<compile_context>
chip_gen: v7x
topology: tpu7x:2x2x1
jax: 0.10.0
libtpu: 0.0.40
codegen_flags: <defaults>
</compile_context>

<pallas_src>
import functools

import jax
import jax.numpy as jnp
from jax.experimental import pallas as pl
from jax.experimental.pallas import tpu as pltpu


# ----------------------------------------------------------------------------- kernels

def _fused_conv_matmul_kernel(x_ref, w_ref, b_ref, o_ref, *, relu):
    # x: (TM, K*K*Cin) bf16 patches, w: (K*K*Cin, Cout) bf16, b: (1, Cout) f32
    y = jnp.dot(x_ref[...], w_ref[...], preferred_element_type=jnp.float32)
    y = y + b_ref[...]
    if relu:
        y = jnp.maximum(y, 0.0)
    o_ref[...] = y.astype(o_ref.dtype)          # bf16 store for inter-layer acts


def _final_conv_add_mean_kernel(x_ref, w_ref, b_ref, i2_ref, o_ref, *,
                                batch, spatial):
    # Last DSConv (c3_2) + ReLU, fused with (i2 + i3) and the spatial mean.
    # x: (B*S, K) bf16 patches, w: (K, 256) bf16, b: (1, 256) f32,
    # i2: (B*S, 256) f32  ->  o: (B, 256) f32
    y = jnp.dot(x_ref[...], w_ref[...], preferred_element_type=jnp.float32)
    y = jnp.maximum(y + b_ref[...], 0.0)                       # i3 = ReLU(conv3_2)
    y = y + i2_ref[...].astype(jnp.float32)                    # i2 + i3
    y = y.reshape(batch, spatial, y.shape[-1])
    o_ref[...] = jnp.mean(y, axis=1)                           # mean over spatial


# ----------------------------------------------------------------------------- wrappers

_MAX_TM = 512          # row tile cap (fits v7x's 64 MiB VMEM with room to spare)
_VMEM_LIMIT = 32 << 20  # explicit scoped-VMEM limit (raises v5e's 16 MiB default)


def _round_up(v, m):
    return (v + m - 1) // m * m


def _pick_tm(m):
    """Row tile: >=2 blocks for the largest layers so v7x's two TCs both work."""
    if m >= 256:
        return min(_MAX_TM, max(128, _round_up((m + 1) // 2, 8)))
    return m


def pallas_matmul_bias(x, w, b, relu, out_dtype):
    """x:(M,K) bf16 @ w:(K,N) bf16 + b:(1,N) f32, fused ReLU -> (M,N) out_dtype.

    Ragged last row-block (if any) is masked by Pallas; N is always a multiple
    of 128 (lane-dense stores) thanks to the channel padding in init_params.
    """
    m, k = x.shape
    n = w.shape[1]
    tm = _pick_tm(m)
    return pl.pallas_call(
        functools.partial(_fused_conv_matmul_kernel, relu=relu),
        out_shape=jax.ShapeDtypeStruct((m, n), out_dtype),
        grid=(pl.cdiv(m, tm),),
        in_specs=[
            pl.BlockSpec((tm, k), lambda i: (i, 0)),
            pl.BlockSpec((k, n), lambda i: (0, 0)),
            pl.BlockSpec((1, n), lambda i: (0, 0)),
        ],
        out_specs=pl.BlockSpec((tm, n), lambda i: (i, 0)),
        compiler_params=pltpu.CompilerParams(
            dimension_semantics=("parallel",),
            vmem_limit_bytes=_VMEM_LIMIT),
    )(x, w, b)


def pallas_final_add_mean(patches, w, b, i2_flat, *, batch, spatial):
    """Fused c3_2 matmul + bias + ReLU + (i2 + i3) add + spatial mean -> (B, C)."""
    m, k = patches.shape
    n = w.shape[1]
    return pl.pallas_call(
        functools.partial(_final_conv_add_mean_kernel,
                          batch=batch, spatial=spatial),
        out_shape=jax.ShapeDtypeStruct((batch, n), jnp.float32),
        grid=(1,),
        in_specs=[
            pl.BlockSpec((m, k), lambda i: (0, 0)),
            pl.BlockSpec((k, n), lambda i: (0, 0)),
            pl.BlockSpec((1, n), lambda i: (0, 0)),
            pl.BlockSpec((m, n), lambda i: (0, 0)),
        ],
        out_specs=pl.BlockSpec((batch, n), lambda i: (0, 0)),
        compiler_params=pltpu.CompilerParams(
            dimension_semantics=("arbitrary",),
            vmem_limit_bytes=_VMEM_LIMIT),
    )(patches, w, b, i2_flat)


# ----------------------------------------------------------------------------- glue (im2col, model)

def im2col(x, k, stride, pad):
    """x: (N, H, W, C) -> patches (N*OH*OW, K*K*C) plus output spatial dims.

    Row layout is [tap(0,0) channels..., tap(0,1) channels..., ...] which
    matches the fused weight layout W_fused[kk*Cin + c, Cout].  No dtype cast
    here: activations are already bf16 from the producing kernel.
    """
    n, h, w, c = x.shape
    xp = jnp.pad(x, ((0, 0), (pad, pad), (pad, pad), (0, 0)))
    oh = (h + 2 * pad - k) // stride + 1
    ow = (w + 2 * pad - k) // stride + 1
    cols = []
    for ky in range(k):
        for kx in range(k):
            cols.append(xp[:, ky:ky + stride * oh:stride,
                            kx:kx + stride * ow:stride, :])
    p = jnp.concatenate(cols, axis=-1)               # (N, OH, OW, K*K*C)
    return p.reshape(n * oh * ow, k * k * c), (n, oh, ow)


def dsconv(x, prm, k, stride, pad, out_dtype=jnp.bfloat16):
    """DepthwiseSeparableConv2d + fused trailing ReLU on NHWC input, as ONE matmul."""
    patches, (n, oh, ow) = im2col(x, k, stride, pad)
    out = pallas_matmul_bias(patches, prm["w"], prm["b"], relu=True,
                             out_dtype=out_dtype)
    return out.reshape(n, oh, ow, -1)


def dsconv_add_mean(x, prm, k, stride, pad, i2):
    """Last DSConv of conv3, fused with (i2 + i3) and the spatial mean."""
    patches, (n, oh, ow) = im2col(x, k, stride, pad)
    ni, h2, w2, c2 = i2.shape
    assert (ni, h2, w2) == (n, oh, ow), (
        "conv2 / conv3 outputs must have identical (N, H, W) for i2 + i3")
    s = oh * ow
    return pallas_final_add_mean(patches, prm["w"], prm["b"],
                                 i2.reshape(n * s, c2), batch=n, spatial=s)


def cnn_forward(params, states):
    """CnnModel.forward; states: (B, 3, H, W) NCHW (as in PyTorch) -> (B, 256)."""
    x = jnp.transpose(states, (0, 2, 3, 1)).astype(jnp.bfloat16)  # NCHW->NHWC, one cast
    p = params
    i1 = dsconv(x,  p["c1_1"], 3, 1, 1)
    i1 = dsconv(i1, p["c1_2"], 4, 2, 1)
    i1 = dsconv(i1, p["c1_3"], 4, 2, 1)
    i2 = dsconv(i1, p["c2_1"], 4, 2, 1)
    i2 = dsconv(i2, p["c2_2"], 4, 2, 1, out_dtype=jnp.float32)    # feeds the add+mean
    i3 = dsconv(i1, p["c3_1"], 8, 4, 2)
    return dsconv_add_mean(i3, p["c3_2"], 3, 1, 1, i2)            # (B, 256) f32


# ----------------------------------------------------------------------------- pure-JAX reference (same fused math)

def _ref_dsconv(x, prm, k, stride, pad, out_dtype=jnp.bfloat16):
    patches, (n, oh, ow) = im2col(x, k, stride, pad)
    y = jnp.dot(patches, prm["w"], preferred_element_type=jnp.float32) + prm["b"]
    y = jnp.maximum(y, 0.0)
    return y.astype(out_dtype).reshape(n, oh, ow, -1)


def cnn_forward_ref(params, states):
    x = jnp.transpose(states, (0, 2, 3, 1)).astype(jnp.bfloat16)
    p = params
    i1 = _ref_dsconv(x,  p["c1_1"], 3, 1, 1)
    i1 = _ref_dsconv(i1, p["c1_2"], 4, 2, 1)
    i1 = _ref_dsconv(i1, p["c1_3"], 4, 2, 1)
    i2 = _ref_dsconv(i1, p["c2_1"], 4, 2, 1)
    i2 = _ref_dsconv(i2, p["c2_2"], 4, 2, 1, out_dtype=jnp.float32)
    i3 = _ref_dsconv(i1, p["c3_1"], 8, 4, 2)
    i3 = _ref_dsconv(i3, p["c3_2"], 3, 1, 1, out_dtype=jnp.float32)
    return jnp.mean(i2 + i3, axis=(1, 2))


# ----------------------------------------------------------------------------- params

_LANE = 128


def _init_dsconv_fused(key, cin, cout, k, cin_pad, cout_pad):
    """Init depthwise+pointwise weights, fold into one (K*K*Cin_pad, Cout_pad) matmul.

    Padded output channels have bias exactly 0 (so they stay 0 after ReLU) and
    padded input-channel rows are exactly 0, so numerics match the unpadded net.
    """
    k1, k2, k3, k4 = jax.random.split(key, 4)
    dw_w = jax.random.normal(k1, (k * k, cin), jnp.float32) / jnp.sqrt(k * k)
    dw_b = jax.random.normal(k2, (1, cin), jnp.float32) * 0.01
    pw_w = jax.random.normal(k3, (cin, cout), jnp.float32) / jnp.sqrt(cin)
    pw_b = jax.random.normal(k4, (1, cout), jnp.float32) * 0.01
    w_fused = dw_w[:, :, None] * pw_w[None, :, :]            # (k*k, cin, cout)
    b_fused = dw_b @ pw_w + pw_b                              # (1, cout)
    w_pad = jnp.zeros((k * k, cin_pad, cout_pad), jnp.float32)
    w_pad = w_pad.at[:, :cin, :cout].set(w_fused)
    b_pad = jnp.zeros((1, cout_pad), jnp.float32).at[:, :cout].set(b_fused)
    return dict(w=w_pad.reshape(k * k * cin_pad, cout_pad).astype(jnp.bfloat16),
                b=b_pad)                                      # f32 epilogue bias


def init_params(key):
    keys = jax.random.split(key, 7)
    p = lambda c: _round_up(c, _LANE)     # pad channel counts to lane multiples
    return dict(
        c1_1=_init_dsconv_fused(keys[0], 3,   16,  3, cin_pad=3,      cout_pad=p(16)),
        c1_2=_init_dsconv_fused(keys[1], 16,  32,  4, cin_pad=p(16),  cout_pad=p(32)),
        c1_3=_init_dsconv_fused(keys[2], 32,  64,  4, cin_pad=p(32),  cout_pad=p(64)),
        c2_1=_init_dsconv_fused(keys[3], 64,  128, 4, cin_pad=p(64),  cout_pad=128),
        c2_2=_init_dsconv_fused(keys[4], 128, 256, 4, cin_pad=128,    cout_pad=256),
        c3_1=_init_dsconv_fused(keys[5], 64,  128, 8, cin_pad=p(64),  cout_pad=128),
        c3_2=_init_dsconv_fused(keys[6], 128, 256, 3, cin_pad=128,    cout_pad=256),
    )


# ----------------------------------------------------------------------------- main

if __name__ == "__main__":
    key = jax.random.PRNGKey(0)
    k_in, k_par = jax.random.split(key)

    B, C, H, W = 2, 3, 16, 16
    states = jax.random.normal(k_in, (B, C, H, W), jnp.float32)
    params = init_params(k_par)

    fwd = jax.jit(cnn_forward)
    out = jax.block_until_ready(fwd(params, states))
    assert out.shape == (B, 256) and out.dtype == jnp.float32
    assert bool(jnp.all(jnp.isfinite(out)))

    ref = jax.block_until_ready(jax.jit(cnn_forward_ref)(params, states))
    err = float(jnp.max(jnp.abs(out - ref)) / (jnp.max(jnp.abs(ref)) + 1e-6))
    assert err < 5e-2, f"kernel vs reference mismatch: rel err {err}"

    print("KERNEL_OK")
</pallas_src>

<mosaic_0001>
module attributes {stable_mosaic.version = 11 : i64} {
  func.func @_fused_conv_matmul_kernel(%arg0: i32, %arg1: memref<256x27xbf16, #tpu.memory_space<vmem>>, %arg2: memref<27x128xbf16, #tpu.memory_space<vmem>>, %arg3: memref<1x128xf32, #tpu.memory_space<vmem>>, %arg4: memref<256x128xbf16, #tpu.memory_space<vmem>>) attributes {dimension_semantics = [#tpu.dimension_semantics<parallel>], iteration_bounds = array<i64: 2>, scalar_prefetch = 0 : i64, scratch_operands = 0 : i64, tpu.core_type = #tpu.core_type<tc>, window_params = [{transform_indices = @transform_0, window_bounds = array<i64: 256, 27>}, {pipeline_mode = #tpu.pipeline_mode<synchronous>, transform_indices = @transform_1, window_bounds = array<i64: 27, 128>}, {pipeline_mode = #tpu.pipeline_mode<synchronous>, transform_indices = @transform_2, window_bounds = array<i64: 1, 128>}, {transform_indices = @transform_3, window_bounds = array<i64: 256, 128>}]} {
    %c0 = arith.constant 0 : index
    %c0_0 = arith.constant 0 : index
    %0 = vector.load %arg1[%c0, %c0_0] : memref<256x27xbf16, #tpu.memory_space<vmem>>, vector<256x27xbf16>
    %c0_1 = arith.constant 0 : index
    %c0_2 = arith.constant 0 : index
    %1 = vector.load %arg2[%c0_1, %c0_2] : memref<27x128xbf16, #tpu.memory_space<vmem>>, vector<27x128xbf16>
    %cst = arith.constant dense<0.000000e+00> : vector<256x128xf32>
    %2 = tpu.matmul %0, %1, %cst {dimension_numbers = #tpu.dot_dimension_numbers<[1], [0], [0], [1], [0, 0, 1, 1], [], []>} : vector<256x27xbf16>, vector<27x128xbf16>, vector<256x128xf32> -> vector<256x128xf32>
    %c0_3 = arith.constant 0 : index
    %c0_4 = arith.constant 0 : index
    %3 = vector.load %arg3[%c0_3, %c0_4] : memref<1x128xf32, #tpu.memory_space<vmem>>, vector<1x128xf32>
    %4 = vector.broadcast %3 : vector<1x128xf32> to vector<256x128xf32>
    %5 = arith.addf %2, %4 : vector<256x128xf32>
    %cst_5 = arith.constant 0.000000e+00 : f32
    %6 = vector.broadcast %cst_5 : f32 to vector<256x128xf32>
    %7 = arith.maximumf %5, %6 : vector<256x128xf32>
    %8 = arith.truncf %7 : vector<256x128xf32> to vector<256x128xbf16>
    %c0_6 = arith.constant 0 : index
    %c0_7 = arith.constant 0 : index
    %9 = vector.load %arg4[%c0_6, %c0_7] : memref<256x128xbf16, #tpu.memory_space<vmem>>, vector<256x128xbf16>
    tpu.vector_store %arg4[%c0_6, %c0_7], %8 {strides = array<i32>} : memref<256x128xbf16, #tpu.memory_space<vmem>>, vector<256x128xbf16>,
    return
  }
  func.func @transform_0(%arg0: i32) -> (i32, i32) {
    %c0_i32 = arith.constant 0 : i32
    %c0_i32_0 = arith.constant 0 : i32
    return %arg0, %c0_i32 : i32, i32
  }
  func.func @transform_1(%arg0: i32) -> (i32, i32) {
    %c0_i32 = arith.constant 0 : i32
    %c0_i32_0 = arith.constant 0 : i32
    %c0_i32_1 = arith.constant 0 : i32
    return %c0_i32, %c0_i32_0 : i32, i32
  }
  func.func @transform_2(%arg0: i32) -> (i32, i32) {
    %c0_i32 = arith.constant 0 : i32
    %c0_i32_0 = arith.constant 0 : i32
    %c0_i32_1 = arith.constant 0 : i32
    return %c0_i32, %c0_i32_0 : i32, i32
  }
  func.func @transform_3(%arg0: i32) -> (i32, i32) {
    %c0_i32 = arith.constant 0 : i32
    %c0_i32_0 = arith.constant 0 : i32
    return %arg0, %c0_i32 : i32, i32
  }
}

module attributes {stable_mosaic.version = 11 : i64} {
  func.func @_fused_conv_matmul_kernel(%arg0: i32, %arg1: memref<128x2048xbf16, #tpu.memory_space<vmem>>, %arg2: memref<2048x128xbf16, #tpu.memory_space<vmem>>, %arg3: memref<1x128xf32, #tpu.memory_space<vmem>>, %arg4: memref<128x128xbf16, #tpu.memory_space<vmem>>) attributes {dimension_semantics = [#tpu.dimension_semantics<parallel>], iteration_bounds = array<i64: 1>, scalar_prefetch = 0 : i64, scratch_operands = 0 : i64, tpu.core_type = #tpu.core_type<tc>, window_params = [{transform_indices = @transform_0, window_bounds = array<i64: 128, 2048>}, {pipeline_mode = #tpu.pipeline_mode<synchronous>, transform_indices = @transform_1, window_bounds = array<i64: 2048, 128>}, {pipeline_mode = #tpu.pipeline_mode<synchronous>, transform_indices = @transform_2, window_bounds = array<i64: 1, 128>}, {transform_indices = @transform_3, window_bounds = array<i64: 128, 128>}]} {
    %c0 = arith.constant 0 : index
    %c0_0 = arith.constant 0 : index
    %0 = vector.load %arg1[%c0, %c0_0] : memref<128x2048xbf16, #tpu.memory_space<vmem>>, vector<128x2048xbf16>
    %c0_1 = arith.constant 0 : index
    %c0_2 = arith.constant 0 : index
    %1 = vector.load %arg2[%c0_1, %c0_2] : memref<2048x128xbf16, #tpu.memory_space<vmem>>, vector<2048x128xbf16>
    %cst = arith.constant dense<0.000000e+00> : vector<128x128xf32>
    %2 = tpu.matmul %0, %1, %cst {dimension_numbers = #tpu.dot_dimension_numbers<[1], [0], [0], [1], [0, 0, 1, 1], [], []>} : vector<128x2048xbf16>, vector<2048x128xbf16>, vector<128x128xf32> -> vector<128x128xf32>
    %c0_3 = arith.constant 0 : index
    %c0_4 = arith.constant 0 : index
    %3 = vector.load %arg3[%c0_3, %c0_4] : memref<1x128xf32, #tpu.memory_space<vmem>>, vector<1x128xf32>
    %4 = vector.broadcast %3 : vector<1x128xf32> to vector<128x128xf32>
    %5 = arith.addf %2, %4 : vector<128x128xf32>
    %cst_5 = arith.constant 0.000000e+00 : f32
    %6 = vector.broadcast %cst_5 : f32 to vector<128x128xf32>
    %7 = arith.maximumf %5, %6 : vector<128x128xf32>
    %8 = arith.truncf %7 : vector<128x128xf32> to vector<128x128xbf16>
    %c0_6 = arith.constant 0 : index
    %c0_7 = arith.constant 0 : index
    %9 = vector.load %arg4[%c0_6, %c0_7] : memref<128x128xbf16, #tpu.memory_space<vmem>>, vector<128x128xbf16>
    tpu.vector_store %arg4[%c0_6, %c0_7], %8 {strides = array<i32>} : memref<128x128xbf16, #tpu.memory_space<vmem>>, vector<128x128xbf16>,
    return
  }
  func.func @transform_0(%arg0: i32) -> (i32, i32) {
    %c0_i32 = arith.constant 0 : i32
    %c0_i32_0 = arith.constant 0 : i32
    return %arg0, %c0_i32 : i32, i32
  }
  func.func @transform_1(%arg0: i32) -> (i32, i32) {
    %c0_i32 = arith.constant 0 : i32
    %c0_i32_0 = arith.constant 0 : i32
    %c0_i32_1 = arith.constant 0 : i32
    return %c0_i32, %c0_i32_0 : i32, i32
  }
  func.func @transform_2(%arg0: i32) -> (i32, i32) {
    %c0_i32 = arith.constant 0 : i32
    %c0_i32_0 = arith.constant 0 : i32
    %c0_i32_1 = arith.constant 0 : i32
    return %c0_i32, %c0_i32_0 : i32, i32
  }
  func.func @transform_3(%arg0: i32) -> (i32, i32) {
    %c0_i32 = arith.constant 0 : i32
    %c0_i32_0 = arith.constant 0 : i32
    return %arg0, %c0_i32 : i32, i32
  }
}

module attributes {stable_mosaic.version = 11 : i64} {
  func.func @_fused_conv_matmul_kernel(%arg0: i32, %arg1: memref<32x2048xbf16, #tpu.memory_space<vmem>>, %arg2: memref<2048x128xbf16, #tpu.memory_space<vmem>>, %arg3: memref<1x128xf32, #tpu.memory_space<vmem>>, %arg4: memref<32x128xbf16, #tpu.memory_space<vmem>>) attributes {dimension_semantics = [#tpu.dimension_semantics<parallel>], iteration_bounds = array<i64: 1>, scalar_prefetch = 0 : i64, scratch_operands = 0 : i64, tpu.core_type = #tpu.core_type<tc>, window_params = [{transform_indices = @transform_0, window_bounds = array<i64: 32, 2048>}, {pipeline_mode = #tpu.pipeline_mode<synchronous>, transform_indices = @transform_1, window_bounds = array<i64: 2048, 128>}, {pipeline_mode = #tpu.pipeline_mode<synchronous>, transform_indices = @transform_2, window_bounds = array<i64: 1, 128>}, {transform_indices = @transform_3, window_bounds = array<i64: 32, 128>}]} {
    %c0 = arith.constant 0 : index
    %c0_0 = arith.constant 0 : index
    %0 = vector.load %arg1[%c0, %c0_0] : memref<32x2048xbf16, #tpu.memory_space<vmem>>, vector<32x2048xbf16>
    %c0_1 = arith.constant 0 : index
    %c0_2 = arith.constant 0 : index
    %1 = vector.load %arg2[%c0_1, %c0_2] : memref<2048x128xbf16, #tpu.memory_space<vmem>>, vector<2048x128xbf16>
    %cst = arith.constant dense<0.000000e+00> : vector<32x128xf32>
    %2 = tpu.matmul %0, %1, %cst {dimension_numbers = #tpu.dot_dimension_numbers<[1], [0], [0], [1], [0, 0, 1, 1], [], []>} : vector<32x2048xbf16>, vector<2048x128xbf16>, vector<32x128xf32> -> vector<32x128xf32>
    %c0_3 = arith.constant 0 : index
    %c0_4 = arith.constant 0 : index
    %3 = vector.load %arg3[%c0_3, %c0_4] : memref<1x128xf32, #tpu.memory_space<vmem>>, vector<1x128xf32>
    %4 = vector.broadcast %3 : vector<1x128xf32> to vector<32x128xf32>
    %5 = arith.addf %2, %4 : vector<32x128xf32>
    %cst_5 = arith.constant 0.000000e+00 : f32
    %6 = vector.broadcast %cst_5 : f32 to vector<32x128xf32>
    %7 = arith.maximumf %5, %6 : vector<32x128xf32>
    %8 = arith.truncf %7 : vector<32x128xf32> to vector<32x128xbf16>
    %c0_6 = arith.constant 0 : index
    %c0_7 = arith.constant 0 : index
    %9 = vector.load %arg4[%c0_6, %c0_7] : memref<32x128xbf16, #tpu.memory_space<vmem>>, vector<32x128xbf16>
    tpu.vector_store %arg4[%c0_6, %c0_7], %8 {strides = array<i32>} : memref<32x128xbf16, #tpu.memory_space<vmem>>, vector<32x128xbf16>,
    return
  }
  func.func @transform_0(%arg0: i32) -> (i32, i32) {
    %c0_i32 = arith.constant 0 : i32
    %c0_i32_0 = arith.constant 0 : i32
    return %arg0, %c0_i32 : i32, i32
  }
  func.func @transform_1(%arg0: i32) -> (i32, i32) {
    %c0_i32 = arith.constant 0 : i32
    %c0_i32_0 = arith.constant 0 : i32
    %c0_i32_1 = arith.constant 0 : i32
    return %c0_i32, %c0_i32_0 : i32, i32
  }
  func.func @transform_2(%arg0: i32) -> (i32, i32) {
    %c0_i32 = arith.constant 0 : i32
    %c0_i32_0 = arith.constant 0 : i32
    %c0_i32_1 = arith.constant 0 : i32
    return %c0_i32, %c0_i32_0 : i32, i32
  }
  func.func @transform_3(%arg0: i32) -> (i32, i32) {
    %c0_i32 = arith.constant 0 : i32
    %c0_i32_0 = arith.constant 0 : i32
    return %arg0, %c0_i32 : i32, i32
  }
}

module attributes {stable_mosaic.version = 11 : i64} {
  func.func @_fused_conv_matmul_kernel(%arg0: i32, %arg1: memref<8x2048xbf16, #tpu.memory_space<vmem>>, %arg2: memref<2048x128xbf16, #tpu.memory_space<vmem>>, %arg3: memref<1x128xf32, #tpu.memory_space<vmem>>, %arg4: memref<8x128xbf16, #tpu.memory_space<vmem>>) attributes {dimension_semantics = [#tpu.dimension_semantics<parallel>], iteration_bounds = array<i64: 1>, scalar_prefetch = 0 : i64, scratch_operands = 0 : i64, tpu.core_type = #tpu.core_type<tc>, window_params = [{transform_indices = @transform_0, window_bounds = array<i64: 8, 2048>}, {pipeline_mode = #tpu.pipeline_mode<synchronous>, transform_indices = @transform_1, window_bounds = array<i64: 2048, 128>}, {pipeline_mode = #tpu.pipeline_mode<synchronous>, transform_indices = @transform_2, window_bounds = array<i64: 1, 128>}, {transform_indices = @transform_3, window_bounds = array<i64: 8, 128>}]} {
    %c0 = arith.constant 0 : index
    %c0_0 = arith.constant 0 : index
    %0 = vector.load %arg1[%c0, %c0_0] : memref<8x2048xbf16, #tpu.memory_space<vmem>>, vector<8x2048xbf16>
    %c0_1 = arith.constant 0 : index
    %c0_2 = arith.constant 0 : index
    %1 = vector.load %arg2[%c0_1, %c0_2] : memref<2048x128xbf16, #tpu.memory_space<vmem>>, vector<2048x128xbf16>
    %cst = arith.constant dense<0.000000e+00> : vector<8x128xf32>
    %2 = tpu.matmul %0, %1, %cst {dimension_numbers = #tpu.dot_dimension_numbers<[1], [0], [0], [1], [0, 0, 1, 1], [], []>} : vector<8x2048xbf16>, vector<2048x128xbf16>, vector<8x128xf32> -> vector<8x128xf32>
    %c0_3 = arith.constant 0 : index
    %c0_4 = arith.constant 0 : index
    %3 = vector.load %arg3[%c0_3, %c0_4] : memref<1x128xf32, #tpu.memory_space<vmem>>, vector<1x128xf32>
    %4 = vector.broadcast %3 : vector<1x128xf32> to vector<8x128xf32>
    %5 = arith.addf %2, %4 : vector<8x128xf32>
    %cst_5 = arith.constant 0.000000e+00 : f32
    %6 = vector.broadcast %cst_5 : f32 to vector<8x128xf32>
    %7 = arith.maximumf %5, %6 : vector<8x128xf32>
    %8 = arith.truncf %7 : vector<8x128xf32> to vector<8x128xbf16>
    %c0_6 = arith.constant 0 : index
    %c0_7 = arith.constant 0 : index
    %9 = vector.load %arg4[%c0_6, %c0_7] : memref<8x128xbf16, #tpu.memory_space<vmem>>, vector<8x128xbf16>
    tpu.vector_store %arg4[%c0_6, %c0_7], %8 {strides = array<i32>} : memref<8x128xbf16, #tpu.memory_space<vmem>>, vector<8x128xbf16>,
    return
  }
  func.func @transform_0(%arg0: i32) -> (i32, i32) {
    %c0_i32 = arith.constant 0 : i32
    %c0_i32_0 = arith.constant 0 : i32
    return %arg0, %c0_i32 : i32, i32
  }
  func.func @transform_1(%arg0: i32) -> (i32, i32) {
    %c0_i32 = arith.constant 0 : i32
    %c0_i32_0 = arith.constant 0 : i32
    %c0_i32_1 = arith.constant 0 : i32
    return %c0_i32, %c0_i32_0 : i32, i32
  }
  func.func @transform_2(%arg0: i32) -> (i32, i32) {
    %c0_i32 = arith.constant 0 : i32
    %c0_i32_0 = arith.constant 0 : i32
    %c0_i32_1 = arith.constant 0 : i32
    return %c0_i32, %c0_i32_0 : i32, i32
  }
  func.func @transform_3(%arg0: i32) -> (i32, i32) {
    %c0_i32 = arith.constant 0 : i32
    %c0_i32_0 = arith.constant 0 : i32
    return %arg0, %c0_i32 : i32, i32
  }
}

module attributes {stable_mosaic.version = 11 : i64} {
  func.func @_fused_conv_matmul_kernel(%arg0: i32, %arg1: memref<2x2048xbf16, #tpu.memory_space<vmem>>, %arg2: memref<2048x256xbf16, #tpu.memory_space<vmem>>, %arg3: memref<1x256xf32, #tpu.memory_space<vmem>>, %arg4: memref<2x256xf32, #tpu.memory_space<vmem>>) attributes {dimension_semantics = [#tpu.dimension_semantics<parallel>], iteration_bounds = array<i64: 1>, scalar_prefetch = 0 : i64, scratch_operands = 0 : i64, tpu.core_type = #tpu.core_type<tc>, window_params = [{transform_indices = @transform_0, window_bounds = array<i64: 2, 2048>}, {pipeline_mode = #tpu.pipeline_mode<synchronous>, transform_indices = @transform_1, window_bounds = array<i64: 2048, 256>}, {pipeline_mode = #tpu.pipeline_mode<synchronous>, transform_indices = @transform_2, window_bounds = array<i64: 1, 256>}, {transform_indices = @transform_3, window_bounds = array<i64: 2, 256>}]} {
    %c0 = arith.constant 0 : index
    %c0_0 = arith.constant 0 : index
    %0 = vector.load %arg1[%c0, %c0_0] : memref<2x2048xbf16, #tpu.memory_space<vmem>>, vector<2x2048xbf16>
    %c0_1 = arith.constant 0 : index
    %c0_2 = arith.constant 0 : index
    %1 = vector.load %arg2[%c0_1, %c0_2] : memref<2048x256xbf16, #tpu.memory_space<vmem>>, vector<2048x256xbf16>
    %cst = arith.constant dense<0.000000e+00> : vector<2x256xf32>
    %2 = tpu.matmul %0, %1, %cst {dimension_numbers = #tpu.dot_dimension_numbers<[1], [0], [0], [1], [0, 0, 1, 1], [], []>} : vector<2x2048xbf16>, vector<2048x256xbf16>, vector<2x256xf32> -> vector<2x256xf32>
    %c0_3 = arith.constant 0 : index
    %c0_4 = arith.constant 0 : index
    %3 = vector.load %arg3[%c0_3, %c0_4] : memref<1x256xf32, #tpu.memory_space<vmem>>, vector<1x256xf32>
    %4 = vector.broadcast %3 : vector<1x256xf32> to vector<2x256xf32>
    %5 = arith.addf %2, %4 : vector<2x256xf32>
    %cst_5 = arith.constant 0.000000e+00 : f32
    %6 = vector.broadcast %cst_5 : f32 to vector<2x256xf32>
    %7 = arith.maximumf %5, %6 : vector<2x256xf32>
    %c0_6 = arith.constant 0 : index
    %c0_7 = arith.constant 0 : index
    %8 = vector.load %arg4[%c0_6, %c0_7] : memref<2x256xf32, #tpu.memory_space<vmem>>, vector<2x256xf32>
    tpu.vector_store %arg4[%c0_6, %c0_7], %7 {strides = array<i32>} : memref<2x256xf32, #tpu.memory_space<vmem>>, vector<2x256xf32>,
    return
  }
  func.func @transform_0(%arg0: i32) -> (i32, i32) {
    %c0_i32 = arith.constant 0 : i32
    %c0_i32_0 = arith.constant 0 : i32
    return %arg0, %c0_i32 : i32, i32
  }
  func.func @transform_1(%arg0: i32) -> (i32, i32) {
    %c0_i32 = arith.constant 0 : i32
    %c0_i32_0 = arith.constant 0 : i32
    %c0_i32_1 = arith.constant 0 : i32
    return %c0_i32, %c0_i32_0 : i32, i32
  }
  func.func @transform_2(%arg0: i32) -> (i32, i32) {
    %c0_i32 = arith.constant 0 : i32
    %c0_i32_0 = arith.constant 0 : i32
    %c0_i32_1 = arith.constant 0 : i32
    return %c0_i32, %c0_i32_0 : i32, i32
  }
  func.func @transform_3(%arg0: i32) -> (i32, i32) {
    %c0_i32 = arith.constant 0 : i32
    %c0_i32_0 = arith.constant 0 : i32
    return %arg0, %c0_i32 : i32, i32
  }
}

module attributes {stable_mosaic.version = 11 : i64} {
  func.func @_final_conv_add_mean_kernel(%arg0: i32, %arg1: memref<2x1152xbf16, #tpu.memory_space<vmem>>, %arg2: memref<1152x256xbf16, #tpu.memory_space<vmem>>, %arg3: memref<1x256xf32, #tpu.memory_space<vmem>>, %arg4: memref<2x256xf32, #tpu.memory_space<vmem>>, %arg5: memref<2x256xf32, #tpu.memory_space<vmem>>) attributes {dimension_semantics = [#tpu.dimension_semantics<arbitrary>], iteration_bounds = array<i64: 1>, scalar_prefetch = 0 : i64, scratch_operands = 0 : i64, tpu.core_type = #tpu.core_type<tc>, window_params = [{pipeline_mode = #tpu.pipeline_mode<synchronous>, transform_indices = @transform_0, window_bounds = array<i64: 2, 1152>}, {pipeline_mode = #tpu.pipeline_mode<synchronous>, transform_indices = @transform_1, window_bounds = array<i64: 1152, 256>}, {pipeline_mode = #tpu.pipeline_mode<synchronous>, transform_indices = @transform_2, window_bounds = array<i64: 1, 256>}, {pipeline_mode = #tpu.pipeline_mode<synchronous>, transform_indices = @transform_3, window_bounds = array<i64: 2, 256>}, {pipeline_mode = #tpu.pipeline_mode<synchronous>, transform_indices = @transform_4, window_bounds = array<i64: 2, 256>}]} {
    %c0 = arith.constant 0 : index
    %c0_0 = arith.constant 0 : index
    %0 = vector.load %arg1[%c0, %c0_0] : memref<2x1152xbf16, #tpu.memory_space<vmem>>, vector<2x1152xbf16>
    %c0_1 = arith.constant 0 : index
    %c0_2 = arith.constant 0 : index
    %1 = vector.load %arg2[%c0_1, %c0_2] : memref<1152x256xbf16, #tpu.memory_space<vmem>>, vector<1152x256xbf16>
    %cst = arith.constant dense<0.000000e+00> : vector<2x256xf32>
    %2 = tpu.matmul %0, %1, %cst {dimension_numbers = #tpu.dot_dimension_numbers<[1], [0], [0], [1], [0, 0, 1, 1], [], []>} : vector<2x1152xbf16>, vector<1152x256xbf16>, vector<2x256xf32> -> vector<2x256xf32>
    %c0_3 = arith.constant 0 : index
    %c0_4 = arith.constant 0 : index
    %3 = vector.load %arg3[%c0_3, %c0_4] : memref<1x256xf32, #tpu.memory_space<vmem>>, vector<1x256xf32>
    %4 = vector.broadcast %3 : vector<1x256xf32> to vector<2x256xf32>
    %5 = arith.addf %2, %4 : vector<2x256xf32>
    %cst_5 = arith.constant 0.000000e+00 : f32
    %6 = vector.broadcast %cst_5 : f32 to vector<2x256xf32>
    %7 = arith.maximumf %5, %6 : vector<2x256xf32>
    %c0_6 = arith.constant 0 : index
    %c0_7 = arith.constant 0 : index
    %8 = vector.load %arg4[%c0_6, %c0_7] : memref<2x256xf32, #tpu.memory_space<vmem>>, vector<2x256xf32>
    %9 = arith.addf %7, %8 : vector<2x256xf32>
    %10 = vector.shape_cast %9 : vector<2x256xf32> to vector<2x1x256xf32>
    %cst_8 = arith.constant dense<0.000000e+00> : vector<2x256xf32>
    %11 = vector.multi_reduction <add>, %10, %cst_8 [1] : vector<2x1x256xf32> to vector<2x256xf32>
    %cst_9 = arith.constant 1.000000e+00 : f32
    %12 = vector.broadcast %cst_9 : f32 to vector<2x256xf32>
    %13 = arith.divf %11, %12 : vector<2x256xf32>
    %c0_10 = arith.constant 0 : index
    %c0_11 = arith.constant 0 : index
    %14 = vector.load %arg5[%c0_10, %c0_11] : memref<2x256xf32, #tpu.memory_space<vmem>>, vector<2x256xf32>
    tpu.vector_store %arg5[%c0_10, %c0_11], %13 {strides = array<i32>} : memref<2x256xf32, #tpu.memory_space<vmem>>, vector<2x256xf32>,
    return
  }
  func.func @transform_0(%arg0: i32) -> (i32, i32) {
    %c0_i32 = arith.constant 0 : i32
    %c0_i32_0 = arith.constant 0 : i32
    %c0_i32_1 = arith.constant 0 : i32
    return %c0_i32, %c0_i32_0 : i32, i32
  }
  func.func @transform_1(%arg0: i32) -> (i32, i32) {
    %c0_i32 = arith.constant 0 : i32
    %c0_i32_0 = arith.constant 0 : i32
    %c0_i32_1 = arith.constant 0 : i32
    return %c0_i32, %c0_i32_0 : i32, i32
  }
  func.func @transform_2(%arg0: i32) -> (i32, i32) {
    %c0_i32 = arith.constant 0 : i32
    %c0_i32_0 = arith.constant 0 : i32
    %c0_i32_1 = arith.constant 0 : i32
    return %c0_i32, %c0_i32_0 : i32, i32
  }
  func.func @transform_3(%arg0: i32) -> (i32, i32) {
    %c0_i32 = arith.constant 0 : i32
    %c0_i32_0 = arith.constant 0 : i32
    %c0_i32_1 = arith.constant 0 : i32
    return %c0_i32, %c0_i32_0 : i32, i32
  }
  func.func @transform_4(%arg0: i32) -> (i32, i32) {
    %c0_i32 = arith.constant 0 : i32
    %c0_i32_0 = arith.constant 0 : i32
    %c0_i32_1 = arith.constant 0 : i32
    return %c0_i32, %c0_i32_0 : i32, i32
  }
}

module attributes {stable_mosaic.version = 11 : i64} {
  func.func @_fused_conv_matmul_kernel(%arg0: i32, %arg1: memref<2x8192xbf16, #tpu.memory_space<vmem>>, %arg2: memref<8192x128xbf16, #tpu.memory_space<vmem>>, %arg3: memref<1x128xf32, #tpu.memory_space<vmem>>, %arg4: memref<2x128xbf16, #tpu.memory_space<vmem>>) attributes {dimension_semantics = [#tpu.dimension_semantics<parallel>], iteration_bounds = array<i64: 1>, scalar_prefetch = 0 : i64, scratch_operands = 0 : i64, tpu.core_type = #tpu.core_type<tc>, window_params = [{transform_indices = @transform_0, window_bounds = array<i64: 2, 8192>}, {pipeline_mode = #tpu.pipeline_mode<synchronous>, transform_indices = @transform_1, window_bounds = array<i64: 8192, 128>}, {pipeline_mode = #tpu.pipeline_mode<synchronous>, transform_indices = @transform_2, window_bounds = array<i64: 1, 128>}, {transform_indices = @transform_3, window_bounds = array<i64: 2, 128>}]} {
    %c0 = arith.constant 0 : index
    %c0_0 = arith.constant 0 : index
    %0 = vector.load %arg1[%c0, %c0_0] : memref<2x8192xbf16, #tpu.memory_space<vmem>>, vector<2x8192xbf16>
    %c0_1 = arith.constant 0 : index
    %c0_2 = arith.constant 0 : index
    %1 = vector.load %arg2[%c0_1, %c0_2] : memref<8192x128xbf16, #tpu.memory_space<vmem>>, vector<8192x128xbf16>
    %cst = arith.constant dense<0.000000e+00> : vector<2x128xf32>
    %2 = tpu.matmul %0, %1, %cst {dimension_numbers = #tpu.dot_dimension_numbers<[1], [0], [0], [1], [0, 0, 1, 1], [], []>} : vector<2x8192xbf16>, vector<8192x128xbf16>, vector<2x128xf32> -> vector<2x128xf32>
    %c0_3 = arith.constant 0 : index
    %c0_4 = arith.constant 0 : index
    %3 = vector.load %arg3[%c0_3, %c0_4] : memref<1x128xf32, #tpu.memory_space<vmem>>, vector<1x128xf32>
    %4 = vector.broadcast %3 : vector<1x128xf32> to vector<2x128xf32>
    %5 = arith.addf %2, %4 : vector<2x128xf32>
    %cst_5 = arith.constant 0.000000e+00 : f32
    %6 = vector.broadcast %cst_5 : f32 to vector<2x128xf32>
    %7 = arith.maximumf %5, %6 : vector<2x128xf32>
    %8 = arith.truncf %7 : vector<2x128xf32> to vector<2x128xbf16>
    %c0_6 = arith.constant 0 : index
    %c0_7 = arith.constant 0 : index
    %9 = vector.load %arg4[%c0_6, %c0_7] : memref<2x128xbf16, #tpu.memory_space<vmem>>, vector<2x128xbf16>
    tpu.vector_store %arg4[%c0_6, %c0_7], %8 {strides = array<i32>} : memref<2x128xbf16, #tpu.memory_space<vmem>>, vector<2x128xbf16>,
    return
  }
  func.func @transform_0(%arg0: i32) -> (i32, i32) {
    %c0_i32 = arith.constant 0 : i32
    %c0_i32_0 = arith.constant 0 : i32
    return %arg0, %c0_i32 : i32, i32
  }
  func.func @transform_1(%arg0: i32) -> (i32, i32) {
    %c0_i32 = arith.constant 0 : i32
    %c0_i32_0 = arith.constant 0 : i32
    %c0_i32_1 = arith.constant 0 : i32
    return %c0_i32, %c0_i32_0 : i32, i32
  }
  func.func @transform_2(%arg0: i32) -> (i32, i32) {
    %c0_i32 = arith.constant 0 : i32
    %c0_i32_0 = arith.constant 0 : i32
    %c0_i32_1 = arith.constant 0 : i32
    return %c0_i32, %c0_i32_0 : i32, i32
  }
  func.func @transform_3(%arg0: i32) -> (i32, i32) {
    %c0_i32 = arith.constant 0 : i32
    %c0_i32_0 = arith.constant 0 : i32
    return %arg0, %c0_i32 : i32, i32
  }
}

</mosaic_0001>

<bundles_post_ra>
// kernel: cnn_forward.7
= control target key start
LH: loop header
LB: loop body
LE: loop exit
PB: predicated region body
PF: predicated region fallthrough
CT: control target
= control target key end

     0   :  { %8 = vsyncpa [#allocation3], 0  ;;  %s1428_s0 = inlined_call_operand.vmem [shape: bf16[512,27], index: 0, kind: input, shape index: {}]   ;;  %s1429_s1 = inlined_call_operand.hbm [shape: bf16[27,128], index: 1, kind: input, shape index: {}]   ;;  %s1430_s2 = inlined_call_operand.hbm [shape: f32[1,128], index: 2, kind: input, shape index: {}]   ;;  %s1431_s3 = inlined_call_operand.vmem [shape: bf16[512,128], index: 3, kind: output, shape index: {}]  }
   0x1   :  { %9 = vsyncpa [#allocation5], 0  ;;  %s1238_s12 = smov 0  }
   0x2 LB: > { %s824_s13 = sadd.s32 4294967295, %s1211_s12   ;;  %p826_p0 = scmp.ge.s32.totalorder %s1211_s12, 1  ;;  %s1211_s12 = sphi %s1238_s12, %s15_s12  }
   0x3   : > { %p114_p1 = scmp.lt.s32.totalorder %s1211_s12, 3  ;;  %s1213_s14 = smov [#allocation2]  }
   0x4   : > { %s126_s15 = sshll.u32 %s1213_s14, 4  ;;  %p1252_p3 = scmp.eq.s32.totalorder %s824_s13, 0  ;;  %s127_s15 = int_to_ptr.vmem [resolvable:$true] %s126_s15 }
   0x5   : > { %p1246_p2 = pnand %p826_p0, %p114_p1  ;;  %s1214_s18 = smov [#allocation4]  }
   0x6   : > { %s1436_s17 = scalar_select %p1252_p3, 1, 0 }
   0x7   : > { %s1435_s16 = scalar_select %p1246_p2, 1, 0 }
   0x8   : > { %p1099_p4 = pneg %p1246_p2  ;;  %s140_s19 = sshll.u32 %s1214_s18, 4  ;;  %s1264_s19 = int_to_ptr.vmem [resolvable:$true] %s140_s19 }
   0x9   : > { %s1141_s23 = scalar_lea.hbm %s1429_s1, 256 }
   0xa   : > { %p1260_p5 = pnand %p1252_p3, %p1099_p4  ;;  %p1142_p6 = scmp.ne.s32.totalorder %s1429_s1, %s1141_s23 }
   0xb   : > { %p1148_p10 = scmp.lt.u32.totalorder %s1141_s23, %s1429_s1 }
   0xc   : > { %p1143_p7 = pneg %p1260_p5 }
   0xe   : > { %p1144_p8 = pnand %p1143_p7, %p1142_p6 }
  0x10   : > { %p1145_p9 = pneg %p1144_p8 }
  0x12   : > { %p1150_p11 = pnand %p1148_p10, %p1145_p9 }
  0x14   : > { %1153 = shalt.err (!%p1150_p11)
}
  0x15   : > { %s1154_s28 = scalar_lea.vmem %s127_s15, 256  ;;  %p1162_p1 = scmp.lt.s32.totalorder %s127_s15, %s127_s15 }
  0x16   : > { %p1155_p12 = scmp.ne.s32.totalorder %s127_s15, %s1154_s28  ;;  %p1163_p4 = scmp.lt.s32.totalorder %s1154_s28, %s1154_s28 }
  0x18   : > { %p1157_p13 = pnand %p1155_p12, %p1143_p7  ;;  %p1164_p3 = por %p1163_p4, %p1162_p1 }
  0x1a   : > { %p1158_p0 = pneg %p1157_p13 }
  0x1c   : > { %p1165_p2 = pnand %p1164_p3, %p1158_p0 }
  0x1e   : > { %1168 = shalt.err (!%p1165_p2)
}
  0x1f   : > { %s1215_s29 = smov 64   ;;  %s1216_s30 = smov 4  }
  0x20   : > { %1102 = dma.hbm_to_vmem [thread:$0]  (!%p1260_p5), %s1429_s1, 256, %s127_s15, [#allocation3], %s1215_s29, %s1215_s29, %s1216_s30  }
  0x21   : > { %s1169_s8 = scalar_lea.hbm %s1430_s2, 16 }
  0x22   : > { %p1170_p6 = scmp.ne.s32.totalorder %s1430_s2, %s1169_s8  ;;  %p1176_p8 = scmp.lt.u32.totalorder %s1169_s8, %s1430_s2 }
  0x24   : > { %p1172_p2 = pnand %p1170_p6, %p1143_p7 }
  0x26   : > { %p1173_p3 = pneg %p1172_p2 }
  0x28   : > { %p1178_p9 = pnand %p1176_p8, %p1173_p3 }
  0x2a   : > { %1181 = shalt.err (!%p1178_p9)
}
  0x2b   : > { %s1182_s15 = scalar_lea.vmem %s1264_s19, 16  ;;  %s1189_s18 = scalar_lea.vmem %s1264_s19, 32 }
  0x2c   : > { %p1183_p10 = scmp.ne.s32.totalorder %s1264_s19, %s1182_s15  ;;  %p1190_p13 = scmp.lt.s32.totalorder %s1264_s19, %s1264_s19 }
  0x2d   : > { %p1191_p0 = scmp.lt.s32.totalorder %s1189_s18, %s1182_s15 }
  0x2e   : > { %p1185_p11 = pnand %p1183_p10, %p1143_p7 }
  0x2f   : > { %p1192_p1 = por %p1191_p0, %p1190_p13 }
  0x30   : > { %p1186_p12 = pneg %p1185_p11 }
  0x32   : > { %p1193_p4 = pnand %p1192_p1, %p1186_p12 }
  0x34   : > { %1196 = shalt.err (!%p1193_p4)
}
  0x35   : > { %1105 = dma.hbm_to_vmem [thread:$0]  (!%p1260_p5), %s1430_s2, 16, %s1264_s19, [#allocation5]  }
  0x36   : > { %p1438_p6 = scmp.ne.s32.totalorder %s1435_s16, 0 }
  0x37   : > { %p1439_p7 = scmp.ne.s32.totalorder (!%p1438_p6), %s1436_s17, 0 }
  0x38   : > { %162 = sbr.rel (%p1438_p6) target bundleno = 323 (0x143), region = 32 }
  0x3f   : > { %1202 = dma.done.wait (%p1439_p7), [#allocation3], 256  }
  0x40   : > { %1204 = vsyncadd (%p1439_p7), [#allocation3], 4294967040 }
  0x41   : > { %1206 = dma.done.wait (%p1439_p7), [#allocation5], 16  }
  0x42   : > { %1208 = vsyncadd (%p1439_p7), [#allocation5], 4294967280  ;;  %s833_s20 = sshll.u32 %s824_s13, 5  ;;  %vm386_vm0 = vcmask 1044480   ;;  %vm387_vm1 = vcmask 1045504   ;;  %v1217_v0 = vmov 65535  }
  0x43   : > { %p191_p5 = scmp.lt.s32.totalorder %s833_s20, 63  ;;  %v388_v1 = vsel %vm386_vm0, 4294967295, %v1217_v0  ;;  %vm337_vm2 = vcmask 220160   ;;  %v1123_v2 = vld [vmem:[#allocation2] sm:$0xff]   ;;  %v1124_v4 = vld [vmem:[#allocation2 + $0x8] sm:$0x3f]  }
  0x44   : > { %v389_v3 = vsel %vm387_vm1, %v388_v1, 0  ;;  %1051 = vmatprep.subr.bf16.mxu0 %v1123_v2  ;;  %1087 = vmatprep.subr.bf16.mxu1 %v1123_v2  ;;  %v1368_v22 = vld [vmem:[#allocation4] ss:$0 sm:$0xff] }
  0x45   : > { %s1441_s20 = smov (!%p191_p5, %s833_s20), 63  ;;  %1052 = vmatpush3.bf16.msra.mxu0 %v1123_v2  ;;  %1089 = vmatpush3.bf16.msra.mxu1 %v1123_v2  ;;  %v391_v6 = vand.u32 %v1124_v4, %v389_v3 }
  0x46   : > { %s834_s16 = sshll.u32 %s1441_s20, 2 }
  0x47   : > { %s1334_s24 = scalar_lea.vmem %s1428_s0, %s834_s16  ;;  %1053 = vmatprep.subr.bf16.mxu0 %v391_v6  ;;  %1088 = vmatprep.subr.bf16.mxu1 %v391_v6  ;;  %s1383_s25 = scalar_lea.vmem %s1431_s3, %s834_s16 }
  0x48   : > { %v1125_v5 = vld [vmem:[%s1334_s24] sm:$0xff]   ;;  %v1127_v8 = vld [vmem:[%s1334_s24 + $0x8] sm:$0xff]   ;;  %v1129_v10 = vld [vmem:[%s1334_s24 + $0x10] sm:$0xff]  }
  0x49   : > { %v1126_v7 = vld [vmem:[%s1334_s24 + $0x40] sm:$0xff]   ;;  %1055 = vmatprep.mubr.msk.bf16.mxu0 %vm337_vm2, %v1125_v5  ;;  %v1128_v9 = vld [vmem:[%s1334_s24 + $0x48] sm:$0xff]   ;;  %1054 = vmatpush3.bf16.msra.mxu0 %v391_v6  ;;  %v1130_v11 = vld [vmem:[%s1334_s24 + $0x50] sm:$0xff]  }
  0x4a   : > { %1071 = vmatprep.mubr.msk.bf16.mxu1 %vm337_vm2, %v1126_v7  ;;  %1090 = vmatpush3.bf16.msra.mxu1 %v391_v6  ;;  %v1131_v12 = vld [vmem:[%s1334_s24 + $0x18] sm:$0xff]   ;;  %v1133_v14 = vld [vmem:[%s1334_s24 + $0x20] sm:$0xff]   ;;  %v1135_v16 = vld [vmem:[%s1334_s24 + $0x28] sm:$0xff]  }
  0x4b   : > { %v1132_v13 = vld [vmem:[%s1334_s24 + $0x58] sm:$0xff]   ;;  %v1134_v15 = vld [vmem:[%s1334_s24 + $0x60] sm:$0xff]   ;;  %v1136_v17 = vld [vmem:[%s1334_s24 + $0x68] sm:$0xff]  }
  0x4c   : > { %1056 = vmatmul.mubr.msk.bf16.vlgmr.msra.gmra.mrb[0].mxu0 %vm337_vm2, %v1127_v8  ;;  %v1137_v18 = vld [vmem:[%s1334_s24 + $0x30] sm:$0xff]   ;;  %v1139_v20 = vld [vmem:[%s1334_s24 + $0x38] sm:$0xff]  }
  0x4d   : > { %1072 = vmatmul.mubr.msk.bf16.vlgmr.msra.gmra.mrb[0].mxu1 %vm337_vm2, %v1128_v9  ;;  %1059 = vmatprep.mubr.msk.bf16.mxu0 %vm337_vm2, %v1129_v10  ;;  %v1138_v19 = vld [vmem:[%s1334_s24 + $0x70] sm:$0xff]   ;;  %v1140_v21 = vld [vmem:[%s1334_s24 + $0x78] sm:$0xff]  }
  0x4e   : > { %1075 = vmatprep.mubr.msk.bf16.mxu1 %vm337_vm2, %v1130_v11 }
  0x54   : > { %1060 = vmatmul.mubr.msk.bf16.gmra.mrb[4].mxu0 %vm337_vm2, %v1131_v12 }
  0x55   : > { %1076 = vmatmul.mubr.msk.bf16.gmra.mrb[4].mxu1 %vm337_vm2, %v1132_v13  ;;  %1063 = vmatprep.mubr.msk.bf16.mxu0 %vm337_vm2, %v1133_v14 }
  0x56   : > { %1079 = vmatprep.mubr.msk.bf16.mxu1 %vm337_vm2, %v1134_v15 }
  0x5c   : > { %1064 = vmatmul.mubr.msk.bf16.gmra.mrb[8].mxu0 %vm337_vm2, %v1135_v16 }
  0x5d   : > { %1080 = vmatmul.mubr.msk.bf16.gmra.mrb[8].mxu1 %vm337_vm2, %v1136_v17  ;;  %1067 = vmatprep.mubr.msk.bf16.mxu0 %vm337_vm2, %v1137_v18 }
  0x5e   : > { %1083 = vmatprep.mubr.msk.bf16.mxu1 %vm337_vm2, %v1138_v19 }
  0x64   : > { %1068 = vmatmul.mubr.msk.bf16.gmra.mrb[12].mxu0 %vm337_vm2, %v1139_v20 }
  0x65   : > { %1084 = vmatmul.mubr.msk.bf16.gmra.mrb[12].mxu1 %vm337_vm2, %v1140_v21 }
 0x11f   : > { %v1057_v23 = vpop.f32.mrb[0].mxu0 }
 0x120   : > { %v1073_v24 = vpop.f32.mrb[0].mxu1  ;;  %v436_v25 = vadd.f32 %v1057_v23, %v1368_v22  ;;  %v427_v27 = vpop.f32.mrb[1].mxu0 }
 0x121   : > { %v500_v26 = vadd.f32 %v1073_v24, %v1368_v22  ;;  %v491_v28 = vpop.f32.mrb[1].mxu1  ;;  %v428_v29 = vadd.f32 %v1368_v22, %v427_v27  ;;  %v1058_v31 = vpop.f32.mrb[2].mxu0 }
 0x122   : > { %v492_v30 = vadd.f32 %v1368_v22, %v491_v28  ;;  %v1074_v32 = vpop.f32.mrb[2].mxu1  ;;  %v439_v33 = vadd.f32 %v1058_v31, %v1368_v22  ;;  %v430_v35 = vpop.f32.mrb[3].mxu0  ;;  %v556_v39 = vmax.f32 %v436_v25, 0.0 }
 0x123   : > { %v503_v34 = vadd.f32 %v1074_v32, %v1368_v22  ;;  %v494_v36 = vpop.f32.mrb[3].mxu1  ;;  %v431_v37 = vadd.f32 %v1368_v22, %v430_v35  ;;  %v572_v40 = vmax.f32 %v500_v26, 0.0  ;;  %v554_v43 = vmax.f32 %v428_v29, 0.0 }
 0x124   : > { %v495_v38 = vadd.f32 %v1368_v22, %v494_v36  ;;  %v557_v41 = vmax.f32 %v439_v33, 0.0  ;;  %v570_v44 = vmax.f32 %v492_v30, 0.0 }
 0x125   : > { %v573_v42 = vmax.f32 %v503_v34, 0.0  ;;  %v555_v45 = vmax.f32 %v431_v37, 0.0 }
 0x126   : > { %v571_v46 = vmax.f32 %v495_v38, 0.0  ;;  %v946_v47 = vpack.c.bf16 %v557_v41, %v556_v39 }
 0x127   : > { %v986_v48 = vpack.c.bf16 %v573_v42, %v572_v40  ;;  %v941_v49 = vpack.c.bf16 %v555_v45, %v554_v43  ;;  %v1061_v51 = vpop.f32.mrb[4].mxu0 }
 0x128   : > { %v981_v50 = vpack.c.bf16 %v571_v46, %v570_v44  ;;  %v1077_v52 = vpop.f32.mrb[4].mxu1  ;;  %1018 = vst [vmem:[%s1383_s25 + $0x8] sm:$0xff] %v946_v47   ;;  %v452_v53 = vadd.f32 %v1061_v51, %v1368_v22  ;;  %v443_v55 = vpop.f32.mrb[5].mxu0 }
 0x129   : > { %1026 = vst [vmem:[%s1383_s25 + $0x48] sm:$0xff] %v986_v48   ;;  %v516_v54 = vadd.f32 %v1077_v52, %v1368_v22  ;;  %v507_v56 = vpop.f32.mrb[5].mxu1  ;;  %942 = vst [vmem:[%s1383_s25] sm:$0xff] %v941_v49   ;;  %v444_v57 = vadd.f32 %v1368_v22, %v443_v55  ;;  %v1062_v59 = vpop.f32.mrb[6].mxu0 }
 0x12a   : > { %1025 = vst [vmem:[%s1383_s25 + $0x40] sm:$0xff] %v981_v50   ;;  %v508_v58 = vadd.f32 %v1368_v22, %v507_v56  ;;  %v1078_v60 = vpop.f32.mrb[6].mxu1  ;;  %v455_v61 = vadd.f32 %v1062_v59, %v1368_v22  ;;  %v446_v63 = vpop.f32.mrb[7].mxu0  ;;  %v560_v3 = vmax.f32 %v452_v53, 0.0 }
 0x12b   : > { %v519_v62 = vadd.f32 %v1078_v60, %v1368_v22  ;;  %v510_v0 = vpop.f32.mrb[7].mxu1  ;;  %v447_v1 = vadd.f32 %v1368_v22, %v446_v63  ;;  %v576_v4 = vmax.f32 %v516_v54, 0.0  ;;  %v558_v7 = vmax.f32 %v444_v57, 0.0 }
 0x12c   : > { %v511_v2 = vadd.f32 %v1368_v22, %v510_v0  ;;  %v561_v5 = vmax.f32 %v455_v61, 0.0  ;;  %v574_v8 = vmax.f32 %v508_v58, 0.0 }
 0x12d   : > { %v577_v6 = vmax.f32 %v519_v62, 0.0  ;;  %v559_v9 = vmax.f32 %v447_v1, 0.0 }
 0x12e   : > { %v575_v10 = vmax.f32 %v511_v2, 0.0  ;;  %v956_v11 = vpack.c.bf16 %v561_v5, %v560_v3 }
 0x12f   : > { %v996_v12 = vpack.c.bf16 %v577_v6, %v576_v4  ;;  %v951_v13 = vpack.c.bf16 %v559_v9, %v558_v7  ;;  %v1065_v15 = vpop.f32.mrb[8].mxu0 }
 0x130   : > { %v991_v14 = vpack.c.bf16 %v575_v10, %v574_v8  ;;  %v1081_v16 = vpop.f32.mrb[8].mxu1  ;;  %1020 = vst [vmem:[%s1383_s25 + $0x18] sm:$0xff] %v956_v11   ;;  %v468_v17 = vadd.f32 %v1065_v15, %v1368_v22  ;;  %v459_v19 = vpop.f32.mrb[9].mxu0 }
 0x131   : > { %1028 = vst [vmem:[%s1383_s25 + $0x58] sm:$0xff] %v996_v12   ;;  %v532_v18 = vadd.f32 %v1081_v16, %v1368_v22  ;;  %v523_v20 = vpop.f32.mrb[9].mxu1  ;;  %1019 = vst [vmem:[%s1383_s25 + $0x10] sm:$0xff] %v951_v13   ;;  %v460_v21 = vadd.f32 %v1368_v22, %v459_v19  ;;  %v1066_v24 = vpop.f32.mrb[10].mxu0 }
 0x132   : > { %1027 = vst [vmem:[%s1383_s25 + $0x50] sm:$0xff] %v991_v14   ;;  %v524_v23 = vadd.f32 %v1368_v22, %v523_v20  ;;  %v1082_v25 = vpop.f32.mrb[10].mxu1  ;;  %v471_v26 = vadd.f32 %v1066_v24, %v1368_v22  ;;  %v462_v28 = vpop.f32.mrb[11].mxu0  ;;  %v564_v32 = vmax.f32 %v468_v17, 0.0 }
 0x133   : > { %v535_v27 = vadd.f32 %v1082_v25, %v1368_v22  ;;  %v526_v29 = vpop.f32.mrb[11].mxu1  ;;  %v463_v30 = vadd.f32 %v1368_v22, %v462_v28  ;;  %v580_v33 = vmax.f32 %v532_v18, 0.0  ;;  %v562_v36 = vmax.f32 %v460_v21, 0.0 }
 0x134   : > { %v527_v31 = vadd.f32 %v1368_v22, %v526_v29  ;;  %v565_v34 = vmax.f32 %v471_v26, 0.0  ;;  %v578_v37 = vmax.f32 %v524_v23, 0.0 }
 0x135   : > { %v581_v35 = vmax.f32 %v535_v27, 0.0  ;;  %v563_v38 = vmax.f32 %v463_v30, 0.0 }
 0x136   : > { %v579_v39 = vmax.f32 %v527_v31, 0.0  ;;  %v966_v40 = vpack.c.bf16 %v565_v34, %v564_v32 }
 0x137   : > { %v1006_v41 = vpack.c.bf16 %v581_v35, %v580_v33  ;;  %v961_v42 = vpack.c.bf16 %v563_v38, %v562_v36  ;;  %v1069_v44 = vpop.f32.mrb[12].mxu0 }
 0x138   : > { %v1001_v43 = vpack.c.bf16 %v579_v39, %v578_v37  ;;  %v1085_v45 = vpop.f32.mrb[12].mxu1  ;;  %1022 = vst [vmem:[%s1383_s25 + $0x28] sm:$0xff] %v966_v40   ;;  %v484_v46 = vadd.f32 %v1069_v44, %v1368_v22  ;;  %v475_v48 = vpop.f32.mrb[13].mxu0 }
 0x139   : > { %1030 = vst [vmem:[%s1383_s25 + $0x68] sm:$0xff] %v1006_v41   ;;  %v548_v47 = vadd.f32 %v1085_v45, %v1368_v22  ;;  %v539_v49 = vpop.f32.mrb[13].mxu1  ;;  %1021 = vst [vmem:[%s1383_s25 + $0x20] sm:$0xff] %v961_v42   ;;  %v476_v50 = vadd.f32 %v1368_v22, %v475_v48  ;;  %v1070_v52 = vpop.f32.mrb[14].mxu0 }
 0x13a   : > { %1029 = vst [vmem:[%s1383_s25 + $0x60] sm:$0xff] %v1001_v43   ;;  %v540_v51 = vadd.f32 %v1368_v22, %v539_v49  ;;  %v1086_v53 = vpop.f32.mrb[14].mxu1  ;;  %v487_v54 = vadd.f32 %v1070_v52, %v1368_v22  ;;  %v478_v56 = vpop.f32.mrb[15].mxu0  ;;  %v568_v60 = vmax.f32 %v484_v46, 0.0 }
 0x13b   : > { %v551_v55 = vadd.f32 %v1086_v53, %v1368_v22  ;;  %v542_v57 = vpop.f32.mrb[15].mxu1  ;;  %v479_v58 = vadd.f32 %v1368_v22, %v478_v56  ;;  %v584_v61 = vmax.f32 %v548_v47, 0.0  ;;  %v566_v0 = vmax.f32 %v476_v50, 0.0 }
 0x13c   : > { %v543_v59 = vadd.f32 %v1368_v22, %v542_v57  ;;  %v569_v62 = vmax.f32 %v487_v54, 0.0  ;;  %v582_v1 = vmax.f32 %v540_v51, 0.0 }
 0x13d   : > { %v585_v63 = vmax.f32 %v551_v55, 0.0  ;;  %v567_v2 = vmax.f32 %v479_v58, 0.0 }
 0x13e   : > { %v583_v3 = vmax.f32 %v543_v59, 0.0  ;;  %v976_v4 = vpack.c.bf16 %v569_v62, %v568_v60 }
 0x13f   : > { %v1016_v5 = vpack.c.bf16 %v585_v63, %v584_v61  ;;  %v971_v6 = vpack.c.bf16 %v567_v2, %v566_v0 }
 0x140   : > { %v1011_v7 = vpack.c.bf16 %v583_v3, %v582_v1  ;;  %1024 = vst [vmem:[%s1383_s25 + $0x38] sm:$0xff] %v976_v4  }
 0x141   : > { %1032 = vst [vmem:[%s1383_s25 + $0x78] sm:$0xff] %v1016_v5   ;;  %1023 = vst [vmem:[%s1383_s25 + $0x30] sm:$0xff] %v971_v6  }
 0x142   : > { %1031 = vst [vmem:[%s1383_s25 + $0x70] sm:$0xff] %v1011_v7  }
 0x143 PF: > { %s15_s12 = sadd.s32 1, %s1211_s12  }
 0x144   : > { %p12_p2 = scmp.ge.s32.totalorder %s15_s12, 4  }
 0x146   :  { %14 = sbr.rel (!%p12_p2) target bundleno = 2 (0x2), region = 71 }
 0x14d   :  { %768 = vsyncpa [#allocation3], 1 }
 0x14e   :  { %770 = vsyncpa [#allocation3 + $0x1], 1 }
 0x14f   :  { %771 = vsyncpa [#allocation5], 1 }

// kernel: cnn_forward.9
= control target key start
LH: loop header
LB: loop body
LE: loop exit
PB: predicated region body
PF: predicated region fallthrough
CT: control target
= control target key end

     0   :  { %s2699_s1 = inlined_call_operand.vmem [shape: bf16[2048,128], index: 1, kind: input, shape index: {}]   ;;  %s2700_s0 = inlined_call_operand.vmem [shape: bf16[32,2048], index: 0, kind: input, shape index: {}]   ;;  %s2701_s2 = inlined_call_operand.vmem [shape: f32[1,128], index: 2, kind: input, shape index: {}]   ;;  %s2702_s3 = inlined_call_operand.vmem [shape: bf16[32,128], index: 3, kind: output, shape index: {}]  }
   0x1   :  { %v2062_v0 = vld [vmem:[%s2699_s1 + $0x40] sm:$0xff]   ;;  %v2066_v4 = vld [vmem:[%s2699_s1 + $0x48] sm:$0xff]   ;;  %v2070_v8 = vld [vmem:[%s2699_s1 + $0x50] sm:$0xff]  }
   0x2   :  { %v2063_v1 = vld [vmem:[%s2699_s1 + $0xc0] sm:$0xff]   ;;  %1838 = vmatprep.subr.bf16.mxu0 %v2062_v0  ;;  %v2067_v5 = vld [vmem:[%s2699_s1 + $0xc8] sm:$0xff]   ;;  %v2071_v9 = vld [vmem:[%s2699_s1 + $0xd0] sm:$0xff]  }
   0x3   :  { %v2064_v2 = vld [vmem:[%s2699_s1] sm:$0xff]   ;;  %1866 = vmatprep.subr.bf16.mxu1 %v2063_v1  ;;  %v2068_v6 = vld [vmem:[%s2699_s1 + $0x8] sm:$0xff]   ;;  %v2072_v10 = vld [vmem:[%s2699_s1 + $0x10] sm:$0xff]  }
   0x4   :  { %v2065_v3 = vld [vmem:[%s2699_s1 + $0x80] sm:$0xff]   ;;  %1839 = vmatpush3.bf16.msra.mxu0 %v2064_v2  ;;  %v2069_v7 = vld [vmem:[%s2699_s1 + $0x88] sm:$0xff]   ;;  %v2073_v11 = vld [vmem:[%s2699_s1 + $0x90] sm:$0xff]  }
   0x5   :  { %1867 = vmatpush3.bf16.msra.mxu1 %v2065_v3  ;;  %1840 = vmatprep.subr.bf16.mxu0 %v2066_v4  ;;  %v2074_v12 = vld [vmem:[%s2699_s1 + $0x58] sm:$0xff]   ;;  %v2078_v16 = vld [vmem:[%s2699_s1 + $0x60] sm:$0xff]   ;;  %v2082_v20 = vld [vmem:[%s2699_s1 + $0x68] sm:$0xff]  }
   0x6   :  { %1868 = vmatprep.subr.bf16.mxu1 %v2067_v5  ;;  %v2075_v13 = vld [vmem:[%s2699_s1 + $0xd8] sm:$0xff]   ;;  %v2079_v17 = vld [vmem:[%s2699_s1 + $0xe0] sm:$0xff]   ;;  %v2083_v21 = vld [vmem:[%s2699_s1 + $0xe8] sm:$0xff]  }
   0x7   :  { %v2076_v14 = vld [vmem:[%s2699_s1 + $0x18] sm:$0xff]   ;;  %v2080_v18 = vld [vmem:[%s2699_s1 + $0x20] sm:$0xff]   ;;  %v2084_v22 = vld [vmem:[%s2699_s1 + $0x28] sm:$0xff]  }
   0x8   :  { %1841 = vmatpush3.bf16.msra.mxu0 %v2068_v6  ;;  %v2077_v15 = vld [vmem:[%s2699_s1 + $0x98] sm:$0xff]   ;;  %v2081_v19 = vld [vmem:[%s2699_s1 + $0xa0] sm:$0xff]   ;;  %v2085_v23 = vld [vmem:[%s2699_s1 + $0xa8] sm:$0xff]  }
   0x9   :  { %1869 = vmatpush3.bf16.msra.mxu1 %v2069_v7  ;;  %1842 = vmatprep.subr.bf16.mxu0 %v2070_v8  ;;  %v2086_v24 = vld [vmem:[%s2699_s1 + $0x70] sm:$0xff]   ;;  %v2090_v28 = vld [vmem:[%s2699_s1 + $0x78] sm:$0xff]   ;;  %v15_v32 = vld [vmem:[%s2700_s0] sm:$0xff] }
   0xa   :  { %1870 = vmatprep.subr.bf16.mxu1 %v2071_v9  ;;  %v2087_v25 = vld [vmem:[%s2699_s1 + $0xf0] sm:$0xff]   ;;  %v2091_v29 = vld [vmem:[%s2699_s1 + $0xf8] sm:$0xff]   ;;  %v23_v33 = vld [vmem:[%s2700_s0 + $0x40] sm:$0xff] }
   0xb   :  { %v2088_v26 = vld [vmem:[%s2699_s1 + $0x30] sm:$0xff]   ;;  %v2092_v30 = vld [vmem:[%s2699_s1 + $0x38] sm:$0xff]   ;;  %v16_v34 = vld [vmem:[%s2700_s0 + $0x8] sm:$0xff]  ;;  %v1659_v35 = vcombine.low %v15_v32, %v23_v33  ;;  %v1660_v36 = vcombine.high %v15_v32, %v23_v33 }
   0xc   :  { %1843 = vmatpush3.bf16.msra.mxu0 %v2072_v10  ;;  %v2089_v27 = vld [vmem:[%s2699_s1 + $0xb0] sm:$0xff]   ;;  %v2093_v31 = vld [vmem:[%s2699_s1 + $0xb8] sm:$0xff]   ;;  %v24_v37 = vld [vmem:[%s2700_s0 + $0x48] sm:$0xff] }
   0xd   :  { %1871 = vmatpush3.bf16.msra.mxu1 %v2073_v11  ;;  %1844 = vmatprep.subr.bf16.mxu0 %v2074_v12  ;;  %v1661_v38 = vcombine.low %v16_v34, %v24_v37  ;;  %v1662_v39 = vcombine.high %v16_v34, %v24_v37  ;;  %v2094_v40 = vld [vmem:[%s2699_s1 + $0x140] sm:$0xff]   ;;  %v2098_v44 = vld [vmem:[%s2699_s1 + $0x148] sm:$0xff]   ;;  %v2102_v48 = vld [vmem:[%s2699_s1 + $0x150] sm:$0xff]  }
   0xe   :  { %1872 = vmatprep.subr.bf16.mxu1 %v2075_v13  ;;  %1270 = vmatprep.mubr.bf16.mxu0 %v1660_v36  ;;  %v2095_v41 = vld [vmem:[%s2699_s1 + $0x1c0] sm:$0xff]   ;;  %v2099_v45 = vld [vmem:[%s2699_s1 + $0x1c8] sm:$0xff]   ;;  %v2103_v49 = vld [vmem:[%s2699_s1 + $0x1d0] sm:$0xff]  }
   0xf   :  { %1319 = vmatprep.mubr.bf16.mxu1 %v1662_v39  ;;  %v2096_v42 = vld [vmem:[%s2699_s1 + $0x100] sm:$0xff]   ;;  %v2100_v46 = vld [vmem:[%s2699_s1 + $0x108] sm:$0xff]   ;;  %v2104_v50 = vld [vmem:[%s2699_s1 + $0x110] sm:$0xff]  }
  0x10   :  { %1845 = vmatpush3.bf16.msra.mxu0 %v2076_v14  ;;  %v2097_v43 = vld [vmem:[%s2699_s1 + $0x180] sm:$0xff]   ;;  %v2101_v47 = vld [vmem:[%s2699_s1 + $0x188] sm:$0xff]   ;;  %v2105_v51 = vld [vmem:[%s2699_s1 + $0x190] sm:$0xff]  }
  0x11   :  { %1873 = vmatpush3.bf16.msra.mxu1 %v2077_v15  ;;  %1846 = vmatprep.subr.bf16.mxu0 %v2078_v16  ;;  %v2106_v52 = vld [vmem:[%s2699_s1 + $0x158] sm:$0xff]   ;;  %v2110_v56 = vld [vmem:[%s2699_s1 + $0x160] sm:$0xff]   ;;  %v2114_v60 = vld [vmem:[%s2699_s1 + $0x168] sm:$0xff]  }
  0x12   :  { %1874 = vmatprep.subr.bf16.mxu1 %v2079_v17  ;;  %v2107_v53 = vld [vmem:[%s2699_s1 + $0x1d8] sm:$0xff]   ;;  %v2111_v57 = vld [vmem:[%s2699_s1 + $0x1e0] sm:$0xff]   ;;  %v2115_v61 = vld [vmem:[%s2699_s1 + $0x1e8] sm:$0xff]  }
  0x13   :  { %v2108_v54 = vld [vmem:[%s2699_s1 + $0x118] sm:$0xff]   ;;  %v2112_v58 = vld [vmem:[%s2699_s1 + $0x120] sm:$0xff]   ;;  %v2116_v1 = vld [vmem:[%s2699_s1 + $0x128] sm:$0xff]  }
  0x14   :  { %1847 = vmatpush3.bf16.msra.mxu0 %v2080_v18  ;;  %v2109_v55 = vld [vmem:[%s2699_s1 + $0x198] sm:$0xff]   ;;  %v2113_v59 = vld [vmem:[%s2699_s1 + $0x1a0] sm:$0xff]   ;;  %v2117_v3 = vld [vmem:[%s2699_s1 + $0x1a8] sm:$0xff]  }
  0x15   :  { %1875 = vmatpush3.bf16.msra.mxu1 %v2081_v19  ;;  %1848 = vmatprep.subr.bf16.mxu0 %v2082_v20  ;;  %v31_v62 = vld [vmem:[%s2700_s0 + $0x80] sm:$0xff]  ;;  %v32_v4 = vld [vmem:[%s2700_s0 + $0x88] sm:$0xff]  ;;  %v2118_v8 = vld [vmem:[%s2699_s1 + $0x170] sm:$0xff]  }
  0x16   :  { %1876 = vmatprep.subr.bf16.mxu1 %v2083_v21  ;;  %v39_v63 = vld [vmem:[%s2700_s0 + $0xc0] sm:$0xff]  ;;  %v40_v5 = vld [vmem:[%s2700_s0 + $0xc8] sm:$0xff]  ;;  %v2119_v9 = vld [vmem:[%s2699_s1 + $0x1f0] sm:$0xff]  }
  0x17   :  { %v1676_v0 = vcombine.high %v31_v62, %v39_v63  ;;  %v1675_v2 = vcombine.low %v31_v62, %v39_v63  ;;  %v1678_v6 = vcombine.high %v32_v4, %v40_v5  ;;  %v1677_v7 = vcombine.low %v32_v4, %v40_v5  ;;  %v2120_v10 = vld [vmem:[%s2699_s1 + $0x130] sm:$0xff]   ;;  %v2122_v12 = vld [vmem:[%s2699_s1 + $0x178] sm:$0xff]   ;;  %v20_v4 = vld [vmem:[%s2700_s0 + $0x28] sm:$0xff] }
  0x18   :  { %1849 = vmatpush3.bf16.msra.mxu0 %v2084_v22  ;;  %v2121_v11 = vld [vmem:[%s2699_s1 + $0x1b0] sm:$0xff]   ;;  %v2123_v13 = vld [vmem:[%s2699_s1 + $0x1f8] sm:$0xff]   ;;  %v28_v5 = vld [vmem:[%s2700_s0 + $0x68] sm:$0xff] }
  0x19   :  { %1877 = vmatpush3.bf16.msra.mxu1 %v2085_v23  ;;  %1850 = vmatprep.subr.bf16.mxu0 %v2086_v24  ;;  %v2124_v14 = vld [vmem:[%s2699_s1 + $0x138] sm:$0xff]   ;;  %v17_v16 = vld [vmem:[%s2700_s0 + $0x10] sm:$0xff]  ;;  %v2126_v24 = vld [vmem:[%s2699_s1 + $0x240] sm:$0xff]  }
  0x1a   :  { %1878 = vmatprep.subr.bf16.mxu1 %v2087_v25  ;;  %v2125_v15 = vld [vmem:[%s2699_s1 + $0x1b8] sm:$0xff]   ;;  %v25_v17 = vld [vmem:[%s2700_s0 + $0x50] sm:$0xff]  ;;  %v2127_v25 = vld [vmem:[%s2699_s1 + $0x2c0] sm:$0xff]  }
  0x1b   :  { %v18_v18 = vld [vmem:[%s2700_s0 + $0x18] sm:$0xff]  ;;  %v1663_v20 = vcombine.low %v17_v16, %v25_v17  ;;  %v1664_v21 = vcombine.high %v17_v16, %v25_v17  ;;  %v33_v32 = vld [vmem:[%s2700_s0 + $0x90] sm:$0xff]  ;;  %v35_v16 = vld [vmem:[%s2700_s0 + $0xa0] sm:$0xff] }
  0x1c   :  { %1851 = vmatpush3.bf16.msra.mxu0 %v2088_v26  ;;  %v26_v19 = vld [vmem:[%s2700_s0 + $0x58] sm:$0xff]  ;;  %v2128_v26 = vld [vmem:[%s2699_s1 + $0x200] sm:$0xff]   ;;  %v41_v33 = vld [vmem:[%s2700_s0 + $0xd0] sm:$0xff] }
  0x1d   :  { %1879 = vmatpush3.bf16.msra.mxu1 %v2089_v27  ;;  %1852 = vmatprep.subr.bf16.mxu0 %v2090_v28  ;;  %v1665_v22 = vcombine.low %v18_v18, %v26_v19  ;;  %v1666_v23 = vcombine.high %v18_v18, %v26_v19  ;;  %v2129_v27 = vld [vmem:[%s2699_s1 + $0x280] sm:$0xff]   ;;  %v2130_v28 = vld [vmem:[%s2699_s1 + $0x248] sm:$0xff]   ;;  %v1680_v34 = vcombine.high %v33_v32, %v41_v33  ;;  %v2134_v36 = vld [vmem:[%s2699_s1 + $0x250] sm:$0xff]  }
  0x1e   :  { %1880 = vmatprep.subr.bf16.mxu1 %v2091_v29  ;;  %v2131_v29 = vld [vmem:[%s2699_s1 + $0x2c8] sm:$0xff]   ;;  %v2135_v37 = vld [vmem:[%s2699_s1 + $0x2d0] sm:$0xff]   ;;  %v42_v39 = vld [vmem:[%s2700_s0 + $0xd8] sm:$0xff] }
  0x1f   :  { %v2156_v62 = vld [vmem:[%s2699_s1 + $0x238] sm:$0xff]   ;;  %v43_v17 = vld [vmem:[%s2700_s0 + $0xe0] sm:$0xff] }
  0x20   :  { %1853 = vmatpush3.bf16.msra.mxu0 %v2092_v30  ;;  %v2132_v30 = vld [vmem:[%s2699_s1 + $0x208] sm:$0xff]   ;;  %v2157_v63 = vld [vmem:[%s2699_s1 + $0x2b8] sm:$0xff]   ;;  %v1684_v18 = vcombine.high %v35_v16, %v43_v17  ;;  %v1683_v19 = vcombine.low %v35_v16, %v43_v17 }
  0x21   :  { %1881 = vmatpush3.bf16.msra.mxu1 %v2093_v31  ;;  %1894 = vmatprep.subr.bf16.mxu0 %v2094_v40  ;;  %v2133_v31 = vld [vmem:[%s2699_s1 + $0x288] sm:$0xff]  }
  0x22   :  { %1922 = vmatprep.subr.bf16.mxu1 %v2095_v41  ;;  %v2136_v41 = vld [vmem:[%s2699_s1 + $0x210] sm:$0xff]  }
  0x23   :  { %1271 = vmatmul.mubr.bf16.vlgmr.msra.gmra.mrb[0].mxu0 %v1659_v35  ;;  %v1679_v35 = vcombine.low %v33_v32, %v41_v33  ;;  %v2174_v32 = vld [vmem:[%s2699_s1 + $0x360] sm:$0xff]  }
  0x24   :  { %1320 = vmatmul.mubr.bf16.vlgmr.msra.gmra.mrb[0].mxu1 %v1661_v38  ;;  %1895 = vmatpush3.bf16.msra.mxu0 %v2096_v42  ;;  %v34_v38 = vld [vmem:[%s2700_s0 + $0x98] sm:$0xff]  ;;  %v2175_v33 = vld [vmem:[%s2699_s1 + $0x3e0] sm:$0xff]  }
  0x25   :  { %1923 = vmatpush3.bf16.msra.mxu1 %v2097_v43  ;;  %1896 = vmatprep.subr.bf16.mxu0 %v2098_v44  ;;  %v1682_v40 = vcombine.high %v34_v38, %v42_v39  ;;  %v1681_v42 = vcombine.low %v34_v38, %v42_v39  ;;  %v2137_v43 = vld [vmem:[%s2699_s1 + $0x290] sm:$0xff]   ;;  %v2138_v44 = vld [vmem:[%s2699_s1 + $0x258] sm:$0xff]   ;;  %v2180_v38 = vld [vmem:[%s2699_s1 + $0x328] sm:$0xff]  }
  0x26   :  { %1924 = vmatprep.subr.bf16.mxu1 %v2099_v45  ;;  %1278 = vmatprep.mubr.bf16.mxu0 %v1676_v0  ;;  %v2139_v45 = vld [vmem:[%s2699_s1 + $0x2d8] sm:$0xff]   ;;  %v19_v0 = vld [vmem:[%s2700_s0 + $0x20] sm:$0xff]  ;;  %v2181_v39 = vld [vmem:[%s2699_s1 + $0x3a8] sm:$0xff]  }
  0x27   :  { %1327 = vmatprep.mubr.bf16.mxu1 %v1678_v6  ;;  %v1669_v6 = vcombine.low %v20_v4, %v28_v5 }
  0x28   :  { %1897 = vmatpush3.bf16.msra.mxu0 %v2100_v46  ;;  %v2140_v46 = vld [vmem:[%s2699_s1 + $0x218] sm:$0xff]  }
  0x29   :  { %1925 = vmatpush3.bf16.msra.mxu1 %v2101_v47  ;;  %1898 = vmatprep.subr.bf16.mxu0 %v2102_v48  ;;  %v2141_v47 = vld [vmem:[%s2699_s1 + $0x298] sm:$0xff]   ;;  %v2142_v48 = vld [vmem:[%s2699_s1 + $0x260] sm:$0xff]  }
  0x2a   :  { %1926 = vmatprep.subr.bf16.mxu1 %v2103_v49  ;;  %v2143_v49 = vld [vmem:[%s2699_s1 + $0x2e0] sm:$0xff]  }
  0x2b   :  { %1279 = vmatmul.mubr.bf16.gmra.mrb[4].mxu0 %v1675_v2 }
  0x2c   :  { %1899 = vmatpush3.bf16.msra.mxu0 %v2104_v50  ;;  %1328 = vmatmul.mubr.bf16.gmra.mrb[4].mxu1 %v1677_v7  ;;  %v2144_v50 = vld [vmem:[%s2699_s1 + $0x220] sm:$0xff]   ;;  %v1670_v7 = vcombine.high %v20_v4, %v28_v5 }
  0x2d   :  { %1927 = vmatpush3.bf16.msra.mxu1 %v2105_v51  ;;  %1900 = vmatprep.subr.bf16.mxu0 %v2106_v52  ;;  %v2145_v51 = vld [vmem:[%s2699_s1 + $0x2a0] sm:$0xff]   ;;  %v2146_v52 = vld [vmem:[%s2699_s1 + $0x268] sm:$0xff]  }
  0x2e   :  { %1928 = vmatprep.subr.bf16.mxu1 %v2107_v53  ;;  %1368 = vmatprep.mubr.bf16.mxu0 %v1664_v21  ;;  %v2147_v53 = vld [vmem:[%s2699_s1 + $0x2e8] sm:$0xff]   ;;  %v2167_v21 = vld [vmem:[%s2699_s1 + $0x3d0] sm:$0xff]  }
  0x2f   :  { %1417 = vmatprep.mubr.bf16.mxu1 %v1666_v23  ;;  %v44_v23 = vld [vmem:[%s2700_s0 + $0xe8] sm:$0xff] }
  0x30   :  { %1901 = vmatpush3.bf16.msra.mxu0 %v2108_v54  ;;  %v2148_v54 = vld [vmem:[%s2699_s1 + $0x228] sm:$0xff]  }
  0x31   :  { %1929 = vmatpush3.bf16.msra.mxu1 %v2109_v55  ;;  %1902 = vmatprep.subr.bf16.mxu0 %v2110_v56  ;;  %v2149_v55 = vld [vmem:[%s2699_s1 + $0x2a8] sm:$0xff]   ;;  %v2150_v56 = vld [vmem:[%s2699_s1 + $0x270] sm:$0xff]  }
  0x32   :  { %1930 = vmatprep.subr.bf16.mxu1 %v2111_v57  ;;  %v2151_v57 = vld [vmem:[%s2699_s1 + $0x2f0] sm:$0xff]  }
  0x34   :  { %1903 = vmatpush3.bf16.msra.mxu0 %v2112_v58  ;;  %v2152_v58 = vld [vmem:[%s2699_s1 + $0x230] sm:$0xff]  }
  0x35   :  { %1931 = vmatpush3.bf16.msra.mxu1 %v2113_v59  ;;  %1904 = vmatprep.subr.bf16.mxu0 %v2114_v60  ;;  %v2153_v59 = vld [vmem:[%s2699_s1 + $0x2b0] sm:$0xff]   ;;  %v2154_v60 = vld [vmem:[%s2699_s1 + $0x278] sm:$0xff]  }
  0x36   :  { %1932 = vmatprep.subr.bf16.mxu1 %v2115_v61  ;;  %v2155_v61 = vld [vmem:[%s2699_s1 + $0x2f8] sm:$0xff]  }
  0x38   :  { %1905 = vmatpush3.bf16.msra.mxu0 %v2116_v1  ;;  %v27_v1 = vld [vmem:[%s2700_s0 + $0x60] sm:$0xff] }
  0x39   :  { %1933 = vmatpush3.bf16.msra.mxu1 %v2117_v3  ;;  %1906 = vmatprep.subr.bf16.mxu0 %v2118_v8  ;;  %v1667_v2 = vcombine.low %v19_v0, %v27_v1  ;;  %v1668_v3 = vcombine.high %v19_v0, %v27_v1  ;;  %v2158_v8 = vld [vmem:[%s2699_s1 + $0x340] sm:$0xff]  }
  0x3a   :  { %1934 = vmatprep.subr.bf16.mxu1 %v2119_v9  ;;  %v2159_v9 = vld [vmem:[%s2699_s1 + $0x3c0] sm:$0xff]  }
  0x3c   :  { %1907 = vmatpush3.bf16.msra.mxu0 %v2120_v10  ;;  %v2160_v10 = vld [vmem:[%s2699_s1 + $0x300] sm:$0xff]  }
  0x3d   :  { %1935 = vmatpush3.bf16.msra.mxu1 %v2121_v11  ;;  %1908 = vmatprep.subr.bf16.mxu0 %v2122_v12  ;;  %v2161_v11 = vld [vmem:[%s2699_s1 + $0x380] sm:$0xff]   ;;  %v2162_v12 = vld [vmem:[%s2699_s1 + $0x348] sm:$0xff]  }
  0x3e   :  { %1936 = vmatprep.subr.bf16.mxu1 %v2123_v13  ;;  %v2163_v13 = vld [vmem:[%s2699_s1 + $0x3c8] sm:$0xff]  }
  0x40   :  { %1909 = vmatpush3.bf16.msra.mxu0 %v2124_v14  ;;  %v2164_v14 = vld [vmem:[%s2699_s1 + $0x308] sm:$0xff]  }
  0x41   :  { %1937 = vmatpush3.bf16.msra.mxu1 %v2125_v15  ;;  %1950 = vmatprep.subr.bf16.mxu0 %v2126_v24  ;;  %v2165_v15 = vld [vmem:[%s2699_s1 + $0x388] sm:$0xff]  }
  0x42   :  { %1978 = vmatprep.subr.bf16.mxu1 %v2127_v25  ;;  %v2168_v25 = vld [vmem:[%s2699_s1 + $0x310] sm:$0xff]  }
  0x43   :  { %1369 = vmatmul.mubr.bf16.vlgmr.msra.gmra.mrb[8].mxu0 %v1663_v20  ;;  %v2166_v20 = vld [vmem:[%s2699_s1 + $0x350] sm:$0xff]  }
  0x44   :  { %1418 = vmatmul.mubr.bf16.vlgmr.msra.gmra.mrb[8].mxu1 %v1665_v22  ;;  %1951 = vmatpush3.bf16.msra.mxu0 %v2128_v26  ;;  %v36_v22 = vld [vmem:[%s2700_s0 + $0xa8] sm:$0xff] }
  0x45   :  { %1979 = vmatpush3.bf16.msra.mxu1 %v2129_v27  ;;  %1952 = vmatprep.subr.bf16.mxu0 %v2130_v28  ;;  %v1686_v24 = vcombine.high %v36_v22, %v44_v23  ;;  %v1685_v26 = vcombine.low %v36_v22, %v44_v23  ;;  %v2169_v27 = vld [vmem:[%s2699_s1 + $0x390] sm:$0xff]   ;;  %v2170_v28 = vld [vmem:[%s2699_s1 + $0x358] sm:$0xff]  }
  0x46   :  { %1980 = vmatprep.subr.bf16.mxu1 %v2131_v29  ;;  %1376 = vmatprep.mubr.bf16.mxu0 %v1680_v34  ;;  %v2171_v29 = vld [vmem:[%s2699_s1 + $0x3d8] sm:$0xff]   ;;  %v2176_v34 = vld [vmem:[%s2699_s1 + $0x320] sm:$0xff]  }
  0x47   :  { %1425 = vmatprep.mubr.bf16.mxu1 %v1682_v40  ;;  %v2182_v40 = vld [vmem:[%s2699_s1 + $0x370] sm:$0xff]  }
  0x48   :  { %1953 = vmatpush3.bf16.msra.mxu0 %v2132_v30  ;;  %v2172_v30 = vld [vmem:[%s2699_s1 + $0x318] sm:$0xff]  }
  0x49   :  { %1981 = vmatpush3.bf16.msra.mxu1 %v2133_v31  ;;  %1954 = vmatprep.subr.bf16.mxu0 %v2134_v36  ;;  %v2173_v31 = vld [vmem:[%s2699_s1 + $0x398] sm:$0xff]   ;;  %v2178_v36 = vld [vmem:[%s2699_s1 + $0x368] sm:$0xff]  }
  0x4a   :  { %1982 = vmatprep.subr.bf16.mxu1 %v2135_v37  ;;  %v2179_v37 = vld [vmem:[%s2699_s1 + $0x3e8] sm:$0xff]  }
  0x4b   :  { %1377 = vmatmul.mubr.bf16.gmra.mrb[12].mxu0 %v1679_v35  ;;  %v2177_v35 = vld [vmem:[%s2699_s1 + $0x3a0] sm:$0xff]  }
  0x4c   :  { %1955 = vmatpush3.bf16.msra.mxu0 %v2136_v41  ;;  %1426 = vmatmul.mubr.bf16.gmra.mrb[12].mxu1 %v1681_v42  ;;  %v2183_v41 = vld [vmem:[%s2699_s1 + $0x3f0] sm:$0xff]  }
  0x4d   :  { %1983 = vmatpush3.bf16.msra.mxu1 %v2137_v43  ;;  %1956 = vmatprep.subr.bf16.mxu0 %v2138_v44  ;;  %v2184_v42 = vld [vmem:[%s2699_s1 + $0x330] sm:$0xff]   ;;  %v2186_v44 = vld [vmem:[%s2699_s1 + $0x378] sm:$0xff]  }
  0x4e   :  { %1984 = vmatprep.subr.bf16.mxu1 %v2139_v45  ;;  %1466 = vmatprep.mubr.bf16.mxu0 %v1668_v3  ;;  %v2185_v43 = vld [vmem:[%s2699_s1 + $0x3b0] sm:$0xff]   ;;  %v2187_v45 = vld [vmem:[%s2699_s1 + $0x3f8] sm:$0xff]  }
  0x4f   :  { %1515 = vmatprep.mubr.bf16.mxu1 %v1670_v7 }
  0x50   :  { %1957 = vmatpush3.bf16.msra.mxu0 %v2140_v46  ;;  %v2188_v46 = vld [vmem:[%s2699_s1 + $0x338] sm:$0xff]  }
  0x51   :  { %1985 = vmatpush3.bf16.msra.mxu1 %v2141_v47  ;;  %1958 = vmatprep.subr.bf16.mxu0 %v2142_v48  ;;  %v2189_v47 = vld [vmem:[%s2699_s1 + $0x3b8] sm:$0xff]   ;;  %v21_v48 = vld [vmem:[%s2700_s0 + $0x30] sm:$0xff] }
  0x52   :  { %1986 = vmatprep.subr.bf16.mxu1 %v2143_v49  ;;  %v29_v49 = vld [vmem:[%s2700_s0 + $0x70] sm:$0xff] }
  0x54   :  { %1959 = vmatpush3.bf16.msra.mxu0 %v2144_v50  ;;  %v22_v50 = vld [vmem:[%s2700_s0 + $0x38] sm:$0xff] }
  0x55   :  { %1987 = vmatpush3.bf16.msra.mxu1 %v2145_v51  ;;  %1960 = vmatprep.subr.bf16.mxu0 %v2146_v52  ;;  %v1671_v51 = vcombine.low %v21_v48, %v29_v49  ;;  %v1672_v52 = vcombine.high %v21_v48, %v29_v49 }
  0x56   :  { %1988 = vmatprep.subr.bf16.mxu1 %v2147_v53  ;;  %v30_v53 = vld [vmem:[%s2700_s0 + $0x78] sm:$0xff] }
  0x58   :  { %1961 = vmatpush3.bf16.msra.mxu0 %v2148_v54  ;;  %v37_v54 = vld [vmem:[%s2700_s0 + $0xb0] sm:$0xff] }
  0x59   :  { %1989 = vmatpush3.bf16.msra.mxu1 %v2149_v55  ;;  %1962 = vmatprep.subr.bf16.mxu0 %v2150_v56  ;;  %v45_v55 = vld [vmem:[%s2700_s0 + $0xf0] sm:$0xff]  ;;  %v1673_v56 = vcombine.low %v22_v50, %v30_v53 }
  0x5a   :  { %1990 = vmatprep.subr.bf16.mxu1 %v2151_v57  ;;  %v1674_v57 = vcombine.high %v22_v50, %v30_v53 }
  0x5c   :  { %1963 = vmatpush3.bf16.msra.mxu0 %v2152_v58  ;;  %v1688_v58 = vcombine.high %v37_v54, %v45_v55 }
  0x5d   :  { %1991 = vmatpush3.bf16.msra.mxu1 %v2153_v59  ;;  %1964 = vmatprep.subr.bf16.mxu0 %v2154_v60  ;;  %v38_v59 = vld [vmem:[%s2700_s0 + $0xb8] sm:$0xff] }
  0x5e   :  { %1992 = vmatprep.subr.bf16.mxu1 %v2155_v61  ;;  %v46_v60 = vld [vmem:[%s2700_s0 + $0xf8] sm:$0xff] }
  0x5f   :  { %v1690_v61 = vcombine.high %v38_v59, %v46_v60 }
  0x60   :  { %1965 = vmatpush3.bf16.msra.mxu0 %v2156_v62  ;;  %v1687_v62 = vcombine.low %v37_v54, %v45_v55 }
  0x61   :  { %1993 = vmatpush3.bf16.msra.mxu1 %v2157_v63  ;;  %2006 = vmatprep.subr.bf16.mxu0 %v2158_v8  ;;  %v1689_v63 = vcombine.low %v38_v59, %v46_v60 }
  0x62   :  { %2034 = vmatprep.subr.bf16.mxu1 %v2159_v9 }
  0x63   :  { %1467 = vmatmul.mubr.bf16.vlgmr.msra.gmra.mrb[16].mxu0 %v1667_v2  ;;  %v1658_v2 = vld [vmem:[%s2701_s2] ss:$0 sm:$0xff] }
  0x64   :  { %1516 = vmatmul.mubr.bf16.vlgmr.msra.gmra.mrb[16].mxu1 %v1669_v6  ;;  %2007 = vmatpush3.bf16.msra.mxu0 %v2160_v10 }
  0x65   :  { %2035 = vmatpush3.bf16.msra.mxu1 %v2161_v11  ;;  %2008 = vmatprep.subr.bf16.mxu0 %v2162_v12 }
  0x66   :  { %2036 = vmatprep.subr.bf16.mxu1 %v2163_v13  ;;  %1474 = vmatprep.mubr.bf16.mxu0 %v1684_v18 }
  0x67   :  { %1523 = vmatprep.mubr.bf16.mxu1 %v1686_v24 }
  0x68   :  { %2009 = vmatpush3.bf16.msra.mxu0 %v2164_v14 }
  0x69   :  { %2037 = vmatpush3.bf16.msra.mxu1 %v2165_v15  ;;  %2010 = vmatprep.subr.bf16.mxu0 %v2166_v20 }
  0x6a   :  { %2038 = vmatprep.subr.bf16.mxu1 %v2167_v21 }
  0x6b   :  { %1475 = vmatmul.mubr.bf16.gmra.mrb[20].mxu0 %v1683_v19 }
  0x6c   :  { %2011 = vmatpush3.bf16.msra.mxu0 %v2168_v25  ;;  %1524 = vmatmul.mubr.bf16.gmra.mrb[20].mxu1 %v1685_v26 }
  0x6d   :  { %2039 = vmatpush3.bf16.msra.mxu1 %v2169_v27  ;;  %2012 = vmatprep.subr.bf16.mxu0 %v2170_v28 }
  0x6e   :  { %2040 = vmatprep.subr.bf16.mxu1 %v2171_v29  ;;  %1564 = vmatprep.mubr.bf16.mxu0 %v1672_v52 }
  0x6f   :  { %1613 = vmatprep.mubr.bf16.mxu1 %v1674_v57 }
  0x70   :  { %2013 = vmatpush3.bf16.msra.mxu0 %v2172_v30 }
  0x71   :  { %2041 = vmatpush3.bf16.msra.mxu1 %v2173_v31  ;;  %2014 = vmatprep.subr.bf16.mxu0 %v2174_v32 }
  0x72   :  { %2042 = vmatprep.subr.bf16.mxu1 %v2175_v33 }
  0x74   :  { %2015 = vmatpush3.bf16.msra.mxu0 %v2176_v34 }
  0x75   :  { %2043 = vmatpush3.bf16.msra.mxu1 %v2177_v35  ;;  %2016 = vmatprep.subr.bf16.mxu0 %v2178_v36 }
  0x76   :  { %2044 = vmatprep.subr.bf16.mxu1 %v2179_v37 }
  0x78   :  { %2017 = vmatpush3.bf16.msra.mxu0 %v2180_v38 }
  0x79   :  { %2045 = vmatpush3.bf16.msra.mxu1 %v2181_v39  ;;  %2018 = vmatprep.subr.bf16.mxu0 %v2182_v40 }
  0x7a   :  { %2046 = vmatprep.subr.bf16.mxu1 %v2183_v41 }
  0x7c   :  { %2019 = vmatpush3.bf16.msra.mxu0 %v2184_v42 }
  0x7d   :  { %2047 = vmatpush3.bf16.msra.mxu1 %v2185_v43  ;;  %2020 = vmatprep.subr.bf16.mxu0 %v2186_v44 }
  0x7e   :  { %2048 = vmatprep.subr.bf16.mxu1 %v2187_v45 }
  0x80   :  { %2021 = vmatpush3.bf16.msra.mxu0 %v2188_v46 }
  0x81   :  { %2049 = vmatpush3.bf16.msra.mxu1 %v2189_v47 }
  0x83   :  { %1565 = vmatmul.mubr.bf16.vlgmr.msra.gmra.mrb[24].mxu0 %v1671_v51 }
  0x84   :  { %1614 = vmatmul.mubr.bf16.vlgmr.msra.gmra.mrb[24].mxu1 %v1673_v56  ;;  %1572 = vmatprep.mubr.bf16.mxu0 %v1688_v58 }
  0x85   :  { %1621 = vmatprep.mubr.bf16.mxu1 %v1690_v61 }
  0x8b   :  { %1573 = vmatmul.mubr.bf16.gmra.mrb[28].mxu0 %v1687_v62 }
  0x8c   :  { %1622 = vmatmul.mubr.bf16.gmra.mrb[28].mxu1 %v1689_v63 }
  0xf6   :  { %v1854_v0 = vpop.f32.mrb[0].mxu0 }
  0xf7   :  { %v1882_v1 = vpop.f32.mrb[0].mxu1  ;;  %v1855_v3 = vpop.f32.mrb[1].mxu0 }
  0xf8   :  { %v1856_v4 = vadd.f32 %v1855_v3, %v1854_v0  ;;  %v1883_v5 = vpop.f32.mrb[1].mxu1  ;;  %v1857_v6 = vpop.f32.mrb[2].mxu0 }
  0xf9   :  { %v1884_v7 = vadd.f32 %v1883_v5, %v1882_v1  ;;  %v1885_v8 = vpop.f32.mrb[2].mxu1  ;;  %v1858_v9 = vpop.f32.mrb[3].mxu0 }
  0xfa   :  { %v1273_v10 = vadd.f32 %v1856_v4, %v1658_v2  ;;  %v1859_v11 = vadd.f32 %v1858_v9, %v1857_v6  ;;  %v1886_v12 = vpop.f32.mrb[3].mxu1 }
  0xfb   :  { %v1887_v13 = vadd.f32 %v1886_v12, %v1885_v8 }
  0xfc   :  { %v1322_v14 = vadd.f32 %v1884_v7, %v1273_v10  ;;  %v1276_v15 = vadd.f32 %v1859_v11, %v1658_v2 }
  0xfe   :  { %v1325_v16 = vadd.f32 %v1887_v13, %v1276_v15  ;;  %v1860_v17 = vpop.f32.mrb[4].mxu0 }
  0xff   :  { %v1861_v18 = vpop.f32.mrb[5].mxu0  ;;  %v1888_v21 = vpop.f32.mrb[4].mxu1 }
 0x100   :  { %v1862_v19 = vadd.f32 %v1861_v18, %v1860_v17  ;;  %v1863_v20 = vpop.f32.mrb[6].mxu0  ;;  %v1889_v25 = vpop.f32.mrb[5].mxu1 }
 0x101   :  { %v1864_v22 = vpop.f32.mrb[7].mxu0  ;;  %v1890_v26 = vadd.f32 %v1889_v25, %v1888_v21  ;;  %v1891_v27 = vpop.f32.mrb[6].mxu1 }
 0x102   :  { %v1281_v23 = vadd.f32 %v1862_v19, %v1658_v2  ;;  %v1865_v24 = vadd.f32 %v1864_v22, %v1863_v20  ;;  %v1892_v29 = vpop.f32.mrb[7].mxu1 }
 0x103   :  { %v1893_v31 = vadd.f32 %v1892_v29, %v1891_v27 }
 0x104   :  { %v1284_v28 = vadd.f32 %v1865_v24, %v1658_v2  ;;  %v1330_v30 = vadd.f32 %v1890_v26, %v1281_v23 }
 0x106   :  { %v1333_v32 = vadd.f32 %v1893_v31, %v1284_v28 }
 0x116   :  { %v1910_v33 = vpop.f32.mrb[8].mxu0 }
 0x117   :  { %v1938_v34 = vpop.f32.mrb[8].mxu1  ;;  %v1911_v35 = vpop.f32.mrb[9].mxu0 }
 0x118   :  { %v1939_v36 = vpop.f32.mrb[9].mxu1  ;;  %v1912_v37 = vadd.f32 %v1911_v35, %v1910_v33  ;;  %v1913_v39 = vpop.f32.mrb[10].mxu0 }
 0x119   :  { %v1940_v38 = vadd.f32 %v1939_v36, %v1938_v34  ;;  %v1941_v40 = vpop.f32.mrb[10].mxu1  ;;  %v1914_v41 = vpop.f32.mrb[11].mxu0 }
 0x11a   :  { %v1942_v42 = vpop.f32.mrb[11].mxu1  ;;  %v1371_v43 = vadd.f32 %v1912_v37, %v1322_v14  ;;  %v1915_v44 = vadd.f32 %v1914_v41, %v1913_v39 }
 0x11b   :  { %v1943_v45 = vadd.f32 %v1942_v42, %v1941_v40 }
 0x11c   :  { %v1420_v46 = vadd.f32 %v1940_v38, %v1371_v43  ;;  %v1374_v47 = vadd.f32 %v1915_v44, %v1325_v16 }
 0x11e   :  { %v1423_v48 = vadd.f32 %v1943_v45, %v1374_v47  ;;  %v1916_v49 = vpop.f32.mrb[12].mxu0 }
 0x11f   :  { %v1917_v50 = vpop.f32.mrb[13].mxu0  ;;  %v1944_v55 = vpop.f32.mrb[12].mxu1 }
 0x120   :  { %v1918_v51 = vadd.f32 %v1917_v50, %v1916_v49  ;;  %v1919_v52 = vpop.f32.mrb[14].mxu0  ;;  %v1945_v57 = vpop.f32.mrb[13].mxu1 }
 0x121   :  { %v1920_v53 = vpop.f32.mrb[15].mxu0  ;;  %v1946_v59 = vadd.f32 %v1945_v57, %v1944_v55  ;;  %v1947_v60 = vpop.f32.mrb[14].mxu1 }
 0x122   :  { %v1379_v54 = vadd.f32 %v1918_v51, %v1330_v30  ;;  %v1921_v56 = vadd.f32 %v1920_v53, %v1919_v52  ;;  %v1948_v61 = vpop.f32.mrb[15].mxu1 }
 0x123   :  { %v1949_v63 = vadd.f32 %v1948_v61, %v1947_v60 }
 0x124   :  { %v1382_v58 = vadd.f32 %v1921_v56, %v1333_v32  ;;  %v1428_v62 = vadd.f32 %v1946_v59, %v1379_v54 }
 0x126   :  { %v1431_v0 = vadd.f32 %v1949_v63, %v1382_v58 }
 0x136   :  { %v1966_v1 = vpop.f32.mrb[16].mxu0 }
 0x137   :  { %v1994_v2 = vpop.f32.mrb[16].mxu1  ;;  %v1967_v3 = vpop.f32.mrb[17].mxu0 }
 0x138   :  { %v1968_v4 = vadd.f32 %v1967_v3, %v1966_v1  ;;  %v1995_v5 = vpop.f32.mrb[17].mxu1  ;;  %v1969_v6 = vpop.f32.mrb[18].mxu0 }
 0x139   :  { %v1996_v7 = vadd.f32 %v1995_v5, %v1994_v2  ;;  %v1997_v8 = vpop.f32.mrb[18].mxu1  ;;  %v1970_v9 = vpop.f32.mrb[19].mxu0 }
 0x13a   :  { %v1469_v10 = vadd.f32 %v1968_v4, %v1420_v46  ;;  %v1971_v11 = vadd.f32 %v1970_v9, %v1969_v6  ;;  %v1998_v12 = vpop.f32.mrb[19].mxu1 }
 0x13b   :  { %v1999_v13 = vadd.f32 %v1998_v12, %v1997_v8 }
 0x13c   :  { %v1518_v14 = vadd.f32 %v1996_v7, %v1469_v10  ;;  %v1472_v15 = vadd.f32 %v1971_v11, %v1423_v48 }
 0x13e   :  { %v1521_v16 = vadd.f32 %v1999_v13, %v1472_v15  ;;  %v1972_v17 = vpop.f32.mrb[20].mxu0 }
 0x13f   :  { %v1973_v18 = vpop.f32.mrb[21].mxu0  ;;  %v2000_v21 = vpop.f32.mrb[20].mxu1 }
 0x140   :  { %v1974_v19 = vadd.f32 %v1973_v18, %v1972_v17  ;;  %v1975_v20 = vpop.f32.mrb[22].mxu0  ;;  %v2001_v25 = vpop.f32.mrb[21].mxu1 }
 0x141   :  { %v1976_v22 = vpop.f32.mrb[23].mxu0  ;;  %v2002_v26 = vadd.f32 %v2001_v25, %v2000_v21  ;;  %v2003_v27 = vpop.f32.mrb[22].mxu1 }
 0x142   :  { %v1477_v23 = vadd.f32 %v1974_v19, %v1428_v62  ;;  %v1977_v24 = vadd.f32 %v1976_v22, %v1975_v20  ;;  %v2004_v29 = vpop.f32.mrb[23].mxu1 }
 0x143   :  { %v2005_v31 = vadd.f32 %v2004_v29, %v2003_v27 }
 0x144   :  { %v1480_v28 = vadd.f32 %v1977_v24, %v1431_v0  ;;  %v1526_v30 = vadd.f32 %v2002_v26, %v1477_v23 }
 0x146   :  { %v1529_v32 = vadd.f32 %v2005_v31, %v1480_v28 }
 0x156   :  { %v2022_v33 = vpop.f32.mrb[24].mxu0 }
 0x157   :  { %v2050_v34 = vpop.f32.mrb[24].mxu1  ;;  %v2023_v35 = vpop.f32.mrb[25].mxu0 }
 0x158   :  { %v2024_v36 = vadd.f32 %v2023_v35, %v2022_v33  ;;  %v2051_v37 = vpop.f32.mrb[25].mxu1  ;;  %v2025_v38 = vpop.f32.mrb[26].mxu0 }
 0x159   :  { %v2052_v39 = vadd.f32 %v2051_v37, %v2050_v34  ;;  %v2053_v40 = vpop.f32.mrb[26].mxu1  ;;  %v2026_v41 = vpop.f32.mrb[27].mxu0 }
 0x15a   :  { %v1567_v42 = vadd.f32 %v2024_v36, %v1518_v14  ;;  %v2027_v43 = vadd.f32 %v2026_v41, %v2025_v38  ;;  %v2054_v44 = vpop.f32.mrb[27].mxu1 }
 0x15b   :  { %v2055_v45 = vadd.f32 %v2054_v44, %v2053_v40 }
 0x15c   :  { %v1616_v46 = vadd.f32 %v2052_v39, %v1567_v42  ;;  %v1570_v47 = vadd.f32 %v2027_v43, %v1521_v16 }
 0x15e   :  { %v1619_v48 = vadd.f32 %v2055_v45, %v1570_v47  ;;  %v2028_v49 = vpop.f32.mrb[28].mxu0  ;;  %v1630_v52 = vmax.f32 %v1616_v46, 0.0 }
 0x15f   :  { %v2056_v50 = vpop.f32.mrb[28].mxu1  ;;  %v2029_v51 = vpop.f32.mrb[29].mxu0 }
 0x160   :  { %v1631_v53 = vmax.f32 %v1619_v48, 0.0  ;;  %v2030_v54 = vadd.f32 %v2029_v51, %v2028_v49  ;;  %v2057_v55 = vpop.f32.mrb[29].mxu1  ;;  %v2031_v56 = vpop.f32.mrb[30].mxu0 }
 0x161   :  { %v2058_v57 = vadd.f32 %v2057_v55, %v2056_v50  ;;  %v2059_v58 = vpop.f32.mrb[30].mxu1  ;;  %v2032_v59 = vpop.f32.mrb[31].mxu0 }
 0x162   :  { %v1830_v60 = vpack.c.bf16 %v1631_v53, %v1630_v52  ;;  %v1575_v61 = vadd.f32 %v2030_v54, %v1526_v30  ;;  %v2033_v62 = vadd.f32 %v2032_v59, %v2031_v56  ;;  %v2060_v63 = vpop.f32.mrb[31].mxu1 }
 0x163   :  { %v2061_v0 = vadd.f32 %v2060_v63, %v2059_v58 }
 0x164   :  { %1831 = vst [vmem:[%s2702_s3] sm:$0xff] %v1830_v60   ;;  %v1624_v1 = vadd.f32 %v2058_v57, %v1575_v61  ;;  %v1578_v2 = vadd.f32 %v2033_v62, %v1529_v32 }
 0x166   :  { %v1627_v3 = vadd.f32 %v2061_v0, %v1578_v2  ;;  %v1632_v4 = vmax.f32 %v1624_v1, 0.0 }
 0x168   :  { %v1633_v5 = vmax.f32 %v1627_v3, 0.0 }
 0x16a   :  { %v1835_v6 = vpack.c.bf16 %v1633_v5, %v1632_v4 }
 0x16c   :  { %1837 = vst [vmem:[%s2702_s3 + $0x8] sm:$0xff] %v1835_v6  }

// kernel: cnn_forward.8
= control target key start
LH: loop header
LB: loop body
LE: loop exit
PB: predicated region body
PF: predicated region fallthrough
CT: control target
= control target key end

     0   :  { %s4643_s1 = inlined_call_operand.vmem [shape: bf16[2048,128], index: 1, kind: input, shape index: {}]   ;;  %s4644_s0 = inlined_call_operand.vmem [shape: bf16[128,2048], index: 0, kind: input, shape index: {}]   ;;  %s4645_s2 = inlined_call_operand.vmem [shape: f32[1,128], index: 2, kind: input, shape index: {}]   ;;  %s4646_s3 = inlined_call_operand.vmem [shape: bf16[128,128], index: 3, kind: output, shape index: {}]  }
   0x1   :  { %v3538_v0 = vld [vmem:[%s4643_s1 + $0x40] sm:$0xff]   ;;  %v3542_v4 = vld [vmem:[%s4643_s1 + $0x48] sm:$0xff]   ;;  %v3546_v8 = vld [vmem:[%s4643_s1 + $0x50] sm:$0xff]  }
   0x2   :  { %v3539_v1 = vld [vmem:[%s4643_s1 + $0xc0] sm:$0xff]   ;;  %3026 = vmatprep.subr.bf16.mxu0 %v3538_v0  ;;  %v3543_v5 = vld [vmem:[%s4643_s1 + $0xc8] sm:$0xff]   ;;  %v3547_v9 = vld [vmem:[%s4643_s1 + $0xd0] sm:$0xff]  }
   0x3   :  { %v3540_v2 = vld [vmem:[%s4643_s1] sm:$0xff]   ;;  %3090 = vmatprep.subr.bf16.mxu1 %v3539_v1  ;;  %v3544_v6 = vld [vmem:[%s4643_s1 + $0x8] sm:$0xff]   ;;  %v3548_v10 = vld [vmem:[%s4643_s1 + $0x10] sm:$0xff]  }
   0x4   :  { %v3541_v3 = vld [vmem:[%s4643_s1 + $0x80] sm:$0xff]   ;;  %3027 = vmatpush3.bf16.msra.mxu0 %v3540_v2  ;;  %v3545_v7 = vld [vmem:[%s4643_s1 + $0x88] sm:$0xff]   ;;  %v3549_v11 = vld [vmem:[%s4643_s1 + $0x90] sm:$0xff]  }
   0x5   :  { %3091 = vmatpush3.bf16.msra.mxu1 %v3541_v3  ;;  %3028 = vmatprep.subr.bf16.mxu0 %v3542_v4  ;;  %v3550_v12 = vld [vmem:[%s4643_s1 + $0x58] sm:$0xff]   ;;  %v3554_v16 = vld [vmem:[%s4643_s1 + $0x60] sm:$0xff]   ;;  %v3558_v20 = vld [vmem:[%s4643_s1 + $0x68] sm:$0xff]  }
   0x6   :  { %3092 = vmatprep.subr.bf16.mxu1 %v3543_v5  ;;  %v3551_v13 = vld [vmem:[%s4643_s1 + $0xd8] sm:$0xff]   ;;  %v3555_v17 = vld [vmem:[%s4643_s1 + $0xe0] sm:$0xff]   ;;  %v3559_v21 = vld [vmem:[%s4643_s1 + $0xe8] sm:$0xff]  }
   0x7   :  { %v3552_v14 = vld [vmem:[%s4643_s1 + $0x18] sm:$0xff]   ;;  %v3556_v18 = vld [vmem:[%s4643_s1 + $0x20] sm:$0xff]   ;;  %v3560_v22 = vld [vmem:[%s4643_s1 + $0x28] sm:$0xff]  }
   0x8   :  { %3029 = vmatpush3.bf16.msra.mxu0 %v3544_v6  ;;  %v3553_v15 = vld [vmem:[%s4643_s1 + $0x98] sm:$0xff]   ;;  %v3557_v19 = vld [vmem:[%s4643_s1 + $0xa0] sm:$0xff]   ;;  %v3561_v23 = vld [vmem:[%s4643_s1 + $0xa8] sm:$0xff]  }
   0x9   :  { %3093 = vmatpush3.bf16.msra.mxu1 %v3545_v7  ;;  %3030 = vmatprep.subr.bf16.mxu0 %v3546_v8  ;;  %v3562_v24 = vld [vmem:[%s4643_s1 + $0x70] sm:$0xff]   ;;  %v3566_v28 = vld [vmem:[%s4643_s1 + $0x78] sm:$0xff]   ;;  %v15_v32 = vld [vmem:[%s4644_s0] sm:$0xff] }
   0xa   :  { %3094 = vmatprep.subr.bf16.mxu1 %v3547_v9  ;;  %v3563_v25 = vld [vmem:[%s4643_s1 + $0xf0] sm:$0xff]   ;;  %v3567_v29 = vld [vmem:[%s4643_s1 + $0xf8] sm:$0xff]   ;;  %v23_v33 = vld [vmem:[%s4644_s0 + $0x40] sm:$0xff] }
   0xb   :  { %v3564_v26 = vld [vmem:[%s4643_s1 + $0x30] sm:$0xff]   ;;  %v3568_v30 = vld [vmem:[%s4643_s1 + $0x38] sm:$0xff]   ;;  %v16_v34 = vld [vmem:[%s4644_s0 + $0x8] sm:$0xff]  ;;  %v2691_v35 = vcombine.low %v15_v32, %v23_v33  ;;  %v2692_v36 = vcombine.high %v15_v32, %v23_v33 }
   0xc   :  { %3031 = vmatpush3.bf16.msra.mxu0 %v3548_v10  ;;  %v3565_v27 = vld [vmem:[%s4643_s1 + $0xb0] sm:$0xff]   ;;  %v3569_v31 = vld [vmem:[%s4643_s1 + $0xb8] sm:$0xff]   ;;  %v24_v37 = vld [vmem:[%s4644_s0 + $0x48] sm:$0xff] }
   0xd   :  { %3095 = vmatpush3.bf16.msra.mxu1 %v3549_v11  ;;  %3032 = vmatprep.subr.bf16.mxu0 %v3550_v12  ;;  %v2693_v38 = vcombine.low %v16_v34, %v24_v37  ;;  %v2694_v39 = vcombine.high %v16_v34, %v24_v37  ;;  %v3570_v40 = vld [vmem:[%s4643_s1 + $0x140] sm:$0xff]   ;;  %v32_v47 = vld [vmem:[%s4644_s0 + $0x88] sm:$0xff]  ;;  %v3578_v62 = vld [vmem:[%s4643_s1 + $0x150] sm:$0xff]  }
   0xe   :  { %3096 = vmatprep.subr.bf16.mxu1 %v3551_v13  ;;  %1846 = vmatprep.mubr.bf16.mxu0 %v2692_v36  ;;  %v3571_v41 = vld [vmem:[%s4643_s1 + $0x100] sm:$0xff]   ;;  %v40_v48 = vld [vmem:[%s4644_s0 + $0xc8] sm:$0xff]  ;;  %v3579_v63 = vld [vmem:[%s4643_s1 + $0x110] sm:$0xff]  }
   0xf   :  { %1943 = vmatprep.mubr.bf16.mxu1 %v2694_v39  ;;  %v3572_v42 = vld [vmem:[%s4643_s1 + $0x1c0] sm:$0xff]   ;;  %v2710_v49 = vcombine.high %v32_v47, %v40_v48  ;;  %v3574_v50 = vld [vmem:[%s4643_s1 + $0x148] sm:$0xff]   ;;  %v2709_v53 = vcombine.low %v32_v47, %v40_v48  ;;  %v3580_v0 = vld [vmem:[%s4643_s1 + $0x1d0] sm:$0xff]  }
  0x10   :  { %3033 = vmatpush3.bf16.msra.mxu0 %v3552_v14  ;;  %v3573_v43 = vld [vmem:[%s4643_s1 + $0x180] sm:$0xff]   ;;  %v3575_v52 = vld [vmem:[%s4643_s1 + $0x108] sm:$0xff]   ;;  %v3581_v1 = vld [vmem:[%s4643_s1 + $0x190] sm:$0xff]  }
  0x11   :  { %3097 = vmatpush3.bf16.msra.mxu1 %v3553_v15  ;;  %3034 = vmatprep.subr.bf16.mxu0 %v3554_v16  ;;  %v31_v44 = vld [vmem:[%s4644_s0 + $0x80] sm:$0xff]  ;;  %v3576_v54 = vld [vmem:[%s4643_s1 + $0x1c8] sm:$0xff]   ;;  %v3582_v10 = vld [vmem:[%s4643_s1 + $0x158] sm:$0xff]  }
  0x12   :  { %3098 = vmatprep.subr.bf16.mxu1 %v3555_v17  ;;  %v39_v45 = vld [vmem:[%s4644_s0 + $0xc0] sm:$0xff]  ;;  %v3577_v55 = vld [vmem:[%s4643_s1 + $0x188] sm:$0xff]   ;;  %v3583_v11 = vld [vmem:[%s4643_s1 + $0x118] sm:$0xff]  }
  0x13   :  { %v2708_v46 = vcombine.high %v31_v44, %v39_v45  ;;  %v2707_v51 = vcombine.low %v31_v44, %v39_v45  ;;  %v47_v56 = vld [vmem:[%s4644_s0 + $0x100] sm:$0xff]  ;;  %v48_v58 = vld [vmem:[%s4644_s0 + $0x108] sm:$0xff]  ;;  %v3584_v12 = vld [vmem:[%s4643_s1 + $0x1d8] sm:$0xff]  }
  0x14   :  { %3035 = vmatpush3.bf16.msra.mxu0 %v3556_v18  ;;  %v55_v57 = vld [vmem:[%s4644_s0 + $0x140] sm:$0xff]  ;;  %v56_v59 = vld [vmem:[%s4644_s0 + $0x148] sm:$0xff]  ;;  %v3585_v13 = vld [vmem:[%s4643_s1 + $0x198] sm:$0xff]  }
  0x15   :  { %3099 = vmatpush3.bf16.msra.mxu1 %v3557_v19  ;;  %3036 = vmatprep.subr.bf16.mxu0 %v3558_v20  ;;  %v2724_v60 = vcombine.high %v47_v56, %v55_v57  ;;  %v2726_v61 = vcombine.high %v48_v58, %v56_v59  ;;  %v2723_v2 = vcombine.low %v47_v56, %v55_v57  ;;  %v63_v3 = vld [vmem:[%s4644_s0 + $0x180] sm:$0xff]  ;;  %v64_v5 = vld [vmem:[%s4644_s0 + $0x188] sm:$0xff]  ;;  %v3595_v39 = vld [vmem:[%s4643_s1 + $0x130] sm:$0xff]  }
  0x16   :  { %3100 = vmatprep.subr.bf16.mxu1 %v3559_v21  ;;  %v71_v4 = vld [vmem:[%s4644_s0 + $0x1c0] sm:$0xff]  ;;  %v2725_v6 = vcombine.low %v48_v58, %v56_v59  ;;  %v72_v8 = vld [vmem:[%s4644_s0 + $0x1c8] sm:$0xff]  ;;  %v3599_v48 = vld [vmem:[%s4643_s1 + $0x138] sm:$0xff]  }
  0x17   :  { %v2740_v7 = vcombine.high %v63_v3, %v71_v4  ;;  %v2742_v9 = vcombine.high %v64_v5, %v72_v8  ;;  %v79_v14 = vld [vmem:[%s4644_s0 + $0x200] sm:$0xff]  ;;  %v80_v16 = vld [vmem:[%s4644_s0 + $0x208] sm:$0xff]  ;;  %v2739_v19 = vcombine.low %v63_v3, %v71_v4  ;;  %v2741_v21 = vcombine.low %v64_v5, %v72_v8  ;;  %v26_v3 = vld [vmem:[%s4644_s0 + $0x58] sm:$0xff] }
  0x18   :  { %3037 = vmatpush3.bf16.msra.mxu0 %v3560_v22  ;;  %v87_v15 = vld [vmem:[%s4644_s0 + $0x240] sm:$0xff]  ;;  %v88_v17 = vld [vmem:[%s4644_s0 + $0x248] sm:$0xff]  ;;  %v33_v8 = vld [vmem:[%s4644_s0 + $0x90] sm:$0xff] }
  0x19   :  { %3101 = vmatpush3.bf16.msra.mxu1 %v3561_v23  ;;  %3038 = vmatprep.subr.bf16.mxu0 %v3562_v24  ;;  %v3586_v18 = vld [vmem:[%s4643_s1 + $0x160] sm:$0xff]   ;;  %v2756_v22 = vcombine.high %v79_v14, %v87_v15  ;;  %v2758_v24 = vcombine.high %v80_v16, %v88_v17  ;;  %v3592_v32 = vld [vmem:[%s4643_s1 + $0x1e8] sm:$0xff]   ;;  %v2755_v34 = vcombine.low %v79_v14, %v87_v15 }
  0x1a   :  { %3102 = vmatprep.subr.bf16.mxu1 %v3563_v25  ;;  %v3587_v20 = vld [vmem:[%s4643_s1 + $0x120] sm:$0xff]   ;;  %v3593_v33 = vld [vmem:[%s4643_s1 + $0x1a8] sm:$0xff]  }
  0x1b   :  { %v3588_v23 = vld [vmem:[%s4643_s1 + $0x1e0] sm:$0xff]   ;;  %v112_v44 = vld [vmem:[%s4644_s0 + $0x308] sm:$0xff] }
  0x1c   :  { %3039 = vmatpush3.bf16.msra.mxu0 %v3564_v26  ;;  %v3589_v25 = vld [vmem:[%s4643_s1 + $0x1a0] sm:$0xff]   ;;  %v120_v45 = vld [vmem:[%s4644_s0 + $0x348] sm:$0xff] }
  0x1d   :  { %3103 = vmatpush3.bf16.msra.mxu1 %v3565_v27  ;;  %3040 = vmatprep.subr.bf16.mxu0 %v3566_v28  ;;  %v95_v26 = vld [vmem:[%s4644_s0 + $0x280] sm:$0xff]  ;;  %v3590_v28 = vld [vmem:[%s4643_s1 + $0x168] sm:$0xff]  }
  0x1e   :  { %3104 = vmatprep.subr.bf16.mxu1 %v3567_v29  ;;  %v103_v27 = vld [vmem:[%s4644_s0 + $0x2c0] sm:$0xff]  ;;  %v96_v29 = vld [vmem:[%s4644_s0 + $0x288] sm:$0xff] }
  0x1f   :  { %v2772_v36 = vcombine.high %v95_v26, %v103_v27  ;;  %v2771_v47 = vcombine.low %v95_v26, %v103_v27  ;;  %v3602_v56 = vld [vmem:[%s4643_s1 + $0x240] sm:$0xff]   ;;  %v128_v57 = vld [vmem:[%s4644_s0 + $0x388] sm:$0xff]  ;;  %v3610_v26 = vld [vmem:[%s4643_s1 + $0x250] sm:$0xff]  }
  0x20   :  { %3041 = vmatpush3.bf16.msra.mxu0 %v3568_v30  ;;  %v104_v30 = vld [vmem:[%s4644_s0 + $0x2c8] sm:$0xff]  ;;  %v3604_v58 = vld [vmem:[%s4643_s1 + $0x2c0] sm:$0xff]   ;;  %v3612_v27 = vld [vmem:[%s4643_s1 + $0x2d0] sm:$0xff]  }
  0x21   :  { %3105 = vmatpush3.bf16.msra.mxu1 %v3569_v31  ;;  %3154 = vmatprep.subr.bf16.mxu0 %v3570_v40  ;;  %v3591_v31 = vld [vmem:[%s4643_s1 + $0x128] sm:$0xff]   ;;  %v2774_v37 = vcombine.high %v96_v29, %v104_v30  ;;  %v3596_v40 = vld [vmem:[%s4643_s1 + $0x1f0] sm:$0xff]   ;;  %v3605_v15 = vld [vmem:[%s4643_s1 + $0x280] sm:$0xff]  }
  0x22   :  { %3218 = vmatprep.subr.bf16.mxu1 %v3572_v42  ;;  %v119_v42 = vld [vmem:[%s4644_s0 + $0x340] sm:$0xff]  ;;  %v136_v59 = vld [vmem:[%s4644_s0 + $0x3c8] sm:$0xff] }
  0x23   :  { %1847 = vmatmul.mubr.bf16.vlgmr.msra.gmra.mrb[0].mxu0 %v2691_v35  ;;  %v2757_v35 = vcombine.low %v80_v16, %v88_v17  ;;  %v2805_v5 = vcombine.low %v128_v57, %v136_v59  ;;  %v3606_v17 = vld [vmem:[%s4643_s1 + $0x248] sm:$0xff]  }
  0x24   :  { %1944 = vmatmul.mubr.bf16.vlgmr.msra.gmra.mrb[0].mxu1 %v2693_v38  ;;  %3155 = vmatpush3.bf16.msra.mxu0 %v3571_v41  ;;  %v3594_v38 = vld [vmem:[%s4643_s1 + $0x170] sm:$0xff]   ;;  %v111_v41 = vld [vmem:[%s4644_s0 + $0x300] sm:$0xff] }
  0x25   :  { %3219 = vmatpush3.bf16.msra.mxu1 %v3573_v43  ;;  %1854 = vmatprep.mubr.bf16.mxu0 %v2708_v46  ;;  %v3597_v43 = vld [vmem:[%s4643_s1 + $0x1b0] sm:$0xff]   ;;  %v3598_v46 = vld [vmem:[%s4643_s1 + $0x178] sm:$0xff]  }
  0x26   :  { %1951 = vmatprep.mubr.bf16.mxu1 %v2710_v49  ;;  %3156 = vmatprep.subr.bf16.mxu0 %v3574_v50  ;;  %v2773_v49 = vcombine.low %v96_v29, %v104_v30  ;;  %v2788_v50 = vcombine.high %v111_v41, %v119_v42 }
  0x27   :  { %3220 = vmatprep.subr.bf16.mxu1 %v3576_v54  ;;  %v127_v54 = vld [vmem:[%s4644_s0 + $0x380] sm:$0xff] }
  0x28   :  { %3157 = vmatpush3.bf16.msra.mxu0 %v3575_v52  ;;  %v2790_v52 = vcombine.high %v112_v44, %v120_v45 }
  0x29   :  { %3221 = vmatpush3.bf16.msra.mxu1 %v3577_v55  ;;  %3158 = vmatprep.subr.bf16.mxu0 %v3578_v62  ;;  %v135_v55 = vld [vmem:[%s4644_s0 + $0x3c0] sm:$0xff] }
  0x2a   :  { %3222 = vmatprep.subr.bf16.mxu1 %v3580_v0  ;;  %v2804_v62 = vcombine.high %v127_v54, %v135_v55  ;;  %v17_v0 = vld [vmem:[%s4644_s0 + $0x10] sm:$0xff]  ;;  %v2803_v4 = vcombine.low %v127_v54, %v135_v55  ;;  %v82_v54 = vld [vmem:[%s4644_s0 + $0x218] sm:$0xff] }
  0x2b   :  { %1855 = vmatmul.mubr.bf16.gmra.mrb[4].mxu0 %v2707_v51  ;;  %v3600_v51 = vld [vmem:[%s4643_s1 + $0x1f8] sm:$0xff]  }
  0x2c   :  { %1952 = vmatmul.mubr.bf16.gmra.mrb[4].mxu1 %v2709_v53  ;;  %1862 = vmatprep.mubr.bf16.mxu0 %v2724_v60  ;;  %v3601_v53 = vld [vmem:[%s4643_s1 + $0x1b8] sm:$0xff]   ;;  %v2787_v60 = vcombine.low %v111_v41, %v119_v42  ;;  %v3618_v42 = vld [vmem:[%s4643_s1 + $0x260] sm:$0xff]  }
  0x2d   :  { %1959 = vmatprep.mubr.bf16.mxu1 %v2726_v61  ;;  %3159 = vmatpush3.bf16.msra.mxu0 %v3579_v63  ;;  %v2789_v61 = vcombine.low %v112_v44, %v120_v45  ;;  %v2806_v63 = vcombine.high %v128_v57, %v136_v59  ;;  %v3617_v41 = vld [vmem:[%s4643_s1 + $0x298] sm:$0xff]   ;;  %v3620_v44 = vld [vmem:[%s4643_s1 + $0x2e0] sm:$0xff]   ;;  %v3625_v57 = vld [vmem:[%s4643_s1 + $0x2a8] sm:$0xff]  }
  0x2e   :  { %3223 = vmatpush3.bf16.msra.mxu1 %v3581_v1  ;;  %3160 = vmatprep.subr.bf16.mxu0 %v3582_v10  ;;  %v25_v1 = vld [vmem:[%s4644_s0 + $0x50] sm:$0xff]  ;;  %v90_v55 = vld [vmem:[%s4644_s0 + $0x258] sm:$0xff] }
  0x2f   :  { %3224 = vmatprep.subr.bf16.mxu1 %v3584_v12  ;;  %v2695_v10 = vcombine.low %v17_v0, %v25_v1  ;;  %v34_v12 = vld [vmem:[%s4644_s0 + $0x98] sm:$0xff] }
  0x31   :  { %3161 = vmatpush3.bf16.msra.mxu0 %v3583_v11  ;;  %v3603_v11 = vld [vmem:[%s4643_s1 + $0x200] sm:$0xff]  }
  0x32   :  { %3225 = vmatpush3.bf16.msra.mxu1 %v3585_v13  ;;  %3162 = vmatprep.subr.bf16.mxu0 %v3586_v18  ;;  %v42_v13 = vld [vmem:[%s4644_s0 + $0xd8] sm:$0xff] }
  0x33   :  { %1863 = vmatmul.mubr.bf16.gmra.mrb[8].mxu0 %v2723_v2  ;;  %3226 = vmatprep.subr.bf16.mxu1 %v3588_v23  ;;  %v18_v2 = vld [vmem:[%s4644_s0 + $0x18] sm:$0xff]  ;;  %v2714_v18 = vcombine.high %v34_v12, %v42_v13  ;;  %v57_v23 = vld [vmem:[%s4644_s0 + $0x150] sm:$0xff]  ;;  %v2713_v29 = vcombine.low %v34_v12, %v42_v13  ;;  %v3636_v12 = vld [vmem:[%s4643_s1 + $0x3c0] sm:$0xff]   ;;  %v2761_v13 = vcombine.low %v82_v54, %v90_v55 }
  0x34   :  { %1960 = vmatmul.mubr.bf16.gmra.mrb[8].mxu1 %v2725_v6  ;;  %1870 = vmatprep.mubr.bf16.mxu0 %v2740_v7  ;;  %v2696_v6 = vcombine.high %v17_v0, %v25_v1  ;;  %v2698_v7 = vcombine.high %v18_v2, %v26_v3  ;;  %v2697_v14 = vcombine.low %v18_v2, %v26_v3  ;;  %v3627_v0 = vld [vmem:[%s4643_s1 + $0x230] sm:$0xff]   ;;  %v3630_v2 = vld [vmem:[%s4643_s1 + $0x278] sm:$0xff]  }
  0x35   :  { %1967 = vmatprep.mubr.bf16.mxu1 %v2742_v9  ;;  %3163 = vmatpush3.bf16.msra.mxu0 %v3587_v20  ;;  %v41_v9 = vld [vmem:[%s4644_s0 + $0xd0] sm:$0xff]  ;;  %v3608_v20 = vld [vmem:[%s4643_s1 + $0x2c8] sm:$0xff]  }
  0x36   :  { %3227 = vmatpush3.bf16.msra.mxu1 %v3589_v25  ;;  %3164 = vmatprep.subr.bf16.mxu0 %v3590_v28  ;;  %v2712_v16 = vcombine.high %v33_v8, %v41_v9  ;;  %v58_v25 = vld [vmem:[%s4644_s0 + $0x158] sm:$0xff]  ;;  %v2711_v28 = vcombine.low %v33_v8, %v41_v9  ;;  %v3629_v1 = vld [vmem:[%s4643_s1 + $0x2b0] sm:$0xff]  }
  0x37   :  { %3228 = vmatprep.subr.bf16.mxu1 %v3592_v32  ;;  %v3611_v32 = vld [vmem:[%s4643_s1 + $0x210] sm:$0xff]   ;;  %v3631_v8 = vld [vmem:[%s4643_s1 + $0x238] sm:$0xff]  }
  0x38   :  { %v97_v3 = vld [vmem:[%s4644_s0 + $0x290] sm:$0xff]  ;;  %v3633_v9 = vld [vmem:[%s4643_s1 + $0x2b8] sm:$0xff]  }
  0x39   :  { %3165 = vmatpush3.bf16.msra.mxu0 %v3591_v31 }
  0x3a   :  { %3229 = vmatpush3.bf16.msra.mxu1 %v3593_v33  ;;  %3166 = vmatprep.subr.bf16.mxu0 %v3594_v38  ;;  %v3613_v33 = vld [vmem:[%s4643_s1 + $0x290] sm:$0xff]   ;;  %v66_v38 = vld [vmem:[%s4644_s0 + $0x198] sm:$0xff] }
  0x3b   :  { %1871 = vmatmul.mubr.bf16.gmra.mrb[12].mxu0 %v2739_v19  ;;  %3230 = vmatprep.subr.bf16.mxu1 %v3596_v40  ;;  %v3607_v19 = vld [vmem:[%s4643_s1 + $0x208] sm:$0xff]   ;;  %v3615_v40 = vld [vmem:[%s4643_s1 + $0x218] sm:$0xff]  }
  0x3c   :  { %1968 = vmatmul.mubr.bf16.gmra.mrb[12].mxu1 %v2741_v21  ;;  %1878 = vmatprep.mubr.bf16.mxu0 %v2756_v22  ;;  %v3609_v21 = vld [vmem:[%s4643_s1 + $0x288] sm:$0xff]   ;;  %v49_v22 = vld [vmem:[%s4644_s0 + $0x110] sm:$0xff] }
  0x3d   :  { %1975 = vmatprep.mubr.bf16.mxu1 %v2758_v24  ;;  %3167 = vmatpush3.bf16.msra.mxu0 %v3595_v39  ;;  %v50_v24 = vld [vmem:[%s4644_s0 + $0x118] sm:$0xff]  ;;  %v2728_v30 = vcombine.high %v49_v22, %v57_v23 }
  0x3e   :  { %3231 = vmatpush3.bf16.msra.mxu1 %v3597_v43  ;;  %3168 = vmatprep.subr.bf16.mxu0 %v3598_v46  ;;  %v2730_v31 = vcombine.high %v50_v24, %v58_v25  ;;  %v74_v39 = vld [vmem:[%s4644_s0 + $0x1d8] sm:$0xff]  ;;  %v2727_v43 = vcombine.low %v49_v22, %v57_v23  ;;  %v2729_v45 = vcombine.low %v50_v24, %v58_v25  ;;  %v129_v24 = vld [vmem:[%s4644_s0 + $0x390] sm:$0xff] }
  0x3f   :  { %3232 = vmatprep.subr.bf16.mxu1 %v3600_v51  ;;  %v81_v51 = vld [vmem:[%s4644_s0 + $0x210] sm:$0xff] }
  0x40   :  { %v137_v25 = vld [vmem:[%s4644_s0 + $0x3d0] sm:$0xff] }
  0x41   :  { %3169 = vmatpush3.bf16.msra.mxu0 %v3599_v48  ;;  %v2746_v48 = vcombine.high %v66_v38, %v74_v39 }
  0x42   :  { %3233 = vmatpush3.bf16.msra.mxu1 %v3601_v53  ;;  %3282 = vmatprep.subr.bf16.mxu0 %v3602_v56  ;;  %v89_v53 = vld [vmem:[%s4644_s0 + $0x250] sm:$0xff]  ;;  %v3623_v56 = vld [vmem:[%s4643_s1 + $0x228] sm:$0xff]  }
  0x43   :  { %1879 = vmatmul.mubr.bf16.gmra.mrb[16].mxu0 %v2755_v34  ;;  %3346 = vmatprep.subr.bf16.mxu1 %v3604_v58  ;;  %v3614_v34 = vld [vmem:[%s4643_s1 + $0x258] sm:$0xff]   ;;  %v3626_v58 = vld [vmem:[%s4643_s1 + $0x270] sm:$0xff]  }
  0x44   :  { %1976 = vmatmul.mubr.bf16.gmra.mrb[16].mxu1 %v2757_v35  ;;  %1886 = vmatprep.mubr.bf16.mxu0 %v2772_v36  ;;  %v65_v35 = vld [vmem:[%s4644_s0 + $0x190] sm:$0xff] }
  0x45   :  { %1983 = vmatprep.mubr.bf16.mxu1 %v2774_v37  ;;  %v73_v36 = vld [vmem:[%s4644_s0 + $0x1d0] sm:$0xff]  ;;  %v3616_v37 = vld [vmem:[%s4643_s1 + $0x2d8] sm:$0xff]  }
  0x46   :  { %v2744_v46 = vcombine.high %v65_v35, %v73_v36  ;;  %v2743_v59 = vcombine.low %v65_v35, %v73_v36  ;;  %v28_v35 = vld [vmem:[%s4644_s0 + $0x68] sm:$0xff]  ;;  %v2807_v36 = vcombine.low %v129_v24, %v137_v25 }
  0x4b   :  { %1887 = vmatmul.mubr.bf16.gmra.mrb[20].mxu0 %v2771_v47  ;;  %v3619_v47 = vld [vmem:[%s4643_s1 + $0x220] sm:$0xff]  }
  0x4c   :  { %1984 = vmatmul.mubr.bf16.gmra.mrb[20].mxu1 %v2773_v49  ;;  %1894 = vmatprep.mubr.bf16.mxu0 %v2788_v50  ;;  %v3621_v49 = vld [vmem:[%s4643_s1 + $0x2a0] sm:$0xff]   ;;  %v3622_v50 = vld [vmem:[%s4643_s1 + $0x268] sm:$0xff]  }
  0x4d   :  { %1991 = vmatprep.mubr.bf16.mxu1 %v2790_v52  ;;  %v3624_v52 = vld [vmem:[%s4643_s1 + $0x2e8] sm:$0xff]  }
  0x53   :  { %1895 = vmatmul.mubr.bf16.gmra.mrb[24].mxu0 %v2787_v60  ;;  %v3628_v60 = vld [vmem:[%s4643_s1 + $0x2f0] sm:$0xff]  }
  0x54   :  { %1992 = vmatmul.mubr.bf16.gmra.mrb[24].mxu1 %v2789_v61  ;;  %1902 = vmatprep.mubr.bf16.mxu0 %v2804_v62  ;;  %v2745_v61 = vcombine.low %v66_v38, %v74_v39  ;;  %v2760_v62 = vcombine.high %v81_v51, %v89_v53 }
  0x55   :  { %1999 = vmatprep.mubr.bf16.mxu1 %v2806_v63  ;;  %v2762_v63 = vcombine.high %v82_v54, %v90_v55  ;;  %v51_v54 = vld [vmem:[%s4644_s0 + $0x120] sm:$0xff] }
  0x56   :  { %v59_v55 = vld [vmem:[%s4644_s0 + $0x160] sm:$0xff] }
  0x5b   :  { %1903 = vmatmul.mubr.bf16.gmra.mrb[28].mxu0 %v2803_v4  ;;  %v105_v4 = vld [vmem:[%s4644_s0 + $0x2d0] sm:$0xff] }
  0x5c   :  { %2000 = vmatmul.mubr.bf16.gmra.mrb[28].mxu1 %v2805_v5  ;;  %2040 = vmatprep.mubr.bf16.mxu0 %v2696_v6  ;;  %v3632_v5 = vld [vmem:[%s4643_s1 + $0x2f8] sm:$0xff]  }
  0x5d   :  { %2137 = vmatprep.mubr.bf16.mxu1 %v2698_v7  ;;  %v98_v6 = vld [vmem:[%s4644_s0 + $0x298] sm:$0xff] }
  0x5e   :  { %v106_v7 = vld [vmem:[%s4644_s0 + $0x2d8] sm:$0xff] }
  0x63   :  { %2041 = vmatmul.mubr.bf16.vlgmr.msra.gmra.mrb[32].mxu0 %v2695_v10  ;;  %v3634_v10 = vld [vmem:[%s4643_s1 + $0x340] sm:$0xff]  }
  0x64   :  { %2138 = vmatmul.mubr.bf16.vlgmr.msra.gmra.mrb[32].mxu1 %v2697_v14  ;;  %3283 = vmatpush3.bf16.msra.mxu0 %v3603_v11  ;;  %v2759_v11 = vcombine.low %v81_v51, %v89_v53  ;;  %v2776_v14 = vcombine.high %v97_v3, %v105_v4  ;;  %v3640_v51 = vld [vmem:[%s4643_s1 + $0x3c8] sm:$0xff]  }
  0x65   :  { %3347 = vmatpush3.bf16.msra.mxu1 %v3605_v15  ;;  %2048 = vmatprep.mubr.bf16.mxu0 %v2712_v16  ;;  %v2778_v15 = vcombine.high %v98_v6, %v106_v7  ;;  %v113_v16 = vld [vmem:[%s4644_s0 + $0x310] sm:$0xff]  ;;  %v3641_v53 = vld [vmem:[%s4643_s1 + $0x388] sm:$0xff]  }
  0x66   :  { %2145 = vmatprep.mubr.bf16.mxu1 %v2714_v18  ;;  %3284 = vmatprep.subr.bf16.mxu0 %v3606_v17  ;;  %v121_v17 = vld [vmem:[%s4644_s0 + $0x350] sm:$0xff]  ;;  %v114_v18 = vld [vmem:[%s4644_s0 + $0x318] sm:$0xff] }
  0x67   :  { %3348 = vmatprep.subr.bf16.mxu1 %v3608_v20  ;;  %v2775_v20 = vcombine.low %v97_v3, %v105_v4  ;;  %v2792_v22 = vcombine.high %v113_v16, %v121_v17  ;;  %v3648_v3 = vld [vmem:[%s4643_s1 + $0x3d8] sm:$0xff]   ;;  %v67_v4 = vld [vmem:[%s4644_s0 + $0x1a0] sm:$0xff] }
  0x68   :  { %3285 = vmatpush3.bf16.msra.mxu0 %v3607_v19  ;;  %v122_v19 = vld [vmem:[%s4644_s0 + $0x358] sm:$0xff] }
  0x69   :  { %3349 = vmatpush3.bf16.msra.mxu1 %v3609_v21  ;;  %3286 = vmatprep.subr.bf16.mxu0 %v3610_v26  ;;  %v2777_v21 = vcombine.low %v98_v6, %v106_v7  ;;  %v2794_v23 = vcombine.high %v114_v18, %v122_v19  ;;  %v130_v26 = vld [vmem:[%s4644_s0 + $0x398] sm:$0xff]  ;;  %v68_v6 = vld [vmem:[%s4644_s0 + $0x1a8] sm:$0xff] }
  0x6a   :  { %3350 = vmatprep.subr.bf16.mxu1 %v3612_v27  ;;  %v138_v27 = vld [vmem:[%s4644_s0 + $0x3d8] sm:$0xff] }
  0x6b   :  { %2049 = vmatmul.mubr.bf16.gmra.mrb[36].mxu0 %v2711_v28  ;;  %v2791_v28 = vcombine.low %v113_v16, %v121_v17  ;;  %v3647_v7 = vld [vmem:[%s4643_s1 + $0x318] sm:$0xff]   ;;  %v3651_v16 = vld [vmem:[%s4643_s1 + $0x320] sm:$0xff]  }
  0x6c   :  { %2146 = vmatmul.mubr.bf16.gmra.mrb[36].mxu1 %v2713_v29  ;;  %2056 = vmatprep.mubr.bf16.mxu0 %v2728_v30  ;;  %v2793_v29 = vcombine.low %v114_v18, %v122_v19  ;;  %v2808_v30 = vcombine.high %v129_v24, %v137_v25  ;;  %v3653_v17 = vld [vmem:[%s4643_s1 + $0x3a0] sm:$0xff]   ;;  %v3654_v18 = vld [vmem:[%s4643_s1 + $0x368] sm:$0xff]  }
  0x6d   :  { %2153 = vmatprep.mubr.bf16.mxu1 %v2730_v31  ;;  %3287 = vmatpush3.bf16.msra.mxu0 %v3611_v32  ;;  %v2810_v31 = vcombine.high %v130_v26, %v138_v27  ;;  %v19_v32 = vld [vmem:[%s4644_s0 + $0x20] sm:$0xff]  ;;  %v3656_v19 = vld [vmem:[%s4643_s1 + $0x3e8] sm:$0xff]  }
  0x6e   :  { %3351 = vmatpush3.bf16.msra.mxu1 %v3613_v33  ;;  %3288 = vmatprep.subr.bf16.mxu0 %v3614_v34  ;;  %v27_v33 = vld [vmem:[%s4644_s0 + $0x60] sm:$0xff]  ;;  %v20_v34 = vld [vmem:[%s4644_s0 + $0x28] sm:$0xff] }
  0x6f   :  { %3352 = vmatprep.subr.bf16.mxu1 %v3616_v37  ;;  %v2809_v37 = vcombine.low %v130_v26, %v138_v27  ;;  %v2700_v38 = vcombine.high %v19_v32, %v27_v33  ;;  %v2702_v39 = vcombine.high %v20_v34, %v28_v35  ;;  %v92_v24 = vld [vmem:[%s4644_s0 + $0x268] sm:$0xff]  ;;  %v3658_v26 = vld [vmem:[%s4643_s1 + $0x370] sm:$0xff]  }
  0x70   :  { %v3657_v25 = vld [vmem:[%s4643_s1 + $0x3a8] sm:$0xff]  }
  0x71   :  { %3289 = vmatpush3.bf16.msra.mxu0 %v3615_v40  ;;  %v35_v40 = vld [vmem:[%s4644_s0 + $0xa0] sm:$0xff] }
  0x72   :  { %3353 = vmatpush3.bf16.msra.mxu1 %v3617_v41  ;;  %3290 = vmatprep.subr.bf16.mxu0 %v3618_v42  ;;  %v43_v41 = vld [vmem:[%s4644_s0 + $0xe0] sm:$0xff]  ;;  %v2699_v42 = vcombine.low %v19_v32, %v27_v33  ;;  %v3659_v32 = vld [vmem:[%s4643_s1 + $0x330] sm:$0xff]  }
  0x73   :  { %2057 = vmatmul.mubr.bf16.gmra.mrb[40].mxu0 %v2727_v43  ;;  %3354 = vmatprep.subr.bf16.mxu1 %v3620_v44  ;;  %v36_v43 = vld [vmem:[%s4644_s0 + $0xa8] sm:$0xff]  ;;  %v3661_v33 = vld [vmem:[%s4643_s1 + $0x3b0] sm:$0xff]  }
  0x74   :  { %2154 = vmatmul.mubr.bf16.gmra.mrb[40].mxu1 %v2729_v45  ;;  %2064 = vmatprep.mubr.bf16.mxu0 %v2744_v46  ;;  %v44_v44 = vld [vmem:[%s4644_s0 + $0xe8] sm:$0xff]  ;;  %v2701_v45 = vcombine.low %v20_v34, %v28_v35  ;;  %v3635_v46 = vld [vmem:[%s4643_s1 + $0x300] sm:$0xff]   ;;  %v3662_v34 = vld [vmem:[%s4643_s1 + $0x378] sm:$0xff]  }
  0x75   :  { %2161 = vmatprep.mubr.bf16.mxu1 %v2746_v48  ;;  %3291 = vmatpush3.bf16.msra.mxu0 %v3619_v47  ;;  %v3637_v47 = vld [vmem:[%s4643_s1 + $0x380] sm:$0xff]   ;;  %v2716_v48 = vcombine.high %v35_v40, %v43_v41  ;;  %v3664_v35 = vld [vmem:[%s4643_s1 + $0x3f8] sm:$0xff]  }
  0x76   :  { %3355 = vmatpush3.bf16.msra.mxu1 %v3621_v49  ;;  %3292 = vmatprep.subr.bf16.mxu0 %v3622_v50  ;;  %v2718_v49 = vcombine.high %v36_v43, %v44_v44  ;;  %v3638_v50 = vld [vmem:[%s4643_s1 + $0x348] sm:$0xff]  }
  0x77   :  { %3356 = vmatprep.subr.bf16.mxu1 %v3624_v52  ;;  %v3639_v52 = vld [vmem:[%s4643_s1 + $0x308] sm:$0xff]  }
  0x79   :  { %3293 = vmatpush3.bf16.msra.mxu0 %v3623_v56  ;;  %v3642_v56 = vld [vmem:[%s4643_s1 + $0x350] sm:$0xff]  }
  0x7a   :  { %3357 = vmatpush3.bf16.msra.mxu1 %v3625_v57  ;;  %3294 = vmatprep.subr.bf16.mxu0 %v3626_v58  ;;  %v52_v57 = vld [vmem:[%s4644_s0 + $0x128] sm:$0xff] }
  0x7b   :  { %2065 = vmatmul.mubr.bf16.gmra.mrb[44].mxu0 %v2743_v59  ;;  %3358 = vmatprep.subr.bf16.mxu1 %v3628_v60  ;;  %v60_v58 = vld [vmem:[%s4644_s0 + $0x168] sm:$0xff]  ;;  %v3644_v59 = vld [vmem:[%s4643_s1 + $0x3d0] sm:$0xff]   ;;  %v2715_v60 = vcombine.low %v35_v40, %v43_v41  ;;  %v3665_v41 = vld [vmem:[%s4643_s1 + $0x3b8] sm:$0xff]  }
  0x7c   :  { %2162 = vmatmul.mubr.bf16.gmra.mrb[44].mxu1 %v2745_v61  ;;  %2072 = vmatprep.mubr.bf16.mxu0 %v2760_v62  ;;  %v2717_v61 = vcombine.low %v36_v43, %v44_v44  ;;  %v2732_v62 = vcombine.high %v51_v54, %v59_v55  ;;  %v108_v40 = vld [vmem:[%s4644_s0 + $0x2e8] sm:$0xff] }
  0x7d   :  { %2169 = vmatprep.mubr.bf16.mxu1 %v2762_v63  ;;  %3295 = vmatpush3.bf16.msra.mxu0 %v3627_v0  ;;  %v2734_v63 = vcombine.high %v52_v57, %v60_v58  ;;  %v3643_v0 = vld [vmem:[%s4643_s1 + $0x310] sm:$0xff]  }
  0x7e   :  { %3359 = vmatpush3.bf16.msra.mxu1 %v3629_v1  ;;  %3296 = vmatprep.subr.bf16.mxu0 %v3630_v2  ;;  %v3645_v1 = vld [vmem:[%s4643_s1 + $0x390] sm:$0xff]   ;;  %v3646_v2 = vld [vmem:[%s4643_s1 + $0x358] sm:$0xff]  }
  0x7f   :  { %3360 = vmatprep.subr.bf16.mxu1 %v3632_v5  ;;  %v75_v5 = vld [vmem:[%s4644_s0 + $0x1e0] sm:$0xff] }
  0x80   :  { %v2747_v27 = vcombine.low %v67_v4, %v75_v5 }
  0x81   :  { %3297 = vmatpush3.bf16.msra.mxu0 %v3631_v8  ;;  %v76_v8 = vld [vmem:[%s4644_s0 + $0x1e8] sm:$0xff] }
  0x82   :  { %3361 = vmatpush3.bf16.msra.mxu1 %v3633_v9  ;;  %3410 = vmatprep.subr.bf16.mxu0 %v3634_v10  ;;  %v3649_v9 = vld [vmem:[%s4643_s1 + $0x398] sm:$0xff]   ;;  %v3650_v10 = vld [vmem:[%s4643_s1 + $0x360] sm:$0xff]  }
  0x83   :  { %2073 = vmatmul.mubr.bf16.gmra.mrb[48].mxu0 %v2759_v11  ;;  %3474 = vmatprep.subr.bf16.mxu1 %v3636_v12  ;;  %v2731_v11 = vcombine.low %v51_v54, %v59_v55  ;;  %v3652_v12 = vld [vmem:[%s4643_s1 + $0x3e0] sm:$0xff]  }
  0x84   :  { %2170 = vmatmul.mubr.bf16.gmra.mrb[48].mxu1 %v2761_v13  ;;  %2080 = vmatprep.mubr.bf16.mxu0 %v2776_v14  ;;  %v2733_v13 = vcombine.low %v52_v57, %v60_v58  ;;  %v2748_v14 = vcombine.high %v67_v4, %v75_v5  ;;  %v131_v54 = vld [vmem:[%s4644_s0 + $0x3a0] sm:$0xff]  ;;  %v140_v57 = vld [vmem:[%s4644_s0 + $0x3e8] sm:$0xff] }
  0x85   :  { %2177 = vmatprep.mubr.bf16.mxu1 %v2778_v15  ;;  %v2750_v15 = vcombine.high %v68_v6, %v76_v8  ;;  %v139_v55 = vld [vmem:[%s4644_s0 + $0x3e0] sm:$0xff] }
  0x8b   :  { %2081 = vmatmul.mubr.bf16.gmra.mrb[52].mxu0 %v2775_v20  ;;  %v83_v20 = vld [vmem:[%s4644_s0 + $0x220] sm:$0xff] }
  0x8c   :  { %2178 = vmatmul.mubr.bf16.gmra.mrb[52].mxu1 %v2777_v21  ;;  %2088 = vmatprep.mubr.bf16.mxu0 %v2792_v22  ;;  %v91_v21 = vld [vmem:[%s4644_s0 + $0x260] sm:$0xff]  ;;  %v84_v22 = vld [vmem:[%s4644_s0 + $0x228] sm:$0xff] }
  0x8d   :  { %2185 = vmatprep.mubr.bf16.mxu1 %v2794_v23  ;;  %v3655_v23 = vld [vmem:[%s4643_s1 + $0x328] sm:$0xff]   ;;  %v2765_v43 = vcombine.low %v84_v22, %v92_v24 }
  0x93   :  { %2089 = vmatmul.mubr.bf16.gmra.mrb[56].mxu0 %v2791_v28  ;;  %v3660_v28 = vld [vmem:[%s4643_s1 + $0x3f0] sm:$0xff]  }
  0x94   :  { %2186 = vmatmul.mubr.bf16.gmra.mrb[56].mxu1 %v2793_v29  ;;  %2096 = vmatprep.mubr.bf16.mxu0 %v2808_v30  ;;  %v2749_v29 = vcombine.low %v68_v6, %v76_v8  ;;  %v2764_v30 = vcombine.high %v83_v20, %v91_v21  ;;  %v37_v6 = vld [vmem:[%s4644_s0 + $0xb0] sm:$0xff]  ;;  %v38_v8 = vld [vmem:[%s4644_s0 + $0xb8] sm:$0xff] }
  0x95   :  { %2193 = vmatprep.mubr.bf16.mxu1 %v2810_v31  ;;  %v2766_v31 = vcombine.high %v84_v22, %v92_v24  ;;  %v69_v22 = vld [vmem:[%s4644_s0 + $0x1b0] sm:$0xff]  ;;  %v70_v24 = vld [vmem:[%s4644_s0 + $0x1b8] sm:$0xff] }
  0x9b   :  { %2097 = vmatmul.mubr.bf16.gmra.mrb[60].mxu0 %v2807_v36  ;;  %v99_v36 = vld [vmem:[%s4644_s0 + $0x2a0] sm:$0xff] }
  0x9c   :  { %2194 = vmatmul.mubr.bf16.gmra.mrb[60].mxu1 %v2809_v37  ;;  %2234 = vmatprep.mubr.bf16.mxu0 %v2700_v38  ;;  %v107_v37 = vld [vmem:[%s4644_s0 + $0x2e0] sm:$0xff]  ;;  %v3663_v38 = vld [vmem:[%s4643_s1 + $0x338] sm:$0xff]  }
  0x9d   :  { %2331 = vmatprep.mubr.bf16.mxu1 %v2702_v39  ;;  %v100_v39 = vld [vmem:[%s4644_s0 + $0x2a8] sm:$0xff]  ;;  %v2780_v44 = vcombine.high %v99_v36, %v107_v37 }
  0xa3   :  { %2235 = vmatmul.mubr.bf16.vlgmr.msra.gmra.mrb[64].mxu0 %v2699_v42  ;;  %v2763_v42 = vcombine.low %v83_v20, %v91_v21 }
  0xa4   :  { %2332 = vmatmul.mubr.bf16.vlgmr.msra.gmra.mrb[64].mxu1 %v2701_v45  ;;  %3411 = vmatpush3.bf16.msra.mxu0 %v3635_v46  ;;  %v2782_v45 = vcombine.high %v100_v39, %v108_v40  ;;  %v115_v46 = vld [vmem:[%s4644_s0 + $0x320] sm:$0xff] }
  0xa5   :  { %3475 = vmatpush3.bf16.msra.mxu1 %v3637_v47  ;;  %2242 = vmatprep.mubr.bf16.mxu0 %v2716_v48  ;;  %v123_v47 = vld [vmem:[%s4644_s0 + $0x360] sm:$0xff]  ;;  %v116_v48 = vld [vmem:[%s4644_s0 + $0x328] sm:$0xff] }
  0xa6   :  { %2339 = vmatprep.mubr.bf16.mxu1 %v2718_v49  ;;  %3412 = vmatprep.subr.bf16.mxu0 %v3638_v50  ;;  %v124_v49 = vld [vmem:[%s4644_s0 + $0x368] sm:$0xff]  ;;  %v2779_v50 = vcombine.low %v99_v36, %v107_v37  ;;  %v2795_v58 = vcombine.low %v115_v46, %v123_v47  ;;  %v4421_v36 = vld [vmem:[%s4645_s2] ss:$0 sm:$0xff] }
  0xa7   :  { %3476 = vmatprep.subr.bf16.mxu1 %v3640_v51  ;;  %v2781_v51 = vcombine.low %v100_v39, %v108_v40 }
  0xa8   :  { %3413 = vmatpush3.bf16.msra.mxu0 %v3639_v52  ;;  %v2796_v52 = vcombine.high %v115_v46, %v123_v47 }
  0xa9   :  { %3477 = vmatpush3.bf16.msra.mxu1 %v3641_v53  ;;  %3414 = vmatprep.subr.bf16.mxu0 %v3642_v56  ;;  %v2798_v53 = vcombine.high %v116_v48, %v124_v49  ;;  %v132_v56 = vld [vmem:[%s4644_s0 + $0x3a8] sm:$0xff] }
  0xaa   :  { %3478 = vmatprep.subr.bf16.mxu1 %v3644_v59  ;;  %v2797_v59 = vcombine.low %v116_v48, %v124_v49 }
  0xab   :  { %2243 = vmatmul.mubr.bf16.gmra.mrb[68].mxu0 %v2715_v60  ;;  %v2812_v60 = vcombine.high %v131_v54, %v139_v55 }
  0xac   :  { %2340 = vmatmul.mubr.bf16.gmra.mrb[68].mxu1 %v2717_v61  ;;  %2250 = vmatprep.mubr.bf16.mxu0 %v2732_v62  ;;  %v2814_v61 = vcombine.high %v132_v56, %v140_v57  ;;  %v21_v62 = vld [vmem:[%s4644_s0 + $0x30] sm:$0xff] }
  0xad   :  { %2347 = vmatprep.mubr.bf16.mxu1 %v2734_v63  ;;  %3415 = vmatpush3.bf16.msra.mxu0 %v3643_v0  ;;  %v29_v63 = vld [vmem:[%s4644_s0 + $0x70] sm:$0xff]  ;;  %v22_v0 = vld [vmem:[%s4644_s0 + $0x38] sm:$0xff] }
  0xae   :  { %3479 = vmatpush3.bf16.msra.mxu1 %v3645_v1  ;;  %3416 = vmatprep.subr.bf16.mxu0 %v3646_v2  ;;  %v30_v1 = vld [vmem:[%s4644_s0 + $0x78] sm:$0xff]  ;;  %v2811_v2 = vcombine.low %v131_v54, %v139_v55  ;;  %v2704_v4 = vcombine.high %v21_v62, %v29_v63  ;;  %v101_v54 = vld [vmem:[%s4644_s0 + $0x2b0] sm:$0xff] }
  0xaf   :  { %3480 = vmatprep.subr.bf16.mxu1 %v3648_v3  ;;  %v2813_v3 = vcombine.low %v132_v56, %v140_v57  ;;  %v2706_v5 = vcombine.high %v22_v0, %v30_v1  ;;  %v109_v55 = vld [vmem:[%s4644_s0 + $0x2f0] sm:$0xff] }
  0xb1   :  { %3417 = vmatpush3.bf16.msra.mxu0 %v3647_v7  ;;  %v45_v7 = vld [vmem:[%s4644_s0 + $0xf0] sm:$0xff] }
  0xb2   :  { %3481 = vmatpush3.bf16.msra.mxu1 %v3649_v9  ;;  %3418 = vmatprep.subr.bf16.mxu0 %v3650_v10  ;;  %v46_v9 = vld [vmem:[%s4644_s0 + $0xf8] sm:$0xff]  ;;  %v2703_v10 = vcombine.low %v21_v62, %v29_v63 }
  0xb3   :  { %2251 = vmatmul.mubr.bf16.gmra.mrb[72].mxu0 %v2731_v11  ;;  %3482 = vmatprep.subr.bf16.mxu1 %v3652_v12  ;;  %v2705_v11 = vcombine.low %v22_v0, %v30_v1  ;;  %v2720_v12 = vcombine.high %v37_v6, %v45_v7 }
  0xb4   :  { %2348 = vmatmul.mubr.bf16.gmra.mrb[72].mxu1 %v2733_v13  ;;  %2258 = vmatprep.mubr.bf16.mxu0 %v2748_v14  ;;  %v2722_v13 = vcombine.high %v38_v8, %v46_v9  ;;  %v53_v14 = vld [vmem:[%s4644_s0 + $0x130] sm:$0xff] }
  0xb5   :  { %2355 = vmatprep.mubr.bf16.mxu1 %v2750_v15  ;;  %3419 = vmatpush3.bf16.msra.mxu0 %v3651_v16  ;;  %v61_v15 = vld [vmem:[%s4644_s0 + $0x170] sm:$0xff]  ;;  %v54_v16 = vld [vmem:[%s4644_s0 + $0x138] sm:$0xff] }
  0xb6   :  { %3483 = vmatpush3.bf16.msra.mxu1 %v3653_v17  ;;  %3420 = vmatprep.subr.bf16.mxu0 %v3654_v18  ;;  %v62_v17 = vld [vmem:[%s4644_s0 + $0x178] sm:$0xff]  ;;  %v2719_v18 = vcombine.low %v37_v6, %v45_v7  ;;  %v2736_v20 = vcombine.high %v53_v14, %v61_v15 }
  0xb7   :  { %3484 = vmatprep.subr.bf16.mxu1 %v3656_v19  ;;  %v2721_v19 = vcombine.low %v38_v8, %v46_v9  ;;  %v2738_v21 = vcombine.high %v54_v16, %v62_v17 }
  0xb9   :  { %3421 = vmatpush3.bf16.msra.mxu0 %v3655_v23  ;;  %v77_v23 = vld [vmem:[%s4644_s0 + $0x1f0] sm:$0xff] }
  0xba   :  { %3485 = vmatpush3.bf16.msra.mxu1 %v3657_v25  ;;  %3422 = vmatprep.subr.bf16.mxu0 %v3658_v26  ;;  %v78_v25 = vld [vmem:[%s4644_s0 + $0x1f8] sm:$0xff]  ;;  %v2735_v26 = vcombine.low %v53_v14, %v61_v15  ;;  %v117_v14 = vld [vmem:[%s4644_s0 + $0x330] sm:$0xff] }
  0xbb   :  { %2259 = vmatmul.mubr.bf16.gmra.mrb[76].mxu0 %v2747_v27  ;;  %3486 = vmatprep.subr.bf16.mxu1 %v3660_v28  ;;  %v2737_v27 = vcombine.low %v54_v16, %v62_v17  ;;  %v2752_v28 = vcombine.high %v69_v22, %v77_v23  ;;  %v125_v15 = vld [vmem:[%s4644_s0 + $0x370] sm:$0xff] }
  0xbc   :  { %2356 = vmatmul.mubr.bf16.gmra.mrb[76].mxu1 %v2749_v29  ;;  %2266 = vmatprep.mubr.bf16.mxu0 %v2764_v30  ;;  %v2754_v29 = vcombine.high %v70_v24, %v78_v25  ;;  %v85_v30 = vld [vmem:[%s4644_s0 + $0x230] sm:$0xff] }
  0xbd   :  { %2363 = vmatprep.mubr.bf16.mxu1 %v2766_v31  ;;  %3423 = vmatpush3.bf16.msra.mxu0 %v3659_v32  ;;  %v93_v31 = vld [vmem:[%s4644_s0 + $0x270] sm:$0xff] }
  0xbe   :  { %3487 = vmatpush3.bf16.msra.mxu1 %v3661_v33  ;;  %3424 = vmatprep.subr.bf16.mxu0 %v3662_v34  ;;  %v86_v33 = vld [vmem:[%s4644_s0 + $0x238] sm:$0xff]  ;;  %v2767_v62 = vcombine.low %v85_v30, %v93_v31 }
  0xbf   :  { %3488 = vmatprep.subr.bf16.mxu1 %v3664_v35  ;;  %v94_v34 = vld [vmem:[%s4644_s0 + $0x278] sm:$0xff] }
  0xc0   :  { %v2770_v47 = vcombine.high %v86_v33, %v94_v34 }
  0xc1   :  { %3425 = vmatpush3.bf16.msra.mxu0 %v3663_v38  ;;  %v2751_v38 = vcombine.low %v69_v22, %v77_v23  ;;  %v2783_v22 = vcombine.low %v101_v54, %v109_v55 }
  0xc2   :  { %3489 = vmatpush3.bf16.msra.mxu1 %v3665_v41 }
  0xc3   :  { %2267 = vmatmul.mubr.bf16.gmra.mrb[80].mxu0 %v2763_v42  ;;  %v2753_v42 = vcombine.low %v70_v24, %v78_v25 }
  0xc4   :  { %2364 = vmatmul.mubr.bf16.gmra.mrb[80].mxu1 %v2765_v43  ;;  %2274 = vmatprep.mubr.bf16.mxu0 %v2780_v44  ;;  %v2768_v43 = vcombine.high %v85_v30, %v93_v31 }
  0xc5   :  { %2371 = vmatprep.mubr.bf16.mxu1 %v2782_v45 }
  0xcb   :  { %2275 = vmatmul.mubr.bf16.gmra.mrb[84].mxu0 %v2779_v50 }
  0xcc   :  { %2372 = vmatmul.mubr.bf16.gmra.mrb[84].mxu1 %v2781_v51  ;;  %2282 = vmatprep.mubr.bf16.mxu0 %v2796_v52 }
  0xcd   :  { %2379 = vmatprep.mubr.bf16.mxu1 %v2798_v53 }
  0xd3   :  { %2283 = vmatmul.mubr.bf16.gmra.mrb[88].mxu0 %v2795_v58  ;;  %v102_v58 = vld [vmem:[%s4644_s0 + $0x2b8] sm:$0xff] }
  0xd4   :  { %2380 = vmatmul.mubr.bf16.gmra.mrb[88].mxu1 %v2797_v59  ;;  %2290 = vmatprep.mubr.bf16.mxu0 %v2812_v60  ;;  %v110_v59 = vld [vmem:[%s4644_s0 + $0x2f8] sm:$0xff] }
  0xd5   :  { %2387 = vmatprep.mubr.bf16.mxu1 %v2814_v61  ;;  %v2786_v7 = vcombine.high %v102_v58, %v110_v59 }
  0xdb   :  { %2291 = vmatmul.mubr.bf16.gmra.mrb[92].mxu0 %v2811_v2  ;;  %v2769_v2 = vcombine.low %v86_v33, %v94_v34 }
  0xdc   :  { %2388 = vmatmul.mubr.bf16.gmra.mrb[92].mxu1 %v2813_v3  ;;  %2428 = vmatprep.mubr.bf16.mxu0 %v2704_v4  ;;  %v2784_v3 = vcombine.high %v101_v54, %v109_v55 }
  0xdd   :  { %2525 = vmatprep.mubr.bf16.mxu1 %v2706_v5 }
  0xe3   :  { %2429 = vmatmul.mubr.bf16.vlgmr.msra.gmra.mrb[96].mxu0 %v2703_v10 }
  0xe4   :  { %2526 = vmatmul.mubr.bf16.vlgmr.msra.gmra.mrb[96].mxu1 %v2705_v11  ;;  %2436 = vmatprep.mubr.bf16.mxu0 %v2720_v12 }
  0xe5   :  { %2533 = vmatprep.mubr.bf16.mxu1 %v2722_v13 }
  0xeb   :  { %2437 = vmatmul.mubr.bf16.gmra.mrb[100].mxu0 %v2719_v18  ;;  %v118_v18 = vld [vmem:[%s4644_s0 + $0x338] sm:$0xff] }
  0xec   :  { %2534 = vmatmul.mubr.bf16.gmra.mrb[100].mxu1 %v2721_v19  ;;  %2444 = vmatprep.mubr.bf16.mxu0 %v2736_v20  ;;  %v126_v19 = vld [vmem:[%s4644_s0 + $0x378] sm:$0xff] }
  0xed   :  { %2541 = vmatprep.mubr.bf16.mxu1 %v2738_v21  ;;  %v2802_v31 = vcombine.high %v118_v18, %v126_v19 }
  0xf3   :  { %2445 = vmatmul.mubr.bf16.gmra.mrb[104].mxu0 %v2735_v26  ;;  %v2785_v26 = vcombine.low %v102_v58, %v110_v59 }
  0xf4   :  { %2542 = vmatmul.mubr.bf16.gmra.mrb[104].mxu1 %v2737_v27  ;;  %2452 = vmatprep.mubr.bf16.mxu0 %v2752_v28  ;;  %v2800_v27 = vcombine.high %v117_v14, %v125_v15 }
  0xf5   :  { %2549 = vmatprep.mubr.bf16.mxu1 %v2754_v29 }
  0xf6   :  { %v3042_v32 = vpop.f32.mrb[0].mxu0 }
  0xf7   :  { %v3106_v35 = vpop.f32.mrb[0].mxu1  ;;  %v3043_v37 = vpop.f32.mrb[1].mxu0 }
  0xf8   :  { %v3044_v39 = vadd.f32 %v3043_v37, %v3042_v32  ;;  %v3107_v40 = vpop.f32.mrb[1].mxu1  ;;  %v3045_v41 = vpop.f32.mrb[2].mxu0 }
  0xf9   :  { %v3108_v44 = vadd.f32 %v3107_v40, %v3106_v35  ;;  %v3109_v45 = vpop.f32.mrb[2].mxu1  ;;  %v3046_v46 = vpop.f32.mrb[3].mxu0  ;;  %v141_v40 = vld [vmem:[%s4644_s0 + $0x3f0] sm:$0xff] }
  0xfa   :  { %v1849_v48 = vadd.f32 %v3044_v39, %v4421_v36  ;;  %v3047_v49 = vadd.f32 %v3046_v46, %v3045_v41  ;;  %v3110_v50 = vpop.f32.mrb[3].mxu1  ;;  %v133_v39 = vld [vmem:[%s4644_s0 + $0x3b0] sm:$0xff] }
  0xfb   :  { %v3111_v51 = vadd.f32 %v3110_v50, %v3109_v45  ;;  %2453 = vmatmul.mubr.bf16.gmra.mrb[108].mxu0 %v2751_v38 }
  0xfc   :  { %v4424_v52 = vadd.f32 %v3108_v44, %v1849_v48  ;;  %v1852_v53 = vadd.f32 %v3047_v49, %v4421_v36  ;;  %2550 = vmatmul.mubr.bf16.gmra.mrb[108].mxu1 %v2753_v42  ;;  %2460 = vmatprep.mubr.bf16.mxu0 %v2768_v43  ;;  %v134_v43 = vld [vmem:[%s4644_s0 + $0x3b8] sm:$0xff] }
  0xfd   :  { %2557 = vmatprep.mubr.bf16.mxu1 %v2770_v47  ;;  %v142_v44 = vld [vmem:[%s4644_s0 + $0x3f8] sm:$0xff]  ;;  %v2799_v47 = vcombine.low %v117_v14, %v125_v15 }
  0xfe   :  { %v4433_v56 = vadd.f32 %v3111_v51, %v1852_v53  ;;  %v3048_v57 = vpop.f32.mrb[4].mxu0  ;;  %v2801_v51 = vcombine.low %v118_v18, %v126_v19  ;;  %v2816_v53 = vcombine.high %v133_v39, %v141_v40  ;;  %v2818_v58 = vcombine.high %v134_v43, %v142_v44 }
  0xff   :  { %v3112_v60 = vpop.f32.mrb[4].mxu1  ;;  %v3049_v61 = vpop.f32.mrb[5].mxu0 }
 0x100   :  { %v3050_v63 = vadd.f32 %v3049_v61, %v3048_v57  ;;  %v3113_v0 = vpop.f32.mrb[5].mxu1  ;;  %v3051_v1 = vpop.f32.mrb[6].mxu0 }
 0x101   :  { %v3114_v4 = vadd.f32 %v3113_v0, %v3112_v60  ;;  %v3115_v5 = vpop.f32.mrb[6].mxu1  ;;  %v3052_v6 = vpop.f32.mrb[7].mxu0 }
 0x102   :  { %v1857_v8 = vadd.f32 %v3050_v63, %v4421_v36  ;;  %v3053_v9 = vadd.f32 %v3052_v6, %v3051_v1  ;;  %v3116_v10 = vpop.f32.mrb[7].mxu1 }
 0x103   :  { %v3117_v11 = vadd.f32 %v3116_v10, %v3115_v5  ;;  %2461 = vmatmul.mubr.bf16.gmra.mrb[112].mxu0 %v2767_v62  ;;  %v2815_v5 = vcombine.low %v133_v39, %v141_v40 }
 0x104   :  { %v4442_v12 = vadd.f32 %v3114_v4, %v1857_v8  ;;  %v1860_v13 = vadd.f32 %v3053_v9, %v4421_v36  ;;  %2558 = vmatmul.mubr.bf16.gmra.mrb[112].mxu1 %v2769_v2  ;;  %2468 = vmatprep.mubr.bf16.mxu0 %v2784_v3  ;;  %v2817_v9 = vcombine.low %v134_v43, %v142_v44 }
 0x105   :  { %2565 = vmatprep.mubr.bf16.mxu1 %v2786_v7 }
 0x106   :  { %v4451_v16 = vadd.f32 %v3117_v11, %v1860_v13  ;;  %v3054_v17 = vpop.f32.mrb[8].mxu0 }
 0x107   :  { %v3118_v20 = vpop.f32.mrb[8].mxu1  ;;  %v3055_v21 = vpop.f32.mrb[9].mxu0 }
 0x108   :  { %v3056_v23 = vadd.f32 %v3055_v21, %v3054_v17  ;;  %v3119_v24 = vpop.f32.mrb[9].mxu1  ;;  %v3057_v25 = vpop.f32.mrb[10].mxu0 }
 0x109   :  { %v3120_v28 = vadd.f32 %v3119_v24, %v3118_v20  ;;  %v3121_v29 = vpop.f32.mrb[10].mxu1  ;;  %v3058_v30 = vpop.f32.mrb[11].mxu0 }
 0x10a   :  { %v1865_v32 = vadd.f32 %v3056_v23, %v4421_v36  ;;  %v3059_v33 = vadd.f32 %v3058_v30, %v3057_v25  ;;  %v3122_v34 = vpop.f32.mrb[11].mxu1 }
 0x10b   :  { %v3123_v35 = vadd.f32 %v3122_v34, %v3121_v29  ;;  %2469 = vmatmul.mubr.bf16.gmra.mrb[116].mxu0 %v2783_v22 }
 0x10c   :  { %v4460_v37 = vadd.f32 %v3120_v28, %v1865_v32  ;;  %v1868_v38 = vadd.f32 %v3059_v33, %v4421_v36  ;;  %2566 = vmatmul.mubr.bf16.gmra.mrb[116].mxu1 %v2785_v26  ;;  %2476 = vmatprep.mubr.bf16.mxu0 %v2800_v27 }
 0x10d   :  { %2573 = vmatprep.mubr.bf16.mxu1 %v2802_v31 }
 0x10e   :  { %v4469_v41 = vadd.f32 %v3123_v35, %v1868_v38  ;;  %v3060_v42 = vpop.f32.mrb[12].mxu0 }
 0x10f   :  { %v3124_v45 = vpop.f32.mrb[12].mxu1  ;;  %v3061_v46 = vpop.f32.mrb[13].mxu0 }
 0x110   :  { %v3062_v48 = vadd.f32 %v3061_v46, %v3060_v42  ;;  %v3125_v49 = vpop.f32.mrb[13].mxu1  ;;  %v3063_v50 = vpop.f32.mrb[14].mxu0 }
 0x111   :  { %v3126_v54 = vadd.f32 %v3125_v49, %v3124_v45  ;;  %v3127_v55 = vpop.f32.mrb[14].mxu1  ;;  %v3064_v57 = vpop.f32.mrb[15].mxu0 }
 0x112   :  { %v1873_v59 = vadd.f32 %v3062_v48, %v4421_v36  ;;  %v3065_v60 = vadd.f32 %v3064_v57, %v3063_v50  ;;  %v3128_v61 = vpop.f32.mrb[15].mxu1 }
 0x113   :  { %v3129_v62 = vadd.f32 %v3128_v61, %v3127_v55  ;;  %2477 = vmatmul.mubr.bf16.gmra.mrb[120].mxu0 %v2799_v47 }
 0x114   :  { %v4478_v63 = vadd.f32 %v3126_v54, %v1873_v59  ;;  %v1876_v0 = vadd.f32 %v3065_v60, %v4421_v36  ;;  %2574 = vmatmul.mubr.bf16.gmra.mrb[120].mxu1 %v2801_v51  ;;  %2484 = vmatprep.mubr.bf16.mxu0 %v2816_v53 }
 0x115   :  { %2581 = vmatprep.mubr.bf16.mxu1 %v2818_v58 }
 0x116   :  { %v4481_v1 = vadd.f32 %v3129_v62, %v1876_v0  ;;  %v3066_v2 = vpop.f32.mrb[16].mxu0 }
 0x117   :  { %v3130_v3 = vpop.f32.mrb[16].mxu1  ;;  %v3067_v4 = vpop.f32.mrb[17].mxu0 }
 0x118   :  { %v3068_v6 = vadd.f32 %v3067_v4, %v3066_v2  ;;  %v3131_v7 = vpop.f32.mrb[17].mxu1  ;;  %v3069_v8 = vpop.f32.mrb[18].mxu0 }
 0x119   :  { %v3132_v10 = vadd.f32 %v3131_v7, %v3130_v3  ;;  %v3133_v11 = vpop.f32.mrb[18].mxu1  ;;  %v3070_v13 = vpop.f32.mrb[19].mxu0 }
 0x11a   :  { %v1881_v14 = vadd.f32 %v3068_v6, %v4421_v36  ;;  %v3071_v15 = vadd.f32 %v3070_v13, %v3069_v8  ;;  %v3134_v17 = vpop.f32.mrb[19].mxu1 }
 0x11b   :  { %v3135_v18 = vadd.f32 %v3134_v17, %v3133_v11  ;;  %2485 = vmatmul.mubr.bf16.gmra.mrb[124].mxu0 %v2815_v5 }
 0x11c   :  { %v4484_v19 = vadd.f32 %v3132_v10, %v1881_v14  ;;  %v1884_v20 = vadd.f32 %v3071_v15, %v4421_v36  ;;  %2582 = vmatmul.mubr.bf16.gmra.mrb[124].mxu1 %v2817_v9 }
 0x11e   :  { %v4487_v21 = vadd.f32 %v3135_v18, %v1884_v20  ;;  %v3072_v22 = vpop.f32.mrb[20].mxu0 }
 0x11f   :  { %v3136_v23 = vpop.f32.mrb[20].mxu1  ;;  %v3073_v24 = vpop.f32.mrb[21].mxu0 }
 0x120   :  { %v3074_v25 = vadd.f32 %v3073_v24, %v3072_v22  ;;  %v3137_v26 = vpop.f32.mrb[21].mxu1  ;;  %v3075_v27 = vpop.f32.mrb[22].mxu0 }
 0x121   :  { %v3138_v28 = vadd.f32 %v3137_v26, %v3136_v23  ;;  %v3139_v29 = vpop.f32.mrb[22].mxu1  ;;  %v3076_v30 = vpop.f32.mrb[23].mxu0 }
 0x122   :  { %v1889_v31 = vadd.f32 %v3074_v25, %v4421_v36  ;;  %v3077_v32 = vadd.f32 %v3076_v30, %v3075_v27  ;;  %v3140_v33 = vpop.f32.mrb[23].mxu1 }
 0x123   :  { %v3141_v34 = vadd.f32 %v3140_v33, %v3139_v29 }
 0x124   :  { %v4490_v35 = vadd.f32 %v3138_v28, %v1889_v31  ;;  %v1892_v38 = vadd.f32 %v3077_v32, %v4421_v36 }
 0x126   :  { %v4493_v39 = vadd.f32 %v3141_v34, %v1892_v38  ;;  %v3078_v40 = vpop.f32.mrb[24].mxu0 }
 0x127   :  { %v3142_v42 = vpop.f32.mrb[24].mxu1  ;;  %v3079_v43 = vpop.f32.mrb[25].mxu0 }
 0x128   :  { %v3080_v44 = vadd.f32 %v3079_v43, %v3078_v40  ;;  %v3143_v45 = vpop.f32.mrb[25].mxu1  ;;  %v3081_v46 = vpop.f32.mrb[26].mxu0 }
 0x129   :  { %v3144_v47 = vadd.f32 %v3143_v45, %v3142_v42  ;;  %v3145_v48 = vpop.f32.mrb[26].mxu1  ;;  %v3082_v49 = vpop.f32.mrb[27].mxu0 }
 0x12a   :  { %v1897_v50 = vadd.f32 %v3080_v44, %v4421_v36  ;;  %v3083_v51 = vadd.f32 %v3082_v49, %v3081_v46  ;;  %v3146_v53 = vpop.f32.mrb[27].mxu1 }
 0x12b   :  { %v3147_v54 = vadd.f32 %v3146_v53, %v3145_v48 }
 0x12c   :  { %v4496_v55 = vadd.f32 %v3144_v47, %v1897_v50  ;;  %v1900_v57 = vadd.f32 %v3083_v51, %v4421_v36 }
 0x12e   :  { %v4499_v58 = vadd.f32 %v3147_v54, %v1900_v57  ;;  %v3084_v59 = vpop.f32.mrb[28].mxu0 }
 0x12f   :  { %v3148_v60 = vpop.f32.mrb[28].mxu1  ;;  %v3085_v61 = vpop.f32.mrb[29].mxu0 }
 0x130   :  { %v3086_v62 = vadd.f32 %v3085_v61, %v3084_v59  ;;  %v3149_v0 = vpop.f32.mrb[29].mxu1  ;;  %v3087_v2 = vpop.f32.mrb[30].mxu0 }
 0x131   :  { %v3150_v3 = vadd.f32 %v3149_v0, %v3148_v60  ;;  %v3151_v4 = vpop.f32.mrb[30].mxu1  ;;  %v3088_v5 = vpop.f32.mrb[31].mxu0 }
 0x132   :  { %v1905_v6 = vadd.f32 %v3086_v62, %v4421_v36  ;;  %v3089_v7 = vadd.f32 %v3088_v5, %v3087_v2  ;;  %v3152_v8 = vpop.f32.mrb[31].mxu1 }
 0x133   :  { %v3153_v9 = vadd.f32 %v3152_v8, %v3151_v4 }
 0x134   :  { %v4502_v10 = vadd.f32 %v3150_v3, %v1905_v6  ;;  %v1908_v11 = vadd.f32 %v3089_v7, %v4421_v36 }
 0x136   :  { %v4505_v13 = vadd.f32 %v3153_v9, %v1908_v11  ;;  %v3170_v14 = vpop.f32.mrb[32].mxu0 }
 0x137   :  { %v3234_v15 = vpop.f32.mrb[32].mxu1  ;;  %v3171_v17 = vpop.f32.mrb[33].mxu0 }
 0x138   :  { %v3172_v18 = vadd.f32 %v3171_v17, %v3170_v14  ;;  %v3235_v20 = vpop.f32.mrb[33].mxu1  ;;  %v3173_v22 = vpop.f32.mrb[34].mxu0 }
 0x139   :  { %v3236_v23 = vadd.f32 %v3235_v20, %v3234_v15  ;;  %v3237_v24 = vpop.f32.mrb[34].mxu1  ;;  %v3174_v25 = vpop.f32.mrb[35].mxu0 }
 0x13a   :  { %v2043_v26 = vadd.f32 %v3172_v18, %v4424_v52  ;;  %v3175_v27 = vadd.f32 %v3174_v25, %v3173_v22  ;;  %v3238_v28 = vpop.f32.mrb[35].mxu1 }
 0x13b   :  { %v3239_v29 = vadd.f32 %v3238_v28, %v3237_v24 }
 0x13c   :  { %v4508_v30 = vadd.f32 %v3236_v23, %v2043_v26  ;;  %v2046_v36 = vadd.f32 %v3175_v27, %v4433_v56 }
 0x13e   :  { %v4511_v31 = vadd.f32 %v3239_v29, %v2046_v36  ;;  %v3176_v32 = vpop.f32.mrb[36].mxu0 }
 0x13f   :  { %v3240_v33 = vpop.f32.mrb[36].mxu1  ;;  %v3177_v34 = vpop.f32.mrb[37].mxu0 }
 0x140   :  { %v3178_v38 = vadd.f32 %v3177_v34, %v3176_v32  ;;  %v3241_v40 = vpop.f32.mrb[37].mxu1  ;;  %v3179_v42 = vpop.f32.mrb[38].mxu0 }
 0x141   :  { %v3242_v43 = vadd.f32 %v3241_v40, %v3240_v33  ;;  %v3243_v44 = vpop.f32.mrb[38].mxu1  ;;  %v3180_v45 = vpop.f32.mrb[39].mxu0 }
 0x142   :  { %v2051_v52 = vadd.f32 %v3178_v38, %v4442_v12  ;;  %v3181_v46 = vadd.f32 %v3180_v45, %v3179_v42  ;;  %v3244_v47 = vpop.f32.mrb[39].mxu1 }
 0x143   :  { %v3245_v48 = vadd.f32 %v3244_v47, %v3243_v44 }
 0x144   :  { %v4514_v49 = vadd.f32 %v3242_v43, %v2051_v52  ;;  %v2054_v56 = vadd.f32 %v3181_v46, %v4451_v16 }
 0x146   :  { %v4517_v50 = vadd.f32 %v3245_v48, %v2054_v56  ;;  %v3182_v51 = vpop.f32.mrb[40].mxu0 }
 0x147   :  { %v3246_v53 = vpop.f32.mrb[40].mxu1  ;;  %v3183_v54 = vpop.f32.mrb[41].mxu0 }
 0x148   :  { %v3184_v57 = vadd.f32 %v3183_v54, %v3182_v51  ;;  %v3247_v59 = vpop.f32.mrb[41].mxu1  ;;  %v3185_v60 = vpop.f32.mrb[42].mxu0 }
 0x149   :  { %v3248_v61 = vadd.f32 %v3247_v59, %v3246_v53  ;;  %v3249_v62 = vpop.f32.mrb[42].mxu1  ;;  %v3186_v0 = vpop.f32.mrb[43].mxu0 }
 0x14a   :  { %v2059_v12 = vadd.f32 %v3184_v57, %v4460_v37  ;;  %v3187_v2 = vadd.f32 %v3186_v0, %v3185_v60  ;;  %v3250_v3 = vpop.f32.mrb[43].mxu1 }
 0x14b   :  { %v3251_v4 = vadd.f32 %v3250_v3, %v3249_v62 }
 0x14c   :  { %v4520_v5 = vadd.f32 %v3248_v61, %v2059_v12  ;;  %v2062_v16 = vadd.f32 %v3187_v2, %v4469_v41 }
 0x14e   :  { %v4523_v6 = vadd.f32 %v3251_v4, %v2062_v16  ;;  %v3188_v7 = vpop.f32.mrb[44].mxu0 }
 0x14f   :  { %v3252_v8 = vpop.f32.mrb[44].mxu1  ;;  %v3189_v9 = vpop.f32.mrb[45].mxu0 }
 0x150   :  { %v3190_v11 = vadd.f32 %v3189_v9, %v3188_v7  ;;  %v3253_v14 = vpop.f32.mrb[45].mxu1  ;;  %v3191_v15 = vpop.f32.mrb[46].mxu0 }
 0x151   :  { %v3254_v17 = vadd.f32 %v3253_v14, %v3252_v8  ;;  %v3255_v18 = vpop.f32.mrb[46].mxu1  ;;  %v3192_v20 = vpop.f32.mrb[47].mxu0 }
 0x152   :  { %v2067_v37 = vadd.f32 %v3190_v11, %v4478_v63  ;;  %v3193_v22 = vadd.f32 %v3192_v20, %v3191_v15  ;;  %v3256_v23 = vpop.f32.mrb[47].mxu1 }
 0x153   :  { %v3257_v24 = vadd.f32 %v3256_v23, %v3255_v18 }
 0x154   :  { %v4526_v25 = vadd.f32 %v3254_v17, %v2067_v37  ;;  %v2070_v41 = vadd.f32 %v3193_v22, %v4481_v1 }
 0x156   :  { %v4529_v26 = vadd.f32 %v3257_v24, %v2070_v41  ;;  %v3194_v27 = vpop.f32.mrb[48].mxu0 }
 0x157   :  { %v3258_v28 = vpop.f32.mrb[48].mxu1  ;;  %v3195_v29 = vpop.f32.mrb[49].mxu0 }
 0x158   :  { %v3196_v36 = vadd.f32 %v3195_v29, %v3194_v27  ;;  %v3259_v32 = vpop.f32.mrb[49].mxu1  ;;  %v3197_v33 = vpop.f32.mrb[50].mxu0 }
 0x159   :  { %v3260_v34 = vadd.f32 %v3259_v32, %v3258_v28  ;;  %v3261_v38 = vpop.f32.mrb[50].mxu1  ;;  %v3198_v40 = vpop.f32.mrb[51].mxu0 }
 0x15a   :  { %v2075_v63 = vadd.f32 %v3196_v36, %v4484_v19  ;;  %v3199_v42 = vadd.f32 %v3198_v40, %v3197_v33  ;;  %v3262_v43 = vpop.f32.mrb[51].mxu1 }
 0x15b   :  { %v3263_v44 = vadd.f32 %v3262_v43, %v3261_v38 }
 0x15c   :  { %v4532_v45 = vadd.f32 %v3260_v34, %v2075_v63  ;;  %v2078_v1 = vadd.f32 %v3199_v42, %v4487_v21 }
 0x15e   :  { %v4535_v52 = vadd.f32 %v3263_v44, %v2078_v1  ;;  %v3200_v46 = vpop.f32.mrb[52].mxu0 }
 0x15f   :  { %v3264_v47 = vpop.f32.mrb[52].mxu1  ;;  %v3201_v48 = vpop.f32.mrb[53].mxu0 }
 0x160   :  { %v3202_v56 = vadd.f32 %v3201_v48, %v3200_v46  ;;  %v3265_v51 = vpop.f32.mrb[53].mxu1  ;;  %v3203_v53 = vpop.f32.mrb[54].mxu0 }
 0x161   :  { %v3266_v54 = vadd.f32 %v3265_v51, %v3264_v47  ;;  %v3267_v57 = vpop.f32.mrb[54].mxu1  ;;  %v3204_v59 = vpop.f32.mrb[55].mxu0 }
 0x162   :  { %v2083_v19 = vadd.f32 %v3202_v56, %v4490_v35  ;;  %v3205_v60 = vadd.f32 %v3204_v59, %v3203_v53  ;;  %v3268_v61 = vpop.f32.mrb[55].mxu1 }
 0x163   :  { %v3269_v62 = vadd.f32 %v3268_v61, %v3267_v57 }
 0x164   :  { %v4538_v0 = vadd.f32 %v3266_v54, %v2083_v19  ;;  %v2086_v21 = vadd.f32 %v3205_v60, %v4493_v39 }
 0x166   :  { %v4541_v12 = vadd.f32 %v3269_v62, %v2086_v21  ;;  %v3206_v2 = vpop.f32.mrb[56].mxu0 }
 0x167   :  { %v3270_v3 = vpop.f32.mrb[56].mxu1  ;;  %v3207_v4 = vpop.f32.mrb[57].mxu0 }
 0x168   :  { %v3208_v16 = vadd.f32 %v3207_v4, %v3206_v2  ;;  %v3271_v7 = vpop.f32.mrb[57].mxu1  ;;  %v3209_v8 = vpop.f32.mrb[58].mxu0 }
 0x169   :  { %v3272_v9 = vadd.f32 %v3271_v7, %v3270_v3  ;;  %v3273_v11 = vpop.f32.mrb[58].mxu1  ;;  %v3210_v14 = vpop.f32.mrb[59].mxu0 }
 0x16a   :  { %v2091_v35 = vadd.f32 %v3208_v16, %v4496_v55  ;;  %v3211_v15 = vadd.f32 %v3210_v14, %v3209_v8  ;;  %v3274_v17 = vpop.f32.mrb[59].mxu1 }
 0x16b   :  { %v3275_v18 = vadd.f32 %v3274_v17, %v3273_v11 }
 0x16c   :  { %v4544_v20 = vadd.f32 %v3272_v9, %v2091_v35  ;;  %v2094_v39 = vadd.f32 %v3211_v15, %v4499_v58 }
 0x16e   :  { %v4547_v37 = vadd.f32 %v3275_v18, %v2094_v39  ;;  %v3212_v22 = vpop.f32.mrb[60].mxu0 }
 0x16f   :  { %v3276_v23 = vpop.f32.mrb[60].mxu1  ;;  %v3213_v24 = vpop.f32.mrb[61].mxu0 }
 0x170   :  { %v3214_v41 = vadd.f32 %v3213_v24, %v3212_v22  ;;  %v3277_v27 = vpop.f32.mrb[61].mxu1  ;;  %v3215_v28 = vpop.f32.mrb[62].mxu0 }
 0x171   :  { %v3278_v29 = vadd.f32 %v3277_v27, %v3276_v23  ;;  %v3279_v36 = vpop.f32.mrb[62].mxu1  ;;  %v3216_v32 = vpop.f32.mrb[63].mxu0 }
 0x172   :  { %v2099_v55 = vadd.f32 %v3214_v41, %v4502_v10  ;;  %v3217_v33 = vadd.f32 %v3216_v32, %v3215_v28  ;;  %v3280_v34 = vpop.f32.mrb[63].mxu1 }
 0x173   :  { %v3281_v38 = vadd.f32 %v3280_v34, %v3279_v36 }
 0x174   :  { %v4550_v40 = vadd.f32 %v3278_v29, %v2099_v55  ;;  %v2102_v58 = vadd.f32 %v3217_v33, %v4505_v13 }
 0x176   :  { %v4553_v63 = vadd.f32 %v3281_v38, %v2102_v58  ;;  %v3298_v42 = vpop.f32.mrb[64].mxu0 }
 0x177   :  { %v3362_v43 = vpop.f32.mrb[64].mxu1  ;;  %v3299_v44 = vpop.f32.mrb[65].mxu0 }
 0x178   :  { %v3300_v1 = vadd.f32 %v3299_v44, %v3298_v42  ;;  %v3363_v46 = vpop.f32.mrb[65].mxu1  ;;  %v3301_v47 = vpop.f32.mrb[66].mxu0 }
 0x179   :  { %v3364_v48 = vadd.f32 %v3363_v46, %v3362_v43  ;;  %v3365_v56 = vpop.f32.mrb[66].mxu1  ;;  %v3302_v51 = vpop.f32.mrb[67].mxu0 }
 0x17a   :  { %v2237_v10 = vadd.f32 %v3300_v1, %v4508_v30  ;;  %v3303_v53 = vadd.f32 %v3302_v51, %v3301_v47  ;;  %v3366_v54 = vpop.f32.mrb[67].mxu1 }
 0x17b   :  { %v3367_v57 = vadd.f32 %v3366_v54, %v3365_v56 }
 0x17c   :  { %v4556_v59 = vadd.f32 %v3364_v48, %v2237_v10  ;;  %v2240_v13 = vadd.f32 %v3303_v53, %v4511_v31 }
 0x17e   :  { %v4559_v19 = vadd.f32 %v3367_v57, %v2240_v13  ;;  %v3304_v60 = vpop.f32.mrb[68].mxu0 }
 0x17f   :  { %v3368_v61 = vpop.f32.mrb[68].mxu1  ;;  %v3305_v62 = vpop.f32.mrb[69].mxu0 }
 0x180   :  { %v3306_v21 = vadd.f32 %v3305_v62, %v3304_v60  ;;  %v3369_v2 = vpop.f32.mrb[69].mxu1  ;;  %v3307_v3 = vpop.f32.mrb[70].mxu0 }
 0x181   :  { %v3370_v4 = vadd.f32 %v3369_v2, %v3368_v61  ;;  %v3371_v16 = vpop.f32.mrb[70].mxu1  ;;  %v3308_v7 = vpop.f32.mrb[71].mxu0 }
 0x182   :  { %v2245_v30 = vadd.f32 %v3306_v21, %v4514_v49  ;;  %v3309_v8 = vadd.f32 %v3308_v7, %v3307_v3  ;;  %v3372_v9 = vpop.f32.mrb[71].mxu1 }
 0x183   :  { %v3373_v11 = vadd.f32 %v3372_v9, %v3371_v16 }
 0x184   :  { %v4562_v14 = vadd.f32 %v3370_v4, %v2245_v30  ;;  %v2248_v31 = vadd.f32 %v3309_v8, %v4517_v50 }
 0x186   :  { %v4565_v35 = vadd.f32 %v3373_v11, %v2248_v31  ;;  %v3310_v15 = vpop.f32.mrb[72].mxu0 }
 0x187   :  { %v3374_v17 = vpop.f32.mrb[72].mxu1  ;;  %v3311_v18 = vpop.f32.mrb[73].mxu0 }
 0x188   :  { %v3312_v39 = vadd.f32 %v3311_v18, %v3310_v15  ;;  %v3375_v22 = vpop.f32.mrb[73].mxu1  ;;  %v3313_v23 = vpop.f32.mrb[74].mxu0 }
 0x189   :  { %v3376_v24 = vadd.f32 %v3375_v22, %v3374_v17  ;;  %v3377_v41 = vpop.f32.mrb[74].mxu1  ;;  %v3314_v27 = vpop.f32.mrb[75].mxu0 }
 0x18a   :  { %v2253_v49 = vadd.f32 %v3312_v39, %v4520_v5  ;;  %v3315_v28 = vadd.f32 %v3314_v27, %v3313_v23  ;;  %v3378_v29 = vpop.f32.mrb[75].mxu1 }
 0x18b   :  { %v3379_v36 = vadd.f32 %v3378_v29, %v3377_v41 }
 0x18c   :  { %v4568_v32 = vadd.f32 %v3376_v24, %v2253_v49  ;;  %v2256_v50 = vadd.f32 %v3315_v28, %v4523_v6 }
 0x18e   :  { %v4571_v55 = vadd.f32 %v3379_v36, %v2256_v50  ;;  %v3316_v33 = vpop.f32.mrb[76].mxu0 }
 0x18f   :  { %v3380_v34 = vpop.f32.mrb[76].mxu1  ;;  %v3317_v38 = vpop.f32.mrb[77].mxu0 }
 0x190   :  { %v3318_v58 = vadd.f32 %v3317_v38, %v3316_v33  ;;  %v3381_v42 = vpop.f32.mrb[77].mxu1  ;;  %v3319_v43 = vpop.f32.mrb[78].mxu0 }
 0x191   :  { %v3382_v44 = vadd.f32 %v3381_v42, %v3380_v34  ;;  %v3383_v1 = vpop.f32.mrb[78].mxu1  ;;  %v3320_v46 = vpop.f32.mrb[79].mxu0 }
 0x192   :  { %v2261_v5 = vadd.f32 %v3318_v58, %v4526_v25  ;;  %v3321_v47 = vadd.f32 %v3320_v46, %v3319_v43  ;;  %v3384_v48 = vpop.f32.mrb[79].mxu1 }
 0x193   :  { %v3385_v56 = vadd.f32 %v3384_v48, %v3383_v1 }
 0x194   :  { %v4574_v51 = vadd.f32 %v3382_v44, %v2261_v5  ;;  %v2264_v6 = vadd.f32 %v3321_v47, %v4529_v26 }
 0x196   :  { %v4577_v10 = vadd.f32 %v3385_v56, %v2264_v6  ;;  %v3322_v53 = vpop.f32.mrb[80].mxu0 }
 0x197   :  { %v3386_v54 = vpop.f32.mrb[80].mxu1  ;;  %v3323_v57 = vpop.f32.mrb[81].mxu0 }
 0x198   :  { %v3324_v13 = vadd.f32 %v3323_v57, %v3322_v53  ;;  %v3387_v60 = vpop.f32.mrb[81].mxu1  ;;  %v3325_v61 = vpop.f32.mrb[82].mxu0 }
 0x199   :  { %v3388_v62 = vadd.f32 %v3387_v60, %v3386_v54  ;;  %v3389_v21 = vpop.f32.mrb[82].mxu1  ;;  %v3326_v2 = vpop.f32.mrb[83].mxu0 }
 0x19a   :  { %v2269_v25 = vadd.f32 %v3324_v13, %v4532_v45  ;;  %v3327_v3 = vadd.f32 %v3326_v2, %v3325_v61  ;;  %v3390_v4 = vpop.f32.mrb[83].mxu1 }
 0x19b   :  { %v3391_v16 = vadd.f32 %v3390_v4, %v3389_v21 }
 0x19c   :  { %v4580_v7 = vadd.f32 %v3388_v62, %v2269_v25  ;;  %v2272_v26 = vadd.f32 %v3327_v3, %v4535_v52 }
 0x19e   :  { %v4583_v30 = vadd.f32 %v3391_v16, %v2272_v26  ;;  %v3328_v8 = vpop.f32.mrb[84].mxu0 }
 0x19f   :  { %v3392_v9 = vpop.f32.mrb[84].mxu1  ;;  %v3329_v11 = vpop.f32.mrb[85].mxu0 }
 0x1a0   :  { %v3330_v31 = vadd.f32 %v3329_v11, %v3328_v8  ;;  %v3393_v15 = vpop.f32.mrb[85].mxu1  ;;  %v3331_v17 = vpop.f32.mrb[86].mxu0 }
 0x1a1   :  { %v3394_v18 = vadd.f32 %v3393_v15, %v3392_v9  ;;  %v3395_v39 = vpop.f32.mrb[86].mxu1  ;;  %v3332_v22 = vpop.f32.mrb[87].mxu0 }
 0x1a2   :  { %v2277_v45 = vadd.f32 %v3330_v31, %v4538_v0  ;;  %v3333_v23 = vadd.f32 %v3332_v22, %v3331_v17  ;;  %v3396_v24 = vpop.f32.mrb[87].mxu1 }
 0x1a3   :  { %v3397_v41 = vadd.f32 %v3396_v24, %v3395_v39 }
 0x1a4   :  { %v4586_v27 = vadd.f32 %v3394_v18, %v2277_v45  ;;  %v2280_v52 = vadd.f32 %v3333_v23, %v4541_v12 }
 0x1a6   :  { %v4589_v49 = vadd.f32 %v3397_v41, %v2280_v52  ;;  %v3334_v28 = vpop.f32.mrb[88].mxu0 }
 0x1a7   :  { %v3398_v29 = vpop.f32.mrb[88].mxu1  ;;  %v3335_v36 = vpop.f32.mrb[89].mxu0 }
 0x1a8   :  { %v3336_v50 = vadd.f32 %v3335_v36, %v3334_v28  ;;  %v3399_v33 = vpop.f32.mrb[89].mxu1  ;;  %v3337_v34 = vpop.f32.mrb[90].mxu0 }
 0x1a9   :  { %v3400_v38 = vadd.f32 %v3399_v33, %v3398_v29  ;;  %v3401_v58 = vpop.f32.mrb[90].mxu1  ;;  %v3338_v42 = vpop.f32.mrb[91].mxu0 }
 0x1aa   :  { %v2285_v0 = vadd.f32 %v3336_v50, %v4544_v20  ;;  %v3339_v43 = vadd.f32 %v3338_v42, %v3337_v34  ;;  %v3402_v44 = vpop.f32.mrb[91].mxu1 }
 0x1ab   :  { %v3403_v1 = vadd.f32 %v3402_v44, %v3401_v58 }
 0x1ac   :  { %v4592_v46 = vadd.f32 %v3400_v38, %v2285_v0  ;;  %v2288_v12 = vadd.f32 %v3339_v43, %v4547_v37 }
 0x1ae   :  { %v4595_v5 = vadd.f32 %v3403_v1, %v2288_v12  ;;  %v3340_v47 = vpop.f32.mrb[92].mxu0 }
 0x1af   :  { %v3404_v48 = vpop.f32.mrb[92].mxu1  ;;  %v3341_v56 = vpop.f32.mrb[93].mxu0 }
 0x1b0   :  { %v3342_v6 = vadd.f32 %v3341_v56, %v3340_v47  ;;  %v3405_v53 = vpop.f32.mrb[93].mxu1  ;;  %v3343_v54 = vpop.f32.mrb[94].mxu0 }
 0x1b1   :  { %v3406_v57 = vadd.f32 %v3405_v53, %v3404_v48  ;;  %v3407_v13 = vpop.f32.mrb[94].mxu1  ;;  %v3344_v60 = vpop.f32.mrb[95].mxu0 }
 0x1b2   :  { %v2293_v20 = vadd.f32 %v3342_v6, %v4550_v40  ;;  %v3345_v61 = vadd.f32 %v3344_v60, %v3343_v54  ;;  %v3408_v62 = vpop.f32.mrb[95].mxu1 }
 0x1b3   :  { %v3409_v21 = vadd.f32 %v3408_v62, %v3407_v13 }
 0x1b4   :  { %v4598_v2 = vadd.f32 %v3406_v57, %v2293_v20  ;;  %v2296_v37 = vadd.f32 %v3345_v61, %v4553_v63 }
 0x1b6   :  { %v4601_v25 = vadd.f32 %v3409_v21, %v2296_v37  ;;  %v3426_v3 = vpop.f32.mrb[96].mxu0 }
 0x1b7   :  { %v3490_v4 = vpop.f32.mrb[96].mxu1  ;;  %v3427_v16 = vpop.f32.mrb[97].mxu0 }
 0x1b8   :  { %v3428_v26 = vadd.f32 %v3427_v16, %v3426_v3  ;;  %v3491_v8 = vpop.f32.mrb[97].mxu1  ;;  %v3429_v9 = vpop.f32.mrb[98].mxu0 }
 0x1b9   :  { %v3492_v11 = vadd.f32 %v3491_v8, %v3490_v4  ;;  %v3493_v31 = vpop.f32.mrb[98].mxu1  ;;  %v3430_v15 = vpop.f32.mrb[99].mxu0 }
 0x1ba   :  { %v2431_v40 = vadd.f32 %v3428_v26, %v4556_v59  ;;  %v3431_v17 = vadd.f32 %v3430_v15, %v3429_v9  ;;  %v3494_v18 = vpop.f32.mrb[99].mxu1 }
 0x1bb   :  { %v3495_v39 = vadd.f32 %v3494_v18, %v3493_v31 }
 0x1bc   :  { %v2528_v22 = vadd.f32 %v3492_v11, %v2431_v40  ;;  %v2434_v45 = vadd.f32 %v3431_v17, %v4559_v19 }
 0x1be   :  { %v2531_v63 = vadd.f32 %v3495_v39, %v2434_v45  ;;  %v3432_v23 = vpop.f32.mrb[100].mxu0  ;;  %v2590_v52 = vmax.f32 %v2528_v22, 0.0 }
 0x1bf   :  { %v3496_v24 = vpop.f32.mrb[100].mxu1  ;;  %v3433_v41 = vpop.f32.mrb[101].mxu0 }
 0x1c0   :  { %v2591_v28 = vmax.f32 %v2531_v63, 0.0  ;;  %v3434_v29 = vadd.f32 %v3433_v41, %v3432_v23  ;;  %v3497_v36 = vpop.f32.mrb[101].mxu1  ;;  %v3435_v50 = vpop.f32.mrb[102].mxu0 }
 0x1c1   :  { %v3498_v33 = vadd.f32 %v3497_v36, %v3496_v24  ;;  %v3499_v34 = vpop.f32.mrb[102].mxu1  ;;  %v3436_v38 = vpop.f32.mrb[103].mxu0 }
 0x1c2   :  { %v2982_v58 = vpack.c.bf16 %v2591_v28, %v2590_v52  ;;  %v2439_v59 = vadd.f32 %v3434_v29, %v4562_v14  ;;  %v3437_v42 = vadd.f32 %v3436_v38, %v3435_v50  ;;  %v3500_v0 = vpop.f32.mrb[103].mxu1 }
 0x1c3   :  { %v3501_v43 = vadd.f32 %v3500_v0, %v3499_v34 }
 0x1c4   :  { %2983 = vst [vmem:[%s4646_s3] sm:$0xff] %v2982_v58   ;;  %v2536_v19 = vadd.f32 %v3498_v33, %v2439_v59  ;;  %v2442_v44 = vadd.f32 %v3437_v42, %v4565_v35 }
 0x1c6   :  { %v2539_v1 = vadd.f32 %v3501_v43, %v2442_v44  ;;  %v3438_v12 = vpop.f32.mrb[104].mxu0  ;;  %v2592_v56 = vmax.f32 %v2536_v19, 0.0 }
 0x1c7   :  { %v3502_v47 = vpop.f32.mrb[104].mxu1  ;;  %v3439_v48 = vpop.f32.mrb[105].mxu0 }
 0x1c8   :  { %v2593_v6 = vmax.f32 %v2539_v1, 0.0  ;;  %v3440_v53 = vadd.f32 %v3439_v48, %v3438_v12  ;;  %v3503_v54 = vpop.f32.mrb[105].mxu1  ;;  %v3441_v57 = vpop.f32.mrb[106].mxu0 }
 0x1c9   :  { %v3504_v14 = vadd.f32 %v3503_v54, %v3502_v47  ;;  %v3505_v13 = vpop.f32.mrb[106].mxu1  ;;  %v3442_v60 = vpop.f32.mrb[107].mxu0 }
 0x1ca   :  { %v2987_v20 = vpack.c.bf16 %v2593_v6, %v2592_v56  ;;  %v2447_v61 = vadd.f32 %v3440_v53, %v4568_v32  ;;  %v3443_v62 = vadd.f32 %v3442_v60, %v3441_v57  ;;  %v3506_v21 = vpop.f32.mrb[107].mxu1 }
 0x1cb   :  { %v3507_v37 = vadd.f32 %v3506_v21, %v3505_v13 }
 0x1cc   :  { %3019 = vst [vmem:[%s4646_s3 + $0x8] sm:$0xff] %v2987_v20   ;;  %v2544_v35 = vadd.f32 %v3504_v14, %v2447_v61  ;;  %v2450_v3 = vadd.f32 %v3443_v62, %v4571_v55 }
 0x1ce   :  { %v2547_v4 = vadd.f32 %v3507_v37, %v2450_v3  ;;  %v3444_v16 = vpop.f32.mrb[108].mxu0  ;;  %v2594_v9 = vmax.f32 %v2544_v35, 0.0 }
 0x1cf   :  { %v3508_v26 = vpop.f32.mrb[108].mxu1  ;;  %v3445_v8 = vpop.f32.mrb[109].mxu0 }
 0x1d0   :  { %v2595_v11 = vmax.f32 %v2547_v4, 0.0  ;;  %v3446_v31 = vadd.f32 %v3445_v8, %v3444_v16  ;;  %v3509_v15 = vpop.f32.mrb[109].mxu1  ;;  %v3447_v40 = vpop.f32.mrb[110].mxu0 }
 0x1d1   :  { %v3510_v32 = vadd.f32 %v3509_v15, %v3508_v26  ;;  %v3511_v17 = vpop.f32.mrb[110].mxu1  ;;  %v3448_v18 = vpop.f32.mrb[111].mxu0 }
 0x1d2   :  { %v2992_v39 = vpack.c.bf16 %v2595_v11, %v2594_v9  ;;  %v2455_v22 = vadd.f32 %v3446_v31, %v4574_v51  ;;  %v3449_v45 = vadd.f32 %v3448_v18, %v3447_v40  ;;  %v3512_v63 = vpop.f32.mrb[111].mxu1 }
 0x1d3   :  { %v3513_v23 = vadd.f32 %v3512_v63, %v3511_v17 }
 0x1d4   :  { %3020 = vst [vmem:[%s4646_s3 + $0x10] sm:$0xff] %v2992_v39   ;;  %v2552_v55 = vadd.f32 %v3510_v32, %v2455_v22  ;;  %v2458_v24 = vadd.f32 %v3449_v45, %v4577_v10 }
 0x1d6   :  { %v2555_v41 = vadd.f32 %v3513_v23, %v2458_v24  ;;  %v3450_v52 = vpop.f32.mrb[112].mxu0  ;;  %v2596_v36 = vmax.f32 %v2552_v55, 0.0 }
 0x1d7   :  { %v3514_v28 = vpop.f32.mrb[112].mxu1  ;;  %v3451_v29 = vpop.f32.mrb[113].mxu0 }
 0x1d8   :  { %v2597_v50 = vmax.f32 %v2555_v41, 0.0  ;;  %v3452_v33 = vadd.f32 %v3451_v29, %v3450_v52  ;;  %v3515_v34 = vpop.f32.mrb[113].mxu1  ;;  %v3453_v38 = vpop.f32.mrb[114].mxu0 }
 0x1d9   :  { %v3516_v51 = vadd.f32 %v3515_v34, %v3514_v28  ;;  %v3517_v58 = vpop.f32.mrb[114].mxu1  ;;  %v3454_v59 = vpop.f32.mrb[115].mxu0 }
 0x1da   :  { %v2997_v42 = vpack.c.bf16 %v2597_v50, %v2596_v36  ;;  %v2463_v0 = vadd.f32 %v3452_v33, %v4580_v7  ;;  %v3455_v43 = vadd.f32 %v3454_v59, %v3453_v38  ;;  %v3518_v19 = vpop.f32.mrb[115].mxu1 }
 0x1db   :  { %v3519_v44 = vadd.f32 %v3518_v19, %v3517_v58 }
 0x1dc   :  { %3021 = vst [vmem:[%s4646_s3 + $0x18] sm:$0xff] %v2997_v42   ;;  %v2560_v10 = vadd.f32 %v3516_v51, %v2463_v0  ;;  %v2466_v1 = vadd.f32 %v3455_v43, %v4583_v30 }
 0x1de   :  { %v2563_v12 = vadd.f32 %v3519_v44, %v2466_v1  ;;  %v3456_v47 = vpop.f32.mrb[116].mxu0  ;;  %v2598_v6 = vmax.f32 %v2560_v10, 0.0 }
 0x1df   :  { %v3520_v48 = vpop.f32.mrb[116].mxu1  ;;  %v3457_v56 = vpop.f32.mrb[117].mxu0 }
 0x1e0   :  { %v2599_v53 = vmax.f32 %v2563_v12, 0.0  ;;  %v3458_v54 = vadd.f32 %v3457_v56, %v3456_v47  ;;  %v3521_v57 = vpop.f32.mrb[117].mxu1  ;;  %v3459_v14 = vpop.f32.mrb[118].mxu0 }
 0x1e1   :  { %v3522_v7 = vadd.f32 %v3521_v57, %v3520_v48  ;;  %v3523_v13 = vpop.f32.mrb[118].mxu1  ;;  %v3460_v60 = vpop.f32.mrb[119].mxu0 }
 0x1e2   :  { %v3002_v20 = vpack.c.bf16 %v2599_v53, %v2598_v6  ;;  %v2471_v61 = vadd.f32 %v3458_v54, %v4586_v27  ;;  %v3461_v62 = vadd.f32 %v3460_v60, %v3459_v14  ;;  %v3524_v21 = vpop.f32.mrb[119].mxu1 }
 0x1e3   :  { %v3525_v37 = vadd.f32 %v3524_v21, %v3523_v13 }
 0x1e4   :  { %3022 = vst [vmem:[%s4646_s3 + $0x20] sm:$0xff] %v3002_v20   ;;  %v2568_v30 = vadd.f32 %v3522_v7, %v2471_v61  ;;  %v2474_v35 = vadd.f32 %v3461_v62, %v4589_v49 }
 0x1e6   :  { %v2571_v3 = vadd.f32 %v3525_v37, %v2474_v35  ;;  %v3462_v4 = vpop.f32.mrb[120].mxu0  ;;  %v2600_v8 = vmax.f32 %v2568_v30, 0.0 }
 0x1e7   :  { %v3526_v16 = vpop.f32.mrb[120].mxu1  ;;  %v3463_v26 = vpop.f32.mrb[121].mxu0 }
 0x1e8   :  { %v2601_v9 = vmax.f32 %v2571_v3, 0.0  ;;  %v3464_v11 = vadd.f32 %v3463_v26, %v3462_v4  ;;  %v3527_v31 = vpop.f32.mrb[121].mxu1  ;;  %v3465_v15 = vpop.f32.mrb[122].mxu0 }
 0x1e9   :  { %v3528_v27 = vadd.f32 %v3527_v31, %v3526_v16  ;;  %v3529_v40 = vpop.f32.mrb[122].mxu1  ;;  %v3466_v32 = vpop.f32.mrb[123].mxu0 }
 0x1ea   :  { %v3007_v17 = vpack.c.bf16 %v2601_v9, %v2600_v8  ;;  %v2479_v18 = vadd.f32 %v3464_v11, %v4592_v46  ;;  %v3467_v39 = vadd.f32 %v3466_v32, %v3465_v15  ;;  %v3530_v22 = vpop.f32.mrb[123].mxu1 }
 0x1eb   :  { %v3531_v45 = vadd.f32 %v3530_v22, %v3529_v40 }
 0x1ec   :  { %3023 = vst [vmem:[%s4646_s3 + $0x28] sm:$0xff] %v3007_v17   ;;  %v2576_v49 = vadd.f32 %v3528_v27, %v2479_v18  ;;  %v2482_v63 = vadd.f32 %v3467_v39, %v4595_v5 }
 0x1ee   :  { %v2579_v23 = vadd.f32 %v3531_v45, %v2482_v63  ;;  %v3468_v55 = vpop.f32.mrb[124].mxu0  ;;  %v2602_v52 = vmax.f32 %v2576_v49, 0.0 }
 0x1ef   :  { %v3532_v24 = vpop.f32.mrb[124].mxu1  ;;  %v3469_v41 = vpop.f32.mrb[125].mxu0 }
 0x1f0   :  { %v2603_v28 = vmax.f32 %v2579_v23, 0.0  ;;  %v3470_v29 = vadd.f32 %v3469_v41, %v3468_v55  ;;  %v3533_v36 = vpop.f32.mrb[125].mxu1  ;;  %v3471_v50 = vpop.f32.mrb[126].mxu0 }
 0x1f1   :  { %v3534_v46 = vadd.f32 %v3533_v36, %v3532_v24  ;;  %v3535_v33 = vpop.f32.mrb[126].mxu1  ;;  %v3472_v34 = vpop.f32.mrb[127].mxu0 }
 0x1f2   :  { %v3012_v38 = vpack.c.bf16 %v2603_v28, %v2602_v52  ;;  %v2487_v51 = vadd.f32 %v3470_v29, %v4598_v2  ;;  %v3473_v58 = vadd.f32 %v3472_v34, %v3471_v50  ;;  %v3536_v59 = vpop.f32.mrb[127].mxu1 }
 0x1f3   :  { %v3537_v42 = vadd.f32 %v3536_v59, %v3535_v33 }
 0x1f4   :  { %3024 = vst [vmem:[%s4646_s3 + $0x30] sm:$0xff] %v3012_v38   ;;  %v2584_v5 = vadd.f32 %v3534_v46, %v2487_v51  ;;  %v2490_v0 = vadd.f32 %v3473_v58, %v4601_v25 }
 0x1f6   :  { %v2587_v43 = vadd.f32 %v3537_v42, %v2490_v0  ;;  %v2604_v19 = vmax.f32 %v2584_v5, 0.0 }
 0x1f8   :  { %v2605_v44 = vmax.f32 %v2587_v43, 0.0 }
 0x1fa   :  { %v3017_v10 = vpack.c.bf16 %v2605_v44, %v2604_v19 }
 0x1fc   :  { %3025 = vst [vmem:[%s4646_s3 + $0x38] sm:$0xff] %v3017_v10  }

// kernel: cnn_forward.10
= control target key start
LH: loop header
LB: loop body
LE: loop exit
PB: predicated region body
PF: predicated region fallthrough
CT: control target
= control target key end

     0   :  { %s2336_s1 = inlined_call_operand.vmem [shape: bf16[2048,128], index: 1, kind: input, shape index: {}]   ;;  %s2337_s0 = inlined_call_operand.vmem [shape: bf16[8,2048], index: 0, kind: input, shape index: {}]   ;;  %s2338_s2 = inlined_call_operand.vmem [shape: f32[1,128], index: 2, kind: input, shape index: {}]   ;;  %s2339_s3 = inlined_call_operand.vmem [shape: bf16[8,128], index: 3, kind: output, shape index: {}]  }
   0x1   :  { %v1758_v0 = vld [vmem:[%s2336_s1 + $0x40] sm:$0xff]   ;;  %v1762_v4 = vld [vmem:[%s2336_s1 + $0x48] sm:$0xff]   ;;  %v1766_v8 = vld [vmem:[%s2336_s1 + $0x50] sm:$0xff]  }
   0x2   :  { %v1759_v1 = vld [vmem:[%s2336_s1 + $0xc0] sm:$0xff]   ;;  %1582 = vmatprep.subr.bf16.mxu0 %v1758_v0  ;;  %v1763_v5 = vld [vmem:[%s2336_s1 + $0xc8] sm:$0xff]   ;;  %v1767_v9 = vld [vmem:[%s2336_s1 + $0xd0] sm:$0xff]  }
   0x3   :  { %v1760_v2 = vld [vmem:[%s2336_s1] sm:$0xff]   ;;  %1604 = vmatprep.subr.bf16.mxu1 %v1759_v1  ;;  %v1764_v6 = vld [vmem:[%s2336_s1 + $0x8] sm:$0xff]   ;;  %v1768_v10 = vld [vmem:[%s2336_s1 + $0x10] sm:$0xff]  }
   0x4   :  { %v1761_v3 = vld [vmem:[%s2336_s1 + $0x80] sm:$0xff]   ;;  %1583 = vmatpush3.bf16.msra.mxu0 %v1760_v2  ;;  %v1765_v7 = vld [vmem:[%s2336_s1 + $0x88] sm:$0xff]   ;;  %v1769_v11 = vld [vmem:[%s2336_s1 + $0x90] sm:$0xff]  }
   0x5   :  { %1605 = vmatpush3.bf16.msra.mxu1 %v1761_v3  ;;  %1584 = vmatprep.subr.bf16.mxu0 %v1762_v4  ;;  %v1770_v12 = vld [vmem:[%s2336_s1 + $0x58] sm:$0xff]   ;;  %v1774_v16 = vld [vmem:[%s2336_s1 + $0x60] sm:$0xff]   ;;  %v1778_v20 = vld [vmem:[%s2336_s1 + $0x68] sm:$0xff]  }
   0x6   :  { %1606 = vmatprep.subr.bf16.mxu1 %v1763_v5  ;;  %v1771_v13 = vld [vmem:[%s2336_s1 + $0xd8] sm:$0xff]   ;;  %v1775_v17 = vld [vmem:[%s2336_s1 + $0xe0] sm:$0xff]   ;;  %v1779_v21 = vld [vmem:[%s2336_s1 + $0xe8] sm:$0xff]  }
   0x7   :  { %v1772_v14 = vld [vmem:[%s2336_s1 + $0x18] sm:$0xff]   ;;  %v1776_v18 = vld [vmem:[%s2336_s1 + $0x20] sm:$0xff]   ;;  %v1780_v22 = vld [vmem:[%s2336_s1 + $0x28] sm:$0xff]  }
   0x8   :  { %1585 = vmatpush3.bf16.msra.mxu0 %v1764_v6  ;;  %v1773_v15 = vld [vmem:[%s2336_s1 + $0x98] sm:$0xff]   ;;  %v1777_v19 = vld [vmem:[%s2336_s1 + $0xa0] sm:$0xff]   ;;  %v1781_v23 = vld [vmem:[%s2336_s1 + $0xa8] sm:$0xff]  }
   0x9   :  { %1607 = vmatpush3.bf16.msra.mxu1 %v1765_v7  ;;  %1586 = vmatprep.subr.bf16.mxu0 %v1766_v8  ;;  %v1782_v24 = vld [vmem:[%s2336_s1 + $0x70] sm:$0xff]   ;;  %v1786_v28 = vld [vmem:[%s2336_s1 + $0x78] sm:$0xff]   ;;  %v15_v32 = vld [vmem:[%s2337_s0] sm:$0xff] }
   0xa   :  { %1608 = vmatprep.subr.bf16.mxu1 %v1767_v9  ;;  %v1783_v25 = vld [vmem:[%s2336_s1 + $0xf0] sm:$0xff]   ;;  %v1787_v29 = vld [vmem:[%s2336_s1 + $0xf8] sm:$0xff]   ;;  %v16_v33 = vld [vmem:[%s2337_s0 + $0x8] sm:$0xff]  ;;  %v1438_v34 = vcombine.low %v15_v32, %v15_v32  ;;  %v1439_v35 = vcombine.high %v15_v32, %v15_v32 }
   0xb   :  { %v1784_v26 = vld [vmem:[%s2336_s1 + $0x30] sm:$0xff]   ;;  %v1788_v30 = vld [vmem:[%s2336_s1 + $0x38] sm:$0xff]   ;;  %v1440_v36 = vcombine.low %v16_v33, %v16_v33  ;;  %v1441_v37 = vcombine.high %v16_v33, %v16_v33  ;;  %v1794_v38 = vld [vmem:[%s2336_s1 + $0x140] sm:$0xff]  }
   0xc   :  { %1587 = vmatpush3.bf16.msra.mxu0 %v1768_v10  ;;  %v1785_v27 = vld [vmem:[%s2336_s1 + $0xb0] sm:$0xff]   ;;  %v1789_v31 = vld [vmem:[%s2336_s1 + $0xb8] sm:$0xff]   ;;  %v1795_v39 = vld [vmem:[%s2336_s1 + $0x1c0] sm:$0xff]   ;;  %1142 = vmatprep.mubr.bf16.mxu0 %v1439_v35 }
   0xd   :  { %1609 = vmatpush3.bf16.msra.mxu1 %v1769_v11  ;;  %1588 = vmatprep.subr.bf16.mxu0 %v1770_v12  ;;  %v1796_v40 = vld [vmem:[%s2336_s1 + $0x100] sm:$0xff]   ;;  %v1798_v42 = vld [vmem:[%s2336_s1 + $0x148] sm:$0xff]   ;;  %v1802_v46 = vld [vmem:[%s2336_s1 + $0x150] sm:$0xff]  }
   0xe   :  { %1610 = vmatprep.subr.bf16.mxu1 %v1771_v13  ;;  %1182 = vmatprep.mubr.bf16.mxu1 %v1441_v37  ;;  %v1797_v41 = vld [vmem:[%s2336_s1 + $0x180] sm:$0xff]   ;;  %v1799_v43 = vld [vmem:[%s2336_s1 + $0x1c8] sm:$0xff]   ;;  %v1803_v47 = vld [vmem:[%s2336_s1 + $0x1d0] sm:$0xff]  }
   0xf   :  { %v1800_v44 = vld [vmem:[%s2336_s1 + $0x108] sm:$0xff]   ;;  %v1804_v48 = vld [vmem:[%s2336_s1 + $0x110] sm:$0xff]   ;;  %v1806_v50 = vld [vmem:[%s2336_s1 + $0x158] sm:$0xff]  }
  0x10   :  { %1589 = vmatpush3.bf16.msra.mxu0 %v1772_v14  ;;  %v1801_v45 = vld [vmem:[%s2336_s1 + $0x188] sm:$0xff]   ;;  %v1805_v49 = vld [vmem:[%s2336_s1 + $0x190] sm:$0xff]   ;;  %v1807_v51 = vld [vmem:[%s2336_s1 + $0x1d8] sm:$0xff]  }
  0x11   :  { %1611 = vmatpush3.bf16.msra.mxu1 %v1773_v15  ;;  %1590 = vmatprep.subr.bf16.mxu0 %v1774_v16  ;;  %v1808_v52 = vld [vmem:[%s2336_s1 + $0x118] sm:$0xff]   ;;  %v1810_v54 = vld [vmem:[%s2336_s1 + $0x160] sm:$0xff]   ;;  %v1814_v58 = vld [vmem:[%s2336_s1 + $0x168] sm:$0xff]  }
  0x12   :  { %1612 = vmatprep.subr.bf16.mxu1 %v1775_v17  ;;  %v1809_v53 = vld [vmem:[%s2336_s1 + $0x198] sm:$0xff]   ;;  %v1811_v55 = vld [vmem:[%s2336_s1 + $0x1e0] sm:$0xff]   ;;  %v1815_v59 = vld [vmem:[%s2336_s1 + $0x1e8] sm:$0xff]  }
  0x13   :  { %v1812_v56 = vld [vmem:[%s2336_s1 + $0x120] sm:$0xff]   ;;  %v1816_v60 = vld [vmem:[%s2336_s1 + $0x128] sm:$0xff]   ;;  %v1818_v62 = vld [vmem:[%s2336_s1 + $0x170] sm:$0xff]  }
  0x14   :  { %1591 = vmatpush3.bf16.msra.mxu0 %v1776_v18  ;;  %v1813_v57 = vld [vmem:[%s2336_s1 + $0x1a0] sm:$0xff]   ;;  %v1817_v61 = vld [vmem:[%s2336_s1 + $0x1a8] sm:$0xff]   ;;  %v1819_v63 = vld [vmem:[%s2336_s1 + $0x1f0] sm:$0xff]  }
  0x15   :  { %1613 = vmatpush3.bf16.msra.mxu1 %v1777_v19  ;;  %1592 = vmatprep.subr.bf16.mxu0 %v1778_v20  ;;  %v1820_v0 = vld [vmem:[%s2336_s1 + $0x130] sm:$0xff]   ;;  %v1822_v2 = vld [vmem:[%s2336_s1 + $0x178] sm:$0xff]   ;;  %v1830_v12 = vld [vmem:[%s2336_s1 + $0x240] sm:$0xff]  }
  0x16   :  { %1614 = vmatprep.subr.bf16.mxu1 %v1779_v21  ;;  %v1821_v1 = vld [vmem:[%s2336_s1 + $0x1b0] sm:$0xff]   ;;  %v1823_v3 = vld [vmem:[%s2336_s1 + $0x1f8] sm:$0xff]   ;;  %v1831_v13 = vld [vmem:[%s2336_s1 + $0x2c0] sm:$0xff]  }
  0x17   :  { %v1824_v4 = vld [vmem:[%s2336_s1 + $0x138] sm:$0xff]   ;;  %v17_v6 = vld [vmem:[%s2337_s0 + $0x10] sm:$0xff]  ;;  %v1832_v14 = vld [vmem:[%s2336_s1 + $0x200] sm:$0xff]  }
  0x18   :  { %1593 = vmatpush3.bf16.msra.mxu0 %v1780_v22  ;;  %v1825_v5 = vld [vmem:[%s2336_s1 + $0x1b8] sm:$0xff]   ;;  %v1442_v7 = vcombine.low %v17_v6, %v17_v6  ;;  %v1443_v8 = vcombine.high %v17_v6, %v17_v6  ;;  %v1833_v15 = vld [vmem:[%s2336_s1 + $0x280] sm:$0xff]   ;;  %v1834_v16 = vld [vmem:[%s2336_s1 + $0x248] sm:$0xff]  }
  0x19   :  { %1615 = vmatpush3.bf16.msra.mxu1 %v1781_v23  ;;  %1594 = vmatprep.subr.bf16.mxu0 %v1782_v24  ;;  %v18_v9 = vld [vmem:[%s2337_s0 + $0x18] sm:$0xff]  ;;  %v1835_v17 = vld [vmem:[%s2336_s1 + $0x2c8] sm:$0xff]   ;;  %v1838_v20 = vld [vmem:[%s2336_s1 + $0x250] sm:$0xff]  }
  0x1a   :  { %1616 = vmatprep.subr.bf16.mxu1 %v1783_v25  ;;  %v1444_v10 = vcombine.low %v18_v9, %v18_v9  ;;  %v1445_v11 = vcombine.high %v18_v9, %v18_v9  ;;  %v1836_v18 = vld [vmem:[%s2336_s1 + $0x208] sm:$0xff]   ;;  %v1839_v21 = vld [vmem:[%s2336_s1 + $0x2d0] sm:$0xff]   ;;  %v1842_v24 = vld [vmem:[%s2336_s1 + $0x258] sm:$0xff]  }
  0x1b   :  { %v1837_v19 = vld [vmem:[%s2336_s1 + $0x288] sm:$0xff]   ;;  %v1840_v22 = vld [vmem:[%s2336_s1 + $0x210] sm:$0xff]   ;;  %v1843_v25 = vld [vmem:[%s2336_s1 + $0x2d8] sm:$0xff]  }
  0x1c   :  { %1595 = vmatpush3.bf16.msra.mxu0 %v1784_v26  ;;  %v1841_v23 = vld [vmem:[%s2336_s1 + $0x290] sm:$0xff]   ;;  %v1844_v26 = vld [vmem:[%s2336_s1 + $0x218] sm:$0xff]   ;;  %v1850_v32 = vld [vmem:[%s2336_s1 + $0x268] sm:$0xff]  }
  0x1d   :  { %1617 = vmatpush3.bf16.msra.mxu1 %v1785_v27  ;;  %1596 = vmatprep.subr.bf16.mxu0 %v1786_v28  ;;  %v1845_v27 = vld [vmem:[%s2336_s1 + $0x298] sm:$0xff]   ;;  %v1846_v28 = vld [vmem:[%s2336_s1 + $0x260] sm:$0xff]   ;;  %v1851_v33 = vld [vmem:[%s2336_s1 + $0x2e8] sm:$0xff]  }
  0x1e   :  { %1618 = vmatprep.subr.bf16.mxu1 %v1787_v29  ;;  %v1847_v29 = vld [vmem:[%s2336_s1 + $0x2e0] sm:$0xff]   ;;  %v1853_v35 = vld [vmem:[%s2336_s1 + $0x2a8] sm:$0xff]   ;;  %v1855_v37 = vld [vmem:[%s2336_s1 + $0x2f0] sm:$0xff]  }
  0x1f   :  { %v1886_v6 = vld [vmem:[%s2336_s1 + $0x368] sm:$0xff]  }
  0x20   :  { %1597 = vmatpush3.bf16.msra.mxu0 %v1788_v30  ;;  %v1848_v30 = vld [vmem:[%s2336_s1 + $0x220] sm:$0xff]   ;;  %v1889_v9 = vld [vmem:[%s2336_s1 + $0x3a8] sm:$0xff]  }
  0x21   :  { %1619 = vmatpush3.bf16.msra.mxu1 %v1789_v31  ;;  %1626 = vmatprep.subr.bf16.mxu0 %v1794_v38  ;;  %v1849_v31 = vld [vmem:[%s2336_s1 + $0x2a0] sm:$0xff]   ;;  %v1856_v38 = vld [vmem:[%s2336_s1 + $0x230] sm:$0xff]  }
  0x22   :  { %1648 = vmatprep.subr.bf16.mxu1 %v1795_v39  ;;  %v1857_v39 = vld [vmem:[%s2336_s1 + $0x2b0] sm:$0xff]  }
  0x23   :  { %1143 = vmatmul.mubr.bf16.vlgmr.msra.gmra.mrb[0].mxu0 %v1438_v34  ;;  %v1852_v34 = vld [vmem:[%s2336_s1 + $0x228] sm:$0xff]  }
  0x24   :  { %1183 = vmatmul.mubr.bf16.vlgmr.msra.gmra.mrb[0].mxu1 %v1440_v36  ;;  %1627 = vmatpush3.bf16.msra.mxu0 %v1796_v40  ;;  %v1854_v36 = vld [vmem:[%s2336_s1 + $0x270] sm:$0xff]   ;;  %v1858_v40 = vld [vmem:[%s2336_s1 + $0x278] sm:$0xff]  }
  0x25   :  { %1649 = vmatpush3.bf16.msra.mxu1 %v1797_v41  ;;  %1628 = vmatprep.subr.bf16.mxu0 %v1798_v42  ;;  %v1859_v41 = vld [vmem:[%s2336_s1 + $0x2f8] sm:$0xff]  }
  0x26   :  { %1650 = vmatprep.subr.bf16.mxu1 %v1799_v43  ;;  %1222 = vmatprep.mubr.bf16.mxu0 %v1443_v8  ;;  %v1860_v42 = vld [vmem:[%s2336_s1 + $0x238] sm:$0xff]   ;;  %v1888_v8 = vld [vmem:[%s2336_s1 + $0x328] sm:$0xff]  }
  0x27   :  { %1262 = vmatprep.mubr.bf16.mxu1 %v1445_v11  ;;  %v1861_v43 = vld [vmem:[%s2336_s1 + $0x2b8] sm:$0xff]   ;;  %v1891_v11 = vld [vmem:[%s2336_s1 + $0x3f0] sm:$0xff]  }
  0x28   :  { %1629 = vmatpush3.bf16.msra.mxu0 %v1800_v44  ;;  %v19_v44 = vld [vmem:[%s2337_s0 + $0x20] sm:$0xff] }
  0x29   :  { %1651 = vmatpush3.bf16.msra.mxu1 %v1801_v45  ;;  %1630 = vmatprep.subr.bf16.mxu0 %v1802_v46  ;;  %v20_v45 = vld [vmem:[%s2337_s0 + $0x28] sm:$0xff]  ;;  %v1446_v46 = vcombine.low %v19_v44, %v19_v44 }
  0x2a   :  { %1652 = vmatprep.subr.bf16.mxu1 %v1803_v47  ;;  %v1447_v47 = vcombine.high %v19_v44, %v19_v44 }
  0x2c   :  { %1631 = vmatpush3.bf16.msra.mxu0 %v1804_v48  ;;  %v1448_v48 = vcombine.low %v20_v45, %v20_v45 }
  0x2d   :  { %1653 = vmatpush3.bf16.msra.mxu1 %v1805_v49  ;;  %1632 = vmatprep.subr.bf16.mxu0 %v1806_v50  ;;  %v1449_v49 = vcombine.high %v20_v45, %v20_v45  ;;  %v1866_v50 = vld [vmem:[%s2336_s1 + $0x340] sm:$0xff]  }
  0x2e   :  { %1654 = vmatprep.subr.bf16.mxu1 %v1807_v51  ;;  %v1867_v51 = vld [vmem:[%s2336_s1 + $0x3c0] sm:$0xff]  }
  0x30   :  { %1633 = vmatpush3.bf16.msra.mxu0 %v1808_v52  ;;  %v1868_v52 = vld [vmem:[%s2336_s1 + $0x300] sm:$0xff]  }
  0x31   :  { %1655 = vmatpush3.bf16.msra.mxu1 %v1809_v53  ;;  %1634 = vmatprep.subr.bf16.mxu0 %v1810_v54  ;;  %v1869_v53 = vld [vmem:[%s2336_s1 + $0x380] sm:$0xff]   ;;  %v1870_v54 = vld [vmem:[%s2336_s1 + $0x348] sm:$0xff]  }
  0x32   :  { %1656 = vmatprep.subr.bf16.mxu1 %v1811_v55  ;;  %v1871_v55 = vld [vmem:[%s2336_s1 + $0x3c8] sm:$0xff]  }
  0x34   :  { %1635 = vmatpush3.bf16.msra.mxu0 %v1812_v56  ;;  %v1872_v56 = vld [vmem:[%s2336_s1 + $0x308] sm:$0xff]  }
  0x35   :  { %1657 = vmatpush3.bf16.msra.mxu1 %v1813_v57  ;;  %1636 = vmatprep.subr.bf16.mxu0 %v1814_v58  ;;  %v1873_v57 = vld [vmem:[%s2336_s1 + $0x388] sm:$0xff]   ;;  %v1874_v58 = vld [vmem:[%s2336_s1 + $0x350] sm:$0xff]  }
  0x36   :  { %1658 = vmatprep.subr.bf16.mxu1 %v1815_v59  ;;  %v1875_v59 = vld [vmem:[%s2336_s1 + $0x3d0] sm:$0xff]  }
  0x38   :  { %1637 = vmatpush3.bf16.msra.mxu0 %v1816_v60  ;;  %v1876_v60 = vld [vmem:[%s2336_s1 + $0x310] sm:$0xff]  }
  0x39   :  { %1659 = vmatpush3.bf16.msra.mxu1 %v1817_v61  ;;  %1638 = vmatprep.subr.bf16.mxu0 %v1818_v62  ;;  %v1877_v61 = vld [vmem:[%s2336_s1 + $0x390] sm:$0xff]   ;;  %v1878_v62 = vld [vmem:[%s2336_s1 + $0x358] sm:$0xff]  }
  0x3a   :  { %1660 = vmatprep.subr.bf16.mxu1 %v1819_v63  ;;  %v1879_v63 = vld [vmem:[%s2336_s1 + $0x3d8] sm:$0xff]  }
  0x3c   :  { %1639 = vmatpush3.bf16.msra.mxu0 %v1820_v0  ;;  %v1880_v0 = vld [vmem:[%s2336_s1 + $0x318] sm:$0xff]  }
  0x3d   :  { %1661 = vmatpush3.bf16.msra.mxu1 %v1821_v1  ;;  %1640 = vmatprep.subr.bf16.mxu0 %v1822_v2  ;;  %v1881_v1 = vld [vmem:[%s2336_s1 + $0x398] sm:$0xff]   ;;  %v1882_v2 = vld [vmem:[%s2336_s1 + $0x360] sm:$0xff]  }
  0x3e   :  { %1662 = vmatprep.subr.bf16.mxu1 %v1823_v3  ;;  %v1883_v3 = vld [vmem:[%s2336_s1 + $0x3e0] sm:$0xff]  }
  0x40   :  { %1641 = vmatpush3.bf16.msra.mxu0 %v1824_v4  ;;  %v1884_v4 = vld [vmem:[%s2336_s1 + $0x320] sm:$0xff]  }
  0x41   :  { %1663 = vmatpush3.bf16.msra.mxu1 %v1825_v5  ;;  %1670 = vmatprep.subr.bf16.mxu0 %v1830_v12  ;;  %v1885_v5 = vld [vmem:[%s2336_s1 + $0x3a0] sm:$0xff]   ;;  %v1892_v12 = vld [vmem:[%s2336_s1 + $0x330] sm:$0xff]  }
  0x42   :  { %1692 = vmatprep.subr.bf16.mxu1 %v1831_v13  ;;  %v1893_v13 = vld [vmem:[%s2336_s1 + $0x3b0] sm:$0xff]  }
  0x43   :  { %1223 = vmatmul.mubr.bf16.vlgmr.msra.gmra.mrb[4].mxu0 %v1442_v7  ;;  %v1887_v7 = vld [vmem:[%s2336_s1 + $0x3e8] sm:$0xff]  }
  0x44   :  { %1263 = vmatmul.mubr.bf16.vlgmr.msra.gmra.mrb[4].mxu1 %v1444_v10  ;;  %1671 = vmatpush3.bf16.msra.mxu0 %v1832_v14  ;;  %v1890_v10 = vld [vmem:[%s2336_s1 + $0x370] sm:$0xff]   ;;  %v1894_v14 = vld [vmem:[%s2336_s1 + $0x378] sm:$0xff]  }
  0x45   :  { %1693 = vmatpush3.bf16.msra.mxu1 %v1833_v15  ;;  %1672 = vmatprep.subr.bf16.mxu0 %v1834_v16  ;;  %v1895_v15 = vld [vmem:[%s2336_s1 + $0x3f8] sm:$0xff]  }
  0x46   :  { %1694 = vmatprep.subr.bf16.mxu1 %v1835_v17  ;;  %1302 = vmatprep.mubr.bf16.mxu0 %v1447_v47  ;;  %v1896_v16 = vld [vmem:[%s2336_s1 + $0x338] sm:$0xff]  }
  0x47   :  { %1342 = vmatprep.mubr.bf16.mxu1 %v1449_v49  ;;  %v1897_v17 = vld [vmem:[%s2336_s1 + $0x3b8] sm:$0xff]  }
  0x48   :  { %1673 = vmatpush3.bf16.msra.mxu0 %v1836_v18  ;;  %v21_v18 = vld [vmem:[%s2337_s0 + $0x30] sm:$0xff] }
  0x49   :  { %1695 = vmatpush3.bf16.msra.mxu1 %v1837_v19  ;;  %1674 = vmatprep.subr.bf16.mxu0 %v1838_v20  ;;  %v22_v19 = vld [vmem:[%s2337_s0 + $0x38] sm:$0xff]  ;;  %v1450_v20 = vcombine.low %v21_v18, %v21_v18 }
  0x4a   :  { %1696 = vmatprep.subr.bf16.mxu1 %v1839_v21  ;;  %v1451_v21 = vcombine.high %v21_v18, %v21_v18 }
  0x4c   :  { %1675 = vmatpush3.bf16.msra.mxu0 %v1840_v22  ;;  %v1452_v22 = vcombine.low %v22_v19, %v22_v19 }
  0x4d   :  { %1697 = vmatpush3.bf16.msra.mxu1 %v1841_v23  ;;  %1676 = vmatprep.subr.bf16.mxu0 %v1842_v24  ;;  %v1453_v23 = vcombine.high %v22_v19, %v22_v19 }
  0x4e   :  { %1698 = vmatprep.subr.bf16.mxu1 %v1843_v25 }
  0x50   :  { %1677 = vmatpush3.bf16.msra.mxu0 %v1844_v26  ;;  %v1437_v26 = vld [vmem:[%s2338_s2] ss:$0 sm:$0xff] }
  0x51   :  { %1699 = vmatpush3.bf16.msra.mxu1 %v1845_v27  ;;  %1678 = vmatprep.subr.bf16.mxu0 %v1846_v28 }
  0x52   :  { %1700 = vmatprep.subr.bf16.mxu1 %v1847_v29 }
  0x54   :  { %1679 = vmatpush3.bf16.msra.mxu0 %v1848_v30 }
  0x55   :  { %1701 = vmatpush3.bf16.msra.mxu1 %v1849_v31  ;;  %1680 = vmatprep.subr.bf16.mxu0 %v1850_v32 }
  0x56   :  { %1702 = vmatprep.subr.bf16.mxu1 %v1851_v33 }
  0x58   :  { %1681 = vmatpush3.bf16.msra.mxu0 %v1852_v34 }
  0x59   :  { %1703 = vmatpush3.bf16.msra.mxu1 %v1853_v35  ;;  %1682 = vmatprep.subr.bf16.mxu0 %v1854_v36 }
  0x5a   :  { %1704 = vmatprep.subr.bf16.mxu1 %v1855_v37 }
  0x5c   :  { %1683 = vmatpush3.bf16.msra.mxu0 %v1856_v38 }
  0x5d   :  { %1705 = vmatpush3.bf16.msra.mxu1 %v1857_v39  ;;  %1684 = vmatprep.subr.bf16.mxu0 %v1858_v40 }
  0x5e   :  { %1706 = vmatprep.subr.bf16.mxu1 %v1859_v41 }
  0x60   :  { %1685 = vmatpush3.bf16.msra.mxu0 %v1860_v42 }
  0x61   :  { %1707 = vmatpush3.bf16.msra.mxu1 %v1861_v43  ;;  %1714 = vmatprep.subr.bf16.mxu0 %v1866_v50 }
  0x62   :  { %1736 = vmatprep.subr.bf16.mxu1 %v1867_v51 }
  0x63   :  { %1303 = vmatmul.mubr.bf16.vlgmr.msra.gmra.mrb[8].mxu0 %v1446_v46 }
  0x64   :  { %1343 = vmatmul.mubr.bf16.vlgmr.msra.gmra.mrb[8].mxu1 %v1448_v48  ;;  %1715 = vmatpush3.bf16.msra.mxu0 %v1868_v52 }
  0x65   :  { %1737 = vmatpush3.bf16.msra.mxu1 %v1869_v53  ;;  %1716 = vmatprep.subr.bf16.mxu0 %v1870_v54 }
  0x66   :  { %1738 = vmatprep.subr.bf16.mxu1 %v1871_v55  ;;  %1382 = vmatprep.mubr.bf16.mxu0 %v1451_v21 }
  0x67   :  { %1422 = vmatprep.mubr.bf16.mxu1 %v1453_v23 }
  0x68   :  { %1717 = vmatpush3.bf16.msra.mxu0 %v1872_v56 }
  0x69   :  { %1739 = vmatpush3.bf16.msra.mxu1 %v1873_v57  ;;  %1718 = vmatprep.subr.bf16.mxu0 %v1874_v58 }
  0x6a   :  { %1740 = vmatprep.subr.bf16.mxu1 %v1875_v59 }
  0x6c   :  { %1719 = vmatpush3.bf16.msra.mxu0 %v1876_v60 }
  0x6d   :  { %1741 = vmatpush3.bf16.msra.mxu1 %v1877_v61  ;;  %1720 = vmatprep.subr.bf16.mxu0 %v1878_v62 }
  0x6e   :  { %1742 = vmatprep.subr.bf16.mxu1 %v1879_v63 }
  0x70   :  { %1721 = vmatpush3.bf16.msra.mxu0 %v1880_v0 }
  0x71   :  { %1743 = vmatpush3.bf16.msra.mxu1 %v1881_v1  ;;  %1722 = vmatprep.subr.bf16.mxu0 %v1882_v2 }
  0x72   :  { %1744 = vmatprep.subr.bf16.mxu1 %v1883_v3 }
  0x74   :  { %1723 = vmatpush3.bf16.msra.mxu0 %v1884_v4 }
  0x75   :  { %1745 = vmatpush3.bf16.msra.mxu1 %v1885_v5  ;;  %1724 = vmatprep.subr.bf16.mxu0 %v1886_v6 }
  0x76   :  { %1746 = vmatprep.subr.bf16.mxu1 %v1887_v7 }
  0x78   :  { %1725 = vmatpush3.bf16.msra.mxu0 %v1888_v8 }
  0x79   :  { %1747 = vmatpush3.bf16.msra.mxu1 %v1889_v9  ;;  %1726 = vmatprep.subr.bf16.mxu0 %v1890_v10 }
  0x7a   :  { %1748 = vmatprep.subr.bf16.mxu1 %v1891_v11 }
  0x7c   :  { %1727 = vmatpush3.bf16.msra.mxu0 %v1892_v12 }
  0x7d   :  { %1749 = vmatpush3.bf16.msra.mxu1 %v1893_v13  ;;  %1728 = vmatprep.subr.bf16.mxu0 %v1894_v14 }
  0x7e   :  { %1750 = vmatprep.subr.bf16.mxu1 %v1895_v15 }
  0x80   :  { %1729 = vmatpush3.bf16.msra.mxu0 %v1896_v16 }
  0x81   :  { %1751 = vmatpush3.bf16.msra.mxu1 %v1897_v17 }
  0x83   :  { %1383 = vmatmul.mubr.bf16.vlgmr.msra.gmra.mrb[12].mxu0 %v1450_v20 }
  0x84   :  { %1423 = vmatmul.mubr.bf16.vlgmr.msra.gmra.mrb[12].mxu1 %v1452_v22 }
  0xf6   :  { %v1598_v24 = vpop.f32.mrb[0].mxu0 }
  0xf7   :  { %v1620_v25 = vpop.f32.mrb[0].mxu1  ;;  %v1599_v27 = vpop.f32.mrb[1].mxu0 }
  0xf8   :  { %v1621_v28 = vpop.f32.mrb[1].mxu1  ;;  %v1600_v29 = vadd.f32 %v1599_v27, %v1598_v24  ;;  %v1601_v31 = vpop.f32.mrb[2].mxu0 }
  0xf9   :  { %v1622_v30 = vadd.f32 %v1621_v28, %v1620_v25  ;;  %v1623_v32 = vpop.f32.mrb[2].mxu1  ;;  %v1602_v33 = vpop.f32.mrb[3].mxu0 }
  0xfa   :  { %v1624_v34 = vpop.f32.mrb[3].mxu1  ;;  %v1145_v35 = vadd.f32 %v1600_v29, %v1437_v26 }
  0xfc   :  { %v1185_v36 = vadd.f32 %v1622_v30, %v1145_v35 }
 0x116   :  { %v1642_v37 = vpop.f32.mrb[4].mxu0 }
 0x117   :  { %v1664_v38 = vpop.f32.mrb[4].mxu1  ;;  %v1643_v39 = vpop.f32.mrb[5].mxu0 }
 0x118   :  { %v1665_v40 = vpop.f32.mrb[5].mxu1  ;;  %v1644_v41 = vadd.f32 %v1643_v39, %v1642_v37  ;;  %v1645_v43 = vpop.f32.mrb[6].mxu0 }
 0x119   :  { %v1666_v42 = vadd.f32 %v1665_v40, %v1664_v38  ;;  %v1667_v44 = vpop.f32.mrb[6].mxu1  ;;  %v1646_v45 = vpop.f32.mrb[7].mxu0 }
 0x11a   :  { %v1668_v46 = vpop.f32.mrb[7].mxu1  ;;  %v1225_v47 = vadd.f32 %v1644_v41, %v1185_v36 }
 0x11c   :  { %v1265_v48 = vadd.f32 %v1666_v42, %v1225_v47 }
 0x136   :  { %v1686_v49 = vpop.f32.mrb[8].mxu0 }
 0x137   :  { %v1708_v50 = vpop.f32.mrb[8].mxu1  ;;  %v1687_v51 = vpop.f32.mrb[9].mxu0 }
 0x138   :  { %v1688_v52 = vadd.f32 %v1687_v51, %v1686_v49  ;;  %v1709_v53 = vpop.f32.mrb[9].mxu1  ;;  %v1689_v54 = vpop.f32.mrb[10].mxu0 }
 0x139   :  { %v1710_v55 = vadd.f32 %v1709_v53, %v1708_v50  ;;  %v1711_v56 = vpop.f32.mrb[10].mxu1  ;;  %v1690_v57 = vpop.f32.mrb[11].mxu0 }
 0x13a   :  { %v1305_v58 = vadd.f32 %v1688_v52, %v1265_v48  ;;  %v1712_v59 = vpop.f32.mrb[11].mxu1 }
 0x13c   :  { %v1345_v60 = vadd.f32 %v1710_v55, %v1305_v58 }
 0x156   :  { %v1730_v61 = vpop.f32.mrb[12].mxu0 }
 0x157   :  { %v1752_v62 = vpop.f32.mrb[12].mxu1  ;;  %v1731_v63 = vpop.f32.mrb[13].mxu0 }
 0x158   :  { %v1732_v0 = vadd.f32 %v1731_v63, %v1730_v61  ;;  %v1753_v1 = vpop.f32.mrb[13].mxu1  ;;  %v1733_v2 = vpop.f32.mrb[14].mxu0 }
 0x159   :  { %v1754_v3 = vadd.f32 %v1753_v1, %v1752_v62  ;;  %v1755_v4 = vpop.f32.mrb[14].mxu1  ;;  %v1734_v5 = vpop.f32.mrb[15].mxu0 }
 0x15a   :  { %v1385_v6 = vadd.f32 %v1732_v0, %v1345_v60  ;;  %v1756_v7 = vpop.f32.mrb[15].mxu1 }
 0x15c   :  { %v1425_v8 = vadd.f32 %v1754_v3, %v1385_v6 }
 0x15e   :  { %v1430_v9 = vmax.f32 %v1425_v8, 0.0 }
 0x160   :  { %v1431_v10 = vpack.c.bf16 %v1430_v9, %v1430_v9 }
 0x162   :  { %1432 = vst [vmem:[%s2339_s3] sm:$0xf] %v1431_v10 }

// kernel: cnn_forward.11
= control target key start
LH: loop header
LB: loop body
LE: loop exit
PB: predicated region body
PF: predicated region fallthrough
CT: control target
= control target key end

     0   :  { %v274_v36 = vlaneseq  ;;  %v2698_v37 = vmov 1966171168   ;;  %s3553_s1 = inlined_call_operand.vmem [shape: bf16[2048,256], index: 1, kind: input, shape index: {}]   ;;  %s3554_s0 = inlined_call_operand.vmem [shape: bf16[2,2048], index: 0, kind: input, shape index: {}]   ;;  %s3555_s2 = inlined_call_operand.vmem [shape: f32[1,256], index: 2, kind: input, shape index: {}]   ;;  %s3556_s3 = inlined_call_operand.vmem [shape: f32[2,256], index: 3, kind: output, shape index: {}]  }
   0x1   :  { %v2312_v0 = vld [vmem:[%s3553_s1 + $0x4] ss:$8 sps:$4 sm:$0xff]   ;;  %v2316_v2 = vld [vmem:[%s3553_s1] ss:$8 sps:$4 sm:$0xff]   ;;  %v2318_v4 = vld [vmem:[%s3553_s1 + $0x14] ss:$8 sps:$4 sm:$0xff]   ;;  %v288_v38 = vunpack.c.l.s4 %v2698_v37 }
   0x2   :  { %v2314_v1 = vld [vmem:[%s3553_s1 + $0x404] ss:$8 sps:$4 sm:$0xff]   ;;  %1680 = vmatprep.subr.bf16.mxu1 %v2312_v0  ;;  %v2317_v3 = vld [vmem:[%s3553_s1 + $0x400] ss:$8 sps:$4 sm:$0xff]   ;;  %v2320_v5 = vld [vmem:[%s3553_s1 + $0x414] ss:$8 sps:$4 sm:$0xff]  }
   0x3   :  { %1844 = vmatprep.subr.bf16.mxu0 %v2314_v1  ;;  %1681 = vmatpush1.bf16.msra.mxu1 %v2316_v2  ;;  %v2322_v6 = vld [vmem:[%s3553_s1 + $0x10] ss:$8 sps:$4 sm:$0xff]   ;;  %v2324_v8 = vld [vmem:[%s3553_s1 + $0x24] ss:$8 sps:$4 sm:$0xff]   ;;  %v2328_v10 = vld [vmem:[%s3553_s1 + $0x20] ss:$8 sps:$4 sm:$0xff]   ;;  %v289_v43 = vunpack.c.0.s8 %v288_v38 }
   0x4   :  { %1845 = vmatpush1.bf16.msra.mxu0 %v2317_v3  ;;  %1682 = vmatprep.subr.bf16.mxu1 %v2318_v4  ;;  %v2323_v7 = vld [vmem:[%s3553_s1 + $0x410] ss:$8 sps:$4 sm:$0xff]   ;;  %v2326_v9 = vld [vmem:[%s3553_s1 + $0x424] ss:$8 sps:$4 sm:$0xff]   ;;  %v2329_v11 = vld [vmem:[%s3553_s1 + $0x420] ss:$8 sps:$4 sm:$0xff]  }
   0x5   :  { %1846 = vmatprep.subr.bf16.mxu0 %v2320_v5  ;;  %v2330_v12 = vld [vmem:[%s3553_s1 + $0x34] ss:$8 sps:$4 sm:$0xff]   ;;  %v2334_v14 = vld [vmem:[%s3553_s1 + $0x30] ss:$8 sps:$4 sm:$0xff]   ;;  %v2336_v16 = vld [vmem:[%s3553_s1 + $0x44] ss:$8 sps:$4 sm:$0xff]  }
   0x6   :  { %v2332_v13 = vld [vmem:[%s3553_s1 + $0x434] ss:$8 sps:$4 sm:$0xff]   ;;  %v2335_v15 = vld [vmem:[%s3553_s1 + $0x430] ss:$8 sps:$4 sm:$0xff]   ;;  %v2338_v17 = vld [vmem:[%s3553_s1 + $0x444] ss:$8 sps:$4 sm:$0xff]  }
   0x7   :  { %1683 = vmatpush1.bf16.msra.mxu1 %v2322_v6  ;;  %v2340_v18 = vld [vmem:[%s3553_s1 + $0x40] ss:$8 sps:$4 sm:$0xff]   ;;  %v2342_v20 = vld [vmem:[%s3553_s1 + $0x54] ss:$8 sps:$4 sm:$0xff]   ;;  %v2346_v22 = vld [vmem:[%s3553_s1 + $0x50] ss:$8 sps:$4 sm:$0xff]  }
   0x8   :  { %1847 = vmatpush1.bf16.msra.mxu0 %v2323_v7  ;;  %1684 = vmatprep.subr.bf16.mxu1 %v2324_v8  ;;  %v2341_v19 = vld [vmem:[%s3553_s1 + $0x440] ss:$8 sps:$4 sm:$0xff]   ;;  %v2344_v21 = vld [vmem:[%s3553_s1 + $0x454] ss:$8 sps:$4 sm:$0xff]   ;;  %v2347_v23 = vld [vmem:[%s3553_s1 + $0x450] ss:$8 sps:$4 sm:$0xff]  }
   0x9   :  { %1848 = vmatprep.subr.bf16.mxu0 %v2326_v9  ;;  %v2348_v24 = vld [vmem:[%s3553_s1 + $0x64] ss:$8 sps:$4 sm:$0xff]   ;;  %v2352_v26 = vld [vmem:[%s3553_s1 + $0x60] ss:$8 sps:$4 sm:$0xff]   ;;  %v2354_v28 = vld [vmem:[%s3553_s1 + $0x74] ss:$8 sps:$4 sm:$0xff]  }
   0xa   :  { %v2350_v25 = vld [vmem:[%s3553_s1 + $0x464] ss:$8 sps:$4 sm:$0xff]   ;;  %v2353_v27 = vld [vmem:[%s3553_s1 + $0x460] ss:$8 sps:$4 sm:$0xff]   ;;  %v2356_v29 = vld [vmem:[%s3553_s1 + $0x474] ss:$8 sps:$4 sm:$0xff]  }
   0xb   :  { %1685 = vmatpush1.bf16.msra.mxu1 %v2328_v10  ;;  %v2358_v30 = vld [vmem:[%s3553_s1 + $0x70] ss:$8 sps:$4 sm:$0xff]   ;;  %v2360_v32 = vld [vmem:[%s3553_s1 + $0x84] ss:$8 sps:$4 sm:$0xff]   ;;  %v2364_v34 = vld [vmem:[%s3553_s1 + $0x80] ss:$8 sps:$4 sm:$0xff]  }
   0xc   :  { %1849 = vmatpush1.bf16.msra.mxu0 %v2329_v11  ;;  %1686 = vmatprep.subr.bf16.mxu1 %v2330_v12  ;;  %v2359_v31 = vld [vmem:[%s3553_s1 + $0x470] ss:$8 sps:$4 sm:$0xff]   ;;  %v2362_v33 = vld [vmem:[%s3553_s1 + $0x484] ss:$8 sps:$4 sm:$0xff]   ;;  %v2365_v35 = vld [vmem:[%s3553_s1 + $0x480] ss:$8 sps:$4 sm:$0xff]  }
   0xd   :  { %1850 = vmatprep.subr.bf16.mxu0 %v2332_v13  ;;  %v2366_v39 = vld [vmem:[%s3553_s1 + $0x94] ss:$8 sps:$4 sm:$0xff]   ;;  %v2370_v41 = vld [vmem:[%s3553_s1 + $0x90] ss:$8 sps:$4 sm:$0xff]   ;;  %v2836_v42 = vshrl.u32 %v274_v36, 7  ;;  %v14_v52 = vld [vmem:[%s3554_s0] sm:$0xff] }
   0xe   :  { %v2368_v40 = vld [vmem:[%s3553_s1 + $0x494] ss:$8 sps:$4 sm:$0xff]   ;;  %v2371_v44 = vld [vmem:[%s3553_s1 + $0x490] ss:$8 sps:$4 sm:$0xff]   ;;  %v2372_v45 = vld [vmem:[%s3553_s1 + $0xa4] ss:$8 sps:$4 sm:$0xff]   ;;  %v286_v12 = vcombine.high %v14_v52, %v14_v52 }
   0xf   :  { %1687 = vmatpush1.bf16.msra.mxu1 %v2334_v14  ;;  %v2374_v46 = vld [vmem:[%s3553_s1 + $0x4a4] ss:$8 sps:$4 sm:$0xff]   ;;  %v2376_v47 = vld [vmem:[%s3553_s1 + $0xa0] ss:$8 sps:$4 sm:$0xff]   ;;  %v2854_v49 = vsub.s32 %v289_v43, %v2836_v42  ;;  %v2378_v50 = vld [vmem:[%s3553_s1 + $0xb4] ss:$8 sps:$4 sm:$0xff]  }
  0x10   :  { %1851 = vmatpush1.bf16.msra.mxu0 %v2335_v15  ;;  %1688 = vmatprep.subr.bf16.mxu1 %v2336_v16  ;;  %v2377_v48 = vld [vmem:[%s3553_s1 + $0x4a0] ss:$8 sps:$4 sm:$0xff]   ;;  %v2380_v51 = vld [vmem:[%s3553_s1 + $0x4b4] ss:$8 sps:$4 sm:$0xff]   ;;  %v2382_v53 = vld [vmem:[%s3553_s1 + $0xb0] ss:$8 sps:$4 sm:$0xff]  }
  0x11   :  { %1852 = vmatprep.subr.bf16.mxu0 %v2338_v17  ;;  %v293_v54 = vrot.slane %v14_v52, %v2854_v49  ;;  %v2383_v55 = vld [vmem:[%s3553_s1 + $0x4b0] ss:$8 sps:$4 sm:$0xff]   ;;  %v15_v56 = vld [vmem:[%s3554_s0 + $0x8] sm:$0xff]  ;;  %v2390_v1 = vld [vmem:[%s3553_s1 + $0xd4] ss:$8 sps:$4 sm:$0xff]  }
  0x12   :  { %v2384_v57 = vld [vmem:[%s3553_s1 + $0xc4] ss:$8 sps:$4 sm:$0xff]   ;;  %v342_v60 = vrot.slane %v15_v56, %v2854_v49  ;;  %v2388_v63 = vld [vmem:[%s3553_s1 + $0xc0] ss:$8 sps:$4 sm:$0xff]   ;;  %v2392_v2 = vld [vmem:[%s3553_s1 + $0x4d4] ss:$8 sps:$4 sm:$0xff]   ;;  %v335_v13 = vcombine.high %v15_v56, %v15_v56 }
  0x13   :  { %1689 = vmatpush1.bf16.msra.mxu1 %v2340_v18  ;;  %v2386_v58 = vld [vmem:[%s3553_s1 + $0x4c4] ss:$8 sps:$4 sm:$0xff]   ;;  %v301_v59 = vcombine.high %v293_v54, %v293_v54  ;;  %v2389_v0 = vld [vmem:[%s3553_s1 + $0x4c0] ss:$8 sps:$4 sm:$0xff]   ;;  %v2394_v4 = vld [vmem:[%s3553_s1 + $0xd0] ss:$8 sps:$4 sm:$0xff]   ;;  %v300_v18 = vrot.slane %v286_v12, %v2854_v49 }
  0x14   :  { %1853 = vmatpush1.bf16.msra.mxu0 %v2341_v19  ;;  %1690 = vmatprep.subr.bf16.mxu1 %v2342_v20  ;;  %v350_v62 = vcombine.high %v342_v60, %v342_v60  ;;  %v2395_v5 = vld [vmem:[%s3553_s1 + $0x4d0] ss:$8 sps:$4 sm:$0xff]   ;;  %v2396_v6 = vld [vmem:[%s3553_s1 + $0xe4] ss:$8 sps:$4 sm:$0xff]   ;;  %v2400_v8 = vld [vmem:[%s3553_s1 + $0xe0] ss:$8 sps:$4 sm:$0xff]   ;;  %v349_v19 = vrot.slane %v335_v13, %v2854_v49  ;;  %v2938_v20 = vrot.slane %v293_v54, %v2854_v49 }
  0x15   :  { %1854 = vmatprep.subr.bf16.mxu0 %v2344_v21  ;;  %v2883_v61 = vrot.slane %v301_v59, %v2854_v49  ;;  %v2398_v7 = vld [vmem:[%s3553_s1 + $0x4e4] ss:$8 sps:$4 sm:$0xff]   ;;  %v2401_v9 = vld [vmem:[%s3553_s1 + $0x4e0] ss:$8 sps:$4 sm:$0xff]   ;;  %v2402_v10 = vld [vmem:[%s3553_s1 + $0xf4] ss:$8 sps:$4 sm:$0xff]   ;;  %v2941_v21 = vrot.slane %v342_v60, %v2854_v49 }
  0x16   :  { %v372_v3 = vrot.slane %v350_v62, %v2854_v49  ;;  %v2404_v11 = vld [vmem:[%s3553_s1 + $0x4f4] ss:$8 sps:$4 sm:$0xff]   ;;  %v2406_v14 = vld [vmem:[%s3553_s1 + $0xf0] ss:$8 sps:$4 sm:$0xff]   ;;  %v2411_v16 = vld [vmem:[%s3553_s1 + $0x104] ss:$8 sps:$4 sm:$0xff]  }
  0x17   :  { %1691 = vmatpush1.bf16.msra.mxu1 %v2346_v22  ;;  %1712 = vmatprep.mubr.bf16.mxu1 %v2883_v61  ;;  %v2407_v15 = vld [vmem:[%s3553_s1 + $0x4f0] ss:$8 sps:$4 sm:$0xff]   ;;  %v2415_v17 = vld [vmem:[%s3553_s1 + $0x504] ss:$8 sps:$4 sm:$0xff]   ;;  %v302_v22 = vcombine.high %v300_v18, %v300_v18  ;;  %v2422_v38 = vld [vmem:[%s3553_s1 + $0x120] ss:$8 sps:$4 sm:$0xff]  }
  0x18   :  { %1855 = vmatpush1.bf16.msra.mxu0 %v2347_v23  ;;  %1692 = vmatprep.subr.bf16.mxu1 %v2348_v24  ;;  %v351_v23 = vcombine.high %v349_v19, %v349_v19  ;;  %v2409_v24 = vld [vmem:[%s3553_s1 + $0x100] ss:$8 sps:$4 sm:$0xff]   ;;  %v2424_v36 = vld [vmem:[%s3553_s1 + $0x124] ss:$8 sps:$4 sm:$0xff]   ;;  %v2428_v43 = vld [vmem:[%s3553_s1 + $0x130] ss:$8 sps:$4 sm:$0xff]  }
  0x19   :  { %1856 = vmatprep.subr.bf16.mxu0 %v2350_v25  ;;  %1876 = vmatprep.mubr.bf16.mxu0 %v372_v3  ;;  %v2413_v25 = vld [vmem:[%s3553_s1 + $0x500] ss:$8 sps:$4 sm:$0xff]   ;;  %v2427_v37 = vld [vmem:[%s3553_s1 + $0x524] ss:$8 sps:$4 sm:$0xff]   ;;  %v2443_v52 = vld [vmem:[%s3553_s1 + $0x550] ss:$8 sps:$4 sm:$0xff]  }
  0x1a   :  { %v2451_v54 = vld [vmem:[%s3553_s1 + $0x564] ss:$8 sps:$4 sm:$0xff]   ;;  %v2449_v56 = vld [vmem:[%s3553_s1 + $0x560] ss:$8 sps:$4 sm:$0xff]   ;;  %v2452_v59 = vld [vmem:[%s3553_s1 + $0x170] ss:$8 sps:$4 sm:$0xff]  }
  0x1b   :  { %1693 = vmatpush1.bf16.msra.mxu1 %v2352_v26  ;;  %v2418_v26 = vld [vmem:[%s3553_s1 + $0x114] ss:$8 sps:$4 sm:$0xff]   ;;  %v2455_v60 = vld [vmem:[%s3553_s1 + $0x570] ss:$8 sps:$4 sm:$0xff]   ;;  %v2463_v62 = vld [vmem:[%s3553_s1 + $0x584] ss:$8 sps:$4 sm:$0xff]  }
  0x1c   :  { %1857 = vmatpush1.bf16.msra.mxu0 %v2353_v27  ;;  %1694 = vmatprep.subr.bf16.mxu1 %v2354_v28  ;;  %v2421_v27 = vld [vmem:[%s3553_s1 + $0x514] ss:$8 sps:$4 sm:$0xff]   ;;  %v2956_v28 = vrot.slane %v302_v22, %v2854_v49  ;;  %v2479_v12 = vld [vmem:[%s3553_s1 + $0x5b0] ss:$8 sps:$4 sm:$0xff]   ;;  %v2484_v13 = vld [vmem:[%s3553_s1 + $0x1c4] ss:$8 sps:$4 sm:$0xff]  }
  0x1d   :  { %1858 = vmatprep.subr.bf16.mxu0 %v2356_v29  ;;  %v2959_v29 = vrot.slane %v351_v23, %v2854_v49  ;;  %v2491_v22 = vld [vmem:[%s3553_s1 + $0x5d0] ss:$8 sps:$4 sm:$0xff]   ;;  %v2496_v23 = vld [vmem:[%s3553_s1 + $0x1e4] ss:$8 sps:$4 sm:$0xff]  }
  0x1f   :  { %1695 = vmatpush1.bf16.msra.mxu1 %v2358_v30  ;;  %v2962_v30 = vrot.slane %v300_v18, %v2854_v49  ;;  %v2493_v18 = vld [vmem:[%s3553_s1 + $0x5d4] ss:$8 sps:$4 sm:$0xff]  }
  0x20   :  { %1859 = vmatpush1.bf16.msra.mxu0 %v2359_v31  ;;  %1696 = vmatprep.subr.bf16.mxu1 %v2360_v32  ;;  %v333_v31 = vcombine.high %v2883_v61, %v2883_v61  ;;  %v382_v32 = vcombine.high %v372_v3, %v372_v3  ;;  %v2460_v61 = vld [vmem:[%s3553_s1 + $0x184] ss:$8 sps:$4 sm:$0xff]   ;;  %v2464_v3 = vld [vmem:[%s3553_s1 + $0x190] ss:$8 sps:$4 sm:$0xff]  }
  0x21   :  { %1860 = vmatprep.subr.bf16.mxu0 %v2362_v33  ;;  %v2967_v33 = vrot.slane %v349_v19, %v2854_v49  ;;  %v2442_v49 = vld [vmem:[%s3553_s1 + $0x154] ss:$8 sps:$4 sm:$0xff]   ;;  %v2488_v19 = vld [vmem:[%s3553_s1 + $0x1d0] ss:$8 sps:$4 sm:$0xff]  }
  0x23   :  { %1697 = vmatpush1.bf16.msra.mxu1 %v2364_v34  ;;  %v2416_v34 = vld [vmem:[%s3553_s1 + $0x110] ss:$8 sps:$4 sm:$0xff]  }
  0x24   :  { %1861 = vmatpush1.bf16.msra.mxu0 %v2365_v35  ;;  %1698 = vmatprep.subr.bf16.mxu1 %v2366_v39  ;;  %v2419_v35 = vld [vmem:[%s3553_s1 + $0x510] ss:$8 sps:$4 sm:$0xff]   ;;  %v2425_v39 = vld [vmem:[%s3553_s1 + $0x520] ss:$8 sps:$4 sm:$0xff]  }
  0x25   :  { %1862 = vmatprep.subr.bf16.mxu0 %v2368_v40  ;;  %v2430_v40 = vld [vmem:[%s3553_s1 + $0x134] ss:$8 sps:$4 sm:$0xff]  }
  0x27   :  { %1699 = vmatpush1.bf16.msra.mxu1 %v2370_v41  ;;  %v2433_v41 = vld [vmem:[%s3553_s1 + $0x534] ss:$8 sps:$4 sm:$0xff]  }
  0x28   :  { %1863 = vmatpush1.bf16.msra.mxu0 %v2371_v44  ;;  %1700 = vmatprep.subr.bf16.mxu1 %v2372_v45  ;;  %v2431_v44 = vld [vmem:[%s3553_s1 + $0x530] ss:$8 sps:$4 sm:$0xff]   ;;  %v2436_v45 = vld [vmem:[%s3553_s1 + $0x144] ss:$8 sps:$4 sm:$0xff]  }
  0x29   :  { %1864 = vmatprep.subr.bf16.mxu0 %v2374_v46  ;;  %v2439_v46 = vld [vmem:[%s3553_s1 + $0x544] ss:$8 sps:$4 sm:$0xff]  }
  0x2b   :  { %1701 = vmatpush1.bf16.msra.mxu1 %v2376_v47  ;;  %v2434_v47 = vld [vmem:[%s3553_s1 + $0x140] ss:$8 sps:$4 sm:$0xff]  }
  0x2c   :  { %1865 = vmatpush1.bf16.msra.mxu0 %v2377_v48  ;;  %1702 = vmatprep.subr.bf16.mxu1 %v2378_v50  ;;  %v2437_v48 = vld [vmem:[%s3553_s1 + $0x540] ss:$8 sps:$4 sm:$0xff]   ;;  %v2445_v50 = vld [vmem:[%s3553_s1 + $0x554] ss:$8 sps:$4 sm:$0xff]  }
  0x2d   :  { %1866 = vmatprep.subr.bf16.mxu0 %v2380_v51  ;;  %v2440_v51 = vld [vmem:[%s3553_s1 + $0x150] ss:$8 sps:$4 sm:$0xff]  }
  0x2f   :  { %1703 = vmatpush1.bf16.msra.mxu1 %v2382_v53  ;;  %v2448_v53 = vld [vmem:[%s3553_s1 + $0x164] ss:$8 sps:$4 sm:$0xff]  }
  0x30   :  { %1867 = vmatpush1.bf16.msra.mxu0 %v2383_v55  ;;  %1704 = vmatprep.subr.bf16.mxu1 %v2384_v57  ;;  %v2446_v55 = vld [vmem:[%s3553_s1 + $0x160] ss:$8 sps:$4 sm:$0xff]   ;;  %v2454_v57 = vld [vmem:[%s3553_s1 + $0x174] ss:$8 sps:$4 sm:$0xff]  }
  0x31   :  { %1868 = vmatprep.subr.bf16.mxu0 %v2386_v58  ;;  %v2457_v58 = vld [vmem:[%s3553_s1 + $0x574] ss:$8 sps:$4 sm:$0xff]  }
  0x33   :  { %1705 = vmatpush1.bf16.msra.mxu1 %v2388_v63  ;;  %v2458_v63 = vld [vmem:[%s3553_s1 + $0x180] ss:$8 sps:$4 sm:$0xff]  }
  0x34   :  { %1869 = vmatpush1.bf16.msra.mxu0 %v2389_v0  ;;  %1706 = vmatprep.subr.bf16.mxu1 %v2390_v1  ;;  %v2461_v0 = vld [vmem:[%s3553_s1 + $0x580] ss:$8 sps:$4 sm:$0xff]   ;;  %v2466_v1 = vld [vmem:[%s3553_s1 + $0x194] ss:$8 sps:$4 sm:$0xff]  }
  0x35   :  { %1870 = vmatprep.subr.bf16.mxu0 %v2392_v2  ;;  %v2469_v2 = vld [vmem:[%s3553_s1 + $0x594] ss:$8 sps:$4 sm:$0xff]  }
  0x37   :  { %1707 = vmatpush1.bf16.msra.mxu1 %v2394_v4  ;;  %v2467_v4 = vld [vmem:[%s3553_s1 + $0x590] ss:$8 sps:$4 sm:$0xff]  }
  0x38   :  { %1871 = vmatpush1.bf16.msra.mxu0 %v2395_v5  ;;  %1708 = vmatprep.subr.bf16.mxu1 %v2396_v6  ;;  %v2472_v5 = vld [vmem:[%s3553_s1 + $0x1a4] ss:$8 sps:$4 sm:$0xff]  }
  0x39   :  { %1872 = vmatprep.subr.bf16.mxu0 %v2398_v7  ;;  %v2475_v6 = vld [vmem:[%s3553_s1 + $0x5a4] ss:$8 sps:$4 sm:$0xff]   ;;  %v2470_v7 = vld [vmem:[%s3553_s1 + $0x1a0] ss:$8 sps:$4 sm:$0xff]  }
  0x3b   :  { %1709 = vmatpush1.bf16.msra.mxu1 %v2400_v8  ;;  %v2473_v8 = vld [vmem:[%s3553_s1 + $0x5a0] ss:$8 sps:$4 sm:$0xff]  }
  0x3c   :  { %1873 = vmatpush1.bf16.msra.mxu0 %v2401_v9  ;;  %1710 = vmatprep.subr.bf16.mxu1 %v2402_v10  ;;  %v2478_v9 = vld [vmem:[%s3553_s1 + $0x1b4] ss:$8 sps:$4 sm:$0xff]  }
  0x3d   :  { %1874 = vmatprep.subr.bf16.mxu0 %v2404_v11  ;;  %v2481_v10 = vld [vmem:[%s3553_s1 + $0x5b4] ss:$8 sps:$4 sm:$0xff]   ;;  %v2476_v11 = vld [vmem:[%s3553_s1 + $0x1b0] ss:$8 sps:$4 sm:$0xff]  }
  0x3f   :  { %1711 = vmatpush1.bf16.msra.mxu1 %v2406_v14  ;;  %v2487_v14 = vld [vmem:[%s3553_s1 + $0x5c4] ss:$8 sps:$4 sm:$0xff]  }
  0x40   :  { %1875 = vmatpush1.bf16.msra.mxu0 %v2407_v15  ;;  %1721 = vmatprep.subr.bf16.mxu1 %v2411_v16  ;;  %v2482_v15 = vld [vmem:[%s3553_s1 + $0x1c0] ss:$8 sps:$4 sm:$0xff]  }
  0x41   :  { %1885 = vmatprep.subr.bf16.mxu0 %v2415_v17  ;;  %v2485_v16 = vld [vmem:[%s3553_s1 + $0x5c0] ss:$8 sps:$4 sm:$0xff]   ;;  %v2490_v17 = vld [vmem:[%s3553_s1 + $0x1d4] ss:$8 sps:$4 sm:$0xff]  }
  0x42   :  { %1713 = vmatmul.mubr.bf16.vlgmr.msra.gmra.mrb[0].mxu1 %v2938_v20 }
  0x43   :  { %1877 = vmatmul.mubr.bf16.vlgmr.msra.gmra.mrb[0].mxu0 %v2941_v21  ;;  %1722 = vmatpush1.bf16.msra.mxu1 %v2409_v24  ;;  %v2499_v24 = vld [vmem:[%s3553_s1 + $0x5e4] ss:$8 sps:$4 sm:$0xff]  }
  0x44   :  { %1886 = vmatpush1.bf16.msra.mxu0 %v2413_v25  ;;  %1723 = vmatprep.subr.bf16.mxu1 %v2418_v26  ;;  %v2494_v25 = vld [vmem:[%s3553_s1 + $0x1e0] ss:$8 sps:$4 sm:$0xff]  }
  0x45   :  { %1887 = vmatprep.subr.bf16.mxu0 %v2421_v27  ;;  %1753 = vmatprep.mubr.bf16.mxu1 %v333_v31  ;;  %v2497_v26 = vld [vmem:[%s3553_s1 + $0x5e0] ss:$8 sps:$4 sm:$0xff]   ;;  %v2502_v27 = vld [vmem:[%s3553_s1 + $0x1f4] ss:$8 sps:$4 sm:$0xff]  }
  0x46   :  { %1917 = vmatprep.mubr.bf16.mxu0 %v382_v32  ;;  %v2505_v31 = vld [vmem:[%s3553_s1 + $0x5f4] ss:$8 sps:$4 sm:$0xff]   ;;  %v2500_v32 = vld [vmem:[%s3553_s1 + $0x1f0] ss:$8 sps:$4 sm:$0xff]  }
  0x47   :  { %1724 = vmatpush1.bf16.msra.mxu1 %v2416_v34  ;;  %v2503_v34 = vld [vmem:[%s3553_s1 + $0x5f0] ss:$8 sps:$4 sm:$0xff]  }
  0x48   :  { %1888 = vmatpush1.bf16.msra.mxu0 %v2419_v35  ;;  %1725 = vmatprep.subr.bf16.mxu1 %v2424_v36  ;;  %v2508_v35 = vld [vmem:[%s3553_s1 + $0x204] ss:$8 sps:$4 sm:$0xff]  }
  0x49   :  { %1889 = vmatprep.subr.bf16.mxu0 %v2427_v37  ;;  %v2511_v36 = vld [vmem:[%s3553_s1 + $0x604] ss:$8 sps:$4 sm:$0xff]   ;;  %v331_v37 = vcombine.high %v2938_v20, %v2938_v20  ;;  %v2517_v20 = vld [vmem:[%s3553_s1 + $0x614] ss:$8 sps:$4 sm:$0xff]  }
  0x4b   :  { %1726 = vmatpush1.bf16.msra.mxu1 %v2422_v38  ;;  %v380_v38 = vcombine.high %v2941_v21, %v2941_v21  ;;  %v2512_v21 = vld [vmem:[%s3553_s1 + $0x210] ss:$8 sps:$4 sm:$0xff]  }
  0x4c   :  { %1890 = vmatpush1.bf16.msra.mxu0 %v2425_v39  ;;  %1727 = vmatprep.subr.bf16.mxu1 %v2430_v40  ;;  %v2506_v39 = vld [vmem:[%s3553_s1 + $0x200] ss:$8 sps:$4 sm:$0xff]  }
  0x4d   :  { %1891 = vmatprep.subr.bf16.mxu0 %v2433_v41  ;;  %v2509_v40 = vld [vmem:[%s3553_s1 + $0x600] ss:$8 sps:$4 sm:$0xff]   ;;  %v2514_v41 = vld [vmem:[%s3553_s1 + $0x214] ss:$8 sps:$4 sm:$0xff]  }
  0x4f   :  { %1728 = vmatpush1.bf16.msra.mxu1 %v2428_v43  ;;  %v2515_v43 = vld [vmem:[%s3553_s1 + $0x610] ss:$8 sps:$4 sm:$0xff]  }
  0x50   :  { %1892 = vmatpush1.bf16.msra.mxu0 %v2431_v44  ;;  %1729 = vmatprep.subr.bf16.mxu1 %v2436_v45  ;;  %v2520_v44 = vld [vmem:[%s3553_s1 + $0x224] ss:$8 sps:$4 sm:$0xff]  }
  0x51   :  { %1893 = vmatprep.subr.bf16.mxu0 %v2439_v46  ;;  %v2523_v45 = vld [vmem:[%s3553_s1 + $0x624] ss:$8 sps:$4 sm:$0xff]   ;;  %v2518_v46 = vld [vmem:[%s3553_s1 + $0x220] ss:$8 sps:$4 sm:$0xff]  }
  0x53   :  { %1730 = vmatpush1.bf16.msra.mxu1 %v2434_v47  ;;  %v2521_v47 = vld [vmem:[%s3553_s1 + $0x620] ss:$8 sps:$4 sm:$0xff]  }
  0x54   :  { %1894 = vmatpush1.bf16.msra.mxu0 %v2437_v48  ;;  %1731 = vmatprep.subr.bf16.mxu1 %v2442_v49  ;;  %v2526_v48 = vld [vmem:[%s3553_s1 + $0x234] ss:$8 sps:$4 sm:$0xff]  }
  0x55   :  { %1895 = vmatprep.subr.bf16.mxu0 %v2445_v50  ;;  %v2529_v49 = vld [vmem:[%s3553_s1 + $0x634] ss:$8 sps:$4 sm:$0xff]   ;;  %v2524_v50 = vld [vmem:[%s3553_s1 + $0x230] ss:$8 sps:$4 sm:$0xff]  }
  0x57   :  { %1732 = vmatpush1.bf16.msra.mxu1 %v2440_v51  ;;  %v2527_v51 = vld [vmem:[%s3553_s1 + $0x630] ss:$8 sps:$4 sm:$0xff]  }
  0x58   :  { %1896 = vmatpush1.bf16.msra.mxu0 %v2443_v52  ;;  %1733 = vmatprep.subr.bf16.mxu1 %v2448_v53  ;;  %v2532_v52 = vld [vmem:[%s3553_s1 + $0x244] ss:$8 sps:$4 sm:$0xff]  }
  0x59   :  { %1897 = vmatprep.subr.bf16.mxu0 %v2451_v54  ;;  %v2535_v53 = vld [vmem:[%s3553_s1 + $0x644] ss:$8 sps:$4 sm:$0xff]   ;;  %v2530_v54 = vld [vmem:[%s3553_s1 + $0x240] ss:$8 sps:$4 sm:$0xff]  }
  0x5b   :  { %1734 = vmatpush1.bf16.msra.mxu1 %v2446_v55  ;;  %v2533_v55 = vld [vmem:[%s3553_s1 + $0x640] ss:$8 sps:$4 sm:$0xff]  }
  0x5c   :  { %1898 = vmatpush1.bf16.msra.mxu0 %v2449_v56  ;;  %1735 = vmatprep.subr.bf16.mxu1 %v2454_v57  ;;  %v2538_v56 = vld [vmem:[%s3553_s1 + $0x254] ss:$8 sps:$4 sm:$0xff]  }
  0x5d   :  { %1899 = vmatprep.subr.bf16.mxu0 %v2457_v58  ;;  %v2541_v57 = vld [vmem:[%s3553_s1 + $0x654] ss:$8 sps:$4 sm:$0xff]   ;;  %v2536_v58 = vld [vmem:[%s3553_s1 + $0x250] ss:$8 sps:$4 sm:$0xff]  }
  0x5f   :  { %1736 = vmatpush1.bf16.msra.mxu1 %v2452_v59  ;;  %v2539_v59 = vld [vmem:[%s3553_s1 + $0x650] ss:$8 sps:$4 sm:$0xff]  }
  0x60   :  { %1900 = vmatpush1.bf16.msra.mxu0 %v2455_v60  ;;  %1737 = vmatprep.subr.bf16.mxu1 %v2460_v61  ;;  %v2544_v60 = vld [vmem:[%s3553_s1 + $0x264] ss:$8 sps:$4 sm:$0xff]  }
  0x61   :  { %1901 = vmatprep.subr.bf16.mxu0 %v2463_v62  ;;  %v2547_v61 = vld [vmem:[%s3553_s1 + $0x664] ss:$8 sps:$4 sm:$0xff]   ;;  %v2542_v62 = vld [vmem:[%s3553_s1 + $0x260] ss:$8 sps:$4 sm:$0xff]  }
  0x63   :  { %1738 = vmatpush1.bf16.msra.mxu1 %v2458_v63  ;;  %v2545_v63 = vld [vmem:[%s3553_s1 + $0x660] ss:$8 sps:$4 sm:$0xff]  }
  0x64   :  { %1902 = vmatpush1.bf16.msra.mxu0 %v2461_v0  ;;  %1739 = vmatprep.subr.bf16.mxu1 %v2466_v1  ;;  %v2550_v0 = vld [vmem:[%s3553_s1 + $0x274] ss:$8 sps:$4 sm:$0xff]  }
  0x65   :  { %1903 = vmatprep.subr.bf16.mxu0 %v2469_v2  ;;  %v2553_v1 = vld [vmem:[%s3553_s1 + $0x674] ss:$8 sps:$4 sm:$0xff]   ;;  %v2548_v2 = vld [vmem:[%s3553_s1 + $0x270] ss:$8 sps:$4 sm:$0xff]  }
  0x67   :  { %1740 = vmatpush1.bf16.msra.mxu1 %v2464_v3  ;;  %v2551_v3 = vld [vmem:[%s3553_s1 + $0x670] ss:$8 sps:$4 sm:$0xff]  }
  0x68   :  { %1904 = vmatpush1.bf16.msra.mxu0 %v2467_v4  ;;  %1741 = vmatprep.subr.bf16.mxu1 %v2472_v5  ;;  %v2556_v4 = vld [vmem:[%s3553_s1 + $0x284] ss:$8 sps:$4 sm:$0xff]  }
  0x69   :  { %1905 = vmatprep.subr.bf16.mxu0 %v2475_v6  ;;  %v2559_v5 = vld [vmem:[%s3553_s1 + $0x684] ss:$8 sps:$4 sm:$0xff]   ;;  %v2554_v6 = vld [vmem:[%s3553_s1 + $0x280] ss:$8 sps:$4 sm:$0xff]  }
  0x6b   :  { %1742 = vmatpush1.bf16.msra.mxu1 %v2470_v7  ;;  %v2557_v7 = vld [vmem:[%s3553_s1 + $0x680] ss:$8 sps:$4 sm:$0xff]  }
  0x6c   :  { %1906 = vmatpush1.bf16.msra.mxu0 %v2473_v8  ;;  %1743 = vmatprep.subr.bf16.mxu1 %v2478_v9  ;;  %v2562_v8 = vld [vmem:[%s3553_s1 + $0x294] ss:$8 sps:$4 sm:$0xff]  }
  0x6d   :  { %1907 = vmatprep.subr.bf16.mxu0 %v2481_v10  ;;  %v2565_v9 = vld [vmem:[%s3553_s1 + $0x694] ss:$8 sps:$4 sm:$0xff]   ;;  %v2560_v10 = vld [vmem:[%s3553_s1 + $0x290] ss:$8 sps:$4 sm:$0xff]  }
  0x6f   :  { %1744 = vmatpush1.bf16.msra.mxu1 %v2476_v11  ;;  %v2563_v11 = vld [vmem:[%s3553_s1 + $0x690] ss:$8 sps:$4 sm:$0xff]  }
  0x70   :  { %1908 = vmatpush1.bf16.msra.mxu0 %v2479_v12  ;;  %1745 = vmatprep.subr.bf16.mxu1 %v2484_v13  ;;  %v2568_v12 = vld [vmem:[%s3553_s1 + $0x2a4] ss:$8 sps:$4 sm:$0xff]  }
  0x71   :  { %1909 = vmatprep.subr.bf16.mxu0 %v2487_v14  ;;  %v2571_v13 = vld [vmem:[%s3553_s1 + $0x6a4] ss:$8 sps:$4 sm:$0xff]   ;;  %v2566_v14 = vld [vmem:[%s3553_s1 + $0x2a0] ss:$8 sps:$4 sm:$0xff]  }
  0x73   :  { %1746 = vmatpush1.bf16.msra.mxu1 %v2482_v15  ;;  %v2569_v15 = vld [vmem:[%s3553_s1 + $0x6a0] ss:$8 sps:$4 sm:$0xff]  }
  0x74   :  { %1910 = vmatpush1.bf16.msra.mxu0 %v2485_v16  ;;  %1747 = vmatprep.subr.bf16.mxu1 %v2490_v17  ;;  %v2574_v16 = vld [vmem:[%s3553_s1 + $0x2b4] ss:$8 sps:$4 sm:$0xff]  }
  0x75   :  { %1911 = vmatprep.subr.bf16.mxu0 %v2493_v18  ;;  %v2577_v17 = vld [vmem:[%s3553_s1 + $0x6b4] ss:$8 sps:$4 sm:$0xff]   ;;  %v2572_v18 = vld [vmem:[%s3553_s1 + $0x2b0] ss:$8 sps:$4 sm:$0xff]  }
  0x77   :  { %1748 = vmatpush1.bf16.msra.mxu1 %v2488_v19  ;;  %v2575_v19 = vld [vmem:[%s3553_s1 + $0x6b0] ss:$8 sps:$4 sm:$0xff]  }
  0x78   :  { %1912 = vmatpush1.bf16.msra.mxu0 %v2491_v22  ;;  %1749 = vmatprep.subr.bf16.mxu1 %v2496_v23  ;;  %v2580_v22 = vld [vmem:[%s3553_s1 + $0x2c4] ss:$8 sps:$4 sm:$0xff]  }
  0x79   :  { %1913 = vmatprep.subr.bf16.mxu0 %v2499_v24  ;;  %v2583_v23 = vld [vmem:[%s3553_s1 + $0x6c4] ss:$8 sps:$4 sm:$0xff]   ;;  %v2578_v24 = vld [vmem:[%s3553_s1 + $0x2c0] ss:$8 sps:$4 sm:$0xff]  }
  0x7b   :  { %1750 = vmatpush1.bf16.msra.mxu1 %v2494_v25  ;;  %v2581_v25 = vld [vmem:[%s3553_s1 + $0x6c0] ss:$8 sps:$4 sm:$0xff]  }
  0x7c   :  { %1914 = vmatpush1.bf16.msra.mxu0 %v2497_v26  ;;  %1751 = vmatprep.subr.bf16.mxu1 %v2502_v27  ;;  %v2586_v26 = vld [vmem:[%s3553_s1 + $0x2d4] ss:$8 sps:$4 sm:$0xff]  }
  0x7d   :  { %1915 = vmatprep.subr.bf16.mxu0 %v2505_v31  ;;  %v2589_v27 = vld [vmem:[%s3553_s1 + $0x6d4] ss:$8 sps:$4 sm:$0xff]   ;;  %v2584_v31 = vld [vmem:[%s3553_s1 + $0x2d0] ss:$8 sps:$4 sm:$0xff]  }
  0x7f   :  { %1752 = vmatpush1.bf16.msra.mxu1 %v2500_v32  ;;  %v2587_v32 = vld [vmem:[%s3553_s1 + $0x6d0] ss:$8 sps:$4 sm:$0xff]  }
  0x80   :  { %1916 = vmatpush1.bf16.msra.mxu0 %v2503_v34  ;;  %1762 = vmatprep.subr.bf16.mxu1 %v2508_v35  ;;  %v2592_v34 = vld [vmem:[%s3553_s1 + $0x2e4] ss:$8 sps:$4 sm:$0xff]  }
  0x81   :  { %1926 = vmatprep.subr.bf16.mxu0 %v2511_v36  ;;  %v2595_v35 = vld [vmem:[%s3553_s1 + $0x6e4] ss:$8 sps:$4 sm:$0xff]   ;;  %v2590_v36 = vld [vmem:[%s3553_s1 + $0x2e0] ss:$8 sps:$4 sm:$0xff]  }
  0x82   :  { %1754 = vmatmul.mubr.bf16.vlgmr.msra.gmra.mrb[0].mxu1 %v331_v37  ;;  %v2593_v37 = vld [vmem:[%s3553_s1 + $0x6e0] ss:$8 sps:$4 sm:$0xff]  }
  0x83   :  { %1918 = vmatmul.mubr.bf16.vlgmr.msra.gmra.mrb[0].mxu0 %v380_v38  ;;  %1763 = vmatpush1.bf16.msra.mxu1 %v2506_v39  ;;  %v2598_v38 = vld [vmem:[%s3553_s1 + $0x2f4] ss:$8 sps:$4 sm:$0xff]  }
  0x84   :  { %1927 = vmatpush1.bf16.msra.mxu0 %v2509_v40  ;;  %1764 = vmatprep.subr.bf16.mxu1 %v2514_v41  ;;  %v2601_v39 = vld [vmem:[%s3553_s1 + $0x6f4] ss:$8 sps:$4 sm:$0xff]   ;;  %v2596_v40 = vld [vmem:[%s3553_s1 + $0x2f0] ss:$8 sps:$4 sm:$0xff]  }
  0x85   :  { %1928 = vmatprep.subr.bf16.mxu0 %v2517_v20  ;;  %1794 = vmatprep.mubr.bf16.mxu1 %v2956_v28  ;;  %v2599_v41 = vld [vmem:[%s3553_s1 + $0x6f0] ss:$8 sps:$4 sm:$0xff]   ;;  %v2604_v20 = vld [vmem:[%s3553_s1 + $0x304] ss:$8 sps:$4 sm:$0xff]  }
  0x86   :  { %1958 = vmatprep.mubr.bf16.mxu0 %v2959_v29 }
  0x87   :  { %1765 = vmatpush1.bf16.msra.mxu1 %v2512_v21  ;;  %v2607_v21 = vld [vmem:[%s3553_s1 + $0x704] ss:$8 sps:$4 sm:$0xff]  }
  0x88   :  { %1929 = vmatpush1.bf16.msra.mxu0 %v2515_v43  ;;  %1766 = vmatprep.subr.bf16.mxu1 %v2520_v44  ;;  %v2602_v43 = vld [vmem:[%s3553_s1 + $0x300] ss:$8 sps:$4 sm:$0xff]  }
  0x89   :  { %1930 = vmatprep.subr.bf16.mxu0 %v2523_v45  ;;  %v2605_v44 = vld [vmem:[%s3553_s1 + $0x700] ss:$8 sps:$4 sm:$0xff]   ;;  %v2610_v45 = vld [vmem:[%s3553_s1 + $0x314] ss:$8 sps:$4 sm:$0xff]  }
  0x8b   :  { %1767 = vmatpush1.bf16.msra.mxu1 %v2518_v46  ;;  %v2613_v46 = vld [vmem:[%s3553_s1 + $0x714] ss:$8 sps:$4 sm:$0xff]  }
  0x8c   :  { %1931 = vmatpush1.bf16.msra.mxu0 %v2521_v47  ;;  %1768 = vmatprep.subr.bf16.mxu1 %v2526_v48  ;;  %v334_v47 = vcombine.high %v2956_v28, %v2956_v28  ;;  %v383_v48 = vcombine.high %v2959_v29, %v2959_v29  ;;  %v2616_v28 = vld [vmem:[%s3553_s1 + $0x324] ss:$8 sps:$4 sm:$0xff]  }
  0x8d   :  { %1932 = vmatprep.subr.bf16.mxu0 %v2529_v49  ;;  %v2608_v49 = vld [vmem:[%s3553_s1 + $0x310] ss:$8 sps:$4 sm:$0xff]   ;;  %v2619_v29 = vld [vmem:[%s3553_s1 + $0x724] ss:$8 sps:$4 sm:$0xff]  }
  0x8f   :  { %1769 = vmatpush1.bf16.msra.mxu1 %v2524_v50  ;;  %v2611_v50 = vld [vmem:[%s3553_s1 + $0x710] ss:$8 sps:$4 sm:$0xff]  }
  0x90   :  { %1933 = vmatpush1.bf16.msra.mxu0 %v2527_v51  ;;  %1770 = vmatprep.subr.bf16.mxu1 %v2532_v52  ;;  %v2614_v51 = vld [vmem:[%s3553_s1 + $0x320] ss:$8 sps:$4 sm:$0xff]  }
  0x91   :  { %1934 = vmatprep.subr.bf16.mxu0 %v2535_v53  ;;  %v2617_v52 = vld [vmem:[%s3553_s1 + $0x720] ss:$8 sps:$4 sm:$0xff]   ;;  %v2622_v53 = vld [vmem:[%s3553_s1 + $0x334] ss:$8 sps:$4 sm:$0xff]  }
  0x93   :  { %1771 = vmatpush1.bf16.msra.mxu1 %v2530_v54  ;;  %v2625_v54 = vld [vmem:[%s3553_s1 + $0x734] ss:$8 sps:$4 sm:$0xff]  }
  0x94   :  { %1935 = vmatpush1.bf16.msra.mxu0 %v2533_v55  ;;  %1772 = vmatprep.subr.bf16.mxu1 %v2538_v56  ;;  %v2620_v55 = vld [vmem:[%s3553_s1 + $0x330] ss:$8 sps:$4 sm:$0xff]  }
  0x95   :  { %1936 = vmatprep.subr.bf16.mxu0 %v2541_v57  ;;  %v2623_v56 = vld [vmem:[%s3553_s1 + $0x730] ss:$8 sps:$4 sm:$0xff]   ;;  %v2628_v57 = vld [vmem:[%s3553_s1 + $0x344] ss:$8 sps:$4 sm:$0xff]  }
  0x97   :  { %1773 = vmatpush1.bf16.msra.mxu1 %v2536_v58  ;;  %v2631_v58 = vld [vmem:[%s3553_s1 + $0x744] ss:$8 sps:$4 sm:$0xff]  }
  0x98   :  { %1937 = vmatpush1.bf16.msra.mxu0 %v2539_v59  ;;  %1774 = vmatprep.subr.bf16.mxu1 %v2544_v60  ;;  %v2626_v59 = vld [vmem:[%s3553_s1 + $0x340] ss:$8 sps:$4 sm:$0xff]  }
  0x99   :  { %1938 = vmatprep.subr.bf16.mxu0 %v2547_v61  ;;  %v2629_v60 = vld [vmem:[%s3553_s1 + $0x740] ss:$8 sps:$4 sm:$0xff]   ;;  %v2634_v61 = vld [vmem:[%s3553_s1 + $0x354] ss:$8 sps:$4 sm:$0xff]  }
  0x9b   :  { %1775 = vmatpush1.bf16.msra.mxu1 %v2542_v62  ;;  %v2637_v62 = vld [vmem:[%s3553_s1 + $0x754] ss:$8 sps:$4 sm:$0xff]  }
  0x9c   :  { %1939 = vmatpush1.bf16.msra.mxu0 %v2545_v63  ;;  %1776 = vmatprep.subr.bf16.mxu1 %v2550_v0  ;;  %v2632_v63 = vld [vmem:[%s3553_s1 + $0x350] ss:$8 sps:$4 sm:$0xff]  }
  0x9d   :  { %1940 = vmatprep.subr.bf16.mxu0 %v2553_v1  ;;  %v2635_v0 = vld [vmem:[%s3553_s1 + $0x750] ss:$8 sps:$4 sm:$0xff]   ;;  %v2640_v1 = vld [vmem:[%s3553_s1 + $0x364] ss:$8 sps:$4 sm:$0xff]  }
  0x9f   :  { %1777 = vmatpush1.bf16.msra.mxu1 %v2548_v2  ;;  %v2643_v2 = vld [vmem:[%s3553_s1 + $0x764] ss:$8 sps:$4 sm:$0xff]  }
  0xa0   :  { %1941 = vmatpush1.bf16.msra.mxu0 %v2551_v3  ;;  %1778 = vmatprep.subr.bf16.mxu1 %v2556_v4  ;;  %v2638_v3 = vld [vmem:[%s3553_s1 + $0x360] ss:$8 sps:$4 sm:$0xff]  }
  0xa1   :  { %1942 = vmatprep.subr.bf16.mxu0 %v2559_v5  ;;  %v2641_v4 = vld [vmem:[%s3553_s1 + $0x760] ss:$8 sps:$4 sm:$0xff]   ;;  %v2646_v5 = vld [vmem:[%s3553_s1 + $0x374] ss:$8 sps:$4 sm:$0xff]  }
  0xa3   :  { %1779 = vmatpush1.bf16.msra.mxu1 %v2554_v6  ;;  %v2649_v6 = vld [vmem:[%s3553_s1 + $0x774] ss:$8 sps:$4 sm:$0xff]  }
  0xa4   :  { %1943 = vmatpush1.bf16.msra.mxu0 %v2557_v7  ;;  %1780 = vmatprep.subr.bf16.mxu1 %v2562_v8  ;;  %v2644_v7 = vld [vmem:[%s3553_s1 + $0x370] ss:$8 sps:$4 sm:$0xff]  }
  0xa5   :  { %1944 = vmatprep.subr.bf16.mxu0 %v2565_v9  ;;  %v2647_v8 = vld [vmem:[%s3553_s1 + $0x770] ss:$8 sps:$4 sm:$0xff]   ;;  %v2652_v9 = vld [vmem:[%s3553_s1 + $0x384] ss:$8 sps:$4 sm:$0xff]  }
  0xa7   :  { %1781 = vmatpush1.bf16.msra.mxu1 %v2560_v10  ;;  %v2655_v10 = vld [vmem:[%s3553_s1 + $0x784] ss:$8 sps:$4 sm:$0xff]  }
  0xa8   :  { %1945 = vmatpush1.bf16.msra.mxu0 %v2563_v11  ;;  %1782 = vmatprep.subr.bf16.mxu1 %v2568_v12  ;;  %v2650_v11 = vld [vmem:[%s3553_s1 + $0x380] ss:$8 sps:$4 sm:$0xff]  }
  0xa9   :  { %1946 = vmatprep.subr.bf16.mxu0 %v2571_v13  ;;  %v2653_v12 = vld [vmem:[%s3553_s1 + $0x780] ss:$8 sps:$4 sm:$0xff]   ;;  %v2658_v13 = vld [vmem:[%s3553_s1 + $0x394] ss:$8 sps:$4 sm:$0xff]  }
  0xab   :  { %1783 = vmatpush1.bf16.msra.mxu1 %v2566_v14  ;;  %v2661_v14 = vld [vmem:[%s3553_s1 + $0x794] ss:$8 sps:$4 sm:$0xff]  }
  0xac   :  { %1947 = vmatpush1.bf16.msra.mxu0 %v2569_v15  ;;  %1784 = vmatprep.subr.bf16.mxu1 %v2574_v16  ;;  %v2656_v15 = vld [vmem:[%s3553_s1 + $0x390] ss:$8 sps:$4 sm:$0xff]  }
  0xad   :  { %1948 = vmatprep.subr.bf16.mxu0 %v2577_v17  ;;  %v2659_v16 = vld [vmem:[%s3553_s1 + $0x790] ss:$8 sps:$4 sm:$0xff]   ;;  %v2664_v17 = vld [vmem:[%s3553_s1 + $0x3a4] ss:$8 sps:$4 sm:$0xff]  }
  0xaf   :  { %1785 = vmatpush1.bf16.msra.mxu1 %v2572_v18  ;;  %v2667_v18 = vld [vmem:[%s3553_s1 + $0x7a4] ss:$8 sps:$4 sm:$0xff]  }
  0xb0   :  { %1949 = vmatpush1.bf16.msra.mxu0 %v2575_v19  ;;  %1786 = vmatprep.subr.bf16.mxu1 %v2580_v22  ;;  %v2662_v19 = vld [vmem:[%s3553_s1 + $0x3a0] ss:$8 sps:$4 sm:$0xff]  }
  0xb1   :  { %1950 = vmatprep.subr.bf16.mxu0 %v2583_v23  ;;  %v2665_v22 = vld [vmem:[%s3553_s1 + $0x7a0] ss:$8 sps:$4 sm:$0xff]   ;;  %v2670_v23 = vld [vmem:[%s3553_s1 + $0x3b4] ss:$8 sps:$4 sm:$0xff]  }
  0xb3   :  { %1787 = vmatpush1.bf16.msra.mxu1 %v2578_v24  ;;  %v2673_v24 = vld [vmem:[%s3553_s1 + $0x7b4] ss:$8 sps:$4 sm:$0xff]  }
  0xb4   :  { %1951 = vmatpush1.bf16.msra.mxu0 %v2581_v25  ;;  %1788 = vmatprep.subr.bf16.mxu1 %v2586_v26  ;;  %v2668_v25 = vld [vmem:[%s3553_s1 + $0x3b0] ss:$8 sps:$4 sm:$0xff]  }
  0xb5   :  { %1952 = vmatprep.subr.bf16.mxu0 %v2589_v27  ;;  %v2671_v26 = vld [vmem:[%s3553_s1 + $0x7b0] ss:$8 sps:$4 sm:$0xff]   ;;  %v2676_v27 = vld [vmem:[%s3553_s1 + $0x3c4] ss:$8 sps:$4 sm:$0xff]  }
  0xb7   :  { %1789 = vmatpush1.bf16.msra.mxu1 %v2584_v31  ;;  %v2679_v31 = vld [vmem:[%s3553_s1 + $0x7c4] ss:$8 sps:$4 sm:$0xff]  }
  0xb8   :  { %1953 = vmatpush1.bf16.msra.mxu0 %v2587_v32  ;;  %1790 = vmatprep.subr.bf16.mxu1 %v2592_v34  ;;  %v2674_v32 = vld [vmem:[%s3553_s1 + $0x3c0] ss:$8 sps:$4 sm:$0xff]  }
  0xb9   :  { %1954 = vmatprep.subr.bf16.mxu0 %v2595_v35  ;;  %v2677_v34 = vld [vmem:[%s3553_s1 + $0x7c0] ss:$8 sps:$4 sm:$0xff]   ;;  %v2682_v35 = vld [vmem:[%s3553_s1 + $0x3d4] ss:$8 sps:$4 sm:$0xff]  }
  0xbb   :  { %1791 = vmatpush1.bf16.msra.mxu1 %v2590_v36  ;;  %v2685_v36 = vld [vmem:[%s3553_s1 + $0x7d4] ss:$8 sps:$4 sm:$0xff]  }
  0xbc   :  { %1955 = vmatpush1.bf16.msra.mxu0 %v2593_v37  ;;  %1792 = vmatprep.subr.bf16.mxu1 %v2598_v38  ;;  %v2680_v37 = vld [vmem:[%s3553_s1 + $0x3d0] ss:$8 sps:$4 sm:$0xff]  }
  0xbd   :  { %1956 = vmatprep.subr.bf16.mxu0 %v2601_v39  ;;  %v2683_v38 = vld [vmem:[%s3553_s1 + $0x7d0] ss:$8 sps:$4 sm:$0xff]   ;;  %v2688_v39 = vld [vmem:[%s3553_s1 + $0x3e4] ss:$8 sps:$4 sm:$0xff]  }
  0xbf   :  { %1793 = vmatpush1.bf16.msra.mxu1 %v2596_v40  ;;  %v2691_v40 = vld [vmem:[%s3553_s1 + $0x7e4] ss:$8 sps:$4 sm:$0xff]  }
  0xc0   :  { %1957 = vmatpush1.bf16.msra.mxu0 %v2599_v41  ;;  %1803 = vmatprep.subr.bf16.mxu1 %v2604_v20  ;;  %v2686_v41 = vld [vmem:[%s3553_s1 + $0x3e0] ss:$8 sps:$4 sm:$0xff]  }
  0xc1   :  { %1967 = vmatprep.subr.bf16.mxu0 %v2607_v21  ;;  %v2689_v20 = vld [vmem:[%s3553_s1 + $0x7e0] ss:$8 sps:$4 sm:$0xff]   ;;  %v2694_v21 = vld [vmem:[%s3553_s1 + $0x3f4] ss:$8 sps:$4 sm:$0xff]  }
  0xc2   :  { %1795 = vmatmul.mubr.bf16.vlgmr.msra.gmra.mrb[0].mxu1 %v2962_v30 }
  0xc3   :  { %1959 = vmatmul.mubr.bf16.vlgmr.msra.gmra.mrb[0].mxu0 %v2967_v33  ;;  %1804 = vmatpush1.bf16.msra.mxu1 %v2602_v43  ;;  %v2697_v43 = vld [vmem:[%s3553_s1 + $0x7f4] ss:$8 sps:$4 sm:$0xff]  }
  0xc4   :  { %1968 = vmatpush1.bf16.msra.mxu0 %v2605_v44  ;;  %1805 = vmatprep.subr.bf16.mxu1 %v2610_v45  ;;  %v2692_v44 = vld [vmem:[%s3553_s1 + $0x3f0] ss:$8 sps:$4 sm:$0xff]  }
  0xc5   :  { %1969 = vmatprep.subr.bf16.mxu0 %v2613_v46  ;;  %1835 = vmatprep.mubr.bf16.mxu1 %v334_v47  ;;  %v2695_v45 = vld [vmem:[%s3553_s1 + $0x7f0] ss:$8 sps:$4 sm:$0xff]   ;;  %v332_v46 = vcombine.high %v2962_v30, %v2962_v30  ;;  %v381_v47 = vcombine.high %v2967_v33, %v2967_v33 }
  0xc6   :  { %1999 = vmatprep.mubr.bf16.mxu0 %v383_v48  ;;  %v276_v48 = vsub.s32 0, %v2836_v42 }
  0xc7   :  { %1806 = vmatpush1.bf16.msra.mxu1 %v2608_v49  ;;  %v272_v49 = vld [vmem:[%s3555_s2] sm:$0x3] }
  0xc8   :  { %1970 = vmatpush1.bf16.msra.mxu0 %v2611_v50  ;;  %1807 = vmatprep.subr.bf16.mxu1 %v2616_v28  ;;  %v280_v50 = vsub.s32 1, %v2836_v42  ;;  %v277_v28 = vrot.slane %v272_v49, %v276_v48 }
  0xc9   :  { %1971 = vmatprep.subr.bf16.mxu0 %v2619_v29 }
  0xca   :  { %v281_v29 = vrot.slane %v272_v49, %v280_v50 }
  0xcb   :  { %1808 = vmatpush1.bf16.msra.mxu1 %v2614_v51 }
  0xcc   :  { %1972 = vmatpush1.bf16.msra.mxu0 %v2617_v52  ;;  %1809 = vmatprep.subr.bf16.mxu1 %v2622_v53 }
  0xcd   :  { %1973 = vmatprep.subr.bf16.mxu0 %v2625_v54 }
  0xcf   :  { %1810 = vmatpush1.bf16.msra.mxu1 %v2620_v55 }
  0xd0   :  { %1974 = vmatpush1.bf16.msra.mxu0 %v2623_v56  ;;  %1811 = vmatprep.subr.bf16.mxu1 %v2628_v57 }
  0xd1   :  { %1975 = vmatprep.subr.bf16.mxu0 %v2631_v58 }
  0xd3   :  { %1812 = vmatpush1.bf16.msra.mxu1 %v2626_v59 }
  0xd4   :  { %1976 = vmatpush1.bf16.msra.mxu0 %v2629_v60  ;;  %1813 = vmatprep.subr.bf16.mxu1 %v2634_v61 }
  0xd5   :  { %1977 = vmatprep.subr.bf16.mxu0 %v2637_v62 }
  0xd7   :  { %1814 = vmatpush1.bf16.msra.mxu1 %v2632_v63 }
  0xd8   :  { %1978 = vmatpush1.bf16.msra.mxu0 %v2635_v0  ;;  %1815 = vmatprep.subr.bf16.mxu1 %v2640_v1 }
  0xd9   :  { %1979 = vmatprep.subr.bf16.mxu0 %v2643_v2 }
  0xdb   :  { %1816 = vmatpush1.bf16.msra.mxu1 %v2638_v3 }
  0xdc   :  { %1980 = vmatpush1.bf16.msra.mxu0 %v2641_v4  ;;  %1817 = vmatprep.subr.bf16.mxu1 %v2646_v5 }
  0xdd   :  { %1981 = vmatprep.subr.bf16.mxu0 %v2649_v6 }
  0xdf   :  { %1818 = vmatpush1.bf16.msra.mxu1 %v2644_v7 }
  0xe0   :  { %1982 = vmatpush1.bf16.msra.mxu0 %v2647_v8  ;;  %1819 = vmatprep.subr.bf16.mxu1 %v2652_v9 }
  0xe1   :  { %1983 = vmatprep.subr.bf16.mxu0 %v2655_v10 }
  0xe3   :  { %1820 = vmatpush1.bf16.msra.mxu1 %v2650_v11 }
  0xe4   :  { %1984 = vmatpush1.bf16.msra.mxu0 %v2653_v12  ;;  %1821 = vmatprep.subr.bf16.mxu1 %v2658_v13 }
  0xe5   :  { %1985 = vmatprep.subr.bf16.mxu0 %v2661_v14 }
  0xe7   :  { %1822 = vmatpush1.bf16.msra.mxu1 %v2656_v15 }
  0xe8   :  { %1986 = vmatpush1.bf16.msra.mxu0 %v2659_v16  ;;  %1823 = vmatprep.subr.bf16.mxu1 %v2664_v17 }
  0xe9   :  { %1987 = vmatprep.subr.bf16.mxu0 %v2667_v18 }
  0xeb   :  { %1824 = vmatpush1.bf16.msra.mxu1 %v2662_v19 }
  0xec   :  { %1988 = vmatpush1.bf16.msra.mxu0 %v2665_v22  ;;  %1825 = vmatprep.subr.bf16.mxu1 %v2670_v23 }
  0xed   :  { %1989 = vmatprep.subr.bf16.mxu0 %v2673_v24 }
  0xef   :  { %1826 = vmatpush1.bf16.msra.mxu1 %v2668_v25 }
  0xf0   :  { %1990 = vmatpush1.bf16.msra.mxu0 %v2671_v26  ;;  %1827 = vmatprep.subr.bf16.mxu1 %v2676_v27 }
  0xf1   :  { %1991 = vmatprep.subr.bf16.mxu0 %v2679_v31 }
  0xf3   :  { %1828 = vmatpush1.bf16.msra.mxu1 %v2674_v32 }
  0xf4   :  { %1992 = vmatpush1.bf16.msra.mxu0 %v2677_v34  ;;  %1829 = vmatprep.subr.bf16.mxu1 %v2682_v35 }
  0xf5   :  { %1993 = vmatprep.subr.bf16.mxu0 %v2685_v36 }
  0xf7   :  { %1830 = vmatpush1.bf16.msra.mxu1 %v2680_v37 }
  0xf8   :  { %1994 = vmatpush1.bf16.msra.mxu0 %v2683_v38  ;;  %1831 = vmatprep.subr.bf16.mxu1 %v2688_v39 }
  0xf9   :  { %1995 = vmatprep.subr.bf16.mxu0 %v2691_v40 }
  0xfb   :  { %1832 = vmatpush1.bf16.msra.mxu1 %v2686_v41 }
  0xfc   :  { %1996 = vmatpush1.bf16.msra.mxu0 %v2689_v20  ;;  %1833 = vmatprep.subr.bf16.mxu1 %v2694_v21 }
  0xfd   :  { %1997 = vmatprep.subr.bf16.mxu0 %v2697_v43 }
  0xff   :  { %1834 = vmatpush1.bf16.msra.mxu1 %v2692_v44 }
 0x100   :  { %1998 = vmatpush1.bf16.msra.mxu0 %v2695_v45 }
 0x102   :  { %1836 = vmatmul.mubr.bf16.vlgmr.msra.gmra.mrb[0].mxu1 %v332_v46 }
 0x103   :  { %2000 = vmatmul.mubr.bf16.vlgmr.msra.gmra.mrb[0].mxu0 %v381_v47 }
 0x1d5   :  { %v1837_v51 = vpop.f32.mrb[0].mxu1 }
 0x1d6   :  { %v2001_v52 = vpop.f32.mrb[0].mxu0  ;;  %v2283_v30 = vadd.f32 %v1837_v51, %v277_v28  ;;  %v1839_v53 = vpop.f32.mrb[1].mxu1 }
 0x1d7   :  { %v2003_v54 = vpop.f32.mrb[1].mxu0  ;;  %v2285_v33 = vadd.f32 %v1839_v53, %v281_v29  ;;  %v1841_v55 = vpop.f32.mrb[2].mxu1 }
 0x1d8   :  { %v2005_v56 = vpop.f32.mrb[2].mxu0  ;;  %v2284_v57 = vadd.f32 %v2283_v30, %v2001_v52  ;;  %v1842_v58 = vpop.f32.mrb[3].mxu1 }
 0x1d9   :  { %v2006_v59 = vpop.f32.mrb[3].mxu0  ;;  %v2286_v60 = vadd.f32 %v2285_v33, %v2003_v54 }
 0x1da   :  { %v2008_v61 = vmax.f32 %v2284_v57, 0.0 }
 0x1db   :  { %v2009_v62 = vmax.f32 %v2286_v60, 0.0 }
 0x1dd   :  { %v2012_v63 = vcombine.low %v2008_v61, %v2009_v62 }
 0x1df   :  { %2282 = vst.sshfl [vmem:[%s3556_s3] sm:$0x33 pattern:$0x76325410] %v2012_v63 }

// kernel: cnn_forward.13
= control target key start
LH: loop header
LB: loop body
LE: loop exit
PB: predicated region body
PF: predicated region fallthrough
CT: control target
= control target key end

     0   :  { %v167_v36 = vlaneseq  ;;  %v1627_v37 = vmov 1966171168   ;;  %s2135_s0 = inlined_call_operand.vmem [shape: bf16[2,1152], index: 0, kind: input, shape index: {}]   ;;  %s2136_s1 = inlined_call_operand.vmem [shape: bf16[1152,256], index: 1, kind: input, shape index: {}]   ;;  %s2137_s2 = inlined_call_operand.vmem [shape: f32[1,256], index: 2, kind: input, shape index: {}]   ;;  %s2138_s3 = inlined_call_operand.vmem [shape: f32[2,256], index: 3, kind: input, shape index: {}]   ;;  %s2139_s4 = inlined_call_operand.hbm [shape: f32[2,256], index: 4, kind: output, shape index: {}]  }
   0x1   :  { %v1386_v0 = vld [vmem:[%s2136_s1 + $0x4] ss:$8 sps:$4 sm:$0xff]   ;;  %v1390_v2 = vld [vmem:[%s2136_s1] ss:$8 sps:$4 sm:$0xff]   ;;  %v1392_v4 = vld [vmem:[%s2136_s1 + $0x14] ss:$8 sps:$4 sm:$0xff]   ;;  %v181_v38 = vunpack.c.l.s4 %v1627_v37 }
   0x2   :  { %v1388_v1 = vld [vmem:[%s2136_s1 + $0x204] ss:$8 sps:$4 sm:$0xff]   ;;  %971 = vmatprep.subr.bf16.mxu1 %v1386_v0  ;;  %v1391_v3 = vld [vmem:[%s2136_s1 + $0x200] ss:$8 sps:$4 sm:$0xff]   ;;  %v1394_v5 = vld [vmem:[%s2136_s1 + $0x214] ss:$8 sps:$4 sm:$0xff]  }
   0x3   :  { %1053 = vmatprep.subr.bf16.mxu0 %v1388_v1  ;;  %972 = vmatpush1.bf16.msra.mxu1 %v1390_v2  ;;  %v1396_v6 = vld [vmem:[%s2136_s1 + $0x10] ss:$8 sps:$4 sm:$0xff]   ;;  %v1398_v8 = vld [vmem:[%s2136_s1 + $0x24] ss:$8 sps:$4 sm:$0xff]   ;;  %v1402_v10 = vld [vmem:[%s2136_s1 + $0x20] ss:$8 sps:$4 sm:$0xff]   ;;  %v182_v43 = vunpack.c.0.s8 %v181_v38 }
   0x4   :  { %1054 = vmatpush1.bf16.msra.mxu0 %v1391_v3  ;;  %973 = vmatprep.subr.bf16.mxu1 %v1392_v4  ;;  %v1397_v7 = vld [vmem:[%s2136_s1 + $0x210] ss:$8 sps:$4 sm:$0xff]   ;;  %v1400_v9 = vld [vmem:[%s2136_s1 + $0x224] ss:$8 sps:$4 sm:$0xff]   ;;  %v1403_v11 = vld [vmem:[%s2136_s1 + $0x220] ss:$8 sps:$4 sm:$0xff]  }
   0x5   :  { %1055 = vmatprep.subr.bf16.mxu0 %v1394_v5  ;;  %v1404_v12 = vld [vmem:[%s2136_s1 + $0x34] ss:$8 sps:$4 sm:$0xff]   ;;  %v1408_v14 = vld [vmem:[%s2136_s1 + $0x30] ss:$8 sps:$4 sm:$0xff]   ;;  %v1410_v16 = vld [vmem:[%s2136_s1 + $0x44] ss:$8 sps:$4 sm:$0xff]  }
   0x6   :  { %v1406_v13 = vld [vmem:[%s2136_s1 + $0x234] ss:$8 sps:$4 sm:$0xff]   ;;  %v1409_v15 = vld [vmem:[%s2136_s1 + $0x230] ss:$8 sps:$4 sm:$0xff]   ;;  %v1412_v17 = vld [vmem:[%s2136_s1 + $0x244] ss:$8 sps:$4 sm:$0xff]  }
   0x7   :  { %974 = vmatpush1.bf16.msra.mxu1 %v1396_v6  ;;  %v1414_v18 = vld [vmem:[%s2136_s1 + $0x40] ss:$8 sps:$4 sm:$0xff]   ;;  %v1416_v20 = vld [vmem:[%s2136_s1 + $0x54] ss:$8 sps:$4 sm:$0xff]   ;;  %v1420_v22 = vld [vmem:[%s2136_s1 + $0x50] ss:$8 sps:$4 sm:$0xff]  }
   0x8   :  { %1056 = vmatpush1.bf16.msra.mxu0 %v1397_v7  ;;  %975 = vmatprep.subr.bf16.mxu1 %v1398_v8  ;;  %v1415_v19 = vld [vmem:[%s2136_s1 + $0x240] ss:$8 sps:$4 sm:$0xff]   ;;  %v1418_v21 = vld [vmem:[%s2136_s1 + $0x254] ss:$8 sps:$4 sm:$0xff]   ;;  %v1421_v23 = vld [vmem:[%s2136_s1 + $0x250] ss:$8 sps:$4 sm:$0xff]  }
   0x9   :  { %1057 = vmatprep.subr.bf16.mxu0 %v1400_v9  ;;  %v1422_v24 = vld [vmem:[%s2136_s1 + $0x64] ss:$8 sps:$4 sm:$0xff]   ;;  %v1426_v26 = vld [vmem:[%s2136_s1 + $0x60] ss:$8 sps:$4 sm:$0xff]   ;;  %v1428_v28 = vld [vmem:[%s2136_s1 + $0x74] ss:$8 sps:$4 sm:$0xff]  }
   0xa   :  { %v1424_v25 = vld [vmem:[%s2136_s1 + $0x264] ss:$8 sps:$4 sm:$0xff]   ;;  %v1427_v27 = vld [vmem:[%s2136_s1 + $0x260] ss:$8 sps:$4 sm:$0xff]   ;;  %v1430_v29 = vld [vmem:[%s2136_s1 + $0x274] ss:$8 sps:$4 sm:$0xff]  }
   0xb   :  { %976 = vmatpush1.bf16.msra.mxu1 %v1402_v10  ;;  %v1432_v30 = vld [vmem:[%s2136_s1 + $0x70] ss:$8 sps:$4 sm:$0xff]   ;;  %v1434_v32 = vld [vmem:[%s2136_s1 + $0x84] ss:$8 sps:$4 sm:$0xff]   ;;  %v1438_v34 = vld [vmem:[%s2136_s1 + $0x80] ss:$8 sps:$4 sm:$0xff]  }
   0xc   :  { %1058 = vmatpush1.bf16.msra.mxu0 %v1403_v11  ;;  %977 = vmatprep.subr.bf16.mxu1 %v1404_v12  ;;  %v1433_v31 = vld [vmem:[%s2136_s1 + $0x270] ss:$8 sps:$4 sm:$0xff]   ;;  %v1436_v33 = vld [vmem:[%s2136_s1 + $0x284] ss:$8 sps:$4 sm:$0xff]   ;;  %v1439_v35 = vld [vmem:[%s2136_s1 + $0x280] ss:$8 sps:$4 sm:$0xff]  }
   0xd   :  { %1059 = vmatprep.subr.bf16.mxu0 %v1406_v13  ;;  %v1440_v39 = vld [vmem:[%s2136_s1 + $0x94] ss:$8 sps:$4 sm:$0xff]   ;;  %v1444_v41 = vld [vmem:[%s2136_s1 + $0x90] ss:$8 sps:$4 sm:$0xff]   ;;  %v1772_v42 = vshrl.u32 %v167_v36, 7  ;;  %v19_v52 = vld [vmem:[%s2135_s0] sm:$0xff] }
   0xe   :  { %v1442_v40 = vld [vmem:[%s2136_s1 + $0x294] ss:$8 sps:$4 sm:$0xff]   ;;  %v1445_v44 = vld [vmem:[%s2136_s1 + $0x290] ss:$8 sps:$4 sm:$0xff]   ;;  %v1446_v45 = vld [vmem:[%s2136_s1 + $0xa4] ss:$8 sps:$4 sm:$0xff]   ;;  %v179_v55 = vcombine.high %v19_v52, %v19_v52 }
   0xf   :  { %978 = vmatpush1.bf16.msra.mxu1 %v1408_v14  ;;  %v1448_v46 = vld [vmem:[%s2136_s1 + $0x2a4] ss:$8 sps:$4 sm:$0xff]   ;;  %v1450_v47 = vld [vmem:[%s2136_s1 + $0xa0] ss:$8 sps:$4 sm:$0xff]   ;;  %v1790_v49 = vsub.s32 %v182_v43, %v1772_v42  ;;  %v1452_v50 = vld [vmem:[%s2136_s1 + $0xb4] ss:$8 sps:$4 sm:$0xff]  }
  0x10   :  { %1060 = vmatpush1.bf16.msra.mxu0 %v1409_v15  ;;  %979 = vmatprep.subr.bf16.mxu1 %v1410_v16  ;;  %v1451_v48 = vld [vmem:[%s2136_s1 + $0x2a0] ss:$8 sps:$4 sm:$0xff]   ;;  %v1454_v51 = vld [vmem:[%s2136_s1 + $0x2b4] ss:$8 sps:$4 sm:$0xff]   ;;  %v1456_v53 = vld [vmem:[%s2136_s1 + $0xb0] ss:$8 sps:$4 sm:$0xff]  }
  0x11   :  { %1061 = vmatprep.subr.bf16.mxu0 %v1412_v17  ;;  %v186_v54 = vrot.slane %v19_v52, %v1790_v49  ;;  %v1457_v56 = vld [vmem:[%s2136_s1 + $0x2b0] ss:$8 sps:$4 sm:$0xff]   ;;  %v1458_v57 = vld [vmem:[%s2136_s1 + $0xc4] ss:$8 sps:$4 sm:$0xff]   ;;  %v193_v60 = vrot.slane %v179_v55, %v1790_v49  ;;  %v1462_v61 = vld [vmem:[%s2136_s1 + $0xc0] ss:$8 sps:$4 sm:$0xff]  }
  0x12   :  { %v1460_v58 = vld [vmem:[%s2136_s1 + $0x2c4] ss:$8 sps:$4 sm:$0xff]   ;;  %v1463_v0 = vld [vmem:[%s2136_s1 + $0x2c0] ss:$8 sps:$4 sm:$0xff]   ;;  %v1464_v1 = vld [vmem:[%s2136_s1 + $0xd4] ss:$8 sps:$4 sm:$0xff]  }
  0x13   :  { %980 = vmatpush1.bf16.msra.mxu1 %v1414_v18  ;;  %v194_v59 = vcombine.high %v186_v54, %v186_v54  ;;  %v195_v63 = vcombine.high %v193_v60, %v193_v60  ;;  %v1466_v2 = vld [vmem:[%s2136_s1 + $0x2d4] ss:$8 sps:$4 sm:$0xff]   ;;  %v1468_v4 = vld [vmem:[%s2136_s1 + $0xd0] ss:$8 sps:$4 sm:$0xff]   ;;  %v1470_v6 = vld [vmem:[%s2136_s1 + $0xe4] ss:$8 sps:$4 sm:$0xff]   ;;  %v1869_v17 = vrot.slane %v186_v54, %v1790_v49  ;;  %v1872_v18 = vrot.slane %v193_v60, %v1790_v49 }
  0x14   :  { %1062 = vmatpush1.bf16.msra.mxu0 %v1415_v19  ;;  %981 = vmatprep.subr.bf16.mxu1 %v1416_v20  ;;  %v1469_v5 = vld [vmem:[%s2136_s1 + $0x2d0] ss:$8 sps:$4 sm:$0xff]   ;;  %v1472_v7 = vld [vmem:[%s2136_s1 + $0x2e4] ss:$8 sps:$4 sm:$0xff]   ;;  %v1474_v8 = vld [vmem:[%s2136_s1 + $0xe0] ss:$8 sps:$4 sm:$0xff]  }
  0x15   :  { %1063 = vmatprep.subr.bf16.mxu0 %v1418_v21  ;;  %v216_v62 = vrot.slane %v194_v59, %v1790_v49  ;;  %v223_v3 = vrot.slane %v195_v63, %v1790_v49  ;;  %v1475_v9 = vld [vmem:[%s2136_s1 + $0x2e0] ss:$8 sps:$4 sm:$0xff]   ;;  %v1476_v10 = vld [vmem:[%s2136_s1 + $0xf4] ss:$8 sps:$4 sm:$0xff]   ;;  %v1480_v12 = vld [vmem:[%s2136_s1 + $0xf0] ss:$8 sps:$4 sm:$0xff]  }
  0x16   :  { %v1478_v11 = vld [vmem:[%s2136_s1 + $0x2f4] ss:$8 sps:$4 sm:$0xff]   ;;  %v1481_v13 = vld [vmem:[%s2136_s1 + $0x2f0] ss:$8 sps:$4 sm:$0xff]   ;;  %v1484_v14 = vld [vmem:[%s2136_s1 + $0x104] ss:$8 sps:$4 sm:$0xff]  }
  0x17   :  { %982 = vmatpush1.bf16.msra.mxu1 %v1420_v22  ;;  %1003 = vmatprep.mubr.bf16.mxu1 %v216_v62  ;;  %v1488_v15 = vld [vmem:[%s2136_s1 + $0x304] ss:$8 sps:$4 sm:$0xff]   ;;  %v1482_v16 = vld [vmem:[%s2136_s1 + $0x100] ss:$8 sps:$4 sm:$0xff]   ;;  %v1491_v20 = vld [vmem:[%s2136_s1 + $0x114] ss:$8 sps:$4 sm:$0xff]   ;;  %v226_v22 = vcombine.high %v216_v62, %v216_v62 }
  0x18   :  { %1064 = vmatpush1.bf16.msra.mxu0 %v1421_v23  ;;  %983 = vmatprep.subr.bf16.mxu1 %v1422_v24  ;;  %v1486_v19 = vld [vmem:[%s2136_s1 + $0x300] ss:$8 sps:$4 sm:$0xff]   ;;  %v1494_v21 = vld [vmem:[%s2136_s1 + $0x314] ss:$8 sps:$4 sm:$0xff]   ;;  %v227_v23 = vcombine.high %v223_v3, %v223_v3  ;;  %v1489_v24 = vld [vmem:[%s2136_s1 + $0x110] ss:$8 sps:$4 sm:$0xff]  }
  0x19   :  { %1065 = vmatprep.subr.bf16.mxu0 %v1424_v25  ;;  %1085 = vmatprep.mubr.bf16.mxu0 %v223_v3  ;;  %v1492_v25 = vld [vmem:[%s2136_s1 + $0x310] ss:$8 sps:$4 sm:$0xff]   ;;  %v1507_v36 = vld [vmem:[%s2136_s1 + $0x140] ss:$8 sps:$4 sm:$0xff]   ;;  %v1515_v38 = vld [vmem:[%s2136_s1 + $0x154] ss:$8 sps:$4 sm:$0xff]  }
  0x1a   :  { %v1510_v37 = vld [vmem:[%s2136_s1 + $0x340] ss:$8 sps:$4 sm:$0xff]   ;;  %v1521_v43 = vld [vmem:[%s2136_s1 + $0x164] ss:$8 sps:$4 sm:$0xff]  }
  0x1b   :  { %984 = vmatpush1.bf16.msra.mxu1 %v1426_v26  ;;  %v1497_v26 = vld [vmem:[%s2136_s1 + $0x124] ss:$8 sps:$4 sm:$0xff]   ;;  %v1531_v54 = vld [vmem:[%s2136_s1 + $0x180] ss:$8 sps:$4 sm:$0xff]  }
  0x1c   :  { %1066 = vmatpush1.bf16.msra.mxu0 %v1427_v27  ;;  %985 = vmatprep.subr.bf16.mxu1 %v1428_v28  ;;  %v1500_v27 = vld [vmem:[%s2136_s1 + $0x324] ss:$8 sps:$4 sm:$0xff]   ;;  %v1495_v28 = vld [vmem:[%s2136_s1 + $0x120] ss:$8 sps:$4 sm:$0xff]  }
  0x1d   :  { %1067 = vmatprep.subr.bf16.mxu0 %v1430_v29  ;;  %v1498_v29 = vld [vmem:[%s2136_s1 + $0x320] ss:$8 sps:$4 sm:$0xff]   ;;  %v1533_v52 = vld [vmem:[%s2136_s1 + $0x184] ss:$8 sps:$4 sm:$0xff]  }
  0x1e   :  { %v1534_v55 = vld [vmem:[%s2136_s1 + $0x380] ss:$8 sps:$4 sm:$0xff]  }
  0x1f   :  { %986 = vmatpush1.bf16.msra.mxu1 %v1432_v30  ;;  %v1503_v30 = vld [vmem:[%s2136_s1 + $0x134] ss:$8 sps:$4 sm:$0xff]  }
  0x20   :  { %1068 = vmatpush1.bf16.msra.mxu0 %v1433_v31  ;;  %987 = vmatprep.subr.bf16.mxu1 %v1434_v32  ;;  %v1506_v31 = vld [vmem:[%s2136_s1 + $0x334] ss:$8 sps:$4 sm:$0xff]   ;;  %v1501_v32 = vld [vmem:[%s2136_s1 + $0x130] ss:$8 sps:$4 sm:$0xff]  }
  0x21   :  { %1069 = vmatprep.subr.bf16.mxu0 %v1436_v33  ;;  %v1504_v33 = vld [vmem:[%s2136_s1 + $0x330] ss:$8 sps:$4 sm:$0xff]  }
  0x23   :  { %988 = vmatpush1.bf16.msra.mxu1 %v1438_v34  ;;  %v1509_v34 = vld [vmem:[%s2136_s1 + $0x144] ss:$8 sps:$4 sm:$0xff]  }
  0x24   :  { %1070 = vmatpush1.bf16.msra.mxu0 %v1439_v35  ;;  %989 = vmatprep.subr.bf16.mxu1 %v1440_v39  ;;  %v1512_v35 = vld [vmem:[%s2136_s1 + $0x344] ss:$8 sps:$4 sm:$0xff]   ;;  %v1518_v39 = vld [vmem:[%s2136_s1 + $0x354] ss:$8 sps:$4 sm:$0xff]  }
  0x25   :  { %1071 = vmatprep.subr.bf16.mxu0 %v1442_v40  ;;  %v1513_v40 = vld [vmem:[%s2136_s1 + $0x150] ss:$8 sps:$4 sm:$0xff]  }
  0x27   :  { %990 = vmatpush1.bf16.msra.mxu1 %v1444_v41  ;;  %v1516_v41 = vld [vmem:[%s2136_s1 + $0x350] ss:$8 sps:$4 sm:$0xff]  }
  0x28   :  { %1072 = vmatpush1.bf16.msra.mxu0 %v1445_v44  ;;  %991 = vmatprep.subr.bf16.mxu1 %v1446_v45  ;;  %v1524_v44 = vld [vmem:[%s2136_s1 + $0x364] ss:$8 sps:$4 sm:$0xff]   ;;  %v1519_v45 = vld [vmem:[%s2136_s1 + $0x160] ss:$8 sps:$4 sm:$0xff]  }
  0x29   :  { %1073 = vmatprep.subr.bf16.mxu0 %v1448_v46  ;;  %v1522_v46 = vld [vmem:[%s2136_s1 + $0x360] ss:$8 sps:$4 sm:$0xff]  }
  0x2b   :  { %992 = vmatpush1.bf16.msra.mxu1 %v1450_v47  ;;  %v1527_v47 = vld [vmem:[%s2136_s1 + $0x174] ss:$8 sps:$4 sm:$0xff]  }
  0x2c   :  { %1074 = vmatpush1.bf16.msra.mxu0 %v1451_v48  ;;  %993 = vmatprep.subr.bf16.mxu1 %v1452_v50  ;;  %v1530_v48 = vld [vmem:[%s2136_s1 + $0x374] ss:$8 sps:$4 sm:$0xff]   ;;  %v1525_v50 = vld [vmem:[%s2136_s1 + $0x170] ss:$8 sps:$4 sm:$0xff]  }
  0x2d   :  { %1075 = vmatprep.subr.bf16.mxu0 %v1454_v51  ;;  %v1528_v51 = vld [vmem:[%s2136_s1 + $0x370] ss:$8 sps:$4 sm:$0xff]  }
  0x2f   :  { %994 = vmatpush1.bf16.msra.mxu1 %v1456_v53  ;;  %v1536_v53 = vld [vmem:[%s2136_s1 + $0x384] ss:$8 sps:$4 sm:$0xff]  }
  0x30   :  { %1076 = vmatpush1.bf16.msra.mxu0 %v1457_v56  ;;  %995 = vmatprep.subr.bf16.mxu1 %v1458_v57  ;;  %v1539_v56 = vld [vmem:[%s2136_s1 + $0x194] ss:$8 sps:$4 sm:$0xff]  }
  0x31   :  { %1077 = vmatprep.subr.bf16.mxu0 %v1460_v58  ;;  %v1542_v57 = vld [vmem:[%s2136_s1 + $0x394] ss:$8 sps:$4 sm:$0xff]  }
  0x33   :  { %996 = vmatpush1.bf16.msra.mxu1 %v1462_v61 }
  0x34   :  { %1078 = vmatpush1.bf16.msra.mxu0 %v1463_v0  ;;  %997 = vmatprep.subr.bf16.mxu1 %v1464_v1 }
  0x35   :  { %1079 = vmatprep.subr.bf16.mxu0 %v1466_v2 }
  0x37   :  { %998 = vmatpush1.bf16.msra.mxu1 %v1468_v4 }
  0x38   :  { %1080 = vmatpush1.bf16.msra.mxu0 %v1469_v5  ;;  %999 = vmatprep.subr.bf16.mxu1 %v1470_v6 }
  0x39   :  { %1081 = vmatprep.subr.bf16.mxu0 %v1472_v7 }
  0x3b   :  { %1000 = vmatpush1.bf16.msra.mxu1 %v1474_v8 }
  0x3c   :  { %1082 = vmatpush1.bf16.msra.mxu0 %v1475_v9  ;;  %1001 = vmatprep.subr.bf16.mxu1 %v1476_v10 }
  0x3d   :  { %1083 = vmatprep.subr.bf16.mxu0 %v1478_v11 }
  0x3f   :  { %1002 = vmatpush1.bf16.msra.mxu1 %v1480_v12 }
  0x40   :  { %1084 = vmatpush1.bf16.msra.mxu0 %v1481_v13  ;;  %1012 = vmatprep.subr.bf16.mxu1 %v1484_v14 }
  0x41   :  { %1094 = vmatprep.subr.bf16.mxu0 %v1488_v15 }
  0x42   :  { %1004 = vmatmul.mubr.bf16.vlgmr.msra.gmra.mrb[0].mxu1 %v1869_v17 }
  0x43   :  { %1086 = vmatmul.mubr.bf16.vlgmr.msra.gmra.mrb[0].mxu0 %v1872_v18  ;;  %1013 = vmatpush1.bf16.msra.mxu1 %v1482_v16 }
  0x44   :  { %1095 = vmatpush1.bf16.msra.mxu0 %v1486_v19  ;;  %1014 = vmatprep.subr.bf16.mxu1 %v1491_v20 }
  0x45   :  { %1096 = vmatprep.subr.bf16.mxu0 %v1494_v21  ;;  %1044 = vmatprep.mubr.bf16.mxu1 %v226_v22 }
  0x46   :  { %1126 = vmatprep.mubr.bf16.mxu0 %v227_v23 }
  0x47   :  { %1015 = vmatpush1.bf16.msra.mxu1 %v1489_v24 }
  0x48   :  { %1097 = vmatpush1.bf16.msra.mxu0 %v1492_v25  ;;  %1016 = vmatprep.subr.bf16.mxu1 %v1497_v26 }
  0x49   :  { %1098 = vmatprep.subr.bf16.mxu0 %v1500_v27 }
  0x4b   :  { %1017 = vmatpush1.bf16.msra.mxu1 %v1495_v28 }
  0x4c   :  { %1099 = vmatpush1.bf16.msra.mxu0 %v1498_v29  ;;  %1018 = vmatprep.subr.bf16.mxu1 %v1503_v30 }
  0x4d   :  { %1100 = vmatprep.subr.bf16.mxu0 %v1506_v31 }
  0x4f   :  { %1019 = vmatpush1.bf16.msra.mxu1 %v1501_v32 }
  0x50   :  { %1101 = vmatpush1.bf16.msra.mxu0 %v1504_v33  ;;  %1020 = vmatprep.subr.bf16.mxu1 %v1509_v34 }
  0x51   :  { %1102 = vmatprep.subr.bf16.mxu0 %v1512_v35 }
  0x53   :  { %1021 = vmatpush1.bf16.msra.mxu1 %v1507_v36 }
  0x54   :  { %1103 = vmatpush1.bf16.msra.mxu0 %v1510_v37  ;;  %1022 = vmatprep.subr.bf16.mxu1 %v1515_v38 }
  0x55   :  { %1104 = vmatprep.subr.bf16.mxu0 %v1518_v39 }
  0x57   :  { %1023 = vmatpush1.bf16.msra.mxu1 %v1513_v40 }
  0x58   :  { %1105 = vmatpush1.bf16.msra.mxu0 %v1516_v41  ;;  %1024 = vmatprep.subr.bf16.mxu1 %v1521_v43 }
  0x59   :  { %1106 = vmatprep.subr.bf16.mxu0 %v1524_v44 }
  0x5b   :  { %1025 = vmatpush1.bf16.msra.mxu1 %v1519_v45 }
  0x5c   :  { %1107 = vmatpush1.bf16.msra.mxu0 %v1522_v46  ;;  %1026 = vmatprep.subr.bf16.mxu1 %v1527_v47 }
  0x5d   :  { %1108 = vmatprep.subr.bf16.mxu0 %v1530_v48 }
  0x5f   :  { %1027 = vmatpush1.bf16.msra.mxu1 %v1525_v50 }
  0x60   :  { %1109 = vmatpush1.bf16.msra.mxu0 %v1528_v51  ;;  %1028 = vmatprep.subr.bf16.mxu1 %v1533_v52 }
  0x61   :  { %1110 = vmatprep.subr.bf16.mxu0 %v1536_v53 }
  0x62   :  { %9 = vsyncpa [#allocation3], 0  ;;  %v1537_v58 = vld [vmem:[%s2136_s1 + $0x190] ss:$8 sps:$4 sm:$0xff]   ;;  %v1545_v60 = vld [vmem:[%s2136_s1 + $0x1a4] ss:$8 sps:$4 sm:$0xff]   ;;  %v224_v23 = vcombine.high %v1869_v17, %v1869_v17  ;;  %v225_v24 = vcombine.high %v1872_v18, %v1872_v18 }
  0x63   :  { %1029 = vmatpush1.bf16.msra.mxu1 %v1531_v54  ;;  %v1540_v59 = vld [vmem:[%s2136_s1 + $0x390] ss:$8 sps:$4 sm:$0xff]   ;;  %v1548_v61 = vld [vmem:[%s2136_s1 + $0x3a4] ss:$8 sps:$4 sm:$0xff]   ;;  %v1543_v62 = vld [vmem:[%s2136_s1 + $0x1a0] ss:$8 sps:$4 sm:$0xff]  }
  0x64   :  { %1111 = vmatpush1.bf16.msra.mxu0 %v1534_v55  ;;  %1030 = vmatprep.subr.bf16.mxu1 %v1539_v56  ;;  %v1546_v63 = vld [vmem:[%s2136_s1 + $0x3a0] ss:$8 sps:$4 sm:$0xff]   ;;  %v1551_v0 = vld [vmem:[%s2136_s1 + $0x1b4] ss:$8 sps:$4 sm:$0xff]   ;;  %v1549_v2 = vld [vmem:[%s2136_s1 + $0x1b0] ss:$8 sps:$4 sm:$0xff]  }
  0x65   :  { %1112 = vmatprep.subr.bf16.mxu0 %v1542_v57  ;;  %v1554_v1 = vld [vmem:[%s2136_s1 + $0x3b4] ss:$8 sps:$4 sm:$0xff]   ;;  %v1552_v3 = vld [vmem:[%s2136_s1 + $0x3b0] ss:$8 sps:$4 sm:$0xff]   ;;  %v1557_v4 = vld [vmem:[%s2136_s1 + $0x1c4] ss:$8 sps:$4 sm:$0xff]  }
  0x66   :  { %v1560_v5 = vld [vmem:[%s2136_s1 + $0x3c4] ss:$8 sps:$4 sm:$0xff]   ;;  %v1555_v6 = vld [vmem:[%s2136_s1 + $0x1c0] ss:$8 sps:$4 sm:$0xff]   ;;  %v1563_v8 = vld [vmem:[%s2136_s1 + $0x1d4] ss:$8 sps:$4 sm:$0xff]  }
  0x67   :  { %1031 = vmatpush1.bf16.msra.mxu1 %v1537_v58  ;;  %v1558_v7 = vld [vmem:[%s2136_s1 + $0x3c0] ss:$8 sps:$4 sm:$0xff]   ;;  %v1566_v9 = vld [vmem:[%s2136_s1 + $0x3d4] ss:$8 sps:$4 sm:$0xff]   ;;  %v1561_v10 = vld [vmem:[%s2136_s1 + $0x1d0] ss:$8 sps:$4 sm:$0xff]  }
  0x68   :  { %1113 = vmatpush1.bf16.msra.mxu0 %v1540_v59  ;;  %1032 = vmatprep.subr.bf16.mxu1 %v1545_v60  ;;  %v1564_v11 = vld [vmem:[%s2136_s1 + $0x3d0] ss:$8 sps:$4 sm:$0xff]   ;;  %v1569_v12 = vld [vmem:[%s2136_s1 + $0x1e4] ss:$8 sps:$4 sm:$0xff]   ;;  %v1567_v14 = vld [vmem:[%s2136_s1 + $0x1e0] ss:$8 sps:$4 sm:$0xff]  }
  0x69   :  { %1114 = vmatprep.subr.bf16.mxu0 %v1548_v61  ;;  %v1572_v13 = vld [vmem:[%s2136_s1 + $0x3e4] ss:$8 sps:$4 sm:$0xff]   ;;  %v1570_v15 = vld [vmem:[%s2136_s1 + $0x3e0] ss:$8 sps:$4 sm:$0xff]   ;;  %v1575_v16 = vld [vmem:[%s2136_s1 + $0x1f4] ss:$8 sps:$4 sm:$0xff]  }
  0x6a   :  { %v1578_v19 = vld [vmem:[%s2136_s1 + $0x3f4] ss:$8 sps:$4 sm:$0xff]   ;;  %v1573_v20 = vld [vmem:[%s2136_s1 + $0x1f0] ss:$8 sps:$4 sm:$0xff]   ;;  %v1581_v22 = vld [vmem:[%s2136_s1 + $0x404] ss:$8 sps:$4 sm:$0xff]  }
  0x6b   :  { %1033 = vmatpush1.bf16.msra.mxu1 %v1543_v62  ;;  %v1576_v21 = vld [vmem:[%s2136_s1 + $0x3f0] ss:$8 sps:$4 sm:$0xff]   ;;  %v1579_v25 = vld [vmem:[%s2136_s1 + $0x400] ss:$8 sps:$4 sm:$0xff]   ;;  %v1584_v26 = vld [vmem:[%s2136_s1 + $0x414] ss:$8 sps:$4 sm:$0xff]  }
  0x6c   :  { %1115 = vmatpush1.bf16.msra.mxu0 %v1546_v63  ;;  %1034 = vmatprep.subr.bf16.mxu1 %v1551_v0  ;;  %v1582_v17 = vld [vmem:[%s2136_s1 + $0x410] ss:$8 sps:$4 sm:$0xff]   ;;  %v1628_v27 = vmov 0   ;;  %v1587_v18 = vld [vmem:[%s2136_s1 + $0x424] ss:$8 sps:$4 sm:$0xff]   ;;  %v169_v46 = vsub.s32 0, %v1772_v42 }
  0x6d   :  { %1116 = vmatprep.subr.bf16.mxu0 %v1554_v1  ;;  %v1585_v28 = vld [vmem:[%s2136_s1 + $0x420] ss:$8 sps:$4 sm:$0xff]   ;;  %v1590_v29 = vld [vmem:[%s2136_s1 + $0x434] ss:$8 sps:$4 sm:$0xff]   ;;  %v1588_v30 = vld [vmem:[%s2136_s1 + $0x430] ss:$8 sps:$4 sm:$0xff]  }
  0x6e   :  { %v1593_v31 = vld [vmem:[%s2136_s1 + $0x444] ss:$8 sps:$4 sm:$0xff]   ;;  %v1591_v32 = vld [vmem:[%s2136_s1 + $0x440] ss:$8 sps:$4 sm:$0xff]   ;;  %v1596_v33 = vld [vmem:[%s2136_s1 + $0x454] ss:$8 sps:$4 sm:$0xff]  }
  0x6f   :  { %1035 = vmatpush1.bf16.msra.mxu1 %v1549_v2  ;;  %v1594_v34 = vld [vmem:[%s2136_s1 + $0x450] ss:$8 sps:$4 sm:$0xff]   ;;  %v1599_v35 = vld [vmem:[%s2136_s1 + $0x464] ss:$8 sps:$4 sm:$0xff]   ;;  %v1597_v36 = vld [vmem:[%s2136_s1 + $0x460] ss:$8 sps:$4 sm:$0xff]  }
  0x70   :  { %1117 = vmatpush1.bf16.msra.mxu0 %v1552_v3  ;;  %1036 = vmatprep.subr.bf16.mxu1 %v1557_v4  ;;  %v1602_v37 = vld [vmem:[%s2136_s1 + $0x474] ss:$8 sps:$4 sm:$0xff]   ;;  %v1600_v38 = vld [vmem:[%s2136_s1 + $0x470] ss:$8 sps:$4 sm:$0xff]   ;;  %v165_v47 = vld [vmem:[%s2137_s2] sm:$0x3] }
  0x71   :  { %1118 = vmatprep.subr.bf16.mxu0 %v1560_v5  ;;  %v1220_v39 = vld.sshfl [vmem:[%s2135_s0 + $0x8] sm:$0x1 pattern:$0x75316420]  ;;  %v173_v48 = vsub.s32 1, %v1772_v42  ;;  %v170_v50 = vrot.slane %v165_v47, %v169_v46  ;;  %s1629_s2 = smov [#allocation2]  }
  0x72   :  { %v241_v40 = vrot.slane %v1220_v39, %v1790_v49  ;;  %v1365_v49 = vld.sshfl [vmem:[%s2138_s3] sm:$0x33 pattern:$0x76325410]  ;;  %s1212_s23 = sshll.u32 %s1629_s2, 4  ;;  %s1213_s23 = int_to_ptr.vmem [resolvable:$true] %s1212_s23 }
  0x73   :  { %1037 = vmatpush1.bf16.msra.mxu1 %v1555_v6  ;;  %v174_v51 = vrot.slane %v165_v47, %v173_v48  ;;  %v1187_v58 = vcombine.high %v1365_v49, %v1365_v49  ;;  %s1603_s24 = scalar_lea.vmem %s1213_s23, 64  ;;  %p1608_p1 = scmp.lt.s32.totalorder %s1213_s23, %s1213_s23 }
  0x74   :  { %1119 = vmatpush1.bf16.msra.mxu0 %v1558_v7  ;;  %1038 = vmatprep.subr.bf16.mxu1 %v1563_v8  ;;  %p1604_p0 = scmp.ne.s32.totalorder %s1213_s23, %s1603_s24  ;;  %p1609_p2 = scmp.lt.s32.totalorder %s1603_s24, %s1603_s24 }
  0x75   :  { %1120 = vmatprep.subr.bf16.mxu0 %v1566_v9 }
  0x76   :  { %p1610_p3 = por %p1609_p2, %p1608_p1 }
  0x77   :  { %1039 = vmatpush1.bf16.msra.mxu1 %v1561_v10 }
  0x78   :  { %1121 = vmatpush1.bf16.msra.mxu0 %v1564_v11  ;;  %1040 = vmatprep.subr.bf16.mxu1 %v1569_v12  ;;  %p1611_p4 = pnand %p1610_p3, %p1604_p0 }
  0x79   :  { %1122 = vmatprep.subr.bf16.mxu0 %v1572_v13 }
  0x7b   :  { %1041 = vmatpush1.bf16.msra.mxu1 %v1567_v14 }
  0x7c   :  { %1123 = vmatpush1.bf16.msra.mxu0 %v1570_v15  ;;  %1042 = vmatprep.subr.bf16.mxu1 %v1575_v16 }
  0x7d   :  { %1124 = vmatprep.subr.bf16.mxu0 %v1578_v19 }
  0x7f   :  { %1043 = vmatpush1.bf16.msra.mxu1 %v1573_v20 }
  0x80   :  { %1125 = vmatpush1.bf16.msra.mxu0 %v1576_v21 }
  0x81   :  { %1135 = vmatprep.subr.bf16.mxu0 %v1581_v22 }
  0x82   :  { %1045 = vmatmul.mubr.bf16.vlgmr.msra.gmra.mrb[0].mxu1 %v224_v23 }
  0x83   :  { %1127 = vmatmul.mubr.bf16.vlgmr.msra.gmra.mrb[0].mxu0 %v225_v24 }
  0x84   :  { %1136 = vmatpush1.bf16.msra.mxu0 %v1579_v25  ;;  %1167 = vmatprep.mubr.bf16.mxu0 %v1628_v27 }
  0x85   :  { %1137 = vmatprep.subr.bf16.mxu0 %v1584_v26 }
  0x88   :  { %1138 = vmatpush1.bf16.msra.mxu0 %v1582_v17 }
  0x89   :  { %1139 = vmatprep.subr.bf16.mxu0 %v1587_v18 }
  0x8c   :  { %1140 = vmatpush1.bf16.msra.mxu0 %v1585_v28 }
  0x8d   :  { %1141 = vmatprep.subr.bf16.mxu0 %v1590_v29 }
  0x90   :  { %1142 = vmatpush1.bf16.msra.mxu0 %v1588_v30 }
  0x91   :  { %1143 = vmatprep.subr.bf16.mxu0 %v1593_v31 }
  0x94   :  { %1144 = vmatpush1.bf16.msra.mxu0 %v1591_v32 }
  0x95   :  { %1145 = vmatprep.subr.bf16.mxu0 %v1596_v33 }
  0x98   :  { %1146 = vmatpush1.bf16.msra.mxu0 %v1594_v34 }
  0x99   :  { %1147 = vmatprep.subr.bf16.mxu0 %v1599_v35 }
  0x9c   :  { %1148 = vmatpush1.bf16.msra.mxu0 %v1597_v36 }
  0x9d   :  { %1149 = vmatprep.subr.bf16.mxu0 %v1602_v37 }
  0xa0   :  { %1150 = vmatpush1.bf16.msra.mxu0 %v1600_v38 }
  0xa3   :  { %1168 = vmatmul.mubr.bf16.vlgmr.msra.gmra.mrb[0].mxu0 %v241_v40 }
 0x155   :  { %v1046_v41 = vpop.f32.mrb[0].mxu1 }
 0x156   :  { %v1048_v43 = vpop.f32.mrb[1].mxu1  ;;  %v1367_v52 = vadd.f32 %v1046_v41, %v170_v50 }
 0x157   :  { %v1050_v44 = vpop.f32.mrb[2].mxu1  ;;  %v1369_v53 = vadd.f32 %v1048_v43, %v174_v51 }
 0x158   :  { %v1051_v45 = vpop.f32.mrb[3].mxu1 }
 0x176   :  { %v1169_v54 = vpop.f32.mrb[0].mxu0 }
 0x177   :  { %v1368_v55 = vadd.f32 %v1367_v52, %v1169_v54  ;;  %v1171_v56 = vpop.f32.mrb[1].mxu0 }
 0x178   :  { %v1370_v57 = vadd.f32 %v1369_v53, %v1171_v56  ;;  %v1173_v59 = vpop.f32.mrb[2].mxu0 }
 0x179   :  { %v1176_v60 = vmax.f32 %v1368_v55, 0.0  ;;  %v1174_v61 = vpop.f32.mrb[3].mxu0 }
 0x17a   :  { %v1177_v62 = vmax.f32 %v1370_v57, 0.0 }
 0x17b   :  { %v1190_v63 = vadd.f32 %v1365_v49, %v1176_v60 }
 0x17c   :  { %v1191_v42 = vadd.f32 %v1187_v58, %v1177_v62 }
 0x17e   :  { %v1196_v0 = vcombine.low %v1190_v63, %v1191_v42 }
 0x180   :  { %1366 = vst.sshfl [vmem:[#allocation2] sm:$0x33 pattern:$0x76325410] %v1196_v0 }
 0x181   :  { %1614 = shalt.err (!%p1611_p4)
}
 0x182   :  { %s1615_s26 = scalar_lea.hbm %s2139_s4, 64 }
 0x183   :  { %p1616_p5 = scmp.ne.s32.totalorder %s2139_s4, %s1615_s26  ;;  %p1619_p6 = scmp.lt.u32.totalorder %s1615_s26, %s2139_s4 }
 0x185   :  { %p1621_p7 = pnand %p1619_p6, %p1616_p5 }
 0x187   :  { %1624 = shalt.err (!%p1621_p7)
}
 0x188   :  { %1215 = dma.vmem_to_hbm [thread:$0]  %s1213_s23, 64, %s2139_s4, [#allocation3]  }
 0x189   :  { %1625 = dma.done.wait [#allocation3], 64  }
 0x18a   :  { %1626 = vsyncadd [#allocation3], 4294967232 }
 0x18b   :  { %1219 = vsyncpa [#allocation3], 1 }

// kernel: cnn_forward.12
= control target key start
LH: loop header
LB: loop body
LE: loop exit
PB: predicated region body
PF: predicated region fallthrough
CT: control target
= control target key end

     0   :  { %v7615_v22 = vmov 1966171168   ;;  %v1066_v24 = vlaneseq  ;;  %s9316_s1 = inlined_call_operand.vmem [shape: bf16[8192,128], index: 1, kind: input, shape index: {}]   ;;  %s9317_s0 = inlined_call_operand.vmem [shape: bf16[2,8192], index: 0, kind: input, shape index: {}]   ;;  %s9318_s2 = inlined_call_operand.vmem [shape: f32[1,128], index: 2, kind: input, shape index: {}]   ;;  %s9319_s3 = inlined_call_operand.vmem [shape: bf16[2,128], index: 3, kind: output, shape index: {}]  }
   0x1   :  { %v7095_v0 = vld [vmem:[%s9316_s1 + $0x40] sm:$0xff]   ;;  %v7099_v4 = vld [vmem:[%s9316_s1 + $0x48] sm:$0xff]   ;;  %v7103_v8 = vld [vmem:[%s9316_s1 + $0x50] sm:$0xff]   ;;  %v1064_v23 = vunpack.c.l.s4 %v7615_v22 }
   0x2   :  { %v7096_v1 = vld [vmem:[%s9316_s1 + $0xc0] sm:$0xff]   ;;  %6390 = vmatprep.subr.bf16.mxu0 %v7095_v0  ;;  %v7100_v5 = vld [vmem:[%s9316_s1 + $0xc8] sm:$0xff]   ;;  %v7104_v9 = vld [vmem:[%s9316_s1 + $0xd0] sm:$0xff]   ;;  %v1067_v30 = vshrl.u32 %v1066_v24, 7 }
   0x3   :  { %v7097_v2 = vld [vmem:[%s9316_s1] sm:$0xff]   ;;  %6412 = vmatprep.subr.bf16.mxu1 %v7096_v1  ;;  %v7101_v6 = vld [vmem:[%s9316_s1 + $0x8] sm:$0xff]   ;;  %v7105_v10 = vld [vmem:[%s9316_s1 + $0x10] sm:$0xff]   ;;  %v1065_v29 = vunpack.c.0.s8 %v1064_v23 }
   0x4   :  { %v7098_v3 = vld [vmem:[%s9316_s1 + $0x80] sm:$0xff]   ;;  %6391 = vmatpush3.bf16.msra.mxu0 %v7097_v2  ;;  %v7102_v7 = vld [vmem:[%s9316_s1 + $0x88] sm:$0xff]   ;;  %v7106_v11 = vld [vmem:[%s9316_s1 + $0x90] sm:$0xff]  }
   0x5   :  { %6413 = vmatpush3.bf16.msra.mxu1 %v7098_v3  ;;  %6392 = vmatprep.subr.bf16.mxu0 %v7099_v4  ;;  %v7107_v12 = vld [vmem:[%s9316_s1 + $0x58] sm:$0xff]   ;;  %v7111_v16 = vld [vmem:[%s9316_s1 + $0x60] sm:$0xff]   ;;  %v7115_v20 = vld [vmem:[%s9316_s1 + $0x68] sm:$0xff]   ;;  %v7726_v35 = vsub.s32 %v1065_v29, %v1067_v30 }
   0x6   :  { %6414 = vmatprep.subr.bf16.mxu1 %v7100_v5  ;;  %v7108_v13 = vld [vmem:[%s9316_s1 + $0xd8] sm:$0xff]   ;;  %v7112_v17 = vld [vmem:[%s9316_s1 + $0xe0] sm:$0xff]   ;;  %v7116_v21 = vld [vmem:[%s9316_s1 + $0xe8] sm:$0xff]  }
   0x7   :  { %v7109_v14 = vld [vmem:[%s9316_s1 + $0x18] sm:$0xff]   ;;  %v7113_v18 = vld [vmem:[%s9316_s1 + $0x20] sm:$0xff]   ;;  %v7117_v25 = vld [vmem:[%s9316_s1 + $0x28] sm:$0xff]  }
   0x8   :  { %6393 = vmatpush3.bf16.msra.mxu0 %v7101_v6  ;;  %v7110_v15 = vld [vmem:[%s9316_s1 + $0x98] sm:$0xff]   ;;  %v7114_v19 = vld [vmem:[%s9316_s1 + $0xa0] sm:$0xff]   ;;  %v7118_v26 = vld [vmem:[%s9316_s1 + $0xa8] sm:$0xff]  }
   0x9   :  { %6415 = vmatpush3.bf16.msra.mxu1 %v7102_v7  ;;  %6394 = vmatprep.subr.bf16.mxu0 %v7103_v8  ;;  %v7119_v27 = vld [vmem:[%s9316_s1 + $0x70] sm:$0xff]   ;;  %v7123_v33 = vld [vmem:[%s9316_s1 + $0x78] sm:$0xff]   ;;  %v15_v38 = vld [vmem:[%s9317_s0] sm:$0xff] }
   0xa   :  { %6416 = vmatprep.subr.bf16.mxu1 %v7104_v9  ;;  %v7120_v28 = vld [vmem:[%s9316_s1 + $0xf0] sm:$0xff]   ;;  %v7124_v34 = vld [vmem:[%s9316_s1 + $0xf8] sm:$0xff]   ;;  %v1062_v39 = vcombine.high %v15_v38, %v15_v38  ;;  %v1069_v40 = vrot.slane %v15_v38, %v7726_v35  ;;  %v7128_v41 = vld [vmem:[%s9316_s1 + $0x140] sm:$0xff]  }
   0xb   :  { %v7121_v31 = vld [vmem:[%s9316_s1 + $0x30] sm:$0xff]   ;;  %v7125_v36 = vld [vmem:[%s9316_s1 + $0x38] sm:$0xff]   ;;  %v7129_v42 = vld [vmem:[%s9316_s1 + $0x1c0] sm:$0xff]  }
   0xc   :  { %6395 = vmatpush3.bf16.msra.mxu0 %v7105_v10  ;;  %v7122_v32 = vld [vmem:[%s9316_s1 + $0xb0] sm:$0xff]   ;;  %v7126_v37 = vld [vmem:[%s9316_s1 + $0xb8] sm:$0xff]   ;;  %v1077_v43 = vcombine.high %v1069_v40, %v1069_v40  ;;  %v1085_v44 = vrot.slane %v1069_v40, %v7726_v35  ;;  %v7746_v45 = vrot.slane %v1062_v39, %v7726_v35  ;;  %v7130_v46 = vld [vmem:[%s9316_s1 + $0x100] sm:$0xff]  }
   0xd   :  { %6417 = vmatpush3.bf16.msra.mxu1 %v7106_v11  ;;  %6396 = vmatprep.subr.bf16.mxu0 %v7107_v12  ;;  %v7131_v48 = vld [vmem:[%s9316_s1 + $0x180] sm:$0xff]   ;;  %v7132_v51 = vld [vmem:[%s9316_s1 + $0x148] sm:$0xff]   ;;  %v7136_v58 = vld [vmem:[%s9316_s1 + $0x150] sm:$0xff]  }
   0xe   :  { %6418 = vmatprep.subr.bf16.mxu1 %v7108_v13  ;;  %v1099_v47 = vrot.slane %v1077_v43, %v7726_v35  ;;  %v1078_v49 = vcombine.high %v7746_v45, %v7746_v45  ;;  %v1107_v50 = vcombine.high %v1085_v44, %v1085_v44  ;;  %v7133_v53 = vld [vmem:[%s9316_s1 + $0x1c8] sm:$0xff]   ;;  %v7137_v59 = vld [vmem:[%s9316_s1 + $0x1d0] sm:$0xff]   ;;  %v7140_v62 = vld [vmem:[%s9316_s1 + $0x158] sm:$0xff]  }
   0xf   :  { %v7134_v55 = vld [vmem:[%s9316_s1 + $0x108] sm:$0xff]   ;;  %v7138_v60 = vld [vmem:[%s9316_s1 + $0x110] sm:$0xff]   ;;  %v7141_v63 = vld [vmem:[%s9316_s1 + $0x1d8] sm:$0xff]  }
  0x10   :  { %6397 = vmatpush3.bf16.msra.mxu0 %v7109_v14  ;;  %4622 = vmatprep.mubr.bf16.mxu0 %v1099_v47  ;;  %v1109_v52 = vcombine.high %v1099_v47, %v1099_v47  ;;  %v1106_v54 = vrot.slane %v1078_v49, %v7726_v35  ;;  %v7135_v56 = vld [vmem:[%s9316_s1 + $0x188] sm:$0xff]   ;;  %v7139_v61 = vld [vmem:[%s9316_s1 + $0x190] sm:$0xff]   ;;  %v7142_v0 = vld [vmem:[%s9316_s1 + $0x118] sm:$0xff]  }
  0x11   :  { %6419 = vmatpush3.bf16.msra.mxu1 %v7110_v15  ;;  %6398 = vmatprep.subr.bf16.mxu0 %v7111_v16  ;;  %v7143_v1 = vld [vmem:[%s9316_s1 + $0x198] sm:$0xff]   ;;  %v7144_v2 = vld [vmem:[%s9316_s1 + $0x160] sm:$0xff]   ;;  %v7148_v6 = vld [vmem:[%s9316_s1 + $0x168] sm:$0xff]  }
  0x12   :  { %6420 = vmatprep.subr.bf16.mxu1 %v7112_v17  ;;  %4662 = vmatprep.mubr.bf16.mxu1 %v1109_v52  ;;  %v1110_v57 = vcombine.high %v1106_v54, %v1106_v54  ;;  %v7145_v3 = vld [vmem:[%s9316_s1 + $0x1e0] sm:$0xff]   ;;  %v7149_v7 = vld [vmem:[%s9316_s1 + $0x1e8] sm:$0xff]   ;;  %v7152_v10 = vld [vmem:[%s9316_s1 + $0x170] sm:$0xff]  }
  0x13   :  { %v7146_v4 = vld [vmem:[%s9316_s1 + $0x120] sm:$0xff]   ;;  %v7150_v8 = vld [vmem:[%s9316_s1 + $0x128] sm:$0xff]   ;;  %v7153_v11 = vld [vmem:[%s9316_s1 + $0x1f0] sm:$0xff]  }
  0x14   :  { %6399 = vmatpush3.bf16.msra.mxu0 %v7113_v18  ;;  %v7147_v5 = vld [vmem:[%s9316_s1 + $0x1a0] sm:$0xff]   ;;  %v7151_v9 = vld [vmem:[%s9316_s1 + $0x1a8] sm:$0xff]   ;;  %v7154_v12 = vld [vmem:[%s9316_s1 + $0x130] sm:$0xff]   ;;  %v1092_v18 = vrot.slane %v7746_v45, %v7726_v35 }
  0x15   :  { %6421 = vmatpush3.bf16.msra.mxu1 %v7114_v19  ;;  %6400 = vmatprep.subr.bf16.mxu0 %v7115_v20  ;;  %v7155_v13 = vld [vmem:[%s9316_s1 + $0x1b0] sm:$0xff]   ;;  %v7156_v14 = vld [vmem:[%s9316_s1 + $0x178] sm:$0xff]   ;;  %v7160_v19 = vld [vmem:[%s9316_s1 + $0x240] sm:$0xff]  }
  0x16   :  { %6422 = vmatprep.subr.bf16.mxu1 %v7116_v21  ;;  %v7157_v15 = vld [vmem:[%s9316_s1 + $0x1f8] sm:$0xff]   ;;  %v7161_v20 = vld [vmem:[%s9316_s1 + $0x2c0] sm:$0xff]   ;;  %v1108_v23 = vcombine.high %v1092_v18, %v1092_v18  ;;  %v7164_v24 = vld [vmem:[%s9316_s1 + $0x248] sm:$0xff]  }
  0x17   :  { %v7158_v16 = vld [vmem:[%s9316_s1 + $0x138] sm:$0xff]   ;;  %v7162_v21 = vld [vmem:[%s9316_s1 + $0x200] sm:$0xff]   ;;  %v7169_v29 = vld [vmem:[%s9316_s1 + $0x2d0] sm:$0xff]  }
  0x18   :  { %6401 = vmatpush3.bf16.msra.mxu0 %v7117_v25  ;;  %v7159_v17 = vld [vmem:[%s9316_s1 + $0x1b8] sm:$0xff]   ;;  %v7163_v22 = vld [vmem:[%s9316_s1 + $0x280] sm:$0xff]   ;;  %v7165_v25 = vld [vmem:[%s9316_s1 + $0x2c8] sm:$0xff]  }
  0x19   :  { %6423 = vmatpush3.bf16.msra.mxu1 %v7118_v26  ;;  %6402 = vmatprep.subr.bf16.mxu0 %v7119_v27  ;;  %v7166_v26 = vld [vmem:[%s9316_s1 + $0x208] sm:$0xff]   ;;  %v7170_v30 = vld [vmem:[%s9316_s1 + $0x210] sm:$0xff]   ;;  %v7177_v38 = vld [vmem:[%s9316_s1 + $0x2e0] sm:$0xff]  }
  0x1a   :  { %6424 = vmatprep.subr.bf16.mxu1 %v7120_v28  ;;  %v7167_v27 = vld [vmem:[%s9316_s1 + $0x288] sm:$0xff]   ;;  %v7168_v28 = vld [vmem:[%s9316_s1 + $0x250] sm:$0xff]   ;;  %v7178_v39 = vld [vmem:[%s9316_s1 + $0x220] sm:$0xff]  }
  0x1b   :  { %v7179_v40 = vld [vmem:[%s9316_s1 + $0x2a0] sm:$0xff]   ;;  %v7182_v43 = vld [vmem:[%s9316_s1 + $0x228] sm:$0xff]   ;;  %v7184_v45 = vld [vmem:[%s9316_s1 + $0x270] sm:$0xff]  }
  0x1c   :  { %6403 = vmatpush3.bf16.msra.mxu0 %v7121_v31  ;;  %v7171_v31 = vld [vmem:[%s9316_s1 + $0x290] sm:$0xff]   ;;  %v7188_v49 = vld [vmem:[%s9316_s1 + $0x278] sm:$0xff]   ;;  %v16_v52 = vld [vmem:[%s9317_s0 + $0x8] sm:$0xff] }
  0x1d   :  { %6425 = vmatpush3.bf16.msra.mxu1 %v7122_v32  ;;  %6404 = vmatprep.subr.bf16.mxu0 %v7123_v33  ;;  %v7172_v32 = vld [vmem:[%s9316_s1 + $0x258] sm:$0xff]   ;;  %v7186_v47 = vld [vmem:[%s9316_s1 + $0x230] sm:$0xff]  }
  0x1e   :  { %6426 = vmatprep.subr.bf16.mxu1 %v7124_v34  ;;  %v7173_v33 = vld [vmem:[%s9316_s1 + $0x2d8] sm:$0xff]  }
  0x1f   :  { %v7174_v34 = vld [vmem:[%s9316_s1 + $0x218] sm:$0xff]  }
  0x20   :  { %6405 = vmatpush3.bf16.msra.mxu0 %v7125_v36  ;;  %v7175_v36 = vld [vmem:[%s9316_s1 + $0x298] sm:$0xff]  }
  0x21   :  { %6427 = vmatpush3.bf16.msra.mxu1 %v7126_v37  ;;  %6434 = vmatprep.subr.bf16.mxu0 %v7128_v41  ;;  %v7176_v37 = vld [vmem:[%s9316_s1 + $0x260] sm:$0xff]   ;;  %v7180_v41 = vld [vmem:[%s9316_s1 + $0x268] sm:$0xff]  }
  0x22   :  { %6456 = vmatprep.subr.bf16.mxu1 %v7129_v42  ;;  %v7181_v42 = vld [vmem:[%s9316_s1 + $0x2e8] sm:$0xff]  }
  0x23   :  { %4623 = vmatmul.mubr.bf16.vlgmr.msra.gmra.mrb[0].mxu0 %v1085_v44  ;;  %v7183_v44 = vld [vmem:[%s9316_s1 + $0x2a8] sm:$0xff]  }
  0x24   :  { %6435 = vmatpush3.bf16.msra.mxu0 %v7130_v46  ;;  %4663 = vmatmul.mubr.bf16.vlgmr.msra.gmra.mrb[0].mxu1 %v1107_v50  ;;  %v7185_v46 = vld [vmem:[%s9316_s1 + $0x2f0] sm:$0xff]   ;;  %v7189_v50 = vld [vmem:[%s9316_s1 + $0x2f8] sm:$0xff]  }
  0x25   :  { %6436 = vmatprep.subr.bf16.mxu0 %v7132_v51  ;;  %6457 = vmatpush3.bf16.msra.mxu1 %v7131_v48  ;;  %v7187_v48 = vld [vmem:[%s9316_s1 + $0x2b0] sm:$0xff]   ;;  %v7190_v51 = vld [vmem:[%s9316_s1 + $0x238] sm:$0xff]  }
  0x26   :  { %4702 = vmatprep.mubr.bf16.mxu0 %v1106_v54  ;;  %6458 = vmatprep.subr.bf16.mxu1 %v7133_v53  ;;  %v7191_v53 = vld [vmem:[%s9316_s1 + $0x2b8] sm:$0xff]   ;;  %v1118_v54 = vrot.slane %v16_v52, %v7726_v35 }
  0x27   :  { %4742 = vmatprep.mubr.bf16.mxu1 %v1110_v57 }
  0x28   :  { %6437 = vmatpush3.bf16.msra.mxu0 %v7134_v55  ;;  %v1111_v55 = vcombine.high %v16_v52, %v16_v52  ;;  %v1126_v57 = vcombine.high %v1118_v54, %v1118_v54  ;;  %v7241_v52 = vld [vmem:[%s9316_s1 + $0x460] sm:$0xff]  }
  0x29   :  { %6438 = vmatprep.subr.bf16.mxu0 %v7136_v58  ;;  %6459 = vmatpush3.bf16.msra.mxu1 %v7135_v56  ;;  %v7192_v56 = vld [vmem:[%s9316_s1 + $0x340] sm:$0xff]   ;;  %v1134_v58 = vrot.slane %v1118_v54, %v7726_v35 }
  0x2a   :  { %6460 = vmatprep.subr.bf16.mxu1 %v7137_v59  ;;  %v7193_v59 = vld [vmem:[%s9316_s1 + $0x3c0] sm:$0xff]  }
  0x2b   :  { %v7243_v54 = vld [vmem:[%s9316_s1 + $0x420] sm:$0xff]  }
  0x2c   :  { %6439 = vmatpush3.bf16.msra.mxu0 %v7138_v60  ;;  %v7952_v60 = vrot.slane %v1111_v55, %v7726_v35  ;;  %v7244_v55 = vld [vmem:[%s9316_s1 + $0x4a0] sm:$0xff]  }
  0x2d   :  { %6440 = vmatprep.subr.bf16.mxu0 %v7140_v62  ;;  %6461 = vmatpush3.bf16.msra.mxu1 %v7139_v61  ;;  %v7194_v61 = vld [vmem:[%s9316_s1 + $0x300] sm:$0xff]   ;;  %v1148_v62 = vrot.slane %v1126_v57, %v7726_v35  ;;  %v7246_v57 = vld [vmem:[%s9316_s1 + $0x4e8] sm:$0xff]  }
  0x2e   :  { %6462 = vmatprep.subr.bf16.mxu1 %v7141_v63  ;;  %v7195_v63 = vld [vmem:[%s9316_s1 + $0x380] sm:$0xff]  }
  0x30   :  { %6441 = vmatpush3.bf16.msra.mxu0 %v7142_v0  ;;  %v1127_v0 = vcombine.high %v7952_v60, %v7952_v60 }
  0x31   :  { %6442 = vmatprep.subr.bf16.mxu0 %v7144_v2  ;;  %6463 = vmatpush3.bf16.msra.mxu1 %v7143_v1  ;;  %v1156_v1 = vcombine.high %v1134_v58, %v1134_v58  ;;  %v7196_v2 = vld [vmem:[%s9316_s1 + $0x348] sm:$0xff]  }
  0x32   :  { %6464 = vmatprep.subr.bf16.mxu1 %v7145_v3  ;;  %v1158_v3 = vcombine.high %v1148_v62, %v1148_v62 }
  0x34   :  { %6443 = vmatpush3.bf16.msra.mxu0 %v7146_v4  ;;  %v7197_v4 = vld [vmem:[%s9316_s1 + $0x3c8] sm:$0xff]  }
  0x35   :  { %6444 = vmatprep.subr.bf16.mxu0 %v7148_v6  ;;  %6465 = vmatpush3.bf16.msra.mxu1 %v7147_v5  ;;  %v1155_v5 = vrot.slane %v1127_v0, %v7726_v35  ;;  %v7198_v6 = vld [vmem:[%s9316_s1 + $0x308] sm:$0xff]   ;;  %v7253_v0 = vld [vmem:[%s9316_s1 + $0x478] sm:$0xff]  }
  0x36   :  { %6466 = vmatprep.subr.bf16.mxu1 %v7149_v7  ;;  %v7199_v7 = vld [vmem:[%s9316_s1 + $0x388] sm:$0xff]  }
  0x38   :  { %6445 = vmatpush3.bf16.msra.mxu0 %v7150_v8  ;;  %v1159_v8 = vcombine.high %v1155_v5, %v1155_v5 }
  0x39   :  { %6446 = vmatprep.subr.bf16.mxu0 %v7152_v10  ;;  %6467 = vmatpush3.bf16.msra.mxu1 %v7151_v9  ;;  %v7200_v9 = vld [vmem:[%s9316_s1 + $0x350] sm:$0xff]  }
  0x3a   :  { %6468 = vmatprep.subr.bf16.mxu1 %v7153_v11  ;;  %v7201_v10 = vld [vmem:[%s9316_s1 + $0x3d0] sm:$0xff]  }
  0x3b   :  { %v7202_v11 = vld [vmem:[%s9316_s1 + $0x310] sm:$0xff]  }
  0x3c   :  { %6447 = vmatpush3.bf16.msra.mxu0 %v7154_v12  ;;  %v7203_v12 = vld [vmem:[%s9316_s1 + $0x390] sm:$0xff]  }
  0x3d   :  { %6448 = vmatprep.subr.bf16.mxu0 %v7156_v14  ;;  %6469 = vmatpush3.bf16.msra.mxu1 %v7155_v13  ;;  %v7204_v13 = vld [vmem:[%s9316_s1 + $0x358] sm:$0xff]  }
  0x3e   :  { %6470 = vmatprep.subr.bf16.mxu1 %v7157_v15  ;;  %v7205_v14 = vld [vmem:[%s9316_s1 + $0x3d8] sm:$0xff]  }
  0x3f   :  { %v7206_v15 = vld [vmem:[%s9316_s1 + $0x318] sm:$0xff]  }
  0x40   :  { %6449 = vmatpush3.bf16.msra.mxu0 %v7158_v16  ;;  %v7207_v16 = vld [vmem:[%s9316_s1 + $0x398] sm:$0xff]  }
  0x41   :  { %6478 = vmatprep.subr.bf16.mxu0 %v7160_v19  ;;  %6471 = vmatpush3.bf16.msra.mxu1 %v7159_v17  ;;  %v7208_v17 = vld [vmem:[%s9316_s1 + $0x360] sm:$0xff]  }
  0x42   :  { %6500 = vmatprep.subr.bf16.mxu1 %v7161_v20  ;;  %v7210_v19 = vld [vmem:[%s9316_s1 + $0x320] sm:$0xff]  }
  0x43   :  { %4703 = vmatmul.mubr.bf16.vlgmr.msra.gmra.mrb[4].mxu0 %v1092_v18  ;;  %v7209_v18 = vld [vmem:[%s9316_s1 + $0x3e0] sm:$0xff]  }
  0x44   :  { %6479 = vmatpush3.bf16.msra.mxu0 %v7162_v21  ;;  %4743 = vmatmul.mubr.bf16.vlgmr.msra.gmra.mrb[4].mxu1 %v1108_v23  ;;  %v7211_v20 = vld [vmem:[%s9316_s1 + $0x3a0] sm:$0xff]   ;;  %v7212_v21 = vld [vmem:[%s9316_s1 + $0x368] sm:$0xff]  }
  0x45   :  { %6480 = vmatprep.subr.bf16.mxu0 %v7164_v24  ;;  %6501 = vmatpush3.bf16.msra.mxu1 %v7163_v22  ;;  %v7213_v22 = vld [vmem:[%s9316_s1 + $0x3e8] sm:$0xff]  }
  0x46   :  { %6502 = vmatprep.subr.bf16.mxu1 %v7165_v25  ;;  %4782 = vmatprep.mubr.bf16.mxu0 %v1148_v62  ;;  %v7214_v23 = vld [vmem:[%s9316_s1 + $0x328] sm:$0xff]   ;;  %v7216_v25 = vld [vmem:[%s9316_s1 + $0x370] sm:$0xff]  }
  0x47   :  { %4822 = vmatprep.mubr.bf16.mxu1 %v1158_v3  ;;  %v7215_v24 = vld [vmem:[%s9316_s1 + $0x3a8] sm:$0xff]   ;;  %v7251_v62 = vld [vmem:[%s9316_s1 + $0x430] sm:$0xff]  }
  0x48   :  { %6481 = vmatpush3.bf16.msra.mxu0 %v7166_v26  ;;  %v7217_v26 = vld [vmem:[%s9316_s1 + $0x3f0] sm:$0xff]  }
  0x49   :  { %6482 = vmatprep.subr.bf16.mxu0 %v7168_v28  ;;  %6503 = vmatpush3.bf16.msra.mxu1 %v7167_v27  ;;  %v7218_v27 = vld [vmem:[%s9316_s1 + $0x330] sm:$0xff]  }
  0x4a   :  { %6504 = vmatprep.subr.bf16.mxu1 %v7169_v29  ;;  %v7219_v28 = vld [vmem:[%s9316_s1 + $0x3b0] sm:$0xff]   ;;  %v7220_v29 = vld [vmem:[%s9316_s1 + $0x378] sm:$0xff]  }
  0x4b   :  { %v17_v3 = vld [vmem:[%s9317_s0 + $0x10] sm:$0xff] }
  0x4c   :  { %6483 = vmatpush3.bf16.msra.mxu0 %v7170_v30  ;;  %v7221_v30 = vld [vmem:[%s9316_s1 + $0x3f8] sm:$0xff]  }
  0x4d   :  { %6484 = vmatprep.subr.bf16.mxu0 %v7172_v32  ;;  %6505 = vmatpush3.bf16.msra.mxu1 %v7171_v31  ;;  %v7222_v31 = vld [vmem:[%s9316_s1 + $0x338] sm:$0xff]  }
  0x4e   :  { %6506 = vmatprep.subr.bf16.mxu1 %v7173_v33  ;;  %v7223_v32 = vld [vmem:[%s9316_s1 + $0x3b8] sm:$0xff]   ;;  %v1141_v33 = vrot.slane %v7952_v60, %v7726_v35  ;;  %v7249_v60 = vld [vmem:[%s9316_s1 + $0x470] sm:$0xff]  }
  0x50   :  { %6485 = vmatpush3.bf16.msra.mxu0 %v7174_v34  ;;  %v7225_v34 = vld [vmem:[%s9316_s1 + $0x440] sm:$0xff]  }
  0x51   :  { %6486 = vmatprep.subr.bf16.mxu0 %v7176_v37  ;;  %6507 = vmatpush3.bf16.msra.mxu1 %v7175_v36  ;;  %v7226_v36 = vld [vmem:[%s9316_s1 + $0x4c0] sm:$0xff]  }
  0x52   :  { %6508 = vmatprep.subr.bf16.mxu1 %v7177_v38  ;;  %v7227_v37 = vld [vmem:[%s9316_s1 + $0x400] sm:$0xff]  }
  0x53   :  { %v7228_v38 = vld [vmem:[%s9316_s1 + $0x480] sm:$0xff]  }
  0x54   :  { %6487 = vmatpush3.bf16.msra.mxu0 %v7178_v39  ;;  %v1157_v39 = vcombine.high %v1141_v33, %v1141_v33 }
  0x55   :  { %6488 = vmatprep.subr.bf16.mxu0 %v7180_v41  ;;  %6509 = vmatpush3.bf16.msra.mxu1 %v7179_v40  ;;  %v7229_v40 = vld [vmem:[%s9316_s1 + $0x448] sm:$0xff]  }
  0x56   :  { %6510 = vmatprep.subr.bf16.mxu1 %v7181_v42  ;;  %v7230_v41 = vld [vmem:[%s9316_s1 + $0x4c8] sm:$0xff]  }
  0x57   :  { %v7231_v42 = vld [vmem:[%s9316_s1 + $0x408] sm:$0xff]  }
  0x58   :  { %6489 = vmatpush3.bf16.msra.mxu0 %v7182_v43  ;;  %v7232_v43 = vld [vmem:[%s9316_s1 + $0x488] sm:$0xff]  }
  0x59   :  { %6490 = vmatprep.subr.bf16.mxu0 %v7184_v45  ;;  %6511 = vmatpush3.bf16.msra.mxu1 %v7183_v44  ;;  %v7233_v44 = vld [vmem:[%s9316_s1 + $0x450] sm:$0xff]  }
  0x5a   :  { %6512 = vmatprep.subr.bf16.mxu1 %v7185_v46  ;;  %v7234_v45 = vld [vmem:[%s9316_s1 + $0x4d0] sm:$0xff]  }
  0x5b   :  { %v7235_v46 = vld [vmem:[%s9316_s1 + $0x410] sm:$0xff]  }
  0x5c   :  { %6491 = vmatpush3.bf16.msra.mxu0 %v7186_v47  ;;  %v7236_v47 = vld [vmem:[%s9316_s1 + $0x490] sm:$0xff]  }
  0x5d   :  { %6492 = vmatprep.subr.bf16.mxu0 %v7188_v49  ;;  %6513 = vmatpush3.bf16.msra.mxu1 %v7187_v48  ;;  %v7237_v48 = vld [vmem:[%s9316_s1 + $0x458] sm:$0xff]  }
  0x5e   :  { %6514 = vmatprep.subr.bf16.mxu1 %v7189_v50  ;;  %v7238_v49 = vld [vmem:[%s9316_s1 + $0x4d8] sm:$0xff]  }
  0x5f   :  { %v7239_v50 = vld [vmem:[%s9316_s1 + $0x418] sm:$0xff]  }
  0x60   :  { %6493 = vmatpush3.bf16.msra.mxu0 %v7190_v51  ;;  %v7240_v51 = vld [vmem:[%s9316_s1 + $0x498] sm:$0xff]  }
  0x61   :  { %6522 = vmatprep.subr.bf16.mxu0 %v7192_v56  ;;  %6515 = vmatpush3.bf16.msra.mxu1 %v7191_v53  ;;  %v7242_v53 = vld [vmem:[%s9316_s1 + $0x4e0] sm:$0xff]   ;;  %v7245_v56 = vld [vmem:[%s9316_s1 + $0x468] sm:$0xff]  }
  0x62   :  { %6544 = vmatprep.subr.bf16.mxu1 %v7193_v59  ;;  %v7248_v59 = vld [vmem:[%s9316_s1 + $0x4a8] sm:$0xff]  }
  0x63   :  { %4783 = vmatmul.mubr.bf16.vlgmr.msra.gmra.mrb[8].mxu0 %v1134_v58  ;;  %v7247_v58 = vld [vmem:[%s9316_s1 + $0x428] sm:$0xff]  }
  0x64   :  { %6523 = vmatpush3.bf16.msra.mxu0 %v7194_v61  ;;  %4823 = vmatmul.mubr.bf16.vlgmr.msra.gmra.mrb[8].mxu1 %v1156_v1  ;;  %v7250_v61 = vld [vmem:[%s9316_s1 + $0x4f0] sm:$0xff]   ;;  %v7254_v1 = vld [vmem:[%s9316_s1 + $0x4f8] sm:$0xff]  }
  0x65   :  { %6524 = vmatprep.subr.bf16.mxu0 %v7196_v2  ;;  %6545 = vmatpush3.bf16.msra.mxu1 %v7195_v63  ;;  %v7252_v63 = vld [vmem:[%s9316_s1 + $0x4b0] sm:$0xff]   ;;  %v7255_v2 = vld [vmem:[%s9316_s1 + $0x438] sm:$0xff]  }
  0x66   :  { %4862 = vmatprep.mubr.bf16.mxu0 %v1155_v5  ;;  %6546 = vmatprep.subr.bf16.mxu1 %v7197_v4  ;;  %v7256_v4 = vld [vmem:[%s9316_s1 + $0x4b8] sm:$0xff]   ;;  %v1167_v5 = vrot.slane %v17_v3, %v7726_v35 }
  0x67   :  { %4902 = vmatprep.mubr.bf16.mxu1 %v1159_v8 }
  0x68   :  { %6525 = vmatpush3.bf16.msra.mxu0 %v7198_v6  ;;  %v1160_v6 = vcombine.high %v17_v3, %v17_v3  ;;  %v1175_v8 = vcombine.high %v1167_v5, %v1167_v5  ;;  %v7306_v3 = vld [vmem:[%s9316_s1 + $0x660] sm:$0xff]  }
  0x69   :  { %6526 = vmatprep.subr.bf16.mxu0 %v7200_v9  ;;  %6547 = vmatpush3.bf16.msra.mxu1 %v7199_v7  ;;  %v7257_v7 = vld [vmem:[%s9316_s1 + $0x540] sm:$0xff]   ;;  %v1183_v9 = vrot.slane %v1167_v5, %v7726_v35 }
  0x6a   :  { %6548 = vmatprep.subr.bf16.mxu1 %v7201_v10  ;;  %v7258_v10 = vld [vmem:[%s9316_s1 + $0x5c0] sm:$0xff]  }
  0x6b   :  { %v7308_v5 = vld [vmem:[%s9316_s1 + $0x620] sm:$0xff]  }
  0x6c   :  { %6527 = vmatpush3.bf16.msra.mxu0 %v7202_v11  ;;  %v8158_v11 = vrot.slane %v1160_v6, %v7726_v35  ;;  %v7309_v6 = vld [vmem:[%s9316_s1 + $0x6a0] sm:$0xff]  }
  0x6d   :  { %6528 = vmatprep.subr.bf16.mxu0 %v7204_v13  ;;  %6549 = vmatpush3.bf16.msra.mxu1 %v7203_v12  ;;  %v7259_v12 = vld [vmem:[%s9316_s1 + $0x500] sm:$0xff]   ;;  %v1197_v13 = vrot.slane %v1175_v8, %v7726_v35  ;;  %v7311_v8 = vld [vmem:[%s9316_s1 + $0x6e8] sm:$0xff]  }
  0x6e   :  { %6550 = vmatprep.subr.bf16.mxu1 %v7205_v14  ;;  %v7260_v14 = vld [vmem:[%s9316_s1 + $0x580] sm:$0xff]  }
  0x70   :  { %6529 = vmatpush3.bf16.msra.mxu0 %v7206_v15  ;;  %v1176_v15 = vcombine.high %v8158_v11, %v8158_v11 }
  0x71   :  { %6530 = vmatprep.subr.bf16.mxu0 %v7208_v17  ;;  %6551 = vmatpush3.bf16.msra.mxu1 %v7207_v16  ;;  %v1205_v16 = vcombine.high %v1183_v9, %v1183_v9  ;;  %v7261_v17 = vld [vmem:[%s9316_s1 + $0x548] sm:$0xff]  }
  0x72   :  { %6552 = vmatprep.subr.bf16.mxu1 %v7209_v18  ;;  %v1207_v18 = vcombine.high %v1197_v13, %v1197_v13 }
  0x74   :  { %6531 = vmatpush3.bf16.msra.mxu0 %v7210_v19  ;;  %v7262_v19 = vld [vmem:[%s9316_s1 + $0x5c8] sm:$0xff]  }
  0x75   :  { %6532 = vmatprep.subr.bf16.mxu0 %v7212_v21  ;;  %6553 = vmatpush3.bf16.msra.mxu1 %v7211_v20  ;;  %v1204_v20 = vrot.slane %v1176_v15, %v7726_v35  ;;  %v7263_v21 = vld [vmem:[%s9316_s1 + $0x508] sm:$0xff]   ;;  %v7318_v15 = vld [vmem:[%s9316_s1 + $0x678] sm:$0xff]  }
  0x76   :  { %6554 = vmatprep.subr.bf16.mxu1 %v7213_v22  ;;  %v7264_v22 = vld [vmem:[%s9316_s1 + $0x588] sm:$0xff]  }
  0x78   :  { %6533 = vmatpush3.bf16.msra.mxu0 %v7214_v23  ;;  %v1208_v23 = vcombine.high %v1204_v20, %v1204_v20 }
  0x79   :  { %6534 = vmatprep.subr.bf16.mxu0 %v7216_v25  ;;  %6555 = vmatpush3.bf16.msra.mxu1 %v7215_v24  ;;  %v7265_v24 = vld [vmem:[%s9316_s1 + $0x550] sm:$0xff]  }
  0x7a   :  { %6556 = vmatprep.subr.bf16.mxu1 %v7217_v26  ;;  %v7266_v25 = vld [vmem:[%s9316_s1 + $0x5d0] sm:$0xff]  }
  0x7b   :  { %v7267_v26 = vld [vmem:[%s9316_s1 + $0x510] sm:$0xff]  }
  0x7c   :  { %6535 = vmatpush3.bf16.msra.mxu0 %v7218_v27  ;;  %v7268_v27 = vld [vmem:[%s9316_s1 + $0x590] sm:$0xff]  }
  0x7d   :  { %6536 = vmatprep.subr.bf16.mxu0 %v7220_v29  ;;  %6557 = vmatpush3.bf16.msra.mxu1 %v7219_v28  ;;  %v7269_v28 = vld [vmem:[%s9316_s1 + $0x558] sm:$0xff]  }
  0x7e   :  { %6558 = vmatprep.subr.bf16.mxu1 %v7221_v30  ;;  %v7270_v29 = vld [vmem:[%s9316_s1 + $0x5d8] sm:$0xff]  }
  0x7f   :  { %v7271_v30 = vld [vmem:[%s9316_s1 + $0x518] sm:$0xff]  }
  0x80   :  { %6537 = vmatpush3.bf16.msra.mxu0 %v7222_v31  ;;  %v7272_v31 = vld [vmem:[%s9316_s1 + $0x598] sm:$0xff]  }
  0x81   :  { %6566 = vmatprep.subr.bf16.mxu0 %v7225_v34  ;;  %6559 = vmatpush3.bf16.msra.mxu1 %v7223_v32  ;;  %v7273_v32 = vld [vmem:[%s9316_s1 + $0x560] sm:$0xff]  }
  0x82   :  { %6588 = vmatprep.subr.bf16.mxu1 %v7226_v36  ;;  %v7275_v34 = vld [vmem:[%s9316_s1 + $0x520] sm:$0xff]  }
  0x83   :  { %4863 = vmatmul.mubr.bf16.vlgmr.msra.gmra.mrb[12].mxu0 %v1141_v33  ;;  %v7274_v33 = vld [vmem:[%s9316_s1 + $0x5e0] sm:$0xff]  }
  0x84   :  { %6567 = vmatpush3.bf16.msra.mxu0 %v7227_v37  ;;  %4903 = vmatmul.mubr.bf16.vlgmr.msra.gmra.mrb[12].mxu1 %v1157_v39  ;;  %v7276_v36 = vld [vmem:[%s9316_s1 + $0x5a0] sm:$0xff]   ;;  %v7277_v37 = vld [vmem:[%s9316_s1 + $0x568] sm:$0xff]  }
  0x85   :  { %6568 = vmatprep.subr.bf16.mxu0 %v7229_v40  ;;  %6589 = vmatpush3.bf16.msra.mxu1 %v7228_v38  ;;  %v7278_v38 = vld [vmem:[%s9316_s1 + $0x5e8] sm:$0xff]  }
  0x86   :  { %6590 = vmatprep.subr.bf16.mxu1 %v7230_v41  ;;  %4942 = vmatprep.mubr.bf16.mxu0 %v1197_v13  ;;  %v7279_v39 = vld [vmem:[%s9316_s1 + $0x528] sm:$0xff]   ;;  %v7281_v41 = vld [vmem:[%s9316_s1 + $0x570] sm:$0xff]  }
  0x87   :  { %4982 = vmatprep.mubr.bf16.mxu1 %v1207_v18  ;;  %v7280_v40 = vld [vmem:[%s9316_s1 + $0x5a8] sm:$0xff]   ;;  %v7316_v13 = vld [vmem:[%s9316_s1 + $0x630] sm:$0xff]   ;;  %v18_v18 = vld [vmem:[%s9317_s0 + $0x18] sm:$0xff] }
  0x88   :  { %6569 = vmatpush3.bf16.msra.mxu0 %v7231_v42  ;;  %v7282_v42 = vld [vmem:[%s9316_s1 + $0x5f0] sm:$0xff]  }
  0x89   :  { %6570 = vmatprep.subr.bf16.mxu0 %v7233_v44  ;;  %6591 = vmatpush3.bf16.msra.mxu1 %v7232_v43  ;;  %v7283_v43 = vld [vmem:[%s9316_s1 + $0x530] sm:$0xff]  }
  0x8a   :  { %6592 = vmatprep.subr.bf16.mxu1 %v7234_v45  ;;  %v7284_v44 = vld [vmem:[%s9316_s1 + $0x5b0] sm:$0xff]   ;;  %v7285_v45 = vld [vmem:[%s9316_s1 + $0x578] sm:$0xff]  }
  0x8c   :  { %6571 = vmatpush3.bf16.msra.mxu0 %v7235_v46  ;;  %v7286_v46 = vld [vmem:[%s9316_s1 + $0x5f8] sm:$0xff]  }
  0x8d   :  { %6572 = vmatprep.subr.bf16.mxu0 %v7237_v48  ;;  %6593 = vmatpush3.bf16.msra.mxu1 %v7236_v47  ;;  %v7287_v47 = vld [vmem:[%s9316_s1 + $0x538] sm:$0xff]  }
  0x8e   :  { %6594 = vmatprep.subr.bf16.mxu1 %v7238_v49  ;;  %v7288_v48 = vld [vmem:[%s9316_s1 + $0x5b8] sm:$0xff]   ;;  %v1190_v49 = vrot.slane %v8158_v11, %v7726_v35  ;;  %v7314_v11 = vld [vmem:[%s9316_s1 + $0x670] sm:$0xff]  }
  0x90   :  { %6573 = vmatpush3.bf16.msra.mxu0 %v7239_v50  ;;  %v7290_v50 = vld [vmem:[%s9316_s1 + $0x640] sm:$0xff]  }
  0x91   :  { %6574 = vmatprep.subr.bf16.mxu0 %v7241_v52  ;;  %6595 = vmatpush3.bf16.msra.mxu1 %v7240_v51  ;;  %v7291_v51 = vld [vmem:[%s9316_s1 + $0x6c0] sm:$0xff]  }
  0x92   :  { %6596 = vmatprep.subr.bf16.mxu1 %v7242_v53  ;;  %v7292_v52 = vld [vmem:[%s9316_s1 + $0x600] sm:$0xff]  }
  0x93   :  { %v7293_v53 = vld [vmem:[%s9316_s1 + $0x680] sm:$0xff]  }
  0x94   :  { %6575 = vmatpush3.bf16.msra.mxu0 %v7243_v54  ;;  %v1206_v54 = vcombine.high %v1190_v49, %v1190_v49 }
  0x95   :  { %6576 = vmatprep.subr.bf16.mxu0 %v7245_v56  ;;  %6597 = vmatpush3.bf16.msra.mxu1 %v7244_v55  ;;  %v7294_v55 = vld [vmem:[%s9316_s1 + $0x648] sm:$0xff]  }
  0x96   :  { %6598 = vmatprep.subr.bf16.mxu1 %v7246_v57  ;;  %v7295_v56 = vld [vmem:[%s9316_s1 + $0x6c8] sm:$0xff]  }
  0x97   :  { %v7296_v57 = vld [vmem:[%s9316_s1 + $0x608] sm:$0xff]  }
  0x98   :  { %6577 = vmatpush3.bf16.msra.mxu0 %v7247_v58  ;;  %v7297_v58 = vld [vmem:[%s9316_s1 + $0x688] sm:$0xff]  }
  0x99   :  { %6578 = vmatprep.subr.bf16.mxu0 %v7249_v60  ;;  %6599 = vmatpush3.bf16.msra.mxu1 %v7248_v59  ;;  %v7298_v59 = vld [vmem:[%s9316_s1 + $0x650] sm:$0xff]  }
  0x9a   :  { %6600 = vmatprep.subr.bf16.mxu1 %v7250_v61  ;;  %v7299_v60 = vld [vmem:[%s9316_s1 + $0x6d0] sm:$0xff]  }
  0x9b   :  { %v7300_v61 = vld [vmem:[%s9316_s1 + $0x610] sm:$0xff]  }
  0x9c   :  { %6579 = vmatpush3.bf16.msra.mxu0 %v7251_v62  ;;  %v7301_v62 = vld [vmem:[%s9316_s1 + $0x690] sm:$0xff]  }
  0x9d   :  { %6580 = vmatprep.subr.bf16.mxu0 %v7253_v0  ;;  %6601 = vmatpush3.bf16.msra.mxu1 %v7252_v63  ;;  %v7302_v63 = vld [vmem:[%s9316_s1 + $0x658] sm:$0xff]  }
  0x9e   :  { %6602 = vmatprep.subr.bf16.mxu1 %v7254_v1  ;;  %v7303_v0 = vld [vmem:[%s9316_s1 + $0x6d8] sm:$0xff]  }
  0x9f   :  { %v7304_v1 = vld [vmem:[%s9316_s1 + $0x618] sm:$0xff]  }
  0xa0   :  { %6581 = vmatpush3.bf16.msra.mxu0 %v7255_v2  ;;  %v7305_v2 = vld [vmem:[%s9316_s1 + $0x698] sm:$0xff]  }
  0xa1   :  { %6610 = vmatprep.subr.bf16.mxu0 %v7257_v7  ;;  %6603 = vmatpush3.bf16.msra.mxu1 %v7256_v4  ;;  %v7307_v4 = vld [vmem:[%s9316_s1 + $0x6e0] sm:$0xff]   ;;  %v7310_v7 = vld [vmem:[%s9316_s1 + $0x668] sm:$0xff]  }
  0xa2   :  { %6632 = vmatprep.subr.bf16.mxu1 %v7258_v10  ;;  %v7313_v10 = vld [vmem:[%s9316_s1 + $0x6a8] sm:$0xff]  }
  0xa3   :  { %4943 = vmatmul.mubr.bf16.vlgmr.msra.gmra.mrb[16].mxu0 %v1183_v9  ;;  %v7312_v9 = vld [vmem:[%s9316_s1 + $0x628] sm:$0xff]  }
  0xa4   :  { %6611 = vmatpush3.bf16.msra.mxu0 %v7259_v12  ;;  %4983 = vmatmul.mubr.bf16.vlgmr.msra.gmra.mrb[16].mxu1 %v1205_v16  ;;  %v7315_v12 = vld [vmem:[%s9316_s1 + $0x6f0] sm:$0xff]   ;;  %v7319_v16 = vld [vmem:[%s9316_s1 + $0x6f8] sm:$0xff]  }
  0xa5   :  { %6612 = vmatprep.subr.bf16.mxu0 %v7261_v17  ;;  %6633 = vmatpush3.bf16.msra.mxu1 %v7260_v14  ;;  %v7317_v14 = vld [vmem:[%s9316_s1 + $0x6b0] sm:$0xff]   ;;  %v7320_v17 = vld [vmem:[%s9316_s1 + $0x638] sm:$0xff]  }
  0xa6   :  { %5022 = vmatprep.mubr.bf16.mxu0 %v1204_v20  ;;  %6634 = vmatprep.subr.bf16.mxu1 %v7262_v19  ;;  %v1216_v19 = vrot.slane %v18_v18, %v7726_v35  ;;  %v7322_v20 = vld [vmem:[%s9316_s1 + $0x740] sm:$0xff]  }
  0xa7   :  { %5062 = vmatprep.mubr.bf16.mxu1 %v1208_v23 }
  0xa8   :  { %6613 = vmatpush3.bf16.msra.mxu0 %v7263_v21  ;;  %v1209_v21 = vcombine.high %v18_v18, %v18_v18  ;;  %v1224_v23 = vcombine.high %v1216_v19, %v1216_v19 }
  0xa9   :  { %6614 = vmatprep.subr.bf16.mxu0 %v7265_v24  ;;  %6635 = vmatpush3.bf16.msra.mxu1 %v7264_v22  ;;  %v7321_v22 = vld [vmem:[%s9316_s1 + $0x6b8] sm:$0xff]   ;;  %v1232_v24 = vrot.slane %v1216_v19, %v7726_v35  ;;  %v7359_v19 = vld [vmem:[%s9316_s1 + $0x848] sm:$0xff]  }
  0xaa   :  { %6636 = vmatprep.subr.bf16.mxu1 %v7266_v25  ;;  %v7323_v25 = vld [vmem:[%s9316_s1 + $0x7c0] sm:$0xff]  }
  0xac   :  { %6615 = vmatpush3.bf16.msra.mxu0 %v7267_v26  ;;  %v8364_v26 = vrot.slane %v1209_v21, %v7726_v35  ;;  %v7361_v21 = vld [vmem:[%s9316_s1 + $0x808] sm:$0xff]  }
  0xad   :  { %6616 = vmatprep.subr.bf16.mxu0 %v7269_v28  ;;  %6637 = vmatpush3.bf16.msra.mxu1 %v7268_v27  ;;  %v1246_v27 = vrot.slane %v1224_v23, %v7726_v35  ;;  %v7324_v28 = vld [vmem:[%s9316_s1 + $0x700] sm:$0xff]   ;;  %v7363_v23 = vld [vmem:[%s9316_s1 + $0x850] sm:$0xff]  }
  0xae   :  { %6638 = vmatprep.subr.bf16.mxu1 %v7270_v29  ;;  %v1225_v29 = vcombine.high %v8364_v26, %v8364_v26 }
  0xb0   :  { %6617 = vmatpush3.bf16.msra.mxu0 %v7271_v30  ;;  %v1254_v30 = vcombine.high %v1232_v24, %v1232_v24 }
  0xb1   :  { %6618 = vmatprep.subr.bf16.mxu0 %v7273_v32  ;;  %6639 = vmatpush3.bf16.msra.mxu1 %v7272_v31  ;;  %v7326_v31 = vld [vmem:[%s9316_s1 + $0x748] sm:$0xff]   ;;  %v1256_v32 = vcombine.high %v1246_v27, %v1246_v27 }
  0xb2   :  { %6640 = vmatprep.subr.bf16.mxu1 %v7274_v33  ;;  %v7325_v33 = vld [vmem:[%s9316_s1 + $0x780] sm:$0xff]  }
  0xb4   :  { %6619 = vmatpush3.bf16.msra.mxu0 %v7275_v34  ;;  %v1253_v34 = vrot.slane %v1225_v29, %v7726_v35  ;;  %v7369_v29 = vld [vmem:[%s9316_s1 + $0x818] sm:$0xff]  }
  0xb5   :  { %6620 = vmatprep.subr.bf16.mxu0 %v7277_v37  ;;  %6641 = vmatpush3.bf16.msra.mxu1 %v7276_v36  ;;  %v7327_v36 = vld [vmem:[%s9316_s1 + $0x7c8] sm:$0xff]  }
  0xb6   :  { %6642 = vmatprep.subr.bf16.mxu1 %v7278_v38  ;;  %v7328_v37 = vld [vmem:[%s9316_s1 + $0x708] sm:$0xff]   ;;  %v1257_v38 = vcombine.high %v1253_v34, %v1253_v34 }
  0xb8   :  { %6621 = vmatpush3.bf16.msra.mxu0 %v7279_v39  ;;  %v7330_v39 = vld [vmem:[%s9316_s1 + $0x750] sm:$0xff]  }
  0xb9   :  { %6622 = vmatprep.subr.bf16.mxu0 %v7281_v41  ;;  %6643 = vmatpush3.bf16.msra.mxu1 %v7280_v40  ;;  %v7329_v40 = vld [vmem:[%s9316_s1 + $0x788] sm:$0xff]   ;;  %v7331_v41 = vld [vmem:[%s9316_s1 + $0x7d0] sm:$0xff]  }
  0xba   :  { %6644 = vmatprep.subr.bf16.mxu1 %v7282_v42  ;;  %v7332_v42 = vld [vmem:[%s9316_s1 + $0x710] sm:$0xff]  }
  0xbc   :  { %6623 = vmatpush3.bf16.msra.mxu0 %v7283_v43  ;;  %v7334_v43 = vld [vmem:[%s9316_s1 + $0x758] sm:$0xff]  }
  0xbd   :  { %6624 = vmatprep.subr.bf16.mxu0 %v7285_v45  ;;  %6645 = vmatpush3.bf16.msra.mxu1 %v7284_v44  ;;  %v7333_v44 = vld [vmem:[%s9316_s1 + $0x790] sm:$0xff]   ;;  %v7335_v45 = vld [vmem:[%s9316_s1 + $0x7d8] sm:$0xff]  }
  0xbe   :  { %6646 = vmatprep.subr.bf16.mxu1 %v7286_v46  ;;  %v7336_v46 = vld [vmem:[%s9316_s1 + $0x718] sm:$0xff]  }
  0xc0   :  { %6625 = vmatpush3.bf16.msra.mxu0 %v7287_v47  ;;  %v7338_v47 = vld [vmem:[%s9316_s1 + $0x760] sm:$0xff]  }
  0xc1   :  { %6654 = vmatprep.subr.bf16.mxu0 %v7290_v50  ;;  %6647 = vmatpush3.bf16.msra.mxu1 %v7288_v48  ;;  %v7337_v48 = vld [vmem:[%s9316_s1 + $0x798] sm:$0xff]   ;;  %v7340_v50 = vld [vmem:[%s9316_s1 + $0x720] sm:$0xff]  }
  0xc2   :  { %6676 = vmatprep.subr.bf16.mxu1 %v7291_v51  ;;  %v7342_v51 = vld [vmem:[%s9316_s1 + $0x768] sm:$0xff]  }
  0xc3   :  { %5023 = vmatmul.mubr.bf16.vlgmr.msra.gmra.mrb[20].mxu0 %v1190_v49  ;;  %v7339_v49 = vld [vmem:[%s9316_s1 + $0x7e0] sm:$0xff]  }
  0xc4   :  { %6655 = vmatpush3.bf16.msra.mxu0 %v7292_v52  ;;  %5063 = vmatmul.mubr.bf16.vlgmr.msra.gmra.mrb[20].mxu1 %v1206_v54  ;;  %v7341_v52 = vld [vmem:[%s9316_s1 + $0x7a0] sm:$0xff]  }
  0xc5   :  { %6656 = vmatprep.subr.bf16.mxu0 %v7294_v55  ;;  %6677 = vmatpush3.bf16.msra.mxu1 %v7293_v53  ;;  %v7343_v53 = vld [vmem:[%s9316_s1 + $0x7e8] sm:$0xff]   ;;  %v5877_v54 = vld [vmem:[%s9318_s2] ss:$0 sm:$0xff] }
  0xc6   :  { %6678 = vmatprep.subr.bf16.mxu1 %v7295_v56  ;;  %5102 = vmatprep.mubr.bf16.mxu0 %v1246_v27  ;;  %v7344_v55 = vld [vmem:[%s9316_s1 + $0x728] sm:$0xff]   ;;  %v7367_v27 = vld [vmem:[%s9316_s1 + $0x858] sm:$0xff]  }
  0xc7   :  { %5142 = vmatprep.mubr.bf16.mxu1 %v1256_v32  ;;  %v7372_v32 = vld [vmem:[%s9316_s1 + $0x8e0] sm:$0xff]  }
  0xc8   :  { %6657 = vmatpush3.bf16.msra.mxu0 %v7296_v57  ;;  %v7346_v57 = vld [vmem:[%s9316_s1 + $0x770] sm:$0xff]  }
  0xc9   :  { %6658 = vmatprep.subr.bf16.mxu0 %v7298_v59  ;;  %6679 = vmatpush3.bf16.msra.mxu1 %v7297_v58  ;;  %v7345_v59 = vld [vmem:[%s9316_s1 + $0x7a8] sm:$0xff]  }
  0xca   :  { %6680 = vmatprep.subr.bf16.mxu1 %v7299_v60 }
  0xcc   :  { %6659 = vmatpush3.bf16.msra.mxu0 %v7300_v61 }
  0xcd   :  { %6660 = vmatprep.subr.bf16.mxu0 %v7302_v63  ;;  %6681 = vmatpush3.bf16.msra.mxu1 %v7301_v62  ;;  %v7347_v63 = vld [vmem:[%s9316_s1 + $0x7f0] sm:$0xff]  }
  0xce   :  { %6682 = vmatprep.subr.bf16.mxu1 %v7303_v0  ;;  %v7348_v0 = vld [vmem:[%s9316_s1 + $0x730] sm:$0xff]  }
  0xd0   :  { %6661 = vmatpush3.bf16.msra.mxu0 %v7304_v1 }
  0xd1   :  { %6662 = vmatprep.subr.bf16.mxu0 %v7306_v3  ;;  %6683 = vmatpush3.bf16.msra.mxu1 %v7305_v2  ;;  %v7349_v3 = vld [vmem:[%s9316_s1 + $0x7b0] sm:$0xff]  }
  0xd2   :  { %6684 = vmatprep.subr.bf16.mxu1 %v7307_v4 }
  0xd4   :  { %6663 = vmatpush3.bf16.msra.mxu0 %v7308_v5 }
  0xd5   :  { %6664 = vmatprep.subr.bf16.mxu0 %v7310_v7  ;;  %6685 = vmatpush3.bf16.msra.mxu1 %v7309_v6  ;;  %v7350_v7 = vld [vmem:[%s9316_s1 + $0x778] sm:$0xff]  }
  0xd6   :  { %6686 = vmatprep.subr.bf16.mxu1 %v7311_v8 }
  0xd8   :  { %6665 = vmatpush3.bf16.msra.mxu0 %v7312_v9  ;;  %v7351_v9 = vld [vmem:[%s9316_s1 + $0x7f8] sm:$0xff]  }
  0xd9   :  { %6666 = vmatprep.subr.bf16.mxu0 %v7314_v11  ;;  %6687 = vmatpush3.bf16.msra.mxu1 %v7313_v10  ;;  %v7352_v11 = vld [vmem:[%s9316_s1 + $0x738] sm:$0xff]  }
  0xda   :  { %6688 = vmatprep.subr.bf16.mxu1 %v7315_v12  ;;  %v7353_v12 = vld [vmem:[%s9316_s1 + $0x7b8] sm:$0xff]  }
  0xdc   :  { %6667 = vmatpush3.bf16.msra.mxu0 %v7316_v13  ;;  %v1239_v13 = vrot.slane %v8364_v26, %v7726_v35  ;;  %v7366_v26 = vld [vmem:[%s9316_s1 + $0x890] sm:$0xff]  }
  0xdd   :  { %6668 = vmatprep.subr.bf16.mxu0 %v7318_v15  ;;  %6689 = vmatpush3.bf16.msra.mxu1 %v7317_v14  ;;  %v7355_v14 = vld [vmem:[%s9316_s1 + $0x840] sm:$0xff]  }
  0xde   :  { %6690 = vmatprep.subr.bf16.mxu1 %v7319_v16  ;;  %v7356_v15 = vld [vmem:[%s9316_s1 + $0x8c0] sm:$0xff]   ;;  %v1255_v18 = vcombine.high %v1239_v13, %v1239_v13 }
  0xdf   :  { %v7357_v16 = vld [vmem:[%s9316_s1 + $0x800] sm:$0xff]  }
  0xe0   :  { %6669 = vmatpush3.bf16.msra.mxu0 %v7320_v17  ;;  %v7358_v17 = vld [vmem:[%s9316_s1 + $0x880] sm:$0xff]  }
  0xe1   :  { %6698 = vmatprep.subr.bf16.mxu0 %v7322_v20  ;;  %6691 = vmatpush3.bf16.msra.mxu1 %v7321_v22  ;;  %v7360_v20 = vld [vmem:[%s9316_s1 + $0x8c8] sm:$0xff]  }
  0xe2   :  { %6720 = vmatprep.subr.bf16.mxu1 %v7323_v25  ;;  %v7362_v22 = vld [vmem:[%s9316_s1 + $0x888] sm:$0xff]   ;;  %v7365_v25 = vld [vmem:[%s9316_s1 + $0x810] sm:$0xff]  }
  0xe3   :  { %5103 = vmatmul.mubr.bf16.vlgmr.msra.gmra.mrb[24].mxu0 %v1232_v24  ;;  %v7364_v24 = vld [vmem:[%s9316_s1 + $0x8d0] sm:$0xff]  }
  0xe4   :  { %6699 = vmatpush3.bf16.msra.mxu0 %v7324_v28  ;;  %5143 = vmatmul.mubr.bf16.vlgmr.msra.gmra.mrb[24].mxu1 %v1254_v30  ;;  %v7368_v28 = vld [vmem:[%s9316_s1 + $0x8d8] sm:$0xff]  }
  0xe5   :  { %6700 = vmatprep.subr.bf16.mxu0 %v7326_v31  ;;  %6721 = vmatpush3.bf16.msra.mxu1 %v7325_v33  ;;  %v7370_v30 = vld [vmem:[%s9316_s1 + $0x898] sm:$0xff]   ;;  %v7371_v31 = vld [vmem:[%s9316_s1 + $0x860] sm:$0xff]  }
  0xe6   :  { %5182 = vmatprep.mubr.bf16.mxu0 %v1253_v34  ;;  %6722 = vmatprep.subr.bf16.mxu1 %v7327_v36  ;;  %v7373_v33 = vld [vmem:[%s9316_s1 + $0x820] sm:$0xff]   ;;  %v7375_v36 = vld [vmem:[%s9316_s1 + $0x868] sm:$0xff]  }
  0xe7   :  { %5222 = vmatprep.mubr.bf16.mxu1 %v1257_v38  ;;  %v7374_v34 = vld [vmem:[%s9316_s1 + $0x8a0] sm:$0xff]   ;;  %v7377_v38 = vld [vmem:[%s9316_s1 + $0x828] sm:$0xff]  }
  0xe8   :  { %6701 = vmatpush3.bf16.msra.mxu0 %v7328_v37  ;;  %v7376_v37 = vld [vmem:[%s9316_s1 + $0x8e8] sm:$0xff]  }
  0xe9   :  { %6702 = vmatprep.subr.bf16.mxu0 %v7330_v39  ;;  %6723 = vmatpush3.bf16.msra.mxu1 %v7329_v40  ;;  %v7378_v39 = vld [vmem:[%s9316_s1 + $0x8a8] sm:$0xff]  }
  0xea   :  { %6724 = vmatprep.subr.bf16.mxu1 %v7331_v41  ;;  %v7379_v41 = vld [vmem:[%s9316_s1 + $0x870] sm:$0xff]  }
  0xec   :  { %6703 = vmatpush3.bf16.msra.mxu0 %v7332_v42 }
  0xed   :  { %6704 = vmatprep.subr.bf16.mxu0 %v7334_v43  ;;  %6725 = vmatpush3.bf16.msra.mxu1 %v7333_v44  ;;  %v7380_v43 = vld [vmem:[%s9316_s1 + $0x8f0] sm:$0xff]  }
  0xee   :  { %6726 = vmatprep.subr.bf16.mxu1 %v7335_v45 }
  0xf0   :  { %6705 = vmatpush3.bf16.msra.mxu0 %v7336_v46 }
  0xf1   :  { %6706 = vmatprep.subr.bf16.mxu0 %v7338_v47  ;;  %6727 = vmatpush3.bf16.msra.mxu1 %v7337_v48 }
  0xf2   :  { %6728 = vmatprep.subr.bf16.mxu1 %v7339_v49  ;;  %v7381_v49 = vld [vmem:[%s9316_s1 + $0x830] sm:$0xff]  }
  0xf4   :  { %6707 = vmatpush3.bf16.msra.mxu0 %v7340_v50  ;;  %v7382_v50 = vld [vmem:[%s9316_s1 + $0x8b0] sm:$0xff]  }
  0xf5   :  { %6708 = vmatprep.subr.bf16.mxu0 %v7342_v51  ;;  %6729 = vmatpush3.bf16.msra.mxu1 %v7341_v52 }
  0xf6   :  { %v6406_v56 = vpop.f32.mrb[0].mxu0  ;;  %6730 = vmatprep.subr.bf16.mxu1 %v7343_v53 }
  0xf7   :  { %v6407_v58 = vpop.f32.mrb[1].mxu0  ;;  %v6428_v60 = vpop.f32.mrb[0].mxu1 }
  0xf8   :  { %v6408_v61 = vadd.f32 %v6407_v58, %v6406_v56  ;;  %v6409_v62 = vpop.f32.mrb[2].mxu0  ;;  %v6429_v1 = vpop.f32.mrb[1].mxu1  ;;  %6709 = vmatpush3.bf16.msra.mxu0 %v7344_v55  ;;  %v7384_v56 = vld [vmem:[%s9316_s1 + $0x8f8] sm:$0xff]  }
  0xf9   :  { %v6410_v2 = vpop.f32.mrb[3].mxu0  ;;  %v6430_v5 = vadd.f32 %v6429_v1, %v6428_v60  ;;  %v6431_v6 = vpop.f32.mrb[2].mxu1  ;;  %6710 = vmatprep.subr.bf16.mxu0 %v7346_v57  ;;  %6731 = vmatpush3.bf16.msra.mxu1 %v7345_v59  ;;  %v7385_v58 = vld [vmem:[%s9316_s1 + $0x838] sm:$0xff]   ;;  %v19_v59 = vld [vmem:[%s9317_s0 + $0x20] sm:$0xff] }
  0xfa   :  { %v4625_v4 = vadd.f32 %v6408_v61, %v5877_v54  ;;  %v6432_v8 = vpop.f32.mrb[3].mxu1  ;;  %6732 = vmatprep.subr.bf16.mxu1 %v7347_v63  ;;  %v7383_v54 = vld [vmem:[%s9316_s1 + $0x878] sm:$0xff]   ;;  %v1265_v60 = vrot.slane %v19_v59, %v7726_v35  ;;  %v7387_v61 = vld [vmem:[%s9316_s1 + $0x940] sm:$0xff]   ;;  %v1258_v62 = vcombine.high %v19_v59, %v19_v59  ;;  %v7424_v59 = vld [vmem:[%s9316_s1 + $0xa48] sm:$0xff]  }
  0xfb   :  { %v7386_v63 = vld [vmem:[%s9316_s1 + $0x8b8] sm:$0xff]   ;;  %v7388_v2 = vld [vmem:[%s9316_s1 + $0x9c0] sm:$0xff]  }
  0xfc   :  { %v8457_v10 = vadd.f32 %v6430_v5, %v4625_v4  ;;  %6711 = vmatpush3.bf16.msra.mxu0 %v7348_v0  ;;  %v1273_v0 = vcombine.high %v1265_v60, %v1265_v60  ;;  %v1281_v1 = vrot.slane %v1265_v60, %v7726_v35  ;;  %v7389_v4 = vld [vmem:[%s9316_s1 + $0x900] sm:$0xff]   ;;  %v7425_v60 = vld [vmem:[%s9316_s1 + $0xac8] sm:$0xff]  }
  0xfd   :  { %6712 = vmatprep.subr.bf16.mxu0 %v7350_v7  ;;  %6733 = vmatpush3.bf16.msra.mxu1 %v7349_v3  ;;  %v8578_v3 = vrot.slane %v1258_v62, %v7726_v35  ;;  %v7390_v6 = vld [vmem:[%s9316_s1 + $0x980] sm:$0xff]   ;;  %v7427_v62 = vld [vmem:[%s9316_s1 + $0xa88] sm:$0xff]  }
  0xfe   :  { %6734 = vmatprep.subr.bf16.mxu1 %v7351_v9  ;;  %v1295_v5 = vrot.slane %v1273_v0, %v7726_v35  ;;  %v1303_v8 = vcombine.high %v1281_v1, %v1281_v1  ;;  %v7391_v9 = vld [vmem:[%s9316_s1 + $0x948] sm:$0xff]   ;;  %v7429_v0 = vld [vmem:[%s9316_s1 + $0xad0] sm:$0xff]  }
  0xff   :  { %v1274_v7 = vcombine.high %v8578_v3, %v8578_v3 }
 0x100   :  { %6713 = vmatpush3.bf16.msra.mxu0 %v7352_v11  ;;  %v7392_v11 = vld [vmem:[%s9316_s1 + $0x9c8] sm:$0xff]  }
 0x101   :  { %6742 = vmatprep.subr.bf16.mxu0 %v7355_v14  ;;  %6735 = vmatpush3.bf16.msra.mxu1 %v7353_v12  ;;  %v1302_v12 = vrot.slane %v1274_v7, %v7726_v35  ;;  %v7394_v14 = vld [vmem:[%s9316_s1 + $0x988] sm:$0xff]   ;;  %v7436_v7 = vld [vmem:[%s9316_s1 + $0xa60] sm:$0xff]  }
 0x102   :  { %6764 = vmatprep.subr.bf16.mxu1 %v7356_v15 }
 0x103   :  { %5183 = vmatmul.mubr.bf16.vlgmr.msra.gmra.mrb[28].mxu0 %v1239_v13  ;;  %v7393_v13 = vld [vmem:[%s9316_s1 + $0x908] sm:$0xff]   ;;  %v1306_v15 = vcombine.high %v1302_v12, %v1302_v12 }
 0x104   :  { %6743 = vmatpush3.bf16.msra.mxu0 %v7357_v16  ;;  %5223 = vmatmul.mubr.bf16.vlgmr.msra.gmra.mrb[28].mxu1 %v1255_v18  ;;  %v7395_v16 = vld [vmem:[%s9316_s1 + $0x950] sm:$0xff]  }
 0x105   :  { %6744 = vmatprep.subr.bf16.mxu0 %v7359_v19  ;;  %6765 = vmatpush3.bf16.msra.mxu1 %v7358_v17  ;;  %v7396_v17 = vld [vmem:[%s9316_s1 + $0x9d0] sm:$0xff]  }
 0x106   :  { %6766 = vmatprep.subr.bf16.mxu1 %v7360_v20  ;;  %5262 = vmatprep.mubr.bf16.mxu0 %v1295_v5  ;;  %v7397_v18 = vld [vmem:[%s9316_s1 + $0x910] sm:$0xff]   ;;  %v7399_v20 = vld [vmem:[%s9316_s1 + $0x958] sm:$0xff]  }
 0x107   :  { %v7398_v19 = vld [vmem:[%s9316_s1 + $0x990] sm:$0xff]  }
 0x108   :  { %6745 = vmatpush3.bf16.msra.mxu0 %v7361_v21  ;;  %v7400_v21 = vld [vmem:[%s9316_s1 + $0x9d8] sm:$0xff]  }
 0x109   :  { %6746 = vmatprep.subr.bf16.mxu0 %v7363_v23  ;;  %6767 = vmatpush3.bf16.msra.mxu1 %v7362_v22  ;;  %v7401_v22 = vld [vmem:[%s9316_s1 + $0x918] sm:$0xff]  }
 0x10a   :  { %6768 = vmatprep.subr.bf16.mxu1 %v7364_v24  ;;  %v7402_v23 = vld [vmem:[%s9316_s1 + $0x998] sm:$0xff]   ;;  %v7403_v24 = vld [vmem:[%s9316_s1 + $0x960] sm:$0xff]  }
 0x10c   :  { %6747 = vmatpush3.bf16.msra.mxu0 %v7365_v25  ;;  %v7404_v25 = vld [vmem:[%s9316_s1 + $0x9e0] sm:$0xff]  }
 0x10d   :  { %6748 = vmatprep.subr.bf16.mxu0 %v7367_v27  ;;  %6769 = vmatpush3.bf16.msra.mxu1 %v7366_v26  ;;  %v7405_v26 = vld [vmem:[%s9316_s1 + $0x920] sm:$0xff]  }
 0x10e   :  { %6770 = vmatprep.subr.bf16.mxu1 %v7368_v28  ;;  %v7406_v27 = vld [vmem:[%s9316_s1 + $0x9a0] sm:$0xff]   ;;  %v7407_v28 = vld [vmem:[%s9316_s1 + $0x968] sm:$0xff]  }
 0x110   :  { %6749 = vmatpush3.bf16.msra.mxu0 %v7369_v29  ;;  %v7408_v29 = vld [vmem:[%s9316_s1 + $0x9e8] sm:$0xff]  }
 0x111   :  { %6750 = vmatprep.subr.bf16.mxu0 %v7371_v31  ;;  %6771 = vmatpush3.bf16.msra.mxu1 %v7370_v30  ;;  %v7409_v30 = vld [vmem:[%s9316_s1 + $0x928] sm:$0xff]  }
 0x112   :  { %6772 = vmatprep.subr.bf16.mxu1 %v7372_v32  ;;  %v7410_v32 = vld [vmem:[%s9316_s1 + $0x9a8] sm:$0xff]  }
 0x114   :  { %6751 = vmatpush3.bf16.msra.mxu0 %v7373_v33 }
 0x115   :  { %6752 = vmatprep.subr.bf16.mxu0 %v7375_v36  ;;  %6773 = vmatpush3.bf16.msra.mxu1 %v7374_v34  ;;  %v7411_v34 = vld [vmem:[%s9316_s1 + $0x970] sm:$0xff]  }
 0x116   :  { %v6450_v40 = vpop.f32.mrb[4].mxu0  ;;  %6774 = vmatprep.subr.bf16.mxu1 %v7376_v37 }
 0x117   :  { %v6451_v42 = vpop.f32.mrb[5].mxu0  ;;  %v6472_v44 = vpop.f32.mrb[4].mxu1 }
 0x118   :  { %v6452_v45 = vadd.f32 %v6451_v42, %v6450_v40  ;;  %v6453_v46 = vpop.f32.mrb[6].mxu0  ;;  %v6473_v47 = vpop.f32.mrb[5].mxu1  ;;  %6753 = vmatpush3.bf16.msra.mxu0 %v7377_v38  ;;  %v7413_v40 = vld [vmem:[%s9316_s1 + $0x930] sm:$0xff]  }
 0x119   :  { %v6454_v48 = vpop.f32.mrb[7].mxu0  ;;  %v6474_v52 = vadd.f32 %v6473_v47, %v6472_v44  ;;  %v6475_v53 = vpop.f32.mrb[6].mxu1  ;;  %6754 = vmatprep.subr.bf16.mxu0 %v7379_v41  ;;  %6775 = vmatpush3.bf16.msra.mxu1 %v7378_v39  ;;  %v7412_v39 = vld [vmem:[%s9316_s1 + $0x9f0] sm:$0xff]  }
 0x11a   :  { %v4705_v51 = vadd.f32 %v6452_v45, %v8457_v10  ;;  %v6476_v55 = vpop.f32.mrb[7].mxu1  ;;  %6776 = vmatprep.subr.bf16.mxu1 %v7380_v43  ;;  %v1305_v10 = vcombine.high %v1295_v5, %v1295_v5  ;;  %v7414_v46 = vld [vmem:[%s9316_s1 + $0x9b0] sm:$0xff]   ;;  %v7415_v48 = vld [vmem:[%s9316_s1 + $0x978] sm:$0xff]   ;;  %v1288_v53 = vrot.slane %v8578_v3, %v7726_v35 }
 0x11b   :  { %v7421_v55 = vld [vmem:[%s9316_s1 + $0xac0] sm:$0xff]   ;;  %v7432_v3 = vld [vmem:[%s9316_s1 + $0xa58] sm:$0xff]  }
 0x11c   :  { %v8558_v57 = vadd.f32 %v6474_v52, %v4705_v51  ;;  %6755 = vmatpush3.bf16.msra.mxu0 %v7381_v49  ;;  %5302 = vmatprep.mubr.bf16.mxu1 %v1305_v10  ;;  %v7417_v51 = vld [vmem:[%s9316_s1 + $0x938] sm:$0xff]   ;;  %v7439_v10 = vld [vmem:[%s9316_s1 + $0xaa0] sm:$0xff]  }
 0x11d   :  { %6756 = vmatprep.subr.bf16.mxu0 %v7383_v54  ;;  %6777 = vmatpush3.bf16.msra.mxu1 %v7382_v50  ;;  %v7416_v50 = vld [vmem:[%s9316_s1 + $0x9f8] sm:$0xff]   ;;  %v7420_v54 = vld [vmem:[%s9316_s1 + $0xa40] sm:$0xff]  }
 0x11e   :  { %6778 = vmatprep.subr.bf16.mxu1 %v7384_v56  ;;  %v7418_v52 = vld [vmem:[%s9316_s1 + $0x9b8] sm:$0xff]   ;;  %v7422_v56 = vld [vmem:[%s9316_s1 + $0xa00] sm:$0xff]  }
 0x11f   :  { %v7434_v5 = vld [vmem:[%s9316_s1 + $0xa18] sm:$0xff]  }
 0x120   :  { %6757 = vmatpush3.bf16.msra.mxu0 %v7385_v58  ;;  %v1304_v58 = vcombine.high %v1288_v53, %v1288_v53 }
 0x121   :  { %6786 = vmatprep.subr.bf16.mxu0 %v7387_v61  ;;  %6779 = vmatpush3.bf16.msra.mxu1 %v7386_v63  ;;  %v7426_v61 = vld [vmem:[%s9316_s1 + $0xa08] sm:$0xff]   ;;  %v7428_v63 = vld [vmem:[%s9316_s1 + $0xa50] sm:$0xff]  }
 0x122   :  { %6808 = vmatprep.subr.bf16.mxu1 %v7388_v2  ;;  %v7431_v2 = vld [vmem:[%s9316_s1 + $0xa90] sm:$0xff]  }
 0x123   :  { %5263 = vmatmul.mubr.bf16.vlgmr.msra.gmra.mrb[32].mxu0 %v1281_v1  ;;  %v7430_v1 = vld [vmem:[%s9316_s1 + $0xa10] sm:$0xff]  }
 0x124   :  { %6787 = vmatpush3.bf16.msra.mxu0 %v7389_v4  ;;  %5303 = vmatmul.mubr.bf16.vlgmr.msra.gmra.mrb[32].mxu1 %v1303_v8  ;;  %v7433_v4 = vld [vmem:[%s9316_s1 + $0xad8] sm:$0xff]   ;;  %v7437_v8 = vld [vmem:[%s9316_s1 + $0xae0] sm:$0xff]  }
 0x125   :  { %6788 = vmatprep.subr.bf16.mxu0 %v7391_v9  ;;  %6809 = vmatpush3.bf16.msra.mxu1 %v7390_v6  ;;  %v7435_v6 = vld [vmem:[%s9316_s1 + $0xa98] sm:$0xff]   ;;  %v7438_v9 = vld [vmem:[%s9316_s1 + $0xa20] sm:$0xff]  }
 0x126   :  { %5342 = vmatprep.mubr.bf16.mxu0 %v1302_v12  ;;  %6810 = vmatprep.subr.bf16.mxu1 %v7392_v11  ;;  %v7440_v11 = vld [vmem:[%s9316_s1 + $0xa68] sm:$0xff]  }
 0x127   :  { %5382 = vmatprep.mubr.bf16.mxu1 %v1306_v15  ;;  %v7441_v12 = vld [vmem:[%s9316_s1 + $0xae8] sm:$0xff]  }
 0x128   :  { %6789 = vmatpush3.bf16.msra.mxu0 %v7393_v13  ;;  %v7442_v13 = vld [vmem:[%s9316_s1 + $0xa28] sm:$0xff]  }
 0x129   :  { %6790 = vmatprep.subr.bf16.mxu0 %v7395_v16  ;;  %6811 = vmatpush3.bf16.msra.mxu1 %v7394_v14  ;;  %v7443_v15 = vld [vmem:[%s9316_s1 + $0xaa8] sm:$0xff]  }
 0x12a   :  { %6812 = vmatprep.subr.bf16.mxu1 %v7396_v17  ;;  %v7444_v17 = vld [vmem:[%s9316_s1 + $0xa70] sm:$0xff]  }
 0x12c   :  { %6791 = vmatpush3.bf16.msra.mxu0 %v7397_v18 }
 0x12d   :  { %6792 = vmatprep.subr.bf16.mxu0 %v7399_v20  ;;  %6813 = vmatpush3.bf16.msra.mxu1 %v7398_v19 }
 0x12e   :  { %6814 = vmatprep.subr.bf16.mxu1 %v7400_v21 }
 0x130   :  { %6793 = vmatpush3.bf16.msra.mxu0 %v7401_v22 }
 0x131   :  { %6794 = vmatprep.subr.bf16.mxu0 %v7403_v24  ;;  %6815 = vmatpush3.bf16.msra.mxu1 %v7402_v23  ;;  %v7445_v23 = vld [vmem:[%s9316_s1 + $0xaf0] sm:$0xff]  }
 0x132   :  { %6816 = vmatprep.subr.bf16.mxu1 %v7404_v25  ;;  %v7446_v24 = vld [vmem:[%s9316_s1 + $0xa30] sm:$0xff]  }
 0x134   :  { %6795 = vmatpush3.bf16.msra.mxu0 %v7405_v26 }
 0x135   :  { %6796 = vmatprep.subr.bf16.mxu0 %v7407_v28  ;;  %6817 = vmatpush3.bf16.msra.mxu1 %v7406_v27  ;;  %v7447_v28 = vld [vmem:[%s9316_s1 + $0xab0] sm:$0xff]  }
 0x136   :  { %v6494_v31 = vpop.f32.mrb[8].mxu0  ;;  %6818 = vmatprep.subr.bf16.mxu1 %v7408_v29 }
 0x137   :  { %v6495_v33 = vpop.f32.mrb[9].mxu0  ;;  %v6516_v36 = vpop.f32.mrb[8].mxu1 }
 0x138   :  { %v6496_v37 = vadd.f32 %v6495_v33, %v6494_v31  ;;  %v6497_v38 = vpop.f32.mrb[10].mxu0  ;;  %v6517_v41 = vpop.f32.mrb[9].mxu1  ;;  %6797 = vmatpush3.bf16.msra.mxu0 %v7409_v30  ;;  %v7448_v30 = vld [vmem:[%s9316_s1 + $0xa78] sm:$0xff]  }
 0x139   :  { %v6498_v42 = vpop.f32.mrb[11].mxu0  ;;  %v6518_v44 = vadd.f32 %v6517_v41, %v6516_v36  ;;  %v6519_v45 = vpop.f32.mrb[10].mxu1  ;;  %6798 = vmatprep.subr.bf16.mxu0 %v7411_v34  ;;  %6819 = vmatpush3.bf16.msra.mxu1 %v7410_v32  ;;  %v7449_v32 = vld [vmem:[%s9316_s1 + $0xaf8] sm:$0xff]   ;;  %v20_v34 = vld [vmem:[%s9317_s0 + $0x28] sm:$0xff] }
 0x13a   :  { %v4785_v43 = vadd.f32 %v6496_v37, %v8558_v57  ;;  %v6520_v47 = vpop.f32.mrb[11].mxu1  ;;  %6820 = vmatprep.subr.bf16.mxu1 %v7412_v39  ;;  %v7423_v57 = vld [vmem:[%s9316_s1 + $0xa80] sm:$0xff]   ;;  %v7450_v33 = vld [vmem:[%s9316_s1 + $0xa38] sm:$0xff]   ;;  %v1314_v36 = vrot.slane %v20_v34, %v7726_v35  ;;  %v1307_v38 = vcombine.high %v20_v34, %v20_v34  ;;  %v7489_v34 = vld [vmem:[%s9316_s1 + $0xc48] sm:$0xff]  }
 0x13b   :  { %v7452_v37 = vld [vmem:[%s9316_s1 + $0xb40] sm:$0xff]   ;;  %v7451_v39 = vld [vmem:[%s9316_s1 + $0xab8] sm:$0xff]  }
 0x13c   :  { %v8666_v49 = vadd.f32 %v6518_v44, %v4785_v43  ;;  %6799 = vmatpush3.bf16.msra.mxu0 %v7413_v40  ;;  %v1322_v40 = vcombine.high %v1314_v36, %v1314_v36  ;;  %v1330_v41 = vrot.slane %v1314_v36, %v7726_v35  ;;  %v7453_v42 = vld [vmem:[%s9316_s1 + $0xbc0] sm:$0xff]   ;;  %v8790_v43 = vrot.slane %v1307_v38, %v7726_v35  ;;  %v7490_v36 = vld [vmem:[%s9316_s1 + $0xcc8] sm:$0xff]  }
 0x13d   :  { %6800 = vmatprep.subr.bf16.mxu0 %v7415_v48  ;;  %6821 = vmatpush3.bf16.msra.mxu1 %v7414_v46  ;;  %v7454_v44 = vld [vmem:[%s9316_s1 + $0xb00] sm:$0xff]   ;;  %v7492_v38 = vld [vmem:[%s9316_s1 + $0xc88] sm:$0xff]  }
 0x13e   :  { %6822 = vmatprep.subr.bf16.mxu1 %v7416_v50  ;;  %v1344_v45 = vrot.slane %v1322_v40, %v7726_v35  ;;  %v7455_v46 = vld [vmem:[%s9316_s1 + $0xb80] sm:$0xff]   ;;  %v1323_v47 = vcombine.high %v8790_v43, %v8790_v43  ;;  %v1352_v48 = vcombine.high %v1330_v41, %v1330_v41  ;;  %v7494_v40 = vld [vmem:[%s9316_s1 + $0xcd0] sm:$0xff]  }
 0x140   :  { %6801 = vmatpush3.bf16.msra.mxu0 %v7417_v51  ;;  %v1354_v50 = vcombine.high %v1344_v45, %v1344_v45  ;;  %v7457_v51 = vld [vmem:[%s9316_s1 + $0xbc8] sm:$0xff]  }
 0x141   :  { %6830 = vmatprep.subr.bf16.mxu0 %v7420_v54  ;;  %6823 = vmatpush3.bf16.msra.mxu1 %v7418_v52  ;;  %v1351_v52 = vrot.slane %v1323_v47, %v7726_v35  ;;  %v7459_v54 = vld [vmem:[%s9316_s1 + $0xb88] sm:$0xff]   ;;  %v7501_v47 = vld [vmem:[%s9316_s1 + $0xc60] sm:$0xff]  }
 0x142   :  { %6852 = vmatprep.subr.bf16.mxu1 %v7421_v55 }
 0x143   :  { %5343 = vmatmul.mubr.bf16.vlgmr.msra.gmra.mrb[36].mxu0 %v1288_v53  ;;  %v7458_v53 = vld [vmem:[%s9316_s1 + $0xb08] sm:$0xff]   ;;  %v1355_v55 = vcombine.high %v1351_v52, %v1351_v52 }
 0x144   :  { %6831 = vmatpush3.bf16.msra.mxu0 %v7422_v56  ;;  %5383 = vmatmul.mubr.bf16.vlgmr.msra.gmra.mrb[36].mxu1 %v1304_v58  ;;  %v7460_v56 = vld [vmem:[%s9316_s1 + $0xb50] sm:$0xff]  }
 0x145   :  { %6832 = vmatprep.subr.bf16.mxu0 %v7424_v59  ;;  %6853 = vmatpush3.bf16.msra.mxu1 %v7423_v57  ;;  %v7461_v57 = vld [vmem:[%s9316_s1 + $0xbd0] sm:$0xff]  }
 0x146   :  { %6854 = vmatprep.subr.bf16.mxu1 %v7425_v60  ;;  %5422 = vmatprep.mubr.bf16.mxu0 %v1344_v45  ;;  %v7462_v58 = vld [vmem:[%s9316_s1 + $0xb10] sm:$0xff]   ;;  %v7464_v60 = vld [vmem:[%s9316_s1 + $0xb58] sm:$0xff]  }
 0x147   :  { %5462 = vmatprep.mubr.bf16.mxu1 %v1354_v50  ;;  %v7463_v59 = vld [vmem:[%s9316_s1 + $0xb90] sm:$0xff]   ;;  %v7499_v45 = vld [vmem:[%s9316_s1 + $0xc18] sm:$0xff]   ;;  %v7504_v50 = vld [vmem:[%s9316_s1 + $0xca0] sm:$0xff]  }
 0x148   :  { %6833 = vmatpush3.bf16.msra.mxu0 %v7426_v61  ;;  %v7465_v61 = vld [vmem:[%s9316_s1 + $0xbd8] sm:$0xff]  }
 0x149   :  { %6834 = vmatprep.subr.bf16.mxu0 %v7428_v63  ;;  %6855 = vmatpush3.bf16.msra.mxu1 %v7427_v62  ;;  %v7466_v62 = vld [vmem:[%s9316_s1 + $0xb18] sm:$0xff]  }
 0x14a   :  { %6856 = vmatprep.subr.bf16.mxu1 %v7429_v0  ;;  %v7467_v63 = vld [vmem:[%s9316_s1 + $0xb98] sm:$0xff]   ;;  %v7468_v0 = vld [vmem:[%s9316_s1 + $0xb60] sm:$0xff]  }
 0x14c   :  { %6835 = vmatpush3.bf16.msra.mxu0 %v7430_v1  ;;  %v7469_v1 = vld [vmem:[%s9316_s1 + $0xbe0] sm:$0xff]  }
 0x14d   :  { %6836 = vmatprep.subr.bf16.mxu0 %v7432_v3  ;;  %6857 = vmatpush3.bf16.msra.mxu1 %v7431_v2  ;;  %v7470_v2 = vld [vmem:[%s9316_s1 + $0xb20] sm:$0xff]  }
 0x14e   :  { %6858 = vmatprep.subr.bf16.mxu1 %v7433_v4  ;;  %v7471_v3 = vld [vmem:[%s9316_s1 + $0xba0] sm:$0xff]   ;;  %v7472_v4 = vld [vmem:[%s9316_s1 + $0xb68] sm:$0xff]  }
 0x150   :  { %6837 = vmatpush3.bf16.msra.mxu0 %v7434_v5  ;;  %v7473_v5 = vld [vmem:[%s9316_s1 + $0xbe8] sm:$0xff]  }
 0x151   :  { %6838 = vmatprep.subr.bf16.mxu0 %v7436_v7  ;;  %6859 = vmatpush3.bf16.msra.mxu1 %v7435_v6  ;;  %v7474_v7 = vld [vmem:[%s9316_s1 + $0xb28] sm:$0xff]  }
 0x152   :  { %6860 = vmatprep.subr.bf16.mxu1 %v7437_v8 }
 0x154   :  { %6839 = vmatpush3.bf16.msra.mxu0 %v7438_v9  ;;  %v7475_v9 = vld [vmem:[%s9316_s1 + $0xba8] sm:$0xff]  }
 0x155   :  { %6840 = vmatprep.subr.bf16.mxu0 %v7440_v11  ;;  %6861 = vmatpush3.bf16.msra.mxu1 %v7439_v10 }
 0x156   :  { %v6538_v14 = vpop.f32.mrb[12].mxu0  ;;  %6862 = vmatprep.subr.bf16.mxu1 %v7441_v12 }
 0x157   :  { %v6539_v16 = vpop.f32.mrb[13].mxu0  ;;  %v6560_v18 = vpop.f32.mrb[12].mxu1 }
 0x158   :  { %v6540_v19 = vadd.f32 %v6539_v16, %v6538_v14  ;;  %v6541_v20 = vpop.f32.mrb[14].mxu0  ;;  %v6561_v21 = vpop.f32.mrb[13].mxu1  ;;  %6841 = vmatpush3.bf16.msra.mxu0 %v7442_v13  ;;  %v7476_v13 = vld [vmem:[%s9316_s1 + $0xb70] sm:$0xff]  }
 0x159   :  { %v6542_v22 = vpop.f32.mrb[15].mxu0  ;;  %v6562_v26 = vadd.f32 %v6561_v21, %v6560_v18  ;;  %v6563_v27 = vpop.f32.mrb[14].mxu1  ;;  %6842 = vmatprep.subr.bf16.mxu0 %v7444_v17  ;;  %6863 = vmatpush3.bf16.msra.mxu1 %v7443_v15  ;;  %v7477_v14 = vld [vmem:[%s9316_s1 + $0xbf0] sm:$0xff]  }
 0x15a   :  { %v4865_v25 = vadd.f32 %v6540_v19, %v8666_v49  ;;  %v6564_v29 = vpop.f32.mrb[15].mxu1  ;;  %6864 = vmatprep.subr.bf16.mxu1 %v7445_v23  ;;  %v7456_v49 = vld [vmem:[%s9316_s1 + $0xb48] sm:$0xff]   ;;  %v7478_v20 = vld [vmem:[%s9316_s1 + $0xb30] sm:$0xff]   ;;  %v7483_v27 = vld [vmem:[%s9316_s1 + $0xbb8] sm:$0xff]  }
 0x15b   :  { %v7479_v22 = vld [vmem:[%s9316_s1 + $0xbb0] sm:$0xff]   ;;  %v7485_v29 = vld [vmem:[%s9316_s1 + $0xc40] sm:$0xff]  }
 0x15c   :  { %v8767_v31 = vadd.f32 %v6562_v26, %v4865_v25  ;;  %6843 = vmatpush3.bf16.msra.mxu0 %v7446_v24  ;;  %v7480_v24 = vld [vmem:[%s9316_s1 + $0xb78] sm:$0xff]  }
 0x15d   :  { %6844 = vmatprep.subr.bf16.mxu0 %v7448_v30  ;;  %6865 = vmatpush3.bf16.msra.mxu1 %v7447_v28  ;;  %v7481_v25 = vld [vmem:[%s9316_s1 + $0xbf8] sm:$0xff]   ;;  %v1337_v28 = vrot.slane %v8790_v43, %v7726_v35  ;;  %v7486_v30 = vld [vmem:[%s9316_s1 + $0xcc0] sm:$0xff]  }
 0x15e   :  { %6866 = vmatprep.subr.bf16.mxu1 %v7449_v32  ;;  %v7482_v26 = vld [vmem:[%s9316_s1 + $0xb38] sm:$0xff]   ;;  %v7488_v32 = vld [vmem:[%s9316_s1 + $0xc80] sm:$0xff]  }
 0x15f   :  { %v7497_v43 = vld [vmem:[%s9316_s1 + $0xc58] sm:$0xff]  }
 0x160   :  { %6845 = vmatpush3.bf16.msra.mxu0 %v7450_v33  ;;  %v1353_v33 = vcombine.high %v1337_v28, %v1337_v28 }
 0x161   :  { %6874 = vmatprep.subr.bf16.mxu0 %v7452_v37  ;;  %6867 = vmatpush3.bf16.msra.mxu1 %v7451_v39  ;;  %v7491_v37 = vld [vmem:[%s9316_s1 + $0xc08] sm:$0xff]   ;;  %v7493_v39 = vld [vmem:[%s9316_s1 + $0xc50] sm:$0xff]  }
 0x162   :  { %6896 = vmatprep.subr.bf16.mxu1 %v7453_v42  ;;  %v7496_v42 = vld [vmem:[%s9316_s1 + $0xc90] sm:$0xff]  }
 0x163   :  { %5423 = vmatmul.mubr.bf16.vlgmr.msra.gmra.mrb[40].mxu0 %v1330_v41  ;;  %v7495_v41 = vld [vmem:[%s9316_s1 + $0xc10] sm:$0xff]  }
 0x164   :  { %6875 = vmatpush3.bf16.msra.mxu0 %v7454_v44  ;;  %5463 = vmatmul.mubr.bf16.vlgmr.msra.gmra.mrb[40].mxu1 %v1352_v48  ;;  %v7498_v44 = vld [vmem:[%s9316_s1 + $0xcd8] sm:$0xff]   ;;  %v7502_v48 = vld [vmem:[%s9316_s1 + $0xce0] sm:$0xff]  }
 0x165   :  { %6876 = vmatprep.subr.bf16.mxu0 %v7456_v49  ;;  %6897 = vmatpush3.bf16.msra.mxu1 %v7455_v46  ;;  %v7500_v46 = vld [vmem:[%s9316_s1 + $0xc98] sm:$0xff]   ;;  %v7503_v49 = vld [vmem:[%s9316_s1 + $0xc20] sm:$0xff]  }
 0x166   :  { %5502 = vmatprep.mubr.bf16.mxu0 %v1351_v52  ;;  %6898 = vmatprep.subr.bf16.mxu1 %v7457_v51  ;;  %v7505_v51 = vld [vmem:[%s9316_s1 + $0xc68] sm:$0xff]  }
 0x167   :  { %5542 = vmatprep.mubr.bf16.mxu1 %v1355_v55  ;;  %v7506_v52 = vld [vmem:[%s9316_s1 + $0xce8] sm:$0xff]  }
 0x168   :  { %6877 = vmatpush3.bf16.msra.mxu0 %v7458_v53 }
 0x169   :  { %6878 = vmatprep.subr.bf16.mxu0 %v7460_v56  ;;  %6899 = vmatpush3.bf16.msra.mxu1 %v7459_v54  ;;  %v7507_v54 = vld [vmem:[%s9316_s1 + $0xc28] sm:$0xff]   ;;  %v7509_v56 = vld [vmem:[%s9316_s1 + $0xc70] sm:$0xff]  }
 0x16a   :  { %6900 = vmatprep.subr.bf16.mxu1 %v7461_v57 }
 0x16c   :  { %6879 = vmatpush3.bf16.msra.mxu0 %v7462_v58 }
 0x16d   :  { %6880 = vmatprep.subr.bf16.mxu0 %v7464_v60  ;;  %6901 = vmatpush3.bf16.msra.mxu1 %v7463_v59 }
 0x16e   :  { %6902 = vmatprep.subr.bf16.mxu1 %v7465_v61  ;;  %v7508_v61 = vld [vmem:[%s9316_s1 + $0xca8] sm:$0xff]  }
 0x170   :  { %6881 = vmatpush3.bf16.msra.mxu0 %v7466_v62 }
 0x171   :  { %6882 = vmatprep.subr.bf16.mxu0 %v7468_v0  ;;  %6903 = vmatpush3.bf16.msra.mxu1 %v7467_v63  ;;  %v7510_v63 = vld [vmem:[%s9316_s1 + $0xcf0] sm:$0xff]  }
 0x172   :  { %6904 = vmatprep.subr.bf16.mxu1 %v7469_v1 }
 0x174   :  { %6883 = vmatpush3.bf16.msra.mxu0 %v7470_v2 }
 0x175   :  { %6884 = vmatprep.subr.bf16.mxu0 %v7472_v4  ;;  %6905 = vmatpush3.bf16.msra.mxu1 %v7471_v3  ;;  %v7511_v3 = vld [vmem:[%s9316_s1 + $0xc30] sm:$0xff]  }
 0x176   :  { %v6582_v6 = vpop.f32.mrb[16].mxu0  ;;  %6906 = vmatprep.subr.bf16.mxu1 %v7473_v5  ;;  %v7513_v5 = vld [vmem:[%s9316_s1 + $0xc78] sm:$0xff]  }
 0x177   :  { %v6583_v8 = vpop.f32.mrb[17].mxu0  ;;  %v6604_v10 = vpop.f32.mrb[16].mxu1 }
 0x178   :  { %v6584_v11 = vadd.f32 %v6583_v8, %v6582_v6  ;;  %v6585_v12 = vpop.f32.mrb[18].mxu0  ;;  %v6605_v15 = vpop.f32.mrb[17].mxu1  ;;  %6885 = vmatpush3.bf16.msra.mxu0 %v7474_v7  ;;  %v7512_v7 = vld [vmem:[%s9316_s1 + $0xcb0] sm:$0xff]   ;;  %v7514_v8 = vld [vmem:[%s9316_s1 + $0xcf8] sm:$0xff]  }
 0x179   :  { %v6586_v16 = vpop.f32.mrb[19].mxu0  ;;  %v6606_v18 = vadd.f32 %v6605_v15, %v6604_v10  ;;  %v6607_v19 = vpop.f32.mrb[18].mxu1  ;;  %6886 = vmatprep.subr.bf16.mxu0 %v7476_v13  ;;  %6907 = vmatpush3.bf16.msra.mxu1 %v7475_v9  ;;  %v7515_v9 = vld [vmem:[%s9316_s1 + $0xc38] sm:$0xff]   ;;  %v21_v10 = vld [vmem:[%s9317_s0 + $0x30] sm:$0xff]  ;;  %v7517_v12 = vld [vmem:[%s9316_s1 + $0xd40] sm:$0xff]  }
 0x17a   :  { %v4945_v17 = vadd.f32 %v6584_v11, %v8767_v31  ;;  %v6608_v21 = vpop.f32.mrb[19].mxu1  ;;  %6908 = vmatprep.subr.bf16.mxu1 %v7477_v14  ;;  %v7487_v31 = vld [vmem:[%s9316_s1 + $0xc00] sm:$0xff]   ;;  %v1363_v11 = vrot.slane %v21_v10, %v7726_v35  ;;  %v1356_v13 = vcombine.high %v21_v10, %v21_v10  ;;  %v7516_v14 = vld [vmem:[%s9316_s1 + $0xcb8] sm:$0xff]   ;;  %v7554_v10 = vld [vmem:[%s9316_s1 + $0xe48] sm:$0xff]  }
 0x17b   :  { %v7519_v19 = vld [vmem:[%s9316_s1 + $0xd00] sm:$0xff]  }
 0x17c   :  { %v8875_v23 = vadd.f32 %v6606_v18, %v4945_v17  ;;  %6887 = vmatpush3.bf16.msra.mxu0 %v7478_v20  ;;  %v1371_v15 = vcombine.high %v1363_v11, %v1363_v11  ;;  %v1379_v16 = vrot.slane %v1363_v11, %v7726_v35  ;;  %v7518_v17 = vld [vmem:[%s9316_s1 + $0xdc0] sm:$0xff]   ;;  %v9002_v18 = vrot.slane %v1356_v13, %v7726_v35  ;;  %v7555_v11 = vld [vmem:[%s9316_s1 + $0xec8] sm:$0xff]  }
 0x17d   :  { %6888 = vmatprep.subr.bf16.mxu0 %v7480_v24  ;;  %6909 = vmatpush3.bf16.msra.mxu1 %v7479_v22  ;;  %v7520_v21 = vld [vmem:[%s9316_s1 + $0xd80] sm:$0xff]   ;;  %v7521_v24 = vld [vmem:[%s9316_s1 + $0xd48] sm:$0xff]  }
 0x17e   :  { %6910 = vmatprep.subr.bf16.mxu1 %v7481_v25  ;;  %v1393_v20 = vrot.slane %v1371_v15, %v7726_v35  ;;  %v1372_v22 = vcombine.high %v9002_v18, %v9002_v18  ;;  %v7557_v13 = vld [vmem:[%s9316_s1 + $0xe88] sm:$0xff]   ;;  %v7559_v15 = vld [vmem:[%s9316_s1 + $0xed0] sm:$0xff]  }
 0x180   :  { %6889 = vmatpush3.bf16.msra.mxu0 %v7482_v26  ;;  %v1403_v25 = vcombine.high %v1393_v20, %v1393_v20  ;;  %v7522_v26 = vld [vmem:[%s9316_s1 + $0xdc8] sm:$0xff]  }
 0x181   :  { %6918 = vmatprep.subr.bf16.mxu0 %v7485_v29  ;;  %6911 = vmatpush3.bf16.msra.mxu1 %v7483_v27  ;;  %v1400_v27 = vrot.slane %v1372_v22, %v7726_v35  ;;  %v7524_v29 = vld [vmem:[%s9316_s1 + $0xd88] sm:$0xff]   ;;  %v7566_v22 = vld [vmem:[%s9316_s1 + $0xe60] sm:$0xff]  }
 0x182   :  { %6940 = vmatprep.subr.bf16.mxu1 %v7486_v30 }
 0x183   :  { %5503 = vmatmul.mubr.bf16.vlgmr.msra.gmra.mrb[44].mxu0 %v1337_v28  ;;  %v7523_v28 = vld [vmem:[%s9316_s1 + $0xd08] sm:$0xff]   ;;  %v1404_v30 = vcombine.high %v1400_v27, %v1400_v27 }
 0x184   :  { %6919 = vmatpush3.bf16.msra.mxu0 %v7487_v31  ;;  %5543 = vmatmul.mubr.bf16.vlgmr.msra.gmra.mrb[44].mxu1 %v1353_v33  ;;  %v7525_v31 = vld [vmem:[%s9316_s1 + $0xd50] sm:$0xff]  }
 0x185   :  { %6920 = vmatprep.subr.bf16.mxu0 %v7489_v34  ;;  %6941 = vmatpush3.bf16.msra.mxu1 %v7488_v32  ;;  %v7526_v32 = vld [vmem:[%s9316_s1 + $0xdd0] sm:$0xff]  }
 0x186   :  { %6942 = vmatprep.subr.bf16.mxu1 %v7490_v36  ;;  %5582 = vmatprep.mubr.bf16.mxu0 %v1393_v20  ;;  %v7527_v33 = vld [vmem:[%s9316_s1 + $0xd10] sm:$0xff]   ;;  %v7529_v36 = vld [vmem:[%s9316_s1 + $0xd58] sm:$0xff]  }
 0x187   :  { %5622 = vmatprep.mubr.bf16.mxu1 %v1403_v25  ;;  %v7528_v34 = vld [vmem:[%s9316_s1 + $0xd90] sm:$0xff]   ;;  %v7564_v20 = vld [vmem:[%s9316_s1 + $0xe18] sm:$0xff]   ;;  %v7569_v25 = vld [vmem:[%s9316_s1 + $0xea0] sm:$0xff]  }
 0x188   :  { %6921 = vmatpush3.bf16.msra.mxu0 %v7491_v37  ;;  %v7530_v37 = vld [vmem:[%s9316_s1 + $0xdd8] sm:$0xff]  }
 0x189   :  { %6922 = vmatprep.subr.bf16.mxu0 %v7493_v39  ;;  %6943 = vmatpush3.bf16.msra.mxu1 %v7492_v38  ;;  %v7531_v38 = vld [vmem:[%s9316_s1 + $0xd18] sm:$0xff]  }
 0x18a   :  { %6944 = vmatprep.subr.bf16.mxu1 %v7494_v40  ;;  %v7532_v39 = vld [vmem:[%s9316_s1 + $0xd98] sm:$0xff]   ;;  %v7533_v40 = vld [vmem:[%s9316_s1 + $0xd60] sm:$0xff]  }
 0x18c   :  { %6923 = vmatpush3.bf16.msra.mxu0 %v7495_v41  ;;  %v7534_v41 = vld [vmem:[%s9316_s1 + $0xde0] sm:$0xff]  }
 0x18d   :  { %6924 = vmatprep.subr.bf16.mxu0 %v7497_v43  ;;  %6945 = vmatpush3.bf16.msra.mxu1 %v7496_v42  ;;  %v7535_v42 = vld [vmem:[%s9316_s1 + $0xd20] sm:$0xff]  }
 0x18e   :  { %6946 = vmatprep.subr.bf16.mxu1 %v7498_v44  ;;  %v7536_v43 = vld [vmem:[%s9316_s1 + $0xda0] sm:$0xff]   ;;  %v7537_v44 = vld [vmem:[%s9316_s1 + $0xd68] sm:$0xff]  }
 0x190   :  { %6925 = vmatpush3.bf16.msra.mxu0 %v7499_v45  ;;  %v7538_v45 = vld [vmem:[%s9316_s1 + $0xde8] sm:$0xff]  }
 0x191   :  { %6926 = vmatprep.subr.bf16.mxu0 %v7501_v47  ;;  %6947 = vmatpush3.bf16.msra.mxu1 %v7500_v46  ;;  %v7539_v47 = vld [vmem:[%s9316_s1 + $0xd28] sm:$0xff]  }
 0x192   :  { %6948 = vmatprep.subr.bf16.mxu1 %v7502_v48 }
 0x194   :  { %6927 = vmatpush3.bf16.msra.mxu0 %v7503_v49  ;;  %v7540_v49 = vld [vmem:[%s9316_s1 + $0xda8] sm:$0xff]  }
 0x195   :  { %6928 = vmatprep.subr.bf16.mxu0 %v7505_v51  ;;  %6949 = vmatpush3.bf16.msra.mxu1 %v7504_v50 }
 0x196   :  { %v6626_v53 = vpop.f32.mrb[20].mxu0  ;;  %6950 = vmatprep.subr.bf16.mxu1 %v7506_v52 }
 0x197   :  { %v6627_v55 = vpop.f32.mrb[21].mxu0  ;;  %v6648_v57 = vpop.f32.mrb[20].mxu1 }
 0x198   :  { %v6628_v58 = vadd.f32 %v6627_v55, %v6626_v53  ;;  %v6629_v59 = vpop.f32.mrb[22].mxu0  ;;  %v6649_v60 = vpop.f32.mrb[21].mxu1  ;;  %6929 = vmatpush3.bf16.msra.mxu0 %v7507_v54  ;;  %v7541_v53 = vld [vmem:[%s9316_s1 + $0xd70] sm:$0xff]  }
 0x199   :  { %v6630_v62 = vpop.f32.mrb[23].mxu0  ;;  %v6650_v1 = vadd.f32 %v6649_v60, %v6648_v57  ;;  %v6651_v2 = vpop.f32.mrb[22].mxu1  ;;  %6930 = vmatprep.subr.bf16.mxu0 %v7509_v56  ;;  %6951 = vmatpush3.bf16.msra.mxu1 %v7508_v61  ;;  %v7542_v54 = vld [vmem:[%s9316_s1 + $0xdf0] sm:$0xff]  }
 0x19a   :  { %v5025_v0 = vadd.f32 %v6628_v58, %v8875_v23  ;;  %v6652_v4 = vpop.f32.mrb[23].mxu1  ;;  %6952 = vmatprep.subr.bf16.mxu1 %v7510_v63  ;;  %v1401_v23 = vcombine.high %v1379_v16, %v1379_v16  ;;  %v7543_v60 = vld [vmem:[%s9316_s1 + $0xd30] sm:$0xff]   ;;  %v7547_v2 = vld [vmem:[%s9316_s1 + $0xd38] sm:$0xff]  }
 0x19b   :  { %v7544_v62 = vld [vmem:[%s9316_s1 + $0xdb0] sm:$0xff]   ;;  %v1386_v4 = vrot.slane %v9002_v18, %v7726_v35  ;;  %v7562_v18 = vld [vmem:[%s9316_s1 + $0xe58] sm:$0xff]  }
 0x19c   :  { %v8976_v6 = vadd.f32 %v6650_v1, %v5025_v0  ;;  %6931 = vmatpush3.bf16.msra.mxu0 %v7511_v3  ;;  %v7545_v0 = vld [vmem:[%s9316_s1 + $0xd78] sm:$0xff]  }
 0x19d   :  { %6932 = vmatprep.subr.bf16.mxu0 %v7513_v5  ;;  %6953 = vmatpush3.bf16.msra.mxu1 %v7512_v7  ;;  %v7546_v1 = vld [vmem:[%s9316_s1 + $0xdf8] sm:$0xff]   ;;  %v7550_v5 = vld [vmem:[%s9316_s1 + $0xe40] sm:$0xff]  }
 0x19e   :  { %6954 = vmatprep.subr.bf16.mxu1 %v7514_v8  ;;  %v7548_v3 = vld [vmem:[%s9316_s1 + $0xdb8] sm:$0xff]   ;;  %v7552_v7 = vld [vmem:[%s9316_s1 + $0xe00] sm:$0xff]  }
 0x19f   :  { %v7553_v8 = vld [vmem:[%s9316_s1 + $0xe80] sm:$0xff]  }
 0x1a0   :  { %6933 = vmatpush3.bf16.msra.mxu0 %v7515_v9  ;;  %v1402_v9 = vcombine.high %v1386_v4, %v1386_v4 }
 0x1a1   :  { %6962 = vmatprep.subr.bf16.mxu0 %v7517_v12  ;;  %6955 = vmatpush3.bf16.msra.mxu1 %v7516_v14  ;;  %v7556_v12 = vld [vmem:[%s9316_s1 + $0xe08] sm:$0xff]   ;;  %v7558_v14 = vld [vmem:[%s9316_s1 + $0xe50] sm:$0xff]  }
 0x1a2   :  { %6984 = vmatprep.subr.bf16.mxu1 %v7518_v17  ;;  %v7561_v17 = vld [vmem:[%s9316_s1 + $0xe90] sm:$0xff]  }
 0x1a3   :  { %5583 = vmatmul.mubr.bf16.vlgmr.msra.gmra.mrb[48].mxu0 %v1379_v16  ;;  %v7560_v16 = vld [vmem:[%s9316_s1 + $0xe10] sm:$0xff]  }
 0x1a4   :  { %6963 = vmatpush3.bf16.msra.mxu0 %v7519_v19  ;;  %5623 = vmatmul.mubr.bf16.vlgmr.msra.gmra.mrb[48].mxu1 %v1401_v23  ;;  %v7563_v19 = vld [vmem:[%s9316_s1 + $0xed8] sm:$0xff]   ;;  %v7567_v23 = vld [vmem:[%s9316_s1 + $0xee0] sm:$0xff]  }
 0x1a5   :  { %6964 = vmatprep.subr.bf16.mxu0 %v7521_v24  ;;  %6985 = vmatpush3.bf16.msra.mxu1 %v7520_v21  ;;  %v7565_v21 = vld [vmem:[%s9316_s1 + $0xe98] sm:$0xff]   ;;  %v7568_v24 = vld [vmem:[%s9316_s1 + $0xe20] sm:$0xff]  }
 0x1a6   :  { %5662 = vmatprep.mubr.bf16.mxu0 %v1400_v27  ;;  %6986 = vmatprep.subr.bf16.mxu1 %v7522_v26  ;;  %v7570_v26 = vld [vmem:[%s9316_s1 + $0xe68] sm:$0xff]  }
 0x1a7   :  { %5702 = vmatprep.mubr.bf16.mxu1 %v1404_v30  ;;  %v7571_v27 = vld [vmem:[%s9316_s1 + $0xee8] sm:$0xff]  }
 0x1a8   :  { %6965 = vmatpush3.bf16.msra.mxu0 %v7523_v28 }
 0x1a9   :  { %6966 = vmatprep.subr.bf16.mxu0 %v7525_v31  ;;  %6987 = vmatpush3.bf16.msra.mxu1 %v7524_v29  ;;  %v7572_v29 = vld [vmem:[%s9316_s1 + $0xe28] sm:$0xff]   ;;  %v7574_v31 = vld [vmem:[%s9316_s1 + $0xe70] sm:$0xff]  }
 0x1aa   :  { %6988 = vmatprep.subr.bf16.mxu1 %v7526_v32 }
 0x1ac   :  { %6967 = vmatpush3.bf16.msra.mxu0 %v7527_v33 }
 0x1ad   :  { %6968 = vmatprep.subr.bf16.mxu0 %v7529_v36  ;;  %6989 = vmatpush3.bf16.msra.mxu1 %v7528_v34 }
 0x1ae   :  { %6990 = vmatprep.subr.bf16.mxu1 %v7530_v37  ;;  %v7573_v37 = vld [vmem:[%s9316_s1 + $0xea8] sm:$0xff]  }
 0x1b0   :  { %6969 = vmatpush3.bf16.msra.mxu0 %v7531_v38 }
 0x1b1   :  { %6970 = vmatprep.subr.bf16.mxu0 %v7533_v40  ;;  %6991 = vmatpush3.bf16.msra.mxu1 %v7532_v39  ;;  %v7575_v39 = vld [vmem:[%s9316_s1 + $0xef0] sm:$0xff]  }
 0x1b2   :  { %6992 = vmatprep.subr.bf16.mxu1 %v7534_v41 }
 0x1b4   :  { %6971 = vmatpush3.bf16.msra.mxu0 %v7535_v42 }
 0x1b5   :  { %6972 = vmatprep.subr.bf16.mxu0 %v7537_v44  ;;  %6993 = vmatpush3.bf16.msra.mxu1 %v7536_v43  ;;  %v7576_v43 = vld [vmem:[%s9316_s1 + $0xe30] sm:$0xff]  }
 0x1b6   :  { %v6670_v46 = vpop.f32.mrb[24].mxu0  ;;  %6994 = vmatprep.subr.bf16.mxu1 %v7538_v45  ;;  %v7578_v45 = vld [vmem:[%s9316_s1 + $0xe78] sm:$0xff]  }
 0x1b7   :  { %v6671_v48 = vpop.f32.mrb[25].mxu0  ;;  %v6692_v50 = vpop.f32.mrb[24].mxu1 }
 0x1b8   :  { %v6672_v51 = vadd.f32 %v6671_v48, %v6670_v46  ;;  %v6673_v52 = vpop.f32.mrb[26].mxu0  ;;  %v6693_v55 = vpop.f32.mrb[25].mxu1  ;;  %6973 = vmatpush3.bf16.msra.mxu0 %v7539_v47  ;;  %v7577_v47 = vld [vmem:[%s9316_s1 + $0xeb0] sm:$0xff]   ;;  %v7579_v48 = vld [vmem:[%s9316_s1 + $0xef8] sm:$0xff]  }
 0x1b9   :  { %v6674_v56 = vpop.f32.mrb[27].mxu0  ;;  %v6694_v58 = vadd.f32 %v6693_v55, %v6692_v50  ;;  %v6695_v59 = vpop.f32.mrb[26].mxu1  ;;  %6974 = vmatprep.subr.bf16.mxu0 %v7541_v53  ;;  %6995 = vmatpush3.bf16.msra.mxu1 %v7540_v49  ;;  %v7580_v49 = vld [vmem:[%s9316_s1 + $0xe38] sm:$0xff]   ;;  %v7582_v52 = vld [vmem:[%s9316_s1 + $0xf40] sm:$0xff]  }
 0x1ba   :  { %v5105_v57 = vadd.f32 %v6672_v51, %v8976_v6  ;;  %v6696_v61 = vpop.f32.mrb[27].mxu1  ;;  %6996 = vmatprep.subr.bf16.mxu1 %v7542_v54  ;;  %v7551_v6 = vld [vmem:[%s9316_s1 + $0xec0] sm:$0xff]   ;;  %v22_v50 = vld [vmem:[%s9317_s0 + $0x38] sm:$0xff] }
 0x1bb   :  { %v1412_v51 = vrot.slane %v22_v50, %v7726_v35  ;;  %v1405_v53 = vcombine.high %v22_v50, %v22_v50  ;;  %v7581_v54 = vld [vmem:[%s9316_s1 + $0xeb8] sm:$0xff]  }
 0x1bc   :  { %v9087_v63 = vadd.f32 %v6694_v58, %v5105_v57  ;;  %6975 = vmatpush3.bf16.msra.mxu0 %v7543_v60  ;;  %v7583_v57 = vld [vmem:[%s9316_s1 + $0xfc0] sm:$0xff]  }
 0x1bd   :  { %6976 = vmatprep.subr.bf16.mxu0 %v7545_v0  ;;  %6997 = vmatpush3.bf16.msra.mxu1 %v7544_v62  ;;  %v1420_v55 = vcombine.high %v1412_v51, %v1412_v51  ;;  %v1428_v56 = vrot.slane %v1412_v51, %v7726_v35  ;;  %v9214_v58 = vrot.slane %v1405_v53, %v7726_v35  ;;  %v7584_v60 = vld [vmem:[%s9316_s1 + $0xf00] sm:$0xff]  }
 0x1be   :  { %6998 = vmatprep.subr.bf16.mxu1 %v7546_v1  ;;  %v7585_v1 = vld [vmem:[%s9316_s1 + $0xf80] sm:$0xff]  }
 0x1bf   :  { %v1442_v59 = vrot.slane %v1420_v55, %v7726_v35  ;;  %v1421_v61 = vcombine.high %v9214_v58, %v9214_v58  ;;  %v1450_v62 = vcombine.high %v1428_v56, %v1428_v56 }
 0x1c0   :  { %6977 = vmatpush3.bf16.msra.mxu0 %v7547_v2 }
 0x1c1   :  { %7006 = vmatprep.subr.bf16.mxu0 %v7550_v5  ;;  %6999 = vmatpush3.bf16.msra.mxu1 %v7548_v3  ;;  %v1452_v0 = vcombine.high %v1442_v59, %v1442_v59  ;;  %v1449_v2 = vrot.slane %v1421_v61, %v7726_v35  ;;  %v7587_v3 = vld [vmem:[%s9316_s1 + $0xfc8] sm:$0xff]  }
 0x1c2   :  { %7028 = vmatprep.subr.bf16.mxu1 %v7551_v6  ;;  %v7590_v6 = vld [vmem:[%s9316_s1 + $0xf50] sm:$0xff]  }
 0x1c3   :  { %5663 = vmatmul.mubr.bf16.vlgmr.msra.gmra.mrb[52].mxu0 %v1386_v4  ;;  %v7588_v4 = vld [vmem:[%s9316_s1 + $0xf08] sm:$0xff]   ;;  %v1453_v5 = vcombine.high %v1449_v2, %v1449_v2 }
 0x1c4   :  { %7007 = vmatpush3.bf16.msra.mxu0 %v7552_v7  ;;  %5703 = vmatmul.mubr.bf16.vlgmr.msra.gmra.mrb[52].mxu1 %v1402_v9  ;;  %v7589_v7 = vld [vmem:[%s9316_s1 + $0xf88] sm:$0xff]   ;;  %v7592_v9 = vld [vmem:[%s9316_s1 + $0xf10] sm:$0xff]  }
 0x1c5   :  { %7008 = vmatprep.subr.bf16.mxu0 %v7554_v10  ;;  %7029 = vmatpush3.bf16.msra.mxu1 %v7553_v8  ;;  %v7591_v8 = vld [vmem:[%s9316_s1 + $0xfd0] sm:$0xff]   ;;  %v7594_v10 = vld [vmem:[%s9316_s1 + $0xf58] sm:$0xff]  }
 0x1c6   :  { %7030 = vmatprep.subr.bf16.mxu1 %v7555_v11  ;;  %5742 = vmatprep.mubr.bf16.mxu0 %v1442_v59  ;;  %v7593_v11 = vld [vmem:[%s9316_s1 + $0xf90] sm:$0xff]  }
 0x1c7   :  { %5782 = vmatprep.mubr.bf16.mxu1 %v1452_v0 }
 0x1c8   :  { %7009 = vmatpush3.bf16.msra.mxu0 %v7556_v12  ;;  %v7595_v12 = vld [vmem:[%s9316_s1 + $0xfd8] sm:$0xff]  }
 0x1c9   :  { %7010 = vmatprep.subr.bf16.mxu0 %v7558_v14  ;;  %7031 = vmatpush3.bf16.msra.mxu1 %v7557_v13  ;;  %v7596_v13 = vld [vmem:[%s9316_s1 + $0xf18] sm:$0xff]   ;;  %v7598_v14 = vld [vmem:[%s9316_s1 + $0xf60] sm:$0xff]  }
 0x1ca   :  { %7032 = vmatprep.subr.bf16.mxu1 %v7559_v15  ;;  %v7597_v15 = vld [vmem:[%s9316_s1 + $0xf98] sm:$0xff]  }
 0x1cc   :  { %7011 = vmatpush3.bf16.msra.mxu0 %v7560_v16  ;;  %v7599_v16 = vld [vmem:[%s9316_s1 + $0xfe0] sm:$0xff]  }
 0x1cd   :  { %7012 = vmatprep.subr.bf16.mxu0 %v7562_v18  ;;  %7033 = vmatpush3.bf16.msra.mxu1 %v7561_v17  ;;  %v7600_v17 = vld [vmem:[%s9316_s1 + $0xf20] sm:$0xff]   ;;  %v7602_v18 = vld [vmem:[%s9316_s1 + $0xf68] sm:$0xff]  }
 0x1ce   :  { %7034 = vmatprep.subr.bf16.mxu1 %v7563_v19  ;;  %v7601_v19 = vld [vmem:[%s9316_s1 + $0xfa0] sm:$0xff]  }
 0x1d0   :  { %7013 = vmatpush3.bf16.msra.mxu0 %v7564_v20 }
 0x1d1   :  { %7014 = vmatprep.subr.bf16.mxu0 %v7566_v22  ;;  %7035 = vmatpush3.bf16.msra.mxu1 %v7565_v21  ;;  %v7603_v21 = vld [vmem:[%s9316_s1 + $0xfe8] sm:$0xff]  }
 0x1d2   :  { %7036 = vmatprep.subr.bf16.mxu1 %v7567_v23  ;;  %v7604_v23 = vld [vmem:[%s9316_s1 + $0xf28] sm:$0xff]  }
 0x1d4   :  { %7015 = vmatpush3.bf16.msra.mxu0 %v7568_v24 }
 0x1d5   :  { %7016 = vmatprep.subr.bf16.mxu0 %v7570_v26  ;;  %7037 = vmatpush3.bf16.msra.mxu1 %v7569_v25 }
 0x1d6   :  { %v6714_v28 = vpop.f32.mrb[28].mxu0  ;;  %7038 = vmatprep.subr.bf16.mxu1 %v7571_v27  ;;  %v7605_v27 = vld [vmem:[%s9316_s1 + $0xfa8] sm:$0xff]  }
 0x1d7   :  { %v6715_v30 = vpop.f32.mrb[29].mxu0  ;;  %v6736_v32 = vpop.f32.mrb[28].mxu1 }
 0x1d8   :  { %v6716_v33 = vadd.f32 %v6715_v30, %v6714_v28  ;;  %v6717_v34 = vpop.f32.mrb[30].mxu0  ;;  %v6737_v36 = vpop.f32.mrb[29].mxu1  ;;  %7017 = vmatpush3.bf16.msra.mxu0 %v7572_v29  ;;  %v7606_v28 = vld [vmem:[%s9316_s1 + $0xf70] sm:$0xff]  }
 0x1d9   :  { %v6718_v38 = vpop.f32.mrb[31].mxu0  ;;  %v6738_v41 = vadd.f32 %v6737_v36, %v6736_v32  ;;  %v6739_v42 = vpop.f32.mrb[30].mxu1  ;;  %7018 = vmatprep.subr.bf16.mxu0 %v7574_v31  ;;  %7039 = vmatpush3.bf16.msra.mxu1 %v7573_v37  ;;  %v7607_v34 = vld [vmem:[%s9316_s1 + $0xff0] sm:$0xff]  }
 0x1da   :  { %v5185_v40 = vadd.f32 %v6716_v33, %v9087_v63  ;;  %v6740_v44 = vpop.f32.mrb[31].mxu1  ;;  %7040 = vmatprep.subr.bf16.mxu1 %v7575_v39  ;;  %v7586_v63 = vld [vmem:[%s9316_s1 + $0xf48] sm:$0xff]   ;;  %v7608_v37 = vld [vmem:[%s9316_s1 + $0xf30] sm:$0xff]   ;;  %v7610_v39 = vld [vmem:[%s9316_s1 + $0xf78] sm:$0xff]  }
 0x1db   :  { %v7612_v42 = vld [vmem:[%s9316_s1 + $0xf38] sm:$0xff]  }
 0x1dc   :  { %v9188_v46 = vadd.f32 %v6738_v41, %v5185_v40  ;;  %7019 = vmatpush3.bf16.msra.mxu0 %v7576_v43  ;;  %v7609_v40 = vld [vmem:[%s9316_s1 + $0xfb0] sm:$0xff]   ;;  %v7611_v41 = vld [vmem:[%s9316_s1 + $0xff8] sm:$0xff]   ;;  %v1435_v43 = vrot.slane %v9214_v58, %v7726_v35 }
 0x1dd   :  { %7020 = vmatprep.subr.bf16.mxu0 %v7578_v45  ;;  %7041 = vmatpush3.bf16.msra.mxu1 %v7577_v47  ;;  %v7613_v44 = vld [vmem:[%s9316_s1 + $0xfb8] sm:$0xff]  }
 0x1de   :  { %7042 = vmatprep.subr.bf16.mxu1 %v7579_v48  ;;  %v1451_v45 = vcombine.high %v1435_v43, %v1435_v43 }
 0x1e0   :  { %7021 = vmatpush3.bf16.msra.mxu0 %v7580_v49 }
 0x1e1   :  { %7050 = vmatprep.subr.bf16.mxu0 %v7582_v52  ;;  %7043 = vmatpush3.bf16.msra.mxu1 %v7581_v54 }
 0x1e2   :  { %7072 = vmatprep.subr.bf16.mxu1 %v7583_v57 }
 0x1e3   :  { %5743 = vmatmul.mubr.bf16.vlgmr.msra.gmra.mrb[56].mxu0 %v1428_v56 }
 0x1e4   :  { %7051 = vmatpush3.bf16.msra.mxu0 %v7584_v60  ;;  %5783 = vmatmul.mubr.bf16.vlgmr.msra.gmra.mrb[56].mxu1 %v1450_v62 }
 0x1e5   :  { %7052 = vmatprep.subr.bf16.mxu0 %v7586_v63  ;;  %7073 = vmatpush3.bf16.msra.mxu1 %v7585_v1 }
 0x1e6   :  { %5822 = vmatprep.mubr.bf16.mxu0 %v1449_v2  ;;  %7074 = vmatprep.subr.bf16.mxu1 %v7587_v3 }
 0x1e7   :  { %5862 = vmatprep.mubr.bf16.mxu1 %v1453_v5 }
 0x1e8   :  { %7053 = vmatpush3.bf16.msra.mxu0 %v7588_v4 }
 0x1e9   :  { %7054 = vmatprep.subr.bf16.mxu0 %v7590_v6  ;;  %7075 = vmatpush3.bf16.msra.mxu1 %v7589_v7 }
 0x1ea   :  { %7076 = vmatprep.subr.bf16.mxu1 %v7591_v8 }
 0x1ec   :  { %7055 = vmatpush3.bf16.msra.mxu0 %v7592_v9 }
 0x1ed   :  { %7056 = vmatprep.subr.bf16.mxu0 %v7594_v10  ;;  %7077 = vmatpush3.bf16.msra.mxu1 %v7593_v11 }
 0x1ee   :  { %7078 = vmatprep.subr.bf16.mxu1 %v7595_v12 }
 0x1f0   :  { %7057 = vmatpush3.bf16.msra.mxu0 %v7596_v13 }
 0x1f1   :  { %7058 = vmatprep.subr.bf16.mxu0 %v7598_v14  ;;  %7079 = vmatpush3.bf16.msra.mxu1 %v7597_v15 }
 0x1f2   :  { %7080 = vmatprep.subr.bf16.mxu1 %v7599_v16 }
 0x1f4   :  { %7059 = vmatpush3.bf16.msra.mxu0 %v7600_v17 }
 0x1f5   :  { %7060 = vmatprep.subr.bf16.mxu0 %v7602_v18  ;;  %7081 = vmatpush3.bf16.msra.mxu1 %v7601_v19 }
 0x1f6   :  { %v6758_v20 = vpop.f32.mrb[32].mxu0  ;;  %7082 = vmatprep.subr.bf16.mxu1 %v7603_v21 }
 0x1f7   :  { %v6759_v22 = vpop.f32.mrb[33].mxu0  ;;  %v6780_v24 = vpop.f32.mrb[32].mxu1 }
 0x1f8   :  { %v6760_v25 = vadd.f32 %v6759_v22, %v6758_v20  ;;  %v6761_v26 = vpop.f32.mrb[34].mxu0  ;;  %v6781_v29 = vpop.f32.mrb[33].mxu1  ;;  %7061 = vmatpush3.bf16.msra.mxu0 %v7604_v23 }
 0x1f9   :  { %v6762_v30 = vpop.f32.mrb[35].mxu0  ;;  %v6782_v32 = vadd.f32 %v6781_v29, %v6780_v24  ;;  %v6783_v33 = vpop.f32.mrb[34].mxu1  ;;  %7062 = vmatprep.subr.bf16.mxu0 %v7606_v28  ;;  %7083 = vmatpush3.bf16.msra.mxu1 %v7605_v27 }
 0x1fa   :  { %v5265_v31 = vadd.f32 %v6760_v25, %v9188_v46  ;;  %v6784_v36 = vpop.f32.mrb[35].mxu1  ;;  %7084 = vmatprep.subr.bf16.mxu1 %v7607_v34 }
 0x1fc   :  { %v5305_v38 = vadd.f32 %v6782_v32, %v5265_v31  ;;  %7063 = vmatpush3.bf16.msra.mxu0 %v7608_v37 }
 0x1fd   :  { %7064 = vmatprep.subr.bf16.mxu0 %v7610_v39  ;;  %7085 = vmatpush3.bf16.msra.mxu1 %v7609_v40 }
 0x1fe   :  { %7086 = vmatprep.subr.bf16.mxu1 %v7611_v41 }
 0x200   :  { %7065 = vmatpush3.bf16.msra.mxu0 %v7612_v42 }
 0x201   :  { %7087 = vmatpush3.bf16.msra.mxu1 %v7613_v44 }
 0x203   :  { %5823 = vmatmul.mubr.bf16.vlgmr.msra.gmra.mrb[60].mxu0 %v1435_v43 }
 0x204   :  { %5863 = vmatmul.mubr.bf16.vlgmr.msra.gmra.mrb[60].mxu1 %v1451_v45 }
 0x216   :  { %v6802_v46 = vpop.f32.mrb[36].mxu0 }
 0x217   :  { %v6803_v47 = vpop.f32.mrb[37].mxu0  ;;  %v6824_v48 = vpop.f32.mrb[36].mxu1 }
 0x218   :  { %v6804_v49 = vadd.f32 %v6803_v47, %v6802_v46  ;;  %v6805_v50 = vpop.f32.mrb[38].mxu0  ;;  %v6825_v51 = vpop.f32.mrb[37].mxu1 }
 0x219   :  { %v6806_v52 = vpop.f32.mrb[39].mxu0  ;;  %v6826_v35 = vadd.f32 %v6825_v51, %v6824_v48  ;;  %v6827_v54 = vpop.f32.mrb[38].mxu1 }
 0x21a   :  { %v5345_v53 = vadd.f32 %v6804_v49, %v5305_v38  ;;  %v6828_v55 = vpop.f32.mrb[39].mxu1 }
 0x21c   :  { %v5385_v56 = vadd.f32 %v6826_v35, %v5345_v53 }
 0x236   :  { %v6846_v57 = vpop.f32.mrb[40].mxu0 }
 0x237   :  { %v6847_v58 = vpop.f32.mrb[41].mxu0  ;;  %v6868_v59 = vpop.f32.mrb[40].mxu1 }
 0x238   :  { %v6848_v60 = vadd.f32 %v6847_v58, %v6846_v57  ;;  %v6849_v61 = vpop.f32.mrb[42].mxu0  ;;  %v6869_v62 = vpop.f32.mrb[41].mxu1 }
 0x239   :  { %v6850_v63 = vpop.f32.mrb[43].mxu0  ;;  %v6870_v1 = vadd.f32 %v6869_v62, %v6868_v59  ;;  %v6871_v2 = vpop.f32.mrb[42].mxu1 }
 0x23a   :  { %v5425_v0 = vadd.f32 %v6848_v60, %v5385_v56  ;;  %v6872_v3 = vpop.f32.mrb[43].mxu1 }
 0x23c   :  { %v5465_v4 = vadd.f32 %v6870_v1, %v5425_v0 }
 0x256   :  { %v6890_v5 = vpop.f32.mrb[44].mxu0 }
 0x257   :  { %v6891_v6 = vpop.f32.mrb[45].mxu0  ;;  %v6912_v7 = vpop.f32.mrb[44].mxu1 }
 0x258   :  { %v6892_v8 = vadd.f32 %v6891_v6, %v6890_v5  ;;  %v6893_v9 = vpop.f32.mrb[46].mxu0  ;;  %v6913_v10 = vpop.f32.mrb[45].mxu1 }
 0x259   :  { %v6894_v11 = vpop.f32.mrb[47].mxu0  ;;  %v6914_v13 = vadd.f32 %v6913_v10, %v6912_v7  ;;  %v6915_v14 = vpop.f32.mrb[46].mxu1 }
 0x25a   :  { %v5505_v12 = vadd.f32 %v6892_v8, %v5465_v4  ;;  %v6916_v15 = vpop.f32.mrb[47].mxu1 }
 0x25c   :  { %v5545_v16 = vadd.f32 %v6914_v13, %v5505_v12 }
 0x276   :  { %v6934_v17 = vpop.f32.mrb[48].mxu0 }
 0x277   :  { %v6935_v18 = vpop.f32.mrb[49].mxu0  ;;  %v6956_v19 = vpop.f32.mrb[48].mxu1 }
 0x278   :  { %v6936_v20 = vadd.f32 %v6935_v18, %v6934_v17  ;;  %v6937_v21 = vpop.f32.mrb[50].mxu0  ;;  %v6957_v22 = vpop.f32.mrb[49].mxu1 }
 0x279   :  { %v6938_v23 = vpop.f32.mrb[51].mxu0  ;;  %v6958_v25 = vadd.f32 %v6957_v22, %v6956_v19  ;;  %v6959_v26 = vpop.f32.mrb[50].mxu1 }
 0x27a   :  { %v5585_v24 = vadd.f32 %v6936_v20, %v5545_v16  ;;  %v6960_v27 = vpop.f32.mrb[51].mxu1 }
 0x27c   :  { %v5625_v28 = vadd.f32 %v6958_v25, %v5585_v24 }
 0x296   :  { %v6978_v29 = vpop.f32.mrb[52].mxu0 }
 0x297   :  { %v6979_v30 = vpop.f32.mrb[53].mxu0  ;;  %v7000_v31 = vpop.f32.mrb[52].mxu1 }
 0x298   :  { %v6980_v32 = vadd.f32 %v6979_v30, %v6978_v29  ;;  %v6981_v33 = vpop.f32.mrb[54].mxu0  ;;  %v7001_v34 = vpop.f32.mrb[53].mxu1 }
 0x299   :  { %v6982_v36 = vpop.f32.mrb[55].mxu0  ;;  %v7002_v38 = vadd.f32 %v7001_v34, %v7000_v31  ;;  %v7003_v39 = vpop.f32.mrb[54].mxu1 }
 0x29a   :  { %v5665_v37 = vadd.f32 %v6980_v32, %v5625_v28  ;;  %v7004_v40 = vpop.f32.mrb[55].mxu1 }
 0x29c   :  { %v5705_v41 = vadd.f32 %v7002_v38, %v5665_v37 }
 0x2b6   :  { %v7022_v42 = vpop.f32.mrb[56].mxu0 }
 0x2b7   :  { %v7023_v43 = vpop.f32.mrb[57].mxu0  ;;  %v7044_v44 = vpop.f32.mrb[56].mxu1 }
 0x2b8   :  { %v7024_v45 = vadd.f32 %v7023_v43, %v7022_v42  ;;  %v7025_v46 = vpop.f32.mrb[58].mxu0  ;;  %v7045_v47 = vpop.f32.mrb[57].mxu1 }
 0x2b9   :  { %v7026_v48 = vpop.f32.mrb[59].mxu0  ;;  %v7046_v50 = vadd.f32 %v7045_v47, %v7044_v44  ;;  %v7047_v51 = vpop.f32.mrb[58].mxu1 }
 0x2ba   :  { %v5745_v49 = vadd.f32 %v7024_v45, %v5705_v41  ;;  %v7048_v52 = vpop.f32.mrb[59].mxu1 }
 0x2bc   :  { %v5785_v53 = vadd.f32 %v7046_v50, %v5745_v49 }
 0x2d6   :  { %v7066_v35 = vpop.f32.mrb[60].mxu0 }
 0x2d7   :  { %v7067_v54 = vpop.f32.mrb[61].mxu0  ;;  %v7088_v55 = vpop.f32.mrb[60].mxu1 }
 0x2d8   :  { %v7068_v56 = vadd.f32 %v7067_v54, %v7066_v35  ;;  %v7069_v57 = vpop.f32.mrb[62].mxu0  ;;  %v7089_v58 = vpop.f32.mrb[61].mxu1 }
 0x2d9   :  { %v7070_v59 = vpop.f32.mrb[63].mxu0  ;;  %v7090_v61 = vadd.f32 %v7089_v58, %v7088_v55  ;;  %v7091_v62 = vpop.f32.mrb[62].mxu1 }
 0x2da   :  { %v5825_v60 = vadd.f32 %v7068_v56, %v5785_v53  ;;  %v7092_v63 = vpop.f32.mrb[63].mxu1 }
 0x2dc   :  { %v5865_v0 = vadd.f32 %v7090_v61, %v5825_v60 }
 0x2de   :  { %v5870_v1 = vmax.f32 %v5865_v0, 0.0 }
 0x2e0   :  { %v5871_v2 = vpack.c.bf16 %v5870_v1, %v5870_v1 }
 0x2e2   :  { %5872 = vst [vmem:[%s9319_s3] sm:$0x1] %v5871_v2 }

</bundles_post_ra>
